<compile_context>
chip_gen: v7x
topology: tpu7x:2x2x1
jax: 0.10.0
libtpu: 0.0.40
codegen_flags: <defaults>
</compile_context>

<pallas_src>
import functools

import jax
import jax.numpy as jnp
from jax.experimental import pallas as pl
from jax.experimental.pallas import tpu as pltpu


_BLOCK_B = 32          # batch elements per grid step (lane-axis fold factor)


def _elu(v):
    return jnp.where(v > 0.0, v, jnp.exp(jnp.minimum(v, 0.0)) - 1.0)


# ---------------------------------------------------------------------------
# Fused per-(branch, batch-tile) kernel.
#
# Folded layout: the lane axis of every big tensor enumerates
#   (padded H row) * (padded W column, width 37) * (batch element in the tile)
# so every convolution tap / pooling window element is a static lane slice and
# conv1 collapses into a single MXU matmul.
# ---------------------------------------------------------------------------
def braingrid_kernel(x_ref, mask_ref, w0_ref, b0_ref, w1_ref, b1_ref,
                     s1_ref, t1_ref, w2_ref, b2_ref, s2_ref, t2_ref,
                     out_ref, patches_ref, r1p_ref, *, bt):
    ws = 37 * bt           # lane stride of one padded-width (37) H row
    npf = 12 * ws          # folded extent of the conv1 input (12 H rows)
    no = 9 * ws            # folded extent of the conv1 output (9 H rows)

    # ---- conv0: depthwise 9-tap along H + bias + ELU (VPU).  The constant
    #      mask zeroes exactly the positions that the conv0 H-padding and
    #      ZeroPad2d((2,3,1,1)) require to be zero. ----
    w0 = w0_ref[0]                                       # (9, 9, 1) [tap,ch,1]
    acc0 = w0[0] * x_ref[0, 0, :, 0:npf]
    for k in range(1, 9):
        acc0 = acc0 + w0[k] * x_ref[0, 0, :, k * ws:k * ws + npf]
    a0 = _elu(acc0 + b0_ref[0]) * mask_ref[...]          # (9, npf)
    # dropout(0.25): identity (inference mode)

    # ---- conv1 (grouped 9 -> 72, kernel 3x6) as ONE MXU matmul:
    #      im2col with K = 9*3*6 = 162 and N = 9*37*bt ----
    for kh in range(3):
        for kw in range(6):
            t = kh * 6 + kw
            off = (kh * 37 + kw) * bt
            patches_ref[9 * t:9 * t + 9, :] = a0[:, off:off + no]
    v1 = jnp.dot(w1_ref[0], patches_ref[...],
                 preferred_element_type=jnp.float32)     # (72, no)
    v1 = _elu(v1 + b1_ref[0]) * s1_ref[0] + t1_ref[0]    # bias, ELU, BN1
    # dropout(0.25): identity (inference mode)

    # ---- AvgPool2d((3,6)) fused with ZeroPad2d((1,1,1,0)): pooled values
    #      land in a folded (4 x 7)-grid scratch that feeds conv2. ----
    r1p_ref[...] = jnp.zeros_like(r1p_ref)               # small (72, 32*bt)
    for i in range(3):
        rsum = (v1[:, (3 * i) * ws:(3 * i + 1) * ws]
                + v1[:, (3 * i + 1) * ws:(3 * i + 2) * ws]
                + v1[:, (3 * i + 2) * ws:(3 * i + 3) * ws])   # (72, 37*bt)
        for j in range(5):
            psum = rsum[:, (6 * j) * bt:(6 * j + 1) * bt]
            for dw in range(1, 6):
                psum = psum + rsum[:, (6 * j + dw) * bt:(6 * j + dw + 1) * bt]
            dst = ((i + 1) * 7 + (j + 1)) * bt
            r1p_ref[:, dst:dst + bt] = psum * (1.0 / 18.0)

    # ---- conv2: depthwise (2,3) + bias + ELU + BN2 (VPU) ----
    r1p = r1p_ref[...]                                   # (72, 32*bt)
    nc = 21 * bt                                         # 3 x 7 folded output
    w2 = w2_ref[0]                                       # (6, 72, 1) [tap,ch,1]
    acc2 = w2[0] * r1p[:, 0:nc]
    for t in range(1, 6):
        kh, kw = divmod(t, 3)
        off = (kh * 7 + kw) * bt
        acc2 = acc2 + w2[t] * r1p[:, off:off + nc]
    v2 = _elu(acc2 + b2_ref[0]) * s2_ref[0] + t2_ref[0]

    # ---- AvgPool2d((2,4)) -> dense (72, bt) feature tile ----
    feat = v2[:, 0:bt]
    for i in range(2):
        for j in range(4):
            if i == 0 and j == 0:
                continue
            off = (i * 7 + j) * bt
            feat = feat + v2[:, off:off + bt]
    out_ref[0, 0] = feat * 0.125


# ---------------------------------------------------------------------------
# Wrapper-side layout helpers (plain XLA).
# ---------------------------------------------------------------------------
def _fold_input(xb, bt):
    """(B, C=9, H=9, W=32) -> (T, 9, 20*37*bt) zero-padded folded layout."""
    b = xb.shape[0]
    n_tiles = b // bt
    xp = jnp.pad(xb, ((0, 0), (0, 0), (5, 6), (2, 3)))   # (B, 9, 20, 37)
    xf = jnp.transpose(xp, (1, 2, 3, 0))                 # (9, 20, 37, B)
    xf = xf.reshape(9, 20, 37, n_tiles, bt)
    xf = jnp.transpose(xf, (3, 0, 1, 2, 4))              # (T, 9, 20, 37, bt)
    return xf.reshape(n_tiles, 9, 20 * 37 * bt)


def _make_mask(bt):
    m = jnp.zeros((12, 37), jnp.float32).at[1:10, 2:34].set(1.0)
    m = jnp.broadcast_to(m[:, :, None], (12, 37, bt))
    return m.reshape(1, 12 * 37 * bt)


def _run_branches(xin, mask, branch_params, bt, n_tiles):
    wmap2 = lambda br, i: (br, 0, 0)
    wmap3 = lambda br, i: (br, 0, 0, 0)
    grid_spec = pltpu.PrefetchScalarGridSpec(
        num_scalar_prefetch=0,
        grid=(2, n_tiles),
        in_specs=[
            pl.BlockSpec((1, 1, 9, 740 * bt), lambda br, i: (br, i, 0, 0)),
            pl.BlockSpec((1, 444 * bt), lambda br, i: (0, 0)),
            pl.BlockSpec((1, 9, 9, 1), wmap3),      # conv0 weight  [tap,ch,1]
            pl.BlockSpec((1, 9, 1), wmap2),         # conv0 bias
            pl.BlockSpec((1, 72, 162), wmap2),      # conv1 block-diag matrix
            pl.BlockSpec((1, 72, 1), wmap2),        # conv1 bias
            pl.BlockSpec((1, 72, 1), wmap2),        # BN1 scale
            pl.BlockSpec((1, 72, 1), wmap2),        # BN1 shift
            pl.BlockSpec((1, 6, 72, 1), wmap3),     # conv2 weight  [tap,ch,1]
            pl.BlockSpec((1, 72, 1), wmap2),        # conv2 bias
            pl.BlockSpec((1, 72, 1), wmap2),        # BN2 scale
            pl.BlockSpec((1, 72, 1), wmap2),        # BN2 shift
        ],
        out_specs=pl.BlockSpec((1, 1, 72, bt), lambda br, i: (br, i, 0, 0)),
        scratch_shapes=[
            pltpu.VMEM((162, 9 * 37 * bt), jnp.float32),   # conv1 im2col
            pltpu.VMEM((72, 32 * bt), jnp.float32),        # pooled+padded grid
        ],
    )
    return pl.pallas_call(
        functools.partial(braingrid_kernel, bt=bt),
        out_shape=jax.ShapeDtypeStruct((2, n_tiles, 72, bt), jnp.float32),
        grid_spec=grid_spec,
        compiler_params=pltpu.CompilerParams(
            dimension_semantics=("parallel", "parallel")),
    )(xin, mask, *branch_params)


# ---------------------------------------------------------------------------
# Full forward pass.
# ---------------------------------------------------------------------------
@jax.jit
def brain_grid_net_psd32(x, params):
    """x: (B, 9, 9, 32) PSD input (NCHW).  Returns (B, 5) class probabilities."""
    b = x.shape[0]
    bt = _BLOCK_B if b >= _BLOCK_B else b
    bpad = -(-b // bt) * bt
    if bpad != b:
        x = jnp.pad(x, ((0, bpad - b), (0, 0), (0, 0), (0, 0)))
    n_tiles = bpad // bt

    x1 = x                                   # branch 1: channels = dim 1
    x2 = jnp.transpose(x, (0, 2, 1, 3))      # branch 2: x.permute(0, 2, 1, 3)
    xin = jnp.stack([_fold_input(x1, bt), _fold_input(x2, bt)], axis=0)
    mask = _make_mask(bt)

    out = _run_branches(xin, mask, params["branch"], bt, n_tiles)  # (2,T,72,bt)

    feats = jnp.transpose(out, (1, 3, 0, 2)).reshape(bpad, 144)[:b]
    logits = feats @ params["fc_w"] + params["fc_b"]     # tiny FC in plain XLA
    return jax.nn.softmax(logits, axis=-1)


# ---------------------------------------------------------------------------
# Deterministic synthetic parameters (layouts pre-baked for the kernel).
# ---------------------------------------------------------------------------
def _branch_params(key):
    ks = jax.random.split(key, 14)
    n = lambda k, s, sc=0.2: sc * jax.random.normal(k, s, jnp.float32)

    W0 = n(ks[0], (9, 9))            # conv0 weight [out_ch, tap] (torch (9,1,9,1))
    b0 = n(ks[1], (9,), 0.1)
    W1 = n(ks[2], (72, 3, 6))        # conv1 weight (torch (72,1,3,6))
    b1 = n(ks[3], (72,), 0.1)
    m1 = n(ks[4], (72,), 0.1)
    v1 = 1.0 + 0.2 * jax.nn.sigmoid(jax.random.normal(ks[5], (72,)))
    g1 = 1.0 + n(ks[6], (72,), 0.1)
    e1 = n(ks[7], (72,), 0.1)
    W2 = n(ks[8], (72, 2, 3))        # conv2 weight (torch (72,1,2,3))
    b2 = n(ks[9], (72,), 0.1)
    m2 = n(ks[10], (72,), 0.1)
    v2 = 1.0 + 0.2 * jax.nn.sigmoid(jax.random.normal(ks[11], (72,)))
    g2 = 1.0 + n(ks[12], (72,), 0.1)
    e2 = n(ks[13], (72,), 0.1)

    # kernel layouts
    w0k = jnp.transpose(W0, (1, 0))[:, :, None]                    # (tap, ch, 1)
    b0k = b0[:, None]
    # conv1 as dense (72, 162) block-diagonal matrix; column = (kh*6+kw)*9 + g
    onehot = (jnp.arange(72)[:, None] // 8 ==
              jnp.arange(9)[None, :]).astype(jnp.float32)          # (72, 9)
    w1k = (W1.reshape(72, 18)[:, :, None] * onehot[:, None, :]).reshape(72, 162)
    b1k = b1[:, None]
    sc1 = g1 / jnp.sqrt(v1)                                        # eps = 0
    s1 = sc1[:, None]
    t1 = (e1 - m1 * sc1)[:, None]
    w2k = jnp.transpose(W2.reshape(72, 6), (1, 0))[:, :, None]     # (6, 72, 1)
    b2k = b2[:, None]
    sc2 = g2 / jnp.sqrt(v2)
    s2 = sc2[:, None]
    t2 = (e2 - m2 * sc2)[:, None]
    return (w0k, b0k, w1k, b1k, s1, t1, w2k, b2k, s2, t2)


def make_params(key):
    k1, k2, k3 = jax.random.split(key, 3)
    br1 = _branch_params(k1)
    br2 = _branch_params(k2)
    branch = tuple(jnp.stack([a, b], axis=0) for a, b in zip(br1, br2))
    Wfc = 0.2 * jax.random.normal(k3, (5, 144), jnp.float32)       # torch fc weight
    bfc = 0.1 * jax.random.normal(jax.random.fold_in(k3, 1), (5,), jnp.float32)
    return {
        "branch": branch,
        "fc_w": jnp.transpose(Wfc, (1, 0)),                        # (144, 5)
        "fc_b": bfc,                                               # (5,)
    }


if __name__ == "__main__":
    B = 2
    key = jax.random.PRNGKey(0)
    kx, kp = jax.random.split(key)
    # synthetic "10*log10(PSD)"-like input
    x = jax.random.normal(kx, (B, 9, 9, 32), dtype=jnp.float32)
    params = make_params(kp)

    out = brain_grid_net_psd32(x, params)
    out = jax.block_until_ready(out)

    assert out.shape == (B, 5)
    assert bool(jnp.all(jnp.isfinite(out)))
    assert bool(jnp.allclose(jnp.sum(out, axis=1), 1.0, atol=1e-5))
    print("KERNEL_OK")
</pallas_src>

<mosaic_0001>
module attributes {stable_mosaic.version = 11 : i64} {
  func.func @braingrid_kernel(%arg0: i32, %arg1: i32, %arg2: memref<1x1x9x1480xf32, #tpu.memory_space<vmem>>, %arg3: memref<1x888xf32, #tpu.memory_space<vmem>>, %arg4: memref<1x9x9x1xf32, #tpu.memory_space<vmem>>, %arg5: memref<1x9x1xf32, #tpu.memory_space<vmem>>, %arg6: memref<1x72x162xf32, #tpu.memory_space<vmem>>, %arg7: memref<1x72x1xf32, #tpu.memory_space<vmem>>, %arg8: memref<1x72x1xf32, #tpu.memory_space<vmem>>, %arg9: memref<1x72x1xf32, #tpu.memory_space<vmem>>, %arg10: memref<1x6x72x1xf32, #tpu.memory_space<vmem>>, %arg11: memref<1x72x1xf32, #tpu.memory_space<vmem>>, %arg12: memref<1x72x1xf32, #tpu.memory_space<vmem>>, %arg13: memref<1x72x1xf32, #tpu.memory_space<vmem>>, %arg14: memref<1x1x72x2xf32, #tpu.memory_space<vmem>>, %arg15: memref<162x666xf32, #tpu.memory_space<vmem>>, %arg16: memref<72x64xf32, #tpu.memory_space<vmem>>) attributes {dimension_semantics = [#tpu.dimension_semantics<parallel>, #tpu.dimension_semantics<parallel>], iteration_bounds = array<i64: 2, 1>, scalar_prefetch = 0 : i64, scratch_operands = 2 : i64, tpu.core_type = #tpu.core_type<tc>, window_params = [{transform_indices = @transform_0, window_bounds = array<i64: 1, 1, 9, 1480>}, {pipeline_mode = #tpu.pipeline_mode<synchronous>, transform_indices = @transform_1, window_bounds = array<i64: 1, 888>}, {transform_indices = @transform_2, window_bounds = array<i64: 1, 9, 9, 1>}, {transform_indices = @transform_3, window_bounds = array<i64: 1, 9, 1>}, {transform_indices = @transform_4, window_bounds = array<i64: 1, 72, 162>}, {transform_indices = @transform_5, window_bounds = array<i64: 1, 72, 1>}, {transform_indices = @transform_6, window_bounds = array<i64: 1, 72, 1>}, {transform_indices = @transform_7, window_bounds = array<i64: 1, 72, 1>}, {transform_indices = @transform_8, window_bounds = array<i64: 1, 6, 72, 1>}, {transform_indices = @transform_9, window_bounds = array<i64: 1, 72, 1>}, {transform_indices = @transform_10, window_bounds = array<i64: 1, 72, 1>}, {transform_indices = @transform_11, window_bounds = array<i64: 1, 72, 1>}, {transform_indices = @transform_12, window_bounds = array<i64: 1, 1, 72, 2>}]} {
    %c0 = arith.constant 0 : index
    %c0_0 = arith.constant 0 : index
    %c0_1 = arith.constant 0 : index
    %c0_2 = arith.constant 0 : index
    %0 = vector.load %arg4[%c0, %c0_0, %c0_1, %c0_2] : memref<1x9x9x1xf32, #tpu.memory_space<vmem>>, vector<1x9x9x1xf32>
    %1 = vector.shape_cast %0 : vector<1x9x9x1xf32> to vector<9x9x1xf32>
    %2 = vector.extract_strided_slice %1 {offsets = [0, 0, 0], sizes = [1, 9, 1], strides = [1, 1, 1]} : vector<9x9x1xf32> to vector<1x9x1xf32>
    %3 = vector.shape_cast %2 : vector<1x9x1xf32> to vector<9x1xf32>
    %c0_3 = arith.constant 0 : index
    %c0_4 = arith.constant 0 : index
    %c0_5 = arith.constant 0 : index
    %c0_6 = arith.constant 0 : index
    %4 = vector.load %arg2[%c0_3, %c0_4, %c0_5, %c0_6] : memref<1x1x9x1480xf32, #tpu.memory_space<vmem>>, vector<1x1x9x888xf32>
    %5 = vector.shape_cast %4 : vector<1x1x9x888xf32> to vector<9x888xf32>
    %6 = vector.broadcast %3 : vector<9x1xf32> to vector<9x888xf32>
    %7 = arith.mulf %6, %5 : vector<9x888xf32>
    %8 = vector.extract_strided_slice %1 {offsets = [1, 0, 0], sizes = [1, 9, 1], strides = [1, 1, 1]} : vector<9x9x1xf32> to vector<1x9x1xf32>
    %9 = vector.shape_cast %8 : vector<1x9x1xf32> to vector<9x1xf32>
    %c0_7 = arith.constant 0 : index
    %c0_8 = arith.constant 0 : index
    %c0_9 = arith.constant 0 : index
    %c74 = arith.constant 74 : index
    %10 = vector.load %arg2[%c0_7, %c0_8, %c0_9, %c74] : memref<1x1x9x1480xf32, #tpu.memory_space<vmem>>, vector<1x1x9x888xf32>
    %11 = vector.shape_cast %10 : vector<1x1x9x888xf32> to vector<9x888xf32>
    %12 = vector.broadcast %9 : vector<9x1xf32> to vector<9x888xf32>
    %13 = arith.mulf %12, %11 : vector<9x888xf32>
    %14 = arith.addf %7, %13 : vector<9x888xf32>
    %15 = vector.extract_strided_slice %1 {offsets = [2, 0, 0], sizes = [1, 9, 1], strides = [1, 1, 1]} : vector<9x9x1xf32> to vector<1x9x1xf32>
    %16 = vector.shape_cast %15 : vector<1x9x1xf32> to vector<9x1xf32>
    %c0_10 = arith.constant 0 : index
    %c0_11 = arith.constant 0 : index
    %c0_12 = arith.constant 0 : index
    %c148 = arith.constant 148 : index
    %17 = vector.load %arg2[%c0_10, %c0_11, %c0_12, %c148] : memref<1x1x9x1480xf32, #tpu.memory_space<vmem>>, vector<1x1x9x888xf32>
    %18 = vector.shape_cast %17 : vector<1x1x9x888xf32> to vector<9x888xf32>
    %19 = vector.broadcast %16 : vector<9x1xf32> to vector<9x888xf32>
    %20 = arith.mulf %19, %18 : vector<9x888xf32>
    %21 = arith.addf %14, %20 : vector<9x888xf32>
    %22 = vector.extract_strided_slice %1 {offsets = [3, 0, 0], sizes = [1, 9, 1], strides = [1, 1, 1]} : vector<9x9x1xf32> to vector<1x9x1xf32>
    %23 = vector.shape_cast %22 : vector<1x9x1xf32> to vector<9x1xf32>
    %c0_13 = arith.constant 0 : index
    %c0_14 = arith.constant 0 : index
    %c0_15 = arith.constant 0 : index
    %c222 = arith.constant 222 : index
    %24 = vector.load %arg2[%c0_13, %c0_14, %c0_15, %c222] : memref<1x1x9x1480xf32, #tpu.memory_space<vmem>>, vector<1x1x9x888xf32>
    %25 = vector.shape_cast %24 : vector<1x1x9x888xf32> to vector<9x888xf32>
    %26 = vector.broadcast %23 : vector<9x1xf32> to vector<9x888xf32>
    %27 = arith.mulf %26, %25 : vector<9x888xf32>
    %28 = arith.addf %21, %27 : vector<9x888xf32>
    %29 = vector.extract_strided_slice %1 {offsets = [4, 0, 0], sizes = [1, 9, 1], strides = [1, 1, 1]} : vector<9x9x1xf32> to vector<1x9x1xf32>
    %30 = vector.shape_cast %29 : vector<1x9x1xf32> to vector<9x1xf32>
    %c0_16 = arith.constant 0 : index
    %c0_17 = arith.constant 0 : index
    %c0_18 = arith.constant 0 : index
    %c296 = arith.constant 296 : index
    %31 = vector.load %arg2[%c0_16, %c0_17, %c0_18, %c296] : memref<1x1x9x1480xf32, #tpu.memory_space<vmem>>, vector<1x1x9x888xf32>
    %32 = vector.shape_cast %31 : vector<1x1x9x888xf32> to vector<9x888xf32>
    %33 = vector.broadcast %30 : vector<9x1xf32> to vector<9x888xf32>
    %34 = arith.mulf %33, %32 : vector<9x888xf32>
    %35 = arith.addf %28, %34 : vector<9x888xf32>
    %36 = vector.extract_strided_slice %1 {offsets = [5, 0, 0], sizes = [1, 9, 1], strides = [1, 1, 1]} : vector<9x9x1xf32> to vector<1x9x1xf32>
    %37 = vector.shape_cast %36 : vector<1x9x1xf32> to vector<9x1xf32>
    %c0_19 = arith.constant 0 : index
    %c0_20 = arith.constant 0 : index
    %c0_21 = arith.constant 0 : index
    %c370 = arith.constant 370 : index
    %38 = vector.load %arg2[%c0_19, %c0_20, %c0_21, %c370] : memref<1x1x9x1480xf32, #tpu.memory_space<vmem>>, vector<1x1x9x888xf32>
    %39 = vector.shape_cast %38 : vector<1x1x9x888xf32> to vector<9x888xf32>
    %40 = vector.broadcast %37 : vector<9x1xf32> to vector<9x888xf32>
    %41 = arith.mulf %40, %39 : vector<9x888xf32>
    %42 = arith.addf %35, %41 : vector<9x888xf32>
    %43 = vector.extract_strided_slice %1 {offsets = [6, 0, 0], sizes = [1, 9, 1], strides = [1, 1, 1]} : vector<9x9x1xf32> to vector<1x9x1xf32>
    %44 = vector.shape_cast %43 : vector<1x9x1xf32> to vector<9x1xf32>
    %c0_22 = arith.constant 0 : index
    %c0_23 = arith.constant 0 : index
    %c0_24 = arith.constant 0 : index
    %c444 = arith.constant 444 : index
    %45 = vector.load %arg2[%c0_22, %c0_23, %c0_24, %c444] : memref<1x1x9x1480xf32, #tpu.memory_space<vmem>>, vector<1x1x9x888xf32>
    %46 = vector.shape_cast %45 : vector<1x1x9x888xf32> to vector<9x888xf32>
    %47 = vector.broadcast %44 : vector<9x1xf32> to vector<9x888xf32>
    %48 = arith.mulf %47, %46 : vector<9x888xf32>
    %49 = arith.addf %42, %48 : vector<9x888xf32>
    %50 = vector.extract_strided_slice %1 {offsets = [7, 0, 0], sizes = [1, 9, 1], strides = [1, 1, 1]} : vector<9x9x1xf32> to vector<1x9x1xf32>
    %51 = vector.shape_cast %50 : vector<1x9x1xf32> to vector<9x1xf32>
    %c0_25 = arith.constant 0 : index
    %c0_26 = arith.constant 0 : index
    %c0_27 = arith.constant 0 : index
    %c518 = arith.constant 518 : index
    %52 = vector.load %arg2[%c0_25, %c0_26, %c0_27, %c518] : memref<1x1x9x1480xf32, #tpu.memory_space<vmem>>, vector<1x1x9x888xf32>
    %53 = vector.shape_cast %52 : vector<1x1x9x888xf32> to vector<9x888xf32>
    %54 = vector.broadcast %51 : vector<9x1xf32> to vector<9x888xf32>
    %55 = arith.mulf %54, %53 : vector<9x888xf32>
    %56 = arith.addf %49, %55 : vector<9x888xf32>
    %57 = vector.extract_strided_slice %1 {offsets = [8, 0, 0], sizes = [1, 9, 1], strides = [1, 1, 1]} : vector<9x9x1xf32> to vector<1x9x1xf32>
    %58 = vector.shape_cast %57 : vector<1x9x1xf32> to vector<9x1xf32>
    %c0_28 = arith.constant 0 : index
    %c0_29 = arith.constant 0 : index
    %c0_30 = arith.constant 0 : index
    %c592 = arith.constant 592 : index
    %59 = vector.load %arg2[%c0_28, %c0_29, %c0_30, %c592] : memref<1x1x9x1480xf32, #tpu.memory_space<vmem>>, vector<1x1x9x888xf32>
    %60 = vector.shape_cast %59 : vector<1x1x9x888xf32> to vector<9x888xf32>
    %61 = vector.broadcast %58 : vector<9x1xf32> to vector<9x888xf32>
    %62 = arith.mulf %61, %60 : vector<9x888xf32>
    %63 = arith.addf %56, %62 : vector<9x888xf32>
    %c0_31 = arith.constant 0 : index
    %c0_32 = arith.constant 0 : index
    %c0_33 = arith.constant 0 : index
    %64 = vector.load %arg5[%c0_31, %c0_32, %c0_33] : memref<1x9x1xf32, #tpu.memory_space<vmem>>, vector<1x9x1xf32>
    %65 = vector.shape_cast %64 : vector<1x9x1xf32> to vector<9x1xf32>
    %66 = vector.broadcast %65 : vector<9x1xf32> to vector<9x888xf32>
    %67 = arith.addf %63, %66 : vector<9x888xf32>
    %cst = arith.constant 0.000000e+00 : f32
    %68 = vector.broadcast %cst : f32 to vector<9x888xf32>
    %69 = arith.cmpf ogt, %67, %68 : vector<9x888xf32>
    %cst_34 = arith.constant 0.000000e+00 : f32
    %70 = vector.broadcast %cst_34 : f32 to vector<9x888xf32>
    %71 = arith.minimumf %67, %70 : vector<9x888xf32>
    %72 = math.exp %71 : vector<9x888xf32>
    %cst_35 = arith.constant 1.000000e+00 : f32
    %73 = vector.broadcast %cst_35 : f32 to vector<9x888xf32>
    %74 = arith.subf %72, %73 : vector<9x888xf32>
    %75 = arith.select %69, %67, %74 : vector<9x888xi1>, vector<9x888xf32>
    %c0_36 = arith.constant 0 : index
    %c0_37 = arith.constant 0 : index
    %76 = vector.load %arg3[%c0_36, %c0_37] : memref<1x888xf32, #tpu.memory_space<vmem>>, vector<1x888xf32>
    %77 = vector.broadcast %76 : vector<1x888xf32> to vector<9x888xf32>
    %78 = arith.mulf %75, %77 : vector<9x888xf32>
    %79 = vector.extract_strided_slice %78 {offsets = [0, 0], sizes = [9, 666], strides = [1, 1]} : vector<9x888xf32> to vector<9x666xf32>
    %c0_38 = arith.constant 0 : index
    %c0_39 = arith.constant 0 : index
    %80 = vector.load %arg15[%c0_38, %c0_39] : memref<162x666xf32, #tpu.memory_space<vmem>>, vector<9x666xf32>
    tpu.vector_store %arg15[%c0_38, %c0_39], %79 {strides = array<i32>} : memref<162x666xf32, #tpu.memory_space<vmem>>, vector<9x666xf32>,
    %81 = vector.extract_strided_slice %78 {offsets = [0, 2], sizes = [9, 666], strides = [1, 1]} : vector<9x888xf32> to vector<9x666xf32>
    %c9 = arith.constant 9 : index
    %c0_40 = arith.constant 0 : index
    %82 = vector.load %arg15[%c9, %c0_40] : memref<162x666xf32, #tpu.memory_space<vmem>>, vector<9x666xf32>
    tpu.vector_store %arg15[%c9, %c0_40], %81 {strides = array<i32>} : memref<162x666xf32, #tpu.memory_space<vmem>>, vector<9x666xf32>,
    %83 = vector.extract_strided_slice %78 {offsets = [0, 4], sizes = [9, 666], strides = [1, 1]} : vector<9x888xf32> to vector<9x666xf32>
    %c18 = arith.constant 18 : index
    %c0_41 = arith.constant 0 : index
    %84 = vector.load %arg15[%c18, %c0_41] : memref<162x666xf32, #tpu.memory_space<vmem>>, vector<9x666xf32>
    tpu.vector_store %arg15[%c18, %c0_41], %83 {strides = array<i32>} : memref<162x666xf32, #tpu.memory_space<vmem>>, vector<9x666xf32>,
    %85 = vector.extract_strided_slice %78 {offsets = [0, 6], sizes = [9, 666], strides = [1, 1]} : vector<9x888xf32> to vector<9x666xf32>
    %c27 = arith.constant 27 : index
    %c0_42 = arith.constant 0 : index
    %86 = vector.load %arg15[%c27, %c0_42] : memref<162x666xf32, #tpu.memory_space<vmem>>, vector<9x666xf32>
    tpu.vector_store %arg15[%c27, %c0_42], %85 {strides = array<i32>} : memref<162x666xf32, #tpu.memory_space<vmem>>, vector<9x666xf32>,
    %87 = vector.extract_strided_slice %78 {offsets = [0, 8], sizes = [9, 666], strides = [1, 1]} : vector<9x888xf32> to vector<9x666xf32>
    %c36 = arith.constant 36 : index
    %c0_43 = arith.constant 0 : index
    %88 = vector.load %arg15[%c36, %c0_43] : memref<162x666xf32, #tpu.memory_space<vmem>>, vector<9x666xf32>
    tpu.vector_store %arg15[%c36, %c0_43], %87 {strides = array<i32>} : memref<162x666xf32, #tpu.memory_space<vmem>>, vector<9x666xf32>,
    %89 = vector.extract_strided_slice %78 {offsets = [0, 10], sizes = [9, 666], strides = [1, 1]} : vector<9x888xf32> to vector<9x666xf32>
    %c45 = arith.constant 45 : index
    %c0_44 = arith.constant 0 : index
    %90 = vector.load %arg15[%c45, %c0_44] : memref<162x666xf32, #tpu.memory_space<vmem>>, vector<9x666xf32>
    tpu.vector_store %arg15[%c45, %c0_44], %89 {strides = array<i32>} : memref<162x666xf32, #tpu.memory_space<vmem>>, vector<9x666xf32>,
    %91 = vector.extract_strided_slice %78 {offsets = [0, 74], sizes = [9, 666], strides = [1, 1]} : vector<9x888xf32> to vector<9x666xf32>
    %c54 = arith.constant 54 : index
    %c0_45 = arith.constant 0 : index
    %92 = vector.load %arg15[%c54, %c0_45] : memref<162x666xf32, #tpu.memory_space<vmem>>, vector<9x666xf32>
    tpu.vector_store %arg15[%c54, %c0_45], %91 {strides = array<i32>} : memref<162x666xf32, #tpu.memory_space<vmem>>, vector<9x666xf32>,
    %93 = vector.extract_strided_slice %78 {offsets = [0, 76], sizes = [9, 666], strides = [1, 1]} : vector<9x888xf32> to vector<9x666xf32>
    %c63 = arith.constant 63 : index
    %c0_46 = arith.constant 0 : index
    %94 = vector.load %arg15[%c63, %c0_46] : memref<162x666xf32, #tpu.memory_space<vmem>>, vector<9x666xf32>
    tpu.vector_store %arg15[%c63, %c0_46], %93 {strides = array<i32>} : memref<162x666xf32, #tpu.memory_space<vmem>>, vector<9x666xf32>,
    %95 = vector.extract_strided_slice %78 {offsets = [0, 78], sizes = [9, 666], strides = [1, 1]} : vector<9x888xf32> to vector<9x666xf32>
    %c72 = arith.constant 72 : index
    %c0_47 = arith.constant 0 : index
    %96 = vector.load %arg15[%c72, %c0_47] : memref<162x666xf32, #tpu.memory_space<vmem>>, vector<9x666xf32>
    tpu.vector_store %arg15[%c72, %c0_47], %95 {strides = array<i32>} : memref<162x666xf32, #tpu.memory_space<vmem>>, vector<9x666xf32>,
    %97 = vector.extract_strided_slice %78 {offsets = [0, 80], sizes = [9, 666], strides = [1, 1]} : vector<9x888xf32> to vector<9x666xf32>
    %c81 = arith.constant 81 : index
    %c0_48 = arith.constant 0 : index
    %98 = vector.load %arg15[%c81, %c0_48] : memref<162x666xf32, #tpu.memory_space<vmem>>, vector<9x666xf32>
    tpu.vector_store %arg15[%c81, %c0_48], %97 {strides = array<i32>} : memref<162x666xf32, #tpu.memory_space<vmem>>, vector<9x666xf32>,
    %99 = vector.extract_strided_slice %78 {offsets = [0, 82], sizes = [9, 666], strides = [1, 1]} : vector<9x888xf32> to vector<9x666xf32>
    %c90 = arith.constant 90 : index
    %c0_49 = arith.constant 0 : index
    %100 = vector.load %arg15[%c90, %c0_49] : memref<162x666xf32, #tpu.memory_space<vmem>>, vector<9x666xf32>
    tpu.vector_store %arg15[%c90, %c0_49], %99 {strides = array<i32>} : memref<162x666xf32, #tpu.memory_space<vmem>>, vector<9x666xf32>,
    %101 = vector.extract_strided_slice %78 {offsets = [0, 84], sizes = [9, 666], strides = [1, 1]} : vector<9x888xf32> to vector<9x666xf32>
    %c99 = arith.constant 99 : index
    %c0_50 = arith.constant 0 : index
    %102 = vector.load %arg15[%c99, %c0_50] : memref<162x666xf32, #tpu.memory_space<vmem>>, vector<9x666xf32>
    tpu.vector_store %arg15[%c99, %c0_50], %101 {strides = array<i32>} : memref<162x666xf32, #tpu.memory_space<vmem>>, vector<9x666xf32>,
    %103 = vector.extract_strided_slice %78 {offsets = [0, 148], sizes = [9, 666], strides = [1, 1]} : vector<9x888xf32> to vector<9x666xf32>
    %c108 = arith.constant 108 : index
    %c0_51 = arith.constant 0 : index
    %104 = vector.load %arg15[%c108, %c0_51] : memref<162x666xf32, #tpu.memory_space<vmem>>, vector<9x666xf32>
    tpu.vector_store %arg15[%c108, %c0_51], %103 {strides = array<i32>} : memref<162x666xf32, #tpu.memory_space<vmem>>, vector<9x666xf32>,
    %105 = vector.extract_strided_slice %78 {offsets = [0, 150], sizes = [9, 666], strides = [1, 1]} : vector<9x888xf32> to vector<9x666xf32>
    %c117 = arith.constant 117 : index
    %c0_52 = arith.constant 0 : index
    %106 = vector.load %arg15[%c117, %c0_52] : memref<162x666xf32, #tpu.memory_space<vmem>>, vector<9x666xf32>
    tpu.vector_store %arg15[%c117, %c0_52], %105 {strides = array<i32>} : memref<162x666xf32, #tpu.memory_space<vmem>>, vector<9x666xf32>,
    %107 = vector.extract_strided_slice %78 {offsets = [0, 152], sizes = [9, 666], strides = [1, 1]} : vector<9x888xf32> to vector<9x666xf32>
    %c126 = arith.constant 126 : index
    %c0_53 = arith.constant 0 : index
    %108 = vector.load %arg15[%c126, %c0_53] : memref<162x666xf32, #tpu.memory_space<vmem>>, vector<9x666xf32>
    tpu.vector_store %arg15[%c126, %c0_53], %107 {strides = array<i32>} : memref<162x666xf32, #tpu.memory_space<vmem>>, vector<9x666xf32>,
    %109 = vector.extract_strided_slice %78 {offsets = [0, 154], sizes = [9, 666], strides = [1, 1]} : vector<9x888xf32> to vector<9x666xf32>
    %c135 = arith.constant 135 : index
    %c0_54 = arith.constant 0 : index
    %110 = vector.load %arg15[%c135, %c0_54] : memref<162x666xf32, #tpu.memory_space<vmem>>, vector<9x666xf32>
    tpu.vector_store %arg15[%c135, %c0_54], %109 {strides = array<i32>} : memref<162x666xf32, #tpu.memory_space<vmem>>, vector<9x666xf32>,
    %111 = vector.extract_strided_slice %78 {offsets = [0, 156], sizes = [9, 666], strides = [1, 1]} : vector<9x888xf32> to vector<9x666xf32>
    %c144 = arith.constant 144 : index
    %c0_55 = arith.constant 0 : index
    %112 = vector.load %arg15[%c144, %c0_55] : memref<162x666xf32, #tpu.memory_space<vmem>>, vector<9x666xf32>
    tpu.vector_store %arg15[%c144, %c0_55], %111 {strides = array<i32>} : memref<162x666xf32, #tpu.memory_space<vmem>>, vector<9x666xf32>,
    %113 = vector.extract_strided_slice %78 {offsets = [0, 158], sizes = [9, 666], strides = [1, 1]} : vector<9x888xf32> to vector<9x666xf32>
    %c153 = arith.constant 153 : index
    %c0_56 = arith.constant 0 : index
    %114 = vector.load %arg15[%c153, %c0_56] : memref<162x666xf32, #tpu.memory_space<vmem>>, vector<9x666xf32>
    tpu.vector_store %arg15[%c153, %c0_56], %113 {strides = array<i32>} : memref<162x666xf32, #tpu.memory_space<vmem>>, vector<9x666xf32>,
    %c0_57 = arith.constant 0 : index
    %c0_58 = arith.constant 0 : index
    %c0_59 = arith.constant 0 : index
    %115 = vector.load %arg6[%c0_57, %c0_58, %c0_59] : memref<1x72x162xf32, #tpu.memory_space<vmem>>, vector<1x72x162xf32>
    %116 = vector.shape_cast %115 : vector<1x72x162xf32> to vector<72x162xf32>
    %c0_60 = arith.constant 0 : index
    %c0_61 = arith.constant 0 : index
    %117 = vector.load %arg15[%c0_60, %c0_61] : memref<162x666xf32, #tpu.memory_space<vmem>>, vector<162x666xf32>
    %cst_62 = arith.constant dense<0.000000e+00> : vector<72x666xf32>
    %118 = tpu.matmul %116, %117, %cst_62 {dimension_numbers = #tpu.dot_dimension_numbers<[1], [0], [0], [1], [0, 0, 1, 1], [], []>} : vector<72x162xf32>, vector<162x666xf32>, vector<72x666xf32> -> vector<72x666xf32>
    %c0_63 = arith.constant 0 : index
    %c0_64 = arith.constant 0 : index
    %c0_65 = arith.constant 0 : index
    %119 = vector.load %arg7[%c0_63, %c0_64, %c0_65] : memref<1x72x1xf32, #tpu.memory_space<vmem>>, vector<1x72x1xf32>
    %120 = vector.shape_cast %119 : vector<1x72x1xf32> to vector<72x1xf32>
    %121 = vector.broadcast %120 : vector<72x1xf32> to vector<72x666xf32>
    %122 = arith.addf %118, %121 : vector<72x666xf32>
    %cst_66 = arith.constant 0.000000e+00 : f32
    %123 = vector.broadcast %cst_66 : f32 to vector<72x666xf32>
    %124 = arith.cmpf ogt, %122, %123 : vector<72x666xf32>
    %cst_67 = arith.constant 0.000000e+00 : f32
    %125 = vector.broadcast %cst_67 : f32 to vector<72x666xf32>
    %126 = arith.minimumf %122, %125 : vector<72x666xf32>
    %127 = math.exp %126 : vector<72x666xf32>
    %cst_68 = arith.constant 1.000000e+00 : f32
    %128 = vector.broadcast %cst_68 : f32 to vector<72x666xf32>
    %129 = arith.subf %127, %128 : vector<72x666xf32>
    %130 = arith.select %124, %122, %129 : vector<72x666xi1>, vector<72x666xf32>
    %c0_69 = arith.constant 0 : index
    %c0_70 = arith.constant 0 : index
    %c0_71 = arith.constant 0 : index
    %131 = vector.load %arg8[%c0_69, %c0_70, %c0_71] : memref<1x72x1xf32, #tpu.memory_space<vmem>>, vector<1x72x1xf32>
    %132 = vector.shape_cast %131 : vector<1x72x1xf32> to vector<72x1xf32>
    %133 = vector.broadcast %132 : vector<72x1xf32> to vector<72x666xf32>
    %134 = arith.mulf %130, %133 : vector<72x666xf32>
    %c0_72 = arith.constant 0 : index
    %c0_73 = arith.constant 0 : index
    %c0_74 = arith.constant 0 : index
    %135 = vector.load %arg9[%c0_72, %c0_73, %c0_74] : memref<1x72x1xf32, #tpu.memory_space<vmem>>, vector<1x72x1xf32>
    %136 = vector.shape_cast %135 : vector<1x72x1xf32> to vector<72x1xf32>
    %137 = vector.broadcast %136 : vector<72x1xf32> to vector<72x666xf32>
    %138 = arith.addf %134, %137 : vector<72x666xf32>
    %cst_75 = arith.constant 0.000000e+00 : f32
    %139 = vector.broadcast %cst_75 : f32 to vector<72x64xf32>
    %c0_76 = arith.constant 0 : index
    %c0_77 = arith.constant 0 : index
    %140 = vector.load %arg16[%c0_76, %c0_77] : memref<72x64xf32, #tpu.memory_space<vmem>>, vector<72x64xf32>
    tpu.vector_store %arg16[%c0_76, %c0_77], %139 {strides = array<i32>} : memref<72x64xf32, #tpu.memory_space<vmem>>, vector<72x64xf32>,
    %141 = vector.extract_strided_slice %138 {offsets = [0, 0], sizes = [72, 74], strides = [1, 1]} : vector<72x666xf32> to vector<72x74xf32>
    %142 = vector.extract_strided_slice %138 {offsets = [0, 74], sizes = [72, 74], strides = [1, 1]} : vector<72x666xf32> to vector<72x74xf32>
    %143 = arith.addf %141, %142 : vector<72x74xf32>
    %144 = vector.extract_strided_slice %138 {offsets = [0, 148], sizes = [72, 74], strides = [1, 1]} : vector<72x666xf32> to vector<72x74xf32>
    %145 = arith.addf %143, %144 : vector<72x74xf32>
    %146 = vector.extract_strided_slice %145 {offsets = [0, 0], sizes = [72, 2], strides = [1, 1]} : vector<72x74xf32> to vector<72x2xf32>
    %147 = vector.extract_strided_slice %145 {offsets = [0, 2], sizes = [72, 2], strides = [1, 1]} : vector<72x74xf32> to vector<72x2xf32>
    %148 = arith.addf %146, %147 : vector<72x2xf32>
    %149 = vector.extract_strided_slice %145 {offsets = [0, 4], sizes = [72, 2], strides = [1, 1]} : vector<72x74xf32> to vector<72x2xf32>
    %150 = arith.addf %148, %149 : vector<72x2xf32>
    %151 = vector.extract_strided_slice %145 {offsets = [0, 6], sizes = [72, 2], strides = [1, 1]} : vector<72x74xf32> to vector<72x2xf32>
    %152 = arith.addf %150, %151 : vector<72x2xf32>
    %153 = vector.extract_strided_slice %145 {offsets = [0, 8], sizes = [72, 2], strides = [1, 1]} : vector<72x74xf32> to vector<72x2xf32>
    %154 = arith.addf %152, %153 : vector<72x2xf32>
    %155 = vector.extract_strided_slice %145 {offsets = [0, 10], sizes = [72, 2], strides = [1, 1]} : vector<72x74xf32> to vector<72x2xf32>
    %156 = arith.addf %154, %155 : vector<72x2xf32>
    %cst_78 = arith.constant 0.055555556 : f32
    %157 = vector.broadcast %cst_78 : f32 to vector<72x2xf32>
    %158 = arith.mulf %156, %157 : vector<72x2xf32>
    %c0_79 = arith.constant 0 : index
    %c16 = arith.constant 16 : index
    %159 = vector.load %arg16[%c0_79, %c16] : memref<72x64xf32, #tpu.memory_space<vmem>>, vector<72x2xf32>
    tpu.vector_store %arg16[%c0_79, %c16], %158 {strides = array<i32>} : memref<72x64xf32, #tpu.memory_space<vmem>>, vector<72x2xf32>,
    %160 = vector.extract_strided_slice %145 {offsets = [0, 12], sizes = [72, 2], strides = [1, 1]} : vector<72x74xf32> to vector<72x2xf32>
    %161 = vector.extract_strided_slice %145 {offsets = [0, 14], sizes = [72, 2], strides = [1, 1]} : vector<72x74xf32> to vector<72x2xf32>
    %162 = arith.addf %160, %161 : vector<72x2xf32>
    %163 = vector.extract_strided_slice %145 {offsets = [0, 16], sizes = [72, 2], strides = [1, 1]} : vector<72x74xf32> to vector<72x2xf32>
    %164 = arith.addf %162, %163 : vector<72x2xf32>
    %165 = vector.extract_strided_slice %145 {offsets = [0, 18], sizes = [72, 2], strides = [1, 1]} : vector<72x74xf32> to vector<72x2xf32>
    %166 = arith.addf %164, %165 : vector<72x2xf32>
    %167 = vector.extract_strided_slice %145 {offsets = [0, 20], sizes = [72, 2], strides = [1, 1]} : vector<72x74xf32> to vector<72x2xf32>
    %168 = arith.addf %166, %167 : vector<72x2xf32>
    %169 = vector.extract_strided_slice %145 {offsets = [0, 22], sizes = [72, 2], strides = [1, 1]} : vector<72x74xf32> to vector<72x2xf32>
    %170 = arith.addf %168, %169 : vector<72x2xf32>
    %cst_80 = arith.constant 0.055555556 : f32
    %171 = vector.broadcast %cst_80 : f32 to vector<72x2xf32>
    %172 = arith.mulf %170, %171 : vector<72x2xf32>
    %c0_81 = arith.constant 0 : index
    %c18_82 = arith.constant 18 : index
    %173 = vector.load %arg16[%c0_81, %c18_82] : memref<72x64xf32, #tpu.memory_space<vmem>>, vector<72x2xf32>
    tpu.vector_store %arg16[%c0_81, %c18_82], %172 {strides = array<i32>} : memref<72x64xf32, #tpu.memory_space<vmem>>, vector<72x2xf32>,
    %174 = vector.extract_strided_slice %145 {offsets = [0, 24], sizes = [72, 2], strides = [1, 1]} : vector<72x74xf32> to vector<72x2xf32>
    %175 = vector.extract_strided_slice %145 {offsets = [0, 26], sizes = [72, 2], strides = [1, 1]} : vector<72x74xf32> to vector<72x2xf32>
    %176 = arith.addf %174, %175 : vector<72x2xf32>
    %177 = vector.extract_strided_slice %145 {offsets = [0, 28], sizes = [72, 2], strides = [1, 1]} : vector<72x74xf32> to vector<72x2xf32>
    %178 = arith.addf %176, %177 : vector<72x2xf32>
    %179 = vector.extract_strided_slice %145 {offsets = [0, 30], sizes = [72, 2], strides = [1, 1]} : vector<72x74xf32> to vector<72x2xf32>
    %180 = arith.addf %178, %179 : vector<72x2xf32>
    %181 = vector.extract_strided_slice %145 {offsets = [0, 32], sizes = [72, 2], strides = [1, 1]} : vector<72x74xf32> to vector<72x2xf32>
    %182 = arith.addf %180, %181 : vector<72x2xf32>
    %183 = vector.extract_strided_slice %145 {offsets = [0, 34], sizes = [72, 2], strides = [1, 1]} : vector<72x74xf32> to vector<72x2xf32>
    %184 = arith.addf %182, %183 : vector<72x2xf32>
    %cst_83 = arith.constant 0.055555556 : f32
    %185 = vector.broadcast %cst_83 : f32 to vector<72x2xf32>
    %186 = arith.mulf %184, %185 : vector<72x2xf32>
    %c0_84 = arith.constant 0 : index
    %c20 = arith.constant 20 : index
    %187 = vector.load %arg16[%c0_84, %c20] : memref<72x64xf32, #tpu.memory_space<vmem>>, vector<72x2xf32>
    tpu.vector_store %arg16[%c0_84, %c20], %186 {strides = array<i32>} : memref<72x64xf32, #tpu.memory_space<vmem>>, vector<72x2xf32>,
    %188 = vector.extract_strided_slice %145 {offsets = [0, 36], sizes = [72, 2], strides = [1, 1]} : vector<72x74xf32> to vector<72x2xf32>
    %189 = vector.extract_strided_slice %145 {offsets = [0, 38], sizes = [72, 2], strides = [1, 1]} : vector<72x74xf32> to vector<72x2xf32>
    %190 = arith.addf %188, %189 : vector<72x2xf32>
    %191 = vector.extract_strided_slice %145 {offsets = [0, 40], sizes = [72, 2], strides = [1, 1]} : vector<72x74xf32> to vector<72x2xf32>
    %192 = arith.addf %190, %191 : vector<72x2xf32>
    %193 = vector.extract_strided_slice %145 {offsets = [0, 42], sizes = [72, 2], strides = [1, 1]} : vector<72x74xf32> to vector<72x2xf32>
    %194 = arith.addf %192, %193 : vector<72x2xf32>
    %195 = vector.extract_strided_slice %145 {offsets = [0, 44], sizes = [72, 2], strides = [1, 1]} : vector<72x74xf32> to vector<72x2xf32>
    %196 = arith.addf %194, %195 : vector<72x2xf32>
    %197 = vector.extract_strided_slice %145 {offsets = [0, 46], sizes = [72, 2], strides = [1, 1]} : vector<72x74xf32> to vector<72x2xf32>
    %198 = arith.addf %196, %197 : vector<72x2xf32>
    %cst_85 = arith.constant 0.055555556 : f32
    %199 = vector.broadcast %cst_85 : f32 to vector<72x2xf32>
    %200 = arith.mulf %198, %199 : vector<72x2xf32>
    %c0_86 = arith.constant 0 : index
    %c22 = arith.constant 22 : index
    %201 = vector.load %arg16[%c0_86, %c22] : memref<72x64xf32, #tpu.memory_space<vmem>>, vector<72x2xf32>
    tpu.vector_store %arg16[%c0_86, %c22], %200 {strides = array<i32>} : memref<72x64xf32, #tpu.memory_space<vmem>>, vector<72x2xf32>,
    %202 = vector.extract_strided_slice %145 {offsets = [0, 48], sizes = [72, 2], strides = [1, 1]} : vector<72x74xf32> to vector<72x2xf32>
    %203 = vector.extract_strided_slice %145 {offsets = [0, 50], sizes = [72, 2], strides = [1, 1]} : vector<72x74xf32> to vector<72x2xf32>
    %204 = arith.addf %202, %203 : vector<72x2xf32>
    %205 = vector.extract_strided_slice %145 {offsets = [0, 52], sizes = [72, 2], strides = [1, 1]} : vector<72x74xf32> to vector<72x2xf32>
    %206 = arith.addf %204, %205 : vector<72x2xf32>
    %207 = vector.extract_strided_slice %145 {offsets = [0, 54], sizes = [72, 2], strides = [1, 1]} : vector<72x74xf32> to vector<72x2xf32>
    %208 = arith.addf %206, %207 : vector<72x2xf32>
    %209 = vector.extract_strided_slice %145 {offsets = [0, 56], sizes = [72, 2], strides = [1, 1]} : vector<72x74xf32> to vector<72x2xf32>
    %210 = arith.addf %208, %209 : vector<72x2xf32>
    %211 = vector.extract_strided_slice %145 {offsets = [0, 58], sizes = [72, 2], strides = [1, 1]} : vector<72x74xf32> to vector<72x2xf32>
    %212 = arith.addf %210, %211 : vector<72x2xf32>
    %cst_87 = arith.constant 0.055555556 : f32
    %213 = vector.broadcast %cst_87 : f32 to vector<72x2xf32>
    %214 = arith.mulf %212, %213 : vector<72x2xf32>
    %c0_88 = arith.constant 0 : index
    %c24 = arith.constant 24 : index
    %215 = vector.load %arg16[%c0_88, %c24] : memref<72x64xf32, #tpu.memory_space<vmem>>, vector<72x2xf32>
    tpu.vector_store %arg16[%c0_88, %c24], %214 {strides = array<i32>} : memref<72x64xf32, #tpu.memory_space<vmem>>, vector<72x2xf32>,
    %216 = vector.extract_strided_slice %138 {offsets = [0, 222], sizes = [72, 74], strides = [1, 1]} : vector<72x666xf32> to vector<72x74xf32>
    %217 = vector.extract_strided_slice %138 {offsets = [0, 296], sizes = [72, 74], strides = [1, 1]} : vector<72x666xf32> to vector<72x74xf32>
    %218 = arith.addf %216, %217 : vector<72x74xf32>
    %219 = vector.extract_strided_slice %138 {offsets = [0, 370], sizes = [72, 74], strides = [1, 1]} : vector<72x666xf32> to vector<72x74xf32>
    %220 = arith.addf %218, %219 : vector<72x74xf32>
    %221 = vector.extract_strided_slice %220 {offsets = [0, 0], sizes = [72, 2], strides = [1, 1]} : vector<72x74xf32> to vector<72x2xf32>
    %222 = vector.extract_strided_slice %220 {offsets = [0, 2], sizes = [72, 2], strides = [1, 1]} : vector<72x74xf32> to vector<72x2xf32>
    %223 = arith.addf %221, %222 : vector<72x2xf32>
    %224 = vector.extract_strided_slice %220 {offsets = [0, 4], sizes = [72, 2], strides = [1, 1]} : vector<72x74xf32> to vector<72x2xf32>
    %225 = arith.addf %223, %224 : vector<72x2xf32>
    %226 = vector.extract_strided_slice %220 {offsets = [0, 6], sizes = [72, 2], strides = [1, 1]} : vector<72x74xf32> to vector<72x2xf32>
    %227 = arith.addf %225, %226 : vector<72x2xf32>
    %228 = vector.extract_strided_slice %220 {offsets = [0, 8], sizes = [72, 2], strides = [1, 1]} : vector<72x74xf32> to vector<72x2xf32>
    %229 = arith.addf %227, %228 : vector<72x2xf32>
    %230 = vector.extract_strided_slice %220 {offsets = [0, 10], sizes = [72, 2], strides = [1, 1]} : vector<72x74xf32> to vector<72x2xf32>
    %231 = arith.addf %229, %230 : vector<72x2xf32>
    %cst_89 = arith.constant 0.055555556 : f32
    %232 = vector.broadcast %cst_89 : f32 to vector<72x2xf32>
    %233 = arith.mulf %231, %232 : vector<72x2xf32>
    %c0_90 = arith.constant 0 : index
    %c30 = arith.constant 30 : index
    %234 = vector.load %arg16[%c0_90, %c30] : memref<72x64xf32, #tpu.memory_space<vmem>>, vector<72x2xf32>
    tpu.vector_store %arg16[%c0_90, %c30], %233 {strides = array<i32>} : memref<72x64xf32, #tpu.memory_space<vmem>>, vector<72x2xf32>,
    %235 = vector.extract_strided_slice %220 {offsets = [0, 12], sizes = [72, 2], strides = [1, 1]} : vector<72x74xf32> to vector<72x2xf32>
    %236 = vector.extract_strided_slice %220 {offsets = [0, 14], sizes = [72, 2], strides = [1, 1]} : vector<72x74xf32> to vector<72x2xf32>
    %237 = arith.addf %235, %236 : vector<72x2xf32>
    %238 = vector.extract_strided_slice %220 {offsets = [0, 16], sizes = [72, 2], strides = [1, 1]} : vector<72x74xf32> to vector<72x2xf32>
    %239 = arith.addf %237, %238 : vector<72x2xf32>
    %240 = vector.extract_strided_slice %220 {offsets = [0, 18], sizes = [72, 2], strides = [1, 1]} : vector<72x74xf32> to vector<72x2xf32>
    %241 = arith.addf %239, %240 : vector<72x2xf32>
    %242 = vector.extract_strided_slice %220 {offsets = [0, 20], sizes = [72, 2], strides = [1, 1]} : vector<72x74xf32> to vector<72x2xf32>
    %243 = arith.addf %241, %242 : vector<72x2xf32>
    %244 = vector.extract_strided_slice %220 {offsets = [0, 22], sizes = [72, 2], strides = [1, 1]} : vector<72x74xf32> to vector<72x2xf32>
    %245 = arith.addf %243, %244 : vector<72x2xf32>
    %cst_91 = arith.constant 0.055555556 : f32
    %246 = vector.broadcast %cst_91 : f32 to vector<72x2xf32>
    %247 = arith.mulf %245, %246 : vector<72x2xf32>
    %c0_92 = arith.constant 0 : index
    %c32 = arith.constant 32 : index
    %248 = vector.load %arg16[%c0_92, %c32] : memref<72x64xf32, #tpu.memory_space<vmem>>, vector<72x2xf32>
    tpu.vector_store %arg16[%c0_92, %c32], %247 {strides = array<i32>} : memref<72x64xf32, #tpu.memory_space<vmem>>, vector<72x2xf32>,
    %249 = vector.extract_strided_slice %220 {offsets = [0, 24], sizes = [72, 2], strides = [1, 1]} : vector<72x74xf32> to vector<72x2xf32>
    %250 = vector.extract_strided_slice %220 {offsets = [0, 26], sizes = [72, 2], strides = [1, 1]} : vector<72x74xf32> to vector<72x2xf32>
    %251 = arith.addf %249, %250 : vector<72x2xf32>
    %252 = vector.extract_strided_slice %220 {offsets = [0, 28], sizes = [72, 2], strides = [1, 1]} : vector<72x74xf32> to vector<72x2xf32>
    %253 = arith.addf %251, %252 : vector<72x2xf32>
    %254 = vector.extract_strided_slice %220 {offsets = [0, 30], sizes = [72, 2], strides = [1, 1]} : vector<72x74xf32> to vector<72x2xf32>
    %255 = arith.addf %253, %254 : vector<72x2xf32>
    %256 = vector.extract_strided_slice %220 {offsets = [0, 32], sizes = [72, 2], strides = [1, 1]} : vector<72x74xf32> to vector<72x2xf32>
    %257 = arith.addf %255, %256 : vector<72x2xf32>
    %258 = vector.extract_strided_slice %220 {offsets = [0, 34], sizes = [72, 2], strides = [1, 1]} : vector<72x74xf32> to vector<72x2xf32>
    %259 = arith.addf %257, %258 : vector<72x2xf32>
    %cst_93 = arith.constant 0.055555556 : f32
    %260 = vector.broadcast %cst_93 : f32 to vector<72x2xf32>
    %261 = arith.mulf %259, %260 : vector<72x2xf32>
    %c0_94 = arith.constant 0 : index
    %c34 = arith.constant 34 : index
    %262 = vector.load %arg16[%c0_94, %c34] : memref<72x64xf32, #tpu.memory_space<vmem>>, vector<72x2xf32>
    tpu.vector_store %arg16[%c0_94, %c34], %261 {strides = array<i32>} : memref<72x64xf32, #tpu.memory_space<vmem>>, vector<72x2xf32>,
    %263 = vector.extract_strided_slice %220 {offsets = [0, 36], sizes = [72, 2], strides = [1, 1]} : vector<72x74xf32> to vector<72x2xf32>
    %264 = vector.extract_strided_slice %220 {offsets = [0, 38], sizes = [72, 2], strides = [1, 1]} : vector<72x74xf32> to vector<72x2xf32>
    %265 = arith.addf %263, %264 : vector<72x2xf32>
    %266 = vector.extract_strided_slice %220 {offsets = [0, 40], sizes = [72, 2], strides = [1, 1]} : vector<72x74xf32> to vector<72x2xf32>
    %267 = arith.addf %265, %266 : vector<72x2xf32>
    %268 = vector.extract_strided_slice %220 {offsets = [0, 42], sizes = [72, 2], strides = [1, 1]} : vector<72x74xf32> to vector<72x2xf32>
    %269 = arith.addf %267, %268 : vector<72x2xf32>
    %270 = vector.extract_strided_slice %220 {offsets = [0, 44], sizes = [72, 2], strides = [1, 1]} : vector<72x74xf32> to vector<72x2xf32>
    %271 = arith.addf %269, %270 : vector<72x2xf32>
    %272 = vector.extract_strided_slice %220 {offsets = [0, 46], sizes = [72, 2], strides = [1, 1]} : vector<72x74xf32> to vector<72x2xf32>
    %273 = arith.addf %271, %272 : vector<72x2xf32>
    %cst_95 = arith.constant 0.055555556 : f32
    %274 = vector.broadcast %cst_95 : f32 to vector<72x2xf32>
    %275 = arith.mulf %273, %274 : vector<72x2xf32>
    %c0_96 = arith.constant 0 : index
    %c36_97 = arith.constant 36 : index
    %276 = vector.load %arg16[%c0_96, %c36_97] : memref<72x64xf32, #tpu.memory_space<vmem>>, vector<72x2xf32>
    tpu.vector_store %arg16[%c0_96, %c36_97], %275 {strides = array<i32>} : memref<72x64xf32, #tpu.memory_space<vmem>>, vector<72x2xf32>,
    %277 = vector.extract_strided_slice %220 {offsets = [0, 48], sizes = [72, 2], strides = [1, 1]} : vector<72x74xf32> to vector<72x2xf32>
    %278 = vector.extract_strided_slice %220 {offsets = [0, 50], sizes = [72, 2], strides = [1, 1]} : vector<72x74xf32> to vector<72x2xf32>
    %279 = arith.addf %277, %278 : vector<72x2xf32>
    %280 = vector.extract_strided_slice %220 {offsets = [0, 52], sizes = [72, 2], strides = [1, 1]} : vector<72x74xf32> to vector<72x2xf32>
    %281 = arith.addf %279, %280 : vector<72x2xf32>
    %282 = vector.extract_strided_slice %220 {offsets = [0, 54], sizes = [72, 2], strides = [1, 1]} : vector<72x74xf32> to vector<72x2xf32>
    %283 = arith.addf %281, %282 : vector<72x2xf32>
    %284 = vector.extract_strided_slice %220 {offsets = [0, 56], sizes = [72, 2], strides = [1, 1]} : vector<72x74xf32> to vector<72x2xf32>
    %285 = arith.addf %283, %284 : vector<72x2xf32>
    %286 = vector.extract_strided_slice %220 {offsets = [0, 58], sizes = [72, 2], strides = [1, 1]} : vector<72x74xf32> to vector<72x2xf32>
    %287 = arith.addf %285, %286 : vector<72x2xf32>
    %cst_98 = arith.constant 0.055555556 : f32
    %288 = vector.broadcast %cst_98 : f32 to vector<72x2xf32>
    %289 = arith.mulf %287, %288 : vector<72x2xf32>
    %c0_99 = arith.constant 0 : index
    %c38 = arith.constant 38 : index
    %290 = vector.load %arg16[%c0_99, %c38] : memref<72x64xf32, #tpu.memory_space<vmem>>, vector<72x2xf32>
    tpu.vector_store %arg16[%c0_99, %c38], %289 {strides = array<i32>} : memref<72x64xf32, #tpu.memory_space<vmem>>, vector<72x2xf32>,
    %291 = vector.extract_strided_slice %138 {offsets = [0, 444], sizes = [72, 74], strides = [1, 1]} : vector<72x666xf32> to vector<72x74xf32>
    %292 = vector.extract_strided_slice %138 {offsets = [0, 518], sizes = [72, 74], strides = [1, 1]} : vector<72x666xf32> to vector<72x74xf32>
    %293 = arith.addf %291, %292 : vector<72x74xf32>
    %294 = vector.extract_strided_slice %138 {offsets = [0, 592], sizes = [72, 74], strides = [1, 1]} : vector<72x666xf32> to vector<72x74xf32>
    %295 = arith.addf %293, %294 : vector<72x74xf32>
    %296 = vector.extract_strided_slice %295 {offsets = [0, 0], sizes = [72, 2], strides = [1, 1]} : vector<72x74xf32> to vector<72x2xf32>
    %297 = vector.extract_strided_slice %295 {offsets = [0, 2], sizes = [72, 2], strides = [1, 1]} : vector<72x74xf32> to vector<72x2xf32>
    %298 = arith.addf %296, %297 : vector<72x2xf32>
    %299 = vector.extract_strided_slice %295 {offsets = [0, 4], sizes = [72, 2], strides = [1, 1]} : vector<72x74xf32> to vector<72x2xf32>
    %300 = arith.addf %298, %299 : vector<72x2xf32>
    %301 = vector.extract_strided_slice %295 {offsets = [0, 6], sizes = [72, 2], strides = [1, 1]} : vector<72x74xf32> to vector<72x2xf32>
    %302 = arith.addf %300, %301 : vector<72x2xf32>
    %303 = vector.extract_strided_slice %295 {offsets = [0, 8], sizes = [72, 2], strides = [1, 1]} : vector<72x74xf32> to vector<72x2xf32>
    %304 = arith.addf %302, %303 : vector<72x2xf32>
    %305 = vector.extract_strided_slice %295 {offsets = [0, 10], sizes = [72, 2], strides = [1, 1]} : vector<72x74xf32> to vector<72x2xf32>
    %306 = arith.addf %304, %305 : vector<72x2xf32>
    %cst_100 = arith.constant 0.055555556 : f32
    %307 = vector.broadcast %cst_100 : f32 to vector<72x2xf32>
    %308 = arith.mulf %306, %307 : vector<72x2xf32>
    %c0_101 = arith.constant 0 : index
    %c44 = arith.constant 44 : index
    %309 = vector.load %arg16[%c0_101, %c44] : memref<72x64xf32, #tpu.memory_space<vmem>>, vector<72x2xf32>
    tpu.vector_store %arg16[%c0_101, %c44], %308 {strides = array<i32>} : memref<72x64xf32, #tpu.memory_space<vmem>>, vector<72x2xf32>,
    %310 = vector.extract_strided_slice %295 {offsets = [0, 12], sizes = [72, 2], strides = [1, 1]} : vector<72x74xf32> to vector<72x2xf32>
    %311 = vector.extract_strided_slice %295 {offsets = [0, 14], sizes = [72, 2], strides = [1, 1]} : vector<72x74xf32> to vector<72x2xf32>
    %312 = arith.addf %310, %311 : vector<72x2xf32>
    %313 = vector.extract_strided_slice %295 {offsets = [0, 16], sizes = [72, 2], strides = [1, 1]} : vector<72x74xf32> to vector<72x2xf32>
    %314 = arith.addf %312, %313 : vector<72x2xf32>
    %315 = vector.extract_strided_slice %295 {offsets = [0, 18], sizes = [72, 2], strides = [1, 1]} : vector<72x74xf32> to vector<72x2xf32>
    %316 = arith.addf %314, %315 : vector<72x2xf32>
    %317 = vector.extract_strided_slice %295 {offsets = [0, 20], sizes = [72, 2], strides = [1, 1]} : vector<72x74xf32> to vector<72x2xf32>
    %318 = arith.addf %316, %317 : vector<72x2xf32>
    %319 = vector.extract_strided_slice %295 {offsets = [0, 22], sizes = [72, 2], strides = [1, 1]} : vector<72x74xf32> to vector<72x2xf32>
    %320 = arith.addf %318, %319 : vector<72x2xf32>
    %cst_102 = arith.constant 0.055555556 : f32
    %321 = vector.broadcast %cst_102 : f32 to vector<72x2xf32>
    %322 = arith.mulf %320, %321 : vector<72x2xf32>
    %c0_103 = arith.constant 0 : index
    %c46 = arith.constant 46 : index
    %323 = vector.load %arg16[%c0_103, %c46] : memref<72x64xf32, #tpu.memory_space<vmem>>, vector<72x2xf32>
    tpu.vector_store %arg16[%c0_103, %c46], %322 {strides = array<i32>} : memref<72x64xf32, #tpu.memory_space<vmem>>, vector<72x2xf32>,
    %324 = vector.extract_strided_slice %295 {offsets = [0, 24], sizes = [72, 2], strides = [1, 1]} : vector<72x74xf32> to vector<72x2xf32>
    %325 = vector.extract_strided_slice %295 {offsets = [0, 26], sizes = [72, 2], strides = [1, 1]} : vector<72x74xf32> to vector<72x2xf32>
    %326 = arith.addf %324, %325 : vector<72x2xf32>
    %327 = vector.extract_strided_slice %295 {offsets = [0, 28], sizes = [72, 2], strides = [1, 1]} : vector<72x74xf32> to vector<72x2xf32>
    %328 = arith.addf %326, %327 : vector<72x2xf32>
    %329 = vector.extract_strided_slice %295 {offsets = [0, 30], sizes = [72, 2], strides = [1, 1]} : vector<72x74xf32> to vector<72x2xf32>
    %330 = arith.addf %328, %329 : vector<72x2xf32>
    %331 = vector.extract_strided_slice %295 {offsets = [0, 32], sizes = [72, 2], strides = [1, 1]} : vector<72x74xf32> to vector<72x2xf32>
    %332 = arith.addf %330, %331 : vector<72x2xf32>
    %333 = vector.extract_strided_slice %295 {offsets = [0, 34], sizes = [72, 2], strides = [1, 1]} : vector<72x74xf32> to vector<72x2xf32>
    %334 = arith.addf %332, %333 : vector<72x2xf32>
    %cst_104 = arith.constant 0.055555556 : f32
    %335 = vector.broadcast %cst_104 : f32 to vector<72x2xf32>
    %336 = arith.mulf %334, %335 : vector<72x2xf32>
    %c0_105 = arith.constant 0 : index
    %c48 = arith.constant 48 : index
    %337 = vector.load %arg16[%c0_105, %c48] : memref<72x64xf32, #tpu.memory_space<vmem>>, vector<72x2xf32>
    tpu.vector_store %arg16[%c0_105, %c48], %336 {strides = array<i32>} : memref<72x64xf32, #tpu.memory_space<vmem>>, vector<72x2xf32>,
    %338 = vector.extract_strided_slice %295 {offsets = [0, 36], sizes = [72, 2], strides = [1, 1]} : vector<72x74xf32> to vector<72x2xf32>
    %339 = vector.extract_strided_slice %295 {offsets = [0, 38], sizes = [72, 2], strides = [1, 1]} : vector<72x74xf32> to vector<72x2xf32>
    %340 = arith.addf %338, %339 : vector<72x2xf32>
    %341 = vector.extract_strided_slice %295 {offsets = [0, 40], sizes = [72, 2], strides = [1, 1]} : vector<72x74xf32> to vector<72x2xf32>
    %342 = arith.addf %340, %341 : vector<72x2xf32>
    %343 = vector.extract_strided_slice %295 {offsets = [0, 42], sizes = [72, 2], strides = [1, 1]} : vector<72x74xf32> to vector<72x2xf32>
    %344 = arith.addf %342, %343 : vector<72x2xf32>
    %345 = vector.extract_strided_slice %295 {offsets = [0, 44], sizes = [72, 2], strides = [1, 1]} : vector<72x74xf32> to vector<72x2xf32>
    %346 = arith.addf %344, %345 : vector<72x2xf32>
    %347 = vector.extract_strided_slice %295 {offsets = [0, 46], sizes = [72, 2], strides = [1, 1]} : vector<72x74xf32> to vector<72x2xf32>
    %348 = arith.addf %346, %347 : vector<72x2xf32>
    %cst_106 = arith.constant 0.055555556 : f32
    %349 = vector.broadcast %cst_106 : f32 to vector<72x2xf32>
    %350 = arith.mulf %348, %349 : vector<72x2xf32>
    %c0_107 = arith.constant 0 : index
    %c50 = arith.constant 50 : index
    %351 = vector.load %arg16[%c0_107, %c50] : memref<72x64xf32, #tpu.memory_space<vmem>>, vector<72x2xf32>
    tpu.vector_store %arg16[%c0_107, %c50], %350 {strides = array<i32>} : memref<72x64xf32, #tpu.memory_space<vmem>>, vector<72x2xf32>,
    %352 = vector.extract_strided_slice %295 {offsets = [0, 48], sizes = [72, 2], strides = [1, 1]} : vector<72x74xf32> to vector<72x2xf32>
    %353 = vector.extract_strided_slice %295 {offsets = [0, 50], sizes = [72, 2], strides = [1, 1]} : vector<72x74xf32> to vector<72x2xf32>
    %354 = arith.addf %352, %353 : vector<72x2xf32>
    %355 = vector.extract_strided_slice %295 {offsets = [0, 52], sizes = [72, 2], strides = [1, 1]} : vector<72x74xf32> to vector<72x2xf32>
    %356 = arith.addf %354, %355 : vector<72x2xf32>
    %357 = vector.extract_strided_slice %295 {offsets = [0, 54], sizes = [72, 2], strides = [1, 1]} : vector<72x74xf32> to vector<72x2xf32>
    %358 = arith.addf %356, %357 : vector<72x2xf32>
    %359 = vector.extract_strided_slice %295 {offsets = [0, 56], sizes = [72, 2], strides = [1, 1]} : vector<72x74xf32> to vector<72x2xf32>
    %360 = arith.addf %358, %359 : vector<72x2xf32>
    %361 = vector.extract_strided_slice %295 {offsets = [0, 58], sizes = [72, 2], strides = [1, 1]} : vector<72x74xf32> to vector<72x2xf32>
    %362 = arith.addf %360, %361 : vector<72x2xf32>
    %cst_108 = arith.constant 0.055555556 : f32
    %363 = vector.broadcast %cst_108 : f32 to vector<72x2xf32>
    %364 = arith.mulf %362, %363 : vector<72x2xf32>
    %c0_109 = arith.constant 0 : index
    %c52 = arith.constant 52 : index
    %365 = vector.load %arg16[%c0_109, %c52] : memref<72x64xf32, #tpu.memory_space<vmem>>, vector<72x2xf32>
    tpu.vector_store %arg16[%c0_109, %c52], %364 {strides = array<i32>} : memref<72x64xf32, #tpu.memory_space<vmem>>, vector<72x2xf32>,
    %c0_110 = arith.constant 0 : index
    %c0_111 = arith.constant 0 : index
    %366 = vector.load %arg16[%c0_110, %c0_111] : memref<72x64xf32, #tpu.memory_space<vmem>>, vector<72x64xf32>
    %c0_112 = arith.constant 0 : index
    %c0_113 = arith.constant 0 : index
    %c0_114 = arith.constant 0 : index
    %c0_115 = arith.constant 0 : index
    %367 = vector.load %arg10[%c0_112, %c0_113, %c0_114, %c0_115] : memref<1x6x72x1xf32, #tpu.memory_space<vmem>>, vector<1x6x72x1xf32>
    %368 = vector.shape_cast %367 : vector<1x6x72x1xf32> to vector<6x72x1xf32>
    %369 = vector.extract_strided_slice %368 {offsets = [0, 0, 0], sizes = [1, 72, 1], strides = [1, 1, 1]} : vector<6x72x1xf32> to vector<1x72x1xf32>
    %370 = vector.shape_cast %369 : vector<1x72x1xf32> to vector<72x1xf32>
    %371 = vector.extract_strided_slice %366 {offsets = [0, 0], sizes = [72, 42], strides = [1, 1]} : vector<72x64xf32> to vector<72x42xf32>
    %372 = vector.broadcast %370 : vector<72x1xf32> to vector<72x42xf32>
    %373 = arith.mulf %372, %371 : vector<72x42xf32>
    %374 = vector.extract_strided_slice %368 {offsets = [1, 0, 0], sizes = [1, 72, 1], strides = [1, 1, 1]} : vector<6x72x1xf32> to vector<1x72x1xf32>
    %375 = vector.shape_cast %374 : vector<1x72x1xf32> to vector<72x1xf32>
    %376 = vector.extract_strided_slice %366 {offsets = [0, 2], sizes = [72, 42], strides = [1, 1]} : vector<72x64xf32> to vector<72x42xf32>
    %377 = vector.broadcast %375 : vector<72x1xf32> to vector<72x42xf32>
    %378 = arith.mulf %377, %376 : vector<72x42xf32>
    %379 = arith.addf %373, %378 : vector<72x42xf32>
    %380 = vector.extract_strided_slice %368 {offsets = [2, 0, 0], sizes = [1, 72, 1], strides = [1, 1, 1]} : vector<6x72x1xf32> to vector<1x72x1xf32>
    %381 = vector.shape_cast %380 : vector<1x72x1xf32> to vector<72x1xf32>
    %382 = vector.extract_strided_slice %366 {offsets = [0, 4], sizes = [72, 42], strides = [1, 1]} : vector<72x64xf32> to vector<72x42xf32>
    %383 = vector.broadcast %381 : vector<72x1xf32> to vector<72x42xf32>
    %384 = arith.mulf %383, %382 : vector<72x42xf32>
    %385 = arith.addf %379, %384 : vector<72x42xf32>
    %386 = vector.extract_strided_slice %368 {offsets = [3, 0, 0], sizes = [1, 72, 1], strides = [1, 1, 1]} : vector<6x72x1xf32> to vector<1x72x1xf32>
    %387 = vector.shape_cast %386 : vector<1x72x1xf32> to vector<72x1xf32>
    %388 = vector.extract_strided_slice %366 {offsets = [0, 14], sizes = [72, 42], strides = [1, 1]} : vector<72x64xf32> to vector<72x42xf32>
    %389 = vector.broadcast %387 : vector<72x1xf32> to vector<72x42xf32>
    %390 = arith.mulf %389, %388 : vector<72x42xf32>
    %391 = arith.addf %385, %390 : vector<72x42xf32>
    %392 = vector.extract_strided_slice %368 {offsets = [4, 0, 0], sizes = [1, 72, 1], strides = [1, 1, 1]} : vector<6x72x1xf32> to vector<1x72x1xf32>
    %393 = vector.shape_cast %392 : vector<1x72x1xf32> to vector<72x1xf32>
    %394 = vector.extract_strided_slice %366 {offsets = [0, 16], sizes = [72, 42], strides = [1, 1]} : vector<72x64xf32> to vector<72x42xf32>
    %395 = vector.broadcast %393 : vector<72x1xf32> to vector<72x42xf32>
    %396 = arith.mulf %395, %394 : vector<72x42xf32>
    %397 = arith.addf %391, %396 : vector<72x42xf32>
    %398 = vector.extract_strided_slice %368 {offsets = [5, 0, 0], sizes = [1, 72, 1], strides = [1, 1, 1]} : vector<6x72x1xf32> to vector<1x72x1xf32>
    %399 = vector.shape_cast %398 : vector<1x72x1xf32> to vector<72x1xf32>
    %400 = vector.extract_strided_slice %366 {offsets = [0, 18], sizes = [72, 42], strides = [1, 1]} : vector<72x64xf32> to vector<72x42xf32>
    %401 = vector.broadcast %399 : vector<72x1xf32> to vector<72x42xf32>
    %402 = arith.mulf %401, %400 : vector<72x42xf32>
    %403 = arith.addf %397, %402 : vector<72x42xf32>
    %c0_116 = arith.constant 0 : index
    %c0_117 = arith.constant 0 : index
    %c0_118 = arith.constant 0 : index
    %404 = vector.load %arg11[%c0_116, %c0_117, %c0_118] : memref<1x72x1xf32, #tpu.memory_space<vmem>>, vector<1x72x1xf32>
    %405 = vector.shape_cast %404 : vector<1x72x1xf32> to vector<72x1xf32>
    %406 = vector.broadcast %405 : vector<72x1xf32> to vector<72x42xf32>
    %407 = arith.addf %403, %406 : vector<72x42xf32>
    %cst_119 = arith.constant 0.000000e+00 : f32
    %408 = vector.broadcast %cst_119 : f32 to vector<72x42xf32>
    %409 = arith.cmpf ogt, %407, %408 : vector<72x42xf32>
    %cst_120 = arith.constant 0.000000e+00 : f32
    %410 = vector.broadcast %cst_120 : f32 to vector<72x42xf32>
    %411 = arith.minimumf %407, %410 : vector<72x42xf32>
    %412 = math.exp %411 : vector<72x42xf32>
    %cst_121 = arith.constant 1.000000e+00 : f32
    %413 = vector.broadcast %cst_121 : f32 to vector<72x42xf32>
    %414 = arith.subf %412, %413 : vector<72x42xf32>
    %415 = arith.select %409, %407, %414 : vector<72x42xi1>, vector<72x42xf32>
    %c0_122 = arith.constant 0 : index
    %c0_123 = arith.constant 0 : index
    %c0_124 = arith.constant 0 : index
    %416 = vector.load %arg12[%c0_122, %c0_123, %c0_124] : memref<1x72x1xf32, #tpu.memory_space<vmem>>, vector<1x72x1xf32>
    %417 = vector.shape_cast %416 : vector<1x72x1xf32> to vector<72x1xf32>
    %418 = vector.broadcast %417 : vector<72x1xf32> to vector<72x42xf32>
    %419 = arith.mulf %415, %418 : vector<72x42xf32>
    %c0_125 = arith.constant 0 : index
    %c0_126 = arith.constant 0 : index
    %c0_127 = arith.constant 0 : index
    %420 = vector.load %arg13[%c0_125, %c0_126, %c0_127] : memref<1x72x1xf32, #tpu.memory_space<vmem>>, vector<1x72x1xf32>
    %421 = vector.shape_cast %420 : vector<1x72x1xf32> to vector<72x1xf32>
    %422 = vector.broadcast %421 : vector<72x1xf32> to vector<72x42xf32>
    %423 = arith.addf %419, %422 : vector<72x42xf32>
    %424 = vector.extract_strided_slice %423 {offsets = [0, 0], sizes = [72, 2], strides = [1, 1]} : vector<72x42xf32> to vector<72x2xf32>
    %425 = vector.extract_strided_slice %423 {offsets = [0, 2], sizes = [72, 2], strides = [1, 1]} : vector<72x42xf32> to vector<72x2xf32>
    %426 = arith.addf %424, %425 : vector<72x2xf32>
    %427 = vector.extract_strided_slice %423 {offsets = [0, 4], sizes = [72, 2], strides = [1, 1]} : vector<72x42xf32> to vector<72x2xf32>
    %428 = arith.addf %426, %427 : vector<72x2xf32>
    %429 = vector.extract_strided_slice %423 {offsets = [0, 6], sizes = [72, 2], strides = [1, 1]} : vector<72x42xf32> to vector<72x2xf32>
    %430 = arith.addf %428, %429 : vector<72x2xf32>
    %431 = vector.extract_strided_slice %423 {offsets = [0, 14], sizes = [72, 2], strides = [1, 1]} : vector<72x42xf32> to vector<72x2xf32>
    %432 = arith.addf %430, %431 : vector<72x2xf32>
    %433 = vector.extract_strided_slice %423 {offsets = [0, 16], sizes = [72, 2], strides = [1, 1]} : vector<72x42xf32> to vector<72x2xf32>
    %434 = arith.addf %432, %433 : vector<72x2xf32>
    %435 = vector.extract_strided_slice %423 {offsets = [0, 18], sizes = [72, 2], strides = [1, 1]} : vector<72x42xf32> to vector<72x2xf32>
    %436 = arith.addf %434, %435 : vector<72x2xf32>
    %437 = vector.extract_strided_slice %423 {offsets = [0, 20], sizes = [72, 2], strides = [1, 1]} : vector<72x42xf32> to vector<72x2xf32>
    %438 = arith.addf %436, %437 : vector<72x2xf32>
    %cst_128 = arith.constant 1.250000e-01 : f32
    %439 = vector.broadcast %cst_128 : f32 to vector<72x2xf32>
    %440 = arith.mulf %438, %439 : vector<72x2xf32>
    %c0_129 = arith.constant 0 : index
    %c0_130 = arith.constant 0 : index
    %c0_131 = arith.constant 0 : index
    %c0_132 = arith.constant 0 : index
    %441 = vector.load %arg14[%c0_129, %c0_130, %c0_131, %c0_132] : memref<1x1x72x2xf32, #tpu.memory_space<vmem>>, vector<1x1x72x2xf32>
    %442 = vector.shape_cast %441 : vector<1x1x72x2xf32> to vector<72x2xf32>
    %443 = vector.shape_cast %440 : vector<72x2xf32> to vector<1x1x72x2xf32>
    tpu.vector_store %arg14[%c0_129, %c0_130, %c0_131, %c0_132], %443 {strides = array<i32>} : memref<1x1x72x2xf32, #tpu.memory_space<vmem>>, vector<1x1x72x2xf32>,
    return
  }
  func.func @transform_0(%arg0: i32, %arg1: i32) -> (i32, i32, i32, i32) {
    %c0_i32 = arith.constant 0 : i32
    %c0_i32_0 = arith.constant 0 : i32
    %c0_i32_1 = arith.constant 0 : i32
    return %arg0, %arg1, %c0_i32, %c0_i32_0 : i32, i32, i32, i32
  }
  func.func @transform_1(%arg0: i32, %arg1: i32) -> (i32, i32) {
    %c0_i32 = arith.constant 0 : i32
    %c0_i32_0 = arith.constant 0 : i32
    %c0_i32_1 = arith.constant 0 : i32
    return %c0_i32, %c0_i32_0 : i32, i32
  }
  func.func @transform_2(%arg0: i32, %arg1: i32) -> (i32, i32, i32, i32) {
    %c0_i32 = arith.constant 0 : i32
    %c0_i32_0 = arith.constant 0 : i32
    %c0_i32_1 = arith.constant 0 : i32
    %c0_i32_2 = arith.constant 0 : i32
    return %arg0, %c0_i32, %c0_i32_0, %c0_i32_1 : i32, i32, i32, i32
  }
  func.func @transform_3(%arg0: i32, %arg1: i32) -> (i32, i32, i32) {
    %c0_i32 = arith.constant 0 : i32
    %c0_i32_0 = arith.constant 0 : i32
    %c0_i32_1 = arith.constant 0 : i32
    return %arg0, %c0_i32, %c0_i32_0 : i32, i32, i32
  }
  func.func @transform_4(%arg0: i32, %arg1: i32) -> (i32, i32, i32) {
    %c0_i32 = arith.constant 0 : i32
    %c0_i32_0 = arith.constant 0 : i32
    %c0_i32_1 = arith.constant 0 : i32
    return %arg0, %c0_i32, %c0_i32_0 : i32, i32, i32
  }
  func.func @transform_5(%arg0: i32, %arg1: i32) -> (i32, i32, i32) {
    %c0_i32 = arith.constant 0 : i32
    %c0_i32_0 = arith.constant 0 : i32
    %c0_i32_1 = arith.constant 0 : i32
    return %arg0, %c0_i32, %c0_i32_0 : i32, i32, i32
  }
  func.func @transform_6(%arg0: i32, %arg1: i32) -> (i32, i32, i32) {
    %c0_i32 = arith.constant 0 : i32
    %c0_i32_0 = arith.constant 0 : i32
    %c0_i32_1 = arith.constant 0 : i32
    return %arg0, %c0_i32, %c0_i32_0 : i32, i32, i32
  }
  func.func @transform_7(%arg0: i32, %arg1: i32) -> (i32, i32, i32) {
    %c0_i32 = arith.constant 0 : i32
    %c0_i32_0 = arith.constant 0 : i32
    %c0_i32_1 = arith.constant 0 : i32
    return %arg0, %c0_i32, %c0_i32_0 : i32, i32, i32
  }
  func.func @transform_8(%arg0: i32, %arg1: i32) -> (i32, i32, i32, i32) {
    %c0_i32 = arith.constant 0 : i32
    %c0_i32_0 = arith.constant 0 : i32
    %c0_i32_1 = arith.constant 0 : i32
    %c0_i32_2 = arith.constant 0 : i32
    return %arg0, %c0_i32, %c0_i32_0, %c0_i32_1 : i32, i32, i32, i32
  }
  func.func @transform_9(%arg0: i32, %arg1: i32) -> (i32, i32, i32) {
    %c0_i32 = arith.constant 0 : i32
    %c0_i32_0 = arith.constant 0 : i32
    %c0_i32_1 = arith.constant 0 : i32
    return %arg0, %c0_i32, %c0_i32_0 : i32, i32, i32
  }
  func.func @transform_10(%arg0: i32, %arg1: i32) -> (i32, i32, i32) {
    %c0_i32 = arith.constant 0 : i32
    %c0_i32_0 = arith.constant 0 : i32
    %c0_i32_1 = arith.constant 0 : i32
    return %arg0, %c0_i32, %c0_i32_0 : i32, i32, i32
  }
  func.func @transform_11(%arg0: i32, %arg1: i32) -> (i32, i32, i32) {
    %c0_i32 = arith.constant 0 : i32
    %c0_i32_0 = arith.constant 0 : i32
    %c0_i32_1 = arith.constant 0 : i32
    return %arg0, %c0_i32, %c0_i32_0 : i32, i32, i32
  }
  func.func @transform_12(%arg0: i32, %arg1: i32) -> (i32, i32, i32, i32) {
    %c0_i32 = arith.constant 0 : i32
    %c0_i32_0 = arith.constant 0 : i32
    %c0_i32_1 = arith.constant 0 : i32
    return %arg0, %arg1, %c0_i32, %c0_i32_0 : i32, i32, i32, i32
  }
}

</mosaic_0001>

<bundles_post_ra>
// kernel: brain_grid_net_psd32.1
= control target key start
LH: loop header
LB: loop body
LE: loop exit
PB: predicated region body
PF: predicated region fallthrough
CT: control target
= control target key end

     0   :  { %s7963_s21 = smov 0   ;;  %s7965_s22 = smov 0   ;;  %s12700_s0 = inlined_call_operand.vmem [shape: f32[2,1,9,1480], index: 0, kind: input, shape index: {}]   ;;  %s12701_s1 = inlined_call_operand.vmem [shape: f32[1,888], index: 1, kind: input, shape index: {}]   ;;  %s12702_s2 = inlined_call_operand.vmem [shape: f32[2,9,9,1], index: 2, kind: input, shape index: {}]   ;;  %s12703_s3 = inlined_call_operand.vmem [shape: f32[2,9,1], index: 3, kind: input, shape index: {}]   ;;  %s12704_s4 = inlined_call_operand.vmem [shape: f32[2,72,162], index: 4, kind: input, shape index: {}]   ;;  %s12705_s5 = inlined_call_operand.vmem [shape: f32[2,72,1], index: 5, kind: input, shape index: {}]   ;;  %s12706_s6 = inlined_call_operand.vmem [shape: f32[2,72,1], index: 6, kind: input, shape index: {}]   ;;  %s12707_s7 = inlined_call_operand.vmem [shape: f32[2,72,1], index: 7, kind: input, shape index: {}]   ;;  %s12708_s8 = inlined_call_operand.vmem [shape: f32[2,6,72,1], index: 8, kind: input, shape index: {}]   ;;  %s12709_s9 = inlined_call_operand.vmem [shape: f32[2,72,1], index: 9, kind: input, shape index: {}]   ;;  %s12710_s10 = inlined_call_operand.vmem [shape: f32[2,72,1], index: 10, kind: input, shape index: {}]   ;;  %s12711_s11 = inlined_call_operand.vmem [shape: f32[2,72,1], index: 11, kind: input, shape index: {}]   ;;  %s12712_s12 = inlined_call_operand.vmem [shape: f32[2,1,72,2], index: 12, kind: output, shape index: {}]  }
   0x1   :  { %s7967_s23 = smov 0  }
   0x2 LB: > { %s34_s24 = sadd.s32 1, %s7859_s22  ;;  %p7350_p0 = scmp.ge.s32.totalorder %s7863_s23, 1  ;;  %s7863_s23 = sphi %s7967_s23, %s22_s23   ;;  %s7859_s22 = sphi %s7965_s22, %s13445_s22   ;;  %s7855_s21 = sphi %s7963_s21, %s13444_s21  }
   0x3   : > { %p36_p1 = scmp.ge.s32.totalorder %s34_s24, 2  ;;  %p482_p2 = scmp.lt.s32.totalorder %s7863_s23, 3 }
   0x5   : > { %s13447_s24 = smov (%p36_p1, %s34_s24), 0  ;;  %p483_p3 = pnand %p7350_p0, %p482_p2 }
   0x7   : > { %486 = sbr.rel (%p483_p3) target bundleno = 4634 (0x121a), region = 68 }
   0xe   : > { %p582_p4 = scmp.lt.s32.totalorder %s7855_s21, 1  ;;  %v7865_v0 = vmov 0   ;;  %s7866_s15 = smov 54   ;;  %vm12814_vm0 = vcmask 441344   ;;  %vm12808_vm1 = vcmask 883712   ;;  %vm12807_vm2 = vcmask 277504  }
   0xf   : > { %7681 = vset.pattern.permute.xlu1 %v7865_v0  ;;  %7680 = vset.pattern.permute.xlu0 %v7865_v0  ;;  %s7867_s16 = smov 108   ;;  %s12818_s17 = smov 34   ;;  %vm1179_vm3 = vcmask 719872   ;;  %vm1296_vm4 = vcmask 113664   ;;  %vm1429_vm5 = vcmask 556032   ;;  %vm1538_vm6 = vcmask 998400  }
  0x10   : > { %s13449_s21 = smov (!%p582_p4, %s7855_s21), 1  ;;  %s7869_s18 = smov 88   ;;  %vm1669_vm7 = vcmask 392192   ;;  %vm1885_vm15 = vcmask 204800  }
  0x11   : > { %s7620_s25 = smul.u32 144, %s13449_s21  ;;  %s7870_s19 = smov 14  }
  0x12   : > { %s7619_s29 = smul.u32 192, %s13449_s21  ;;  %s7871_s20 = smov 68  }
  0x13   : > { %s7989_s28 = scalar_lea.vmem %s12702_s2, %s7620_s25  ;;  %s7872_s26 = smov 122  }
  0x14   : > { %v652_v1 = vld [vmem:[%s7989_s28 + $0x10] sm:$0xff]  ;;  %v650_v2 = vld [vmem:[%s7989_s28] sm:$0xff]  ;;  %v653_v3 = vld [vmem:[%s7989_s28 + $0x18] sm:$0x1]  ;;  %s8005_s14 = scalar_lea.vmem %s12700_s0, %s7619_s29  ;;  %s7873_s27 = smov 48  }
  0x15   : > { %724 = vperm.xlu1 %7681, %v652_v1   ;;  %684 = vperm.xlu0 %7680, %v650_v2   ;;  %v651_v4 = vld [vmem:[%s7989_s28 + $0x8] sm:$0x1]  ;;  %v654_v6 = vld [vmem:[%s7989_s28 + $0x20] sm:$0xff]  ;;  %v657_v7 = vld [vmem:[%s7989_s28 + $0x38] sm:$0x1]  ;;  %s7476_s30 = sshll.u32 %s13449_s21, 4 }
  0x16   : > { %v655_v5 = vld [vmem:[%s7989_s28 + $0x28] sm:$0x1]  ;;  %v656_v8 = vld [vmem:[%s7989_s28 + $0x30] sm:$0xff]  ;;  %v658_v10 = vld [vmem:[%s7989_s28 + $0x40] sm:$0xff]  ;;  %s7877_s29 = smov 118   ;;  %s7879_s13 = smov 50  }
  0x17   : > { %v659_v9 = vld [vmem:[%s7989_s28 + $0x48] sm:$0x1]  ;;  %v8011_v12 = vld [vmem:[%s8005_s14] sm:$0xff]  ;;  %v8016_v16 = vld [vmem:[%s8005_s14 + $0x18] sm:$0xff] }
  0x18   : > { %v8008_v11 = vld [vmem:[%s8005_s14 + $0x8] sm:$0xff]  ;;  %v8019_v17 = vld [vmem:[%s8005_s14 + $0x10] sm:$0xff]  ;;  %v8029_v21 = vld [vmem:[%s8005_s14 + $0x20] sm:$0xff] }
  0x19   : > { %729 = vperm.xlu1 %7681, %v653_v3   ;;  %689 = vperm.xlu0 %7680, %v651_v4   ;;  %v8026_v20 = vld [vmem:[%s8005_s14 + $0x28] sm:$0xff]  ;;  %v8036_v24 = vld [vmem:[%s8005_s14 + $0x38] sm:$0xff]  ;;  %v8039_v25 = vld [vmem:[%s8005_s14 + $0x30] sm:$0xff] }
  0x1a   : > { %v715_v29 = vld [vmem:[%s8005_s14 + $0x68] sm:$0x1]  ;;  %v714_v30 = vld [vmem:[%s8005_s14 + $0x60] sm:$0x1]  ;;  %v717_v33 = vld [vmem:[%s8005_s14 + $0x78] sm:$0x1] }
  0x1b   : > { %v716_v34 = vld [vmem:[%s8005_s14 + $0x70] sm:$0x1]  ;;  %v719_v38 = vld [vmem:[%s8005_s14 + $0x88] sm:$0x1]  ;;  %v718_v39 = vld [vmem:[%s8005_s14 + $0x80] sm:$0x1] }
  0x1c   : > { %v721_v43 = vld [vmem:[%s8005_s14 + $0x98] sm:$0x1]  ;;  %v720_v44 = vld [vmem:[%s8005_s14 + $0x90] sm:$0x1]  ;;  %v8078_v54 = vld [vmem:[%s8005_s14 + $0x40] sm:$0xff] }
  0x1d   : > { %862 = vperm.xlu1 %7681, %v655_v5   ;;  %857 = vperm.xlu0 %7680, %v654_v6   ;;  %v848_v58 = vld [vmem:[%s8005_s14 + $0x70] sm:$0x1]  ;;  %v847_v59 = vld [vmem:[%s8005_s14 + $0x68] sm:$0x1]  ;;  %v850_v62 = vld [vmem:[%s8005_s14 + $0x80] sm:$0x1] }
  0x1e   : > { %v849_v63 = vld [vmem:[%s8005_s14 + $0x78] sm:$0x1]  ;;  %v852_v2 = vld [vmem:[%s8005_s14 + $0x90] sm:$0x1]  ;;  %v851_v3 = vld [vmem:[%s8005_s14 + $0x88] sm:$0x1] }
  0x1f   : > { %v854_v6 = vld [vmem:[%s8005_s14 + $0xa0] sm:$0x1] }
  0x21   : > { %979 = vperm.xlu1 %7681, %v657_v7   ;;  %974 = vperm.xlu0 %7680, %v656_v8   ;;  %v853_v7 = vld [vmem:[%s8005_s14 + $0x98] sm:$0x1] }
  0x25   : > { %1112 = vperm.xlu1 %7681, %v659_v9   ;;  %1107 = vperm.xlu0 %7680, %v658_v10  }
  0x94   : > { %v725_v13 = vpop.permute.xlu1 %724  ;;  %v8053_v35 = vpop.permute.xlu0 %684 }
  0x95   : > { %v733_v14 = vmul.f32 %v725_v13, %v8008_v11  ;;  %v732_v15 = vmul.f32 %v725_v13, %v8011_v12  ;;  %v735_v18 = vmul.f32 %v725_v13, %v8016_v16  ;;  %v734_v19 = vmul.f32 %v725_v13, %v8019_v17 }
  0x96   : > { %v737_v22 = vmul.f32 %v725_v13, %v8026_v20  ;;  %v736_v23 = vmul.f32 %v725_v13, %v8029_v21  ;;  %v739_v26 = vmul.f32 %v725_v13, %v8036_v24  ;;  %v738_v27 = vmul.f32 %v725_v13, %v8039_v25 }
  0x97   : > { %766 = vrot.lane.b32.xlu1 %v733_v14, %s7866_s15  ;;  %764 = vrot.lane.b32.xlu0 %v732_v15, %s7866_s15 }
  0x98   : > { %v730_v28 = vpop.permute.xlu1 %729  ;;  %v8059_v42 = vpop.permute.xlu0 %689 }
  0x99   : > { %v741_v31 = vmul.f32 %v730_v28, %v715_v29  ;;  %v740_v32 = vmul.f32 %v730_v28, %v714_v30  ;;  %v743_v36 = vmul.f32 %v730_v28, %v717_v33  ;;  %v742_v37 = vmul.f32 %v730_v28, %v716_v34 }
  0x9a   : > { %v745_v40 = vmul.f32 %v730_v28, %v719_v38  ;;  %v744_v41 = vmul.f32 %v730_v28, %v718_v39  ;;  %v747_v45 = vmul.f32 %v730_v28, %v721_v43  ;;  %v746_v46 = vmul.f32 %v730_v28, %v720_v44  ;;  %v8137_v44 = vld [vmem:[%s8005_s14 + $0x48] sm:$0xff] }
  0x9b   : > { %770 = vrot.lane.b32.xlu1 %v735_v18, %s7866_s15  ;;  %768 = vrot.lane.b32.xlu0 %v734_v19, %s7866_s15 }
  0x9c   : > { %v858_v47 = vpop.permute.xlu0 %857  ;;  %v863_v57 = vpop.permute.xlu1 %862 }
  0x9d   : > { %v866_v48 = vmul.f32 %v858_v47, %v8019_v17  ;;  %v865_v49 = vmul.f32 %v858_v47, %v8008_v11  ;;  %v868_v50 = vmul.f32 %v858_v47, %v8029_v21  ;;  %v867_v51 = vmul.f32 %v858_v47, %v8016_v16 }
  0x9e   : > { %v870_v52 = vmul.f32 %v858_v47, %v8039_v25  ;;  %v869_v53 = vmul.f32 %v858_v47, %v8026_v20  ;;  %v872_v55 = vmul.f32 %v858_v47, %v8078_v54  ;;  %v871_v56 = vmul.f32 %v858_v47, %v8036_v24 }
  0x9f   : > { %774 = vrot.lane.b32.xlu1 %v737_v22, %s7866_s15  ;;  %772 = vrot.lane.b32.xlu0 %v736_v23, %s7866_s15  ;;  %v874_v60 = vmul.f32 %v863_v57, %v848_v58  ;;  %v873_v61 = vmul.f32 %v863_v57, %v847_v59  ;;  %v876_v0 = vmul.f32 %v863_v57, %v850_v62 }
  0xa0   : > { %v875_v1 = vmul.f32 %v863_v57, %v849_v63  ;;  %v878_v4 = vmul.f32 %v863_v57, %v852_v2  ;;  %v877_v5 = vmul.f32 %v863_v57, %v851_v3  ;;  %v880_v8 = vmul.f32 %v863_v57, %v854_v6  ;;  %v975_v10 = vpop.permute.xlu0 %974 }
  0xa1   : > { %v879_v9 = vmul.f32 %v863_v57, %v853_v7  ;;  %v983_v13 = vmul.f32 %v975_v10, %v8019_v17  ;;  %v982_v14 = vmul.f32 %v975_v10, %v8008_v11  ;;  %v985_v15 = vmul.f32 %v975_v10, %v8029_v21 }
  0xa2   : > { %v984_v18 = vmul.f32 %v975_v10, %v8016_v16  ;;  %v987_v19 = vmul.f32 %v975_v10, %v8039_v25  ;;  %v986_v22 = vmul.f32 %v975_v10, %v8026_v20  ;;  %v989_v11 = vmul.f32 %v975_v10, %v8078_v54 }
  0xa3   : > { %778 = vrot.lane.b32.xlu1 %v739_v26, %s7866_s15  ;;  %776 = vrot.lane.b32.xlu0 %v738_v27, %s7866_s15  ;;  %v988_v23 = vmul.f32 %v975_v10, %v8036_v24  ;;  %v980_v26 = vpop.permute.xlu1 %979 }
  0xa4   : > { %v991_v27 = vmul.f32 %v980_v26, %v848_v58  ;;  %v990_v28 = vmul.f32 %v980_v26, %v847_v59  ;;  %v993_v29 = vmul.f32 %v980_v26, %v850_v62  ;;  %v992_v30 = vmul.f32 %v980_v26, %v849_v63  ;;  %v8168_v59 = vld [vmem:[%s8005_s14 + $0x98] sm:$0x1] }
  0xa5   : > { %v997_v33 = vmul.f32 %v980_v26, %v854_v6  ;;  %v996_v34 = vmul.f32 %v980_v26, %v853_v7  ;;  %v661_v7 = vld [vmem:[%s7989_s28 + $0x58] sm:$0x1] }
  0xa7   : > { %782 = vrot.lane.b32.xlu1 %v741_v31, %s7866_s15  ;;  %780 = vrot.lane.b32.xlu0 %v740_v32, %s7866_s15  ;;  %v995_v31 = vmul.f32 %v980_v26, %v852_v2  ;;  %v994_v32 = vmul.f32 %v980_v26, %v851_v3  ;;  %v1113_v47 = vpop.permute.xlu1 %1112  ;;  %v8185_v2 = vld [vmem:[%s8005_s14 + $0xa0] sm:$0x1] }
  0xa8   : > { %v1128_v63 = vmul.f32 %v1113_v47, %v8168_v59  ;;  %v1129_v6 = vmul.f32 %v1113_v47, %v8185_v2 }
  0xab   : > { %786 = vrot.lane.b32.xlu1 %v743_v36, %s7866_s15  ;;  %784 = vrot.lane.b32.xlu0 %v742_v37, %s7866_s15  ;;  %v1108_v36 = vpop.permute.xlu0 %1107 }
  0xac   : > { %v1116_v37 = vmul.f32 %v1108_v36, %v8016_v16  ;;  %v1115_v38 = vmul.f32 %v1108_v36, %v8019_v17  ;;  %v1118_v39 = vmul.f32 %v1108_v36, %v8026_v20  ;;  %v1119_v43 = vmul.f32 %v1108_v36, %v8039_v25 }
  0xaf   : > { %790 = vrot.lane.b32.xlu1 %v745_v40, %s7866_s15  ;;  %788 = vrot.lane.b32.xlu0 %v744_v41, %s7866_s15  ;;  %v1117_v40 = vmul.f32 %v1108_v36, %v8029_v21  ;;  %v1120_v41 = vmul.f32 %v1108_v36, %v8036_v24 }
  0xb3   : > { %794 = vrot.lane.b32.xlu1 %v747_v45, %s7866_s15  ;;  %792 = vrot.lane.b32.xlu0 %v746_v46, %s7866_s15  ;;  %v1122_v45 = vmul.f32 %v1108_v36, %v8137_v44  ;;  %v1121_v46 = vmul.f32 %v1108_v36, %v8078_v54 }
  0xb7   : > { %899 = vrot.lane.b32.xlu1 %v866_v48, %s7867_s16  ;;  %897 = vrot.lane.b32.xlu0 %v865_v49, %s7867_s16  ;;  %v8144_v48 = vld [vmem:[%s8005_s14 + $0x78] sm:$0x1]  ;;  %v8147_v49 = vld [vmem:[%s8005_s14 + $0x70] sm:$0x1] }
  0xbb   : > { %903 = vrot.lane.b32.xlu1 %v868_v50, %s7867_s16  ;;  %901 = vrot.lane.b32.xlu0 %v867_v51, %s7867_s16  ;;  %v1124_v50 = vmul.f32 %v1113_v47, %v8144_v48  ;;  %v1123_v51 = vmul.f32 %v1113_v47, %v8147_v49 }
  0xbf   : > { %907 = vrot.lane.b32.xlu1 %v870_v52, %s7867_s16  ;;  %905 = vrot.lane.b32.xlu0 %v869_v53, %s7867_s16  ;;  %v8154_v52 = vld [vmem:[%s8005_s14 + $0x88] sm:$0x1]  ;;  %v8157_v53 = vld [vmem:[%s8005_s14 + $0x80] sm:$0x1] }
  0xc0   : > { %v1126_v57 = vmul.f32 %v1113_v47, %v8154_v52  ;;  %v1125_v58 = vmul.f32 %v1113_v47, %v8157_v53 }
  0xc3   : > { %911 = vrot.lane.b32.xlu1 %v872_v55, %s7867_s16  ;;  %909 = vrot.lane.b32.xlu0 %v871_v56, %s7867_s16 }
  0xc7   : > { %915 = vrot.lane.b32.xlu1 %v874_v60, %s7867_s16  ;;  %913 = vrot.lane.b32.xlu0 %v873_v61, %s7867_s16  ;;  %v8171_v60 = vld [vmem:[%s8005_s14 + $0x90] sm:$0x1] }
  0xcb   : > { %919 = vrot.lane.b32.xlu1 %v876_v0, %s7867_s16  ;;  %917 = vrot.lane.b32.xlu0 %v875_v1, %s7867_s16  ;;  %v1127_v0 = vmul.f32 %v1113_v47, %v8171_v60  ;;  %v8182_v1 = vld [vmem:[%s8005_s14 + $0xa8] sm:$0x1] }
  0xcf   : > { %923 = vrot.lane.b32.xlu1 %v878_v4, %s7867_s16  ;;  %921 = vrot.lane.b32.xlu0 %v877_v5, %s7867_s16  ;;  %v1130_v5 = vmul.f32 %v1113_v47, %v8182_v1 }
  0xd3   : > { %927 = vrot.lane.b32.xlu1 %v880_v8, %s7867_s16  ;;  %925 = vrot.lane.b32.xlu0 %v879_v9, %s7867_s16  ;;  %v660_v8 = vld [vmem:[%s7989_s28 + $0x50] sm:$0xff] }
  0xd7   : > { %1016 = vrot.lane.b32.xlu1 %v983_v13, %s12818_s17  ;;  %1014 = vrot.lane.b32.xlu0 %v982_v14, %s12818_s17 }
  0xdb   : > { %1020 = vrot.lane.b32.xlu1 %v985_v15, %s12818_s17  ;;  %1018 = vrot.lane.b32.xlu0 %v984_v18, %s12818_s17 }
  0xdf   : > { %1024 = vrot.lane.b32.xlu1 %v987_v19, %s12818_s17  ;;  %1022 = vrot.lane.b32.xlu0 %v986_v22, %s12818_s17 }
  0xe3   : > { %1028 = vrot.lane.b32.xlu1 %v989_v11, %s12818_s17  ;;  %1026 = vrot.lane.b32.xlu0 %v988_v23, %s12818_s17 }
  0xe7   : > { %1032 = vrot.lane.b32.xlu1 %v991_v27, %s12818_s17  ;;  %1030 = vrot.lane.b32.xlu0 %v990_v28, %s12818_s17 }
  0xeb   : > { %1036 = vrot.lane.b32.xlu1 %v993_v29, %s12818_s17  ;;  %1034 = vrot.lane.b32.xlu0 %v992_v30, %s12818_s17 }
  0xef   : > { %1040 = vrot.lane.b32.xlu1 %v995_v31, %s12818_s17  ;;  %1038 = vrot.lane.b32.xlu0 %v994_v32, %s12818_s17 }
  0xf3   : > { %1044 = vrot.lane.b32.xlu1 %v997_v33, %s12818_s17  ;;  %1042 = vrot.lane.b32.xlu0 %v996_v34, %s12818_s17  ;;  %s9938_s17 = scalar_lea.vmem %s12704_s4, %s7620_s25 }
  0xf7   : > { %1149 = vrot.lane.b32.xlu1 %v1116_v37, %s7869_s18  ;;  %1147 = vrot.lane.b32.xlu0 %v1115_v38, %s7869_s18 }
  0xfb   : > { %1153 = vrot.lane.b32.xlu1 %v1118_v39, %s7869_s18  ;;  %1151 = vrot.lane.b32.xlu0 %v1117_v40, %s7869_s18 }
  0xff   : > { %1157 = vrot.lane.b32.xlu1 %v1120_v41, %s7869_s18  ;;  %1155 = vrot.lane.b32.xlu0 %v1119_v43, %s7869_s18 }
 0x103   : > { %1161 = vrot.lane.b32.xlu1 %v1122_v45, %s7869_s18  ;;  %1159 = vrot.lane.b32.xlu0 %v1121_v46, %s7869_s18 }
 0x107   : > { %1165 = vrot.lane.b32.xlu1 %v1124_v50, %s7869_s18  ;;  %1163 = vrot.lane.b32.xlu0 %v1123_v51, %s7869_s18 }
 0x109   : > { %v8161_v55 = vpop.permute.xlu1 %766  ;;  %v8163_v56 = vpop.permute.xlu0 %764 }
 0x10b   : > { %1169 = vrot.lane.b32.xlu1 %v1126_v57, %s7869_s18  ;;  %1167 = vrot.lane.b32.xlu0 %v1125_v58, %s7869_s18 }
 0x10d   : > { %v8175_v61 = vpop.permute.xlu1 %770  ;;  %v8177_v62 = vpop.permute.xlu0 %768 }
 0x10f   : > { %1173 = vrot.lane.b32.xlu1 %v1128_v63, %s7869_s18  ;;  %1171 = vrot.lane.b32.xlu0 %v1127_v0, %s7869_s18 }
 0x111   : > { %v8189_v3 = vpop.permute.xlu1 %774  ;;  %v8191_v4 = vpop.permute.xlu0 %772 }
 0x113   : > { %1177 = vrot.lane.b32.xlu1 %v1130_v5, %s7869_s18  ;;  %1175 = vrot.lane.b32.xlu0 %v1129_v6, %s7869_s18  ;;  %s7880_s18 = smov 46  }
 0x115   : > { %v8199_v9 = vpop.permute.xlu1 %778  ;;  %v8201_v10 = vpop.permute.xlu0 %776 }
 0x117   : > { %1229 = vperm.xlu1 %7681, %v661_v7   ;;  %1224 = vperm.xlu0 %7680, %v660_v8  }
 0x119   : > { %v8203_v13 = vpop.permute.xlu1 %782  ;;  %v8205_v14 = vpop.permute.xlu0 %780 }
 0x11d   : > { %v8207_v15 = vpop.permute.xlu1 %786  ;;  %v8209_v18 = vpop.permute.xlu0 %784 }
 0x121   : > { %v8211_v19 = vpop.permute.xlu1 %790  ;;  %v8213_v22 = vpop.permute.xlu0 %788 }
 0x125   : > { %v8215_v11 = vpop.permute.xlu1 %794  ;;  %v8217_v23 = vpop.permute.xlu0 %792 }
 0x129   : > { %v8219_v26 = vpop.permute.xlu1 %899  ;;  %v8221_v27 = vpop.permute.xlu0 %897 }
 0x12d   : > { %v8223_v28 = vpop.permute.xlu1 %903  ;;  %v8225_v29 = vpop.permute.xlu0 %901 }
 0x131   : > { %v8227_v30 = vpop.permute.xlu1 %907  ;;  %v8229_v31 = vpop.permute.xlu0 %905 }
 0x135   : > { %v8231_v32 = vpop.permute.xlu1 %911  ;;  %v8233_v33 = vpop.permute.xlu0 %909 }
 0x139   : > { %v8235_v34 = vpop.permute.xlu1 %915  ;;  %v8237_v36 = vpop.permute.xlu0 %913 }
 0x13d   : > { %v8239_v37 = vpop.permute.xlu1 %919  ;;  %v8241_v38 = vpop.permute.xlu0 %917 }
 0x13e   : > { %12936 = vst [vmem:[#allocation4_spill] sm:$0xff] %v8239_v37 }
 0x141   : > { %v8243_v39 = vpop.permute.xlu1 %923  ;;  %v8245_v40 = vpop.permute.xlu0 %921 }
 0x142   : > { %12937 = vst [vmem:[#allocation5_spill] sm:$0xff] %v8243_v39  ;;  %12938 = vst [vmem:[#allocation6_spill] sm:$0xff] %v8245_v40 }
 0x145   : > { %v8247_v41 = vpop.permute.xlu1 %927  ;;  %v8249_v43 = vpop.permute.xlu0 %925 }
 0x149   : > { %v8251_v45 = vpop.permute.xlu1 %1016  ;;  %v8253_v46 = vpop.permute.xlu0 %1014 }
 0x14a   : > { %12939 = vst [vmem:[#allocation7_spill] sm:$0xff] %v8251_v45  ;;  %12940 = vst [vmem:[#allocation8_spill] sm:$0xff] %v8253_v46 }
 0x14d   : > { %v8255_v47 = vpop.permute.xlu1 %1020  ;;  %v8257_v50 = vpop.permute.xlu0 %1018 }
 0x14e   : > { %12941 = vst [vmem:[#allocation9_spill] sm:$0xff] %v8255_v47  ;;  %12942 = vst [vmem:[#allocation10_spill] sm:$0xff] %v8257_v50 }
 0x151   : > { %v8259_v51 = vpop.permute.xlu0 %1022  ;;  %v8261_v57 = vpop.permute.xlu1 %1024 }
 0x152   : > { %12943 = vst [vmem:[#allocation11_spill] sm:$0xff] %v8259_v51  ;;  %12944 = vst [vmem:[#allocation12_spill] sm:$0xff] %v8261_v57 }
 0x155   : > { %v8263_v58 = vpop.permute.xlu0 %1026  ;;  %v8265_v63 = vpop.permute.xlu1 %1028 }
 0x159   : > { %v8267_v0 = vpop.permute.xlu0 %1030  ;;  %v8271_v6 = vpop.permute.xlu1 %1032 }
 0x15a   : > { %12945 = vst [vmem:[#allocation13_spill] sm:$0xff] %v8267_v0  ;;  %12947 = vst [vmem:[#allocation15_spill] sm:$0xff] %v8271_v6 }
 0x15d   : > { %v8269_v5 = vpop.permute.xlu0 %1034  ;;  %v8275_v8 = vpop.permute.xlu1 %1036 }
 0x15e   : > { %12946 = vst [vmem:[#allocation14_spill] sm:$0xff] %v8269_v5  ;;  %12949 = vst [vmem:[#allocation17_spill] sm:$0xff] %v8275_v8 }
 0x161   : > { %v8273_v7 = vpop.permute.xlu0 %1038  ;;  %v8281_v51 = vpop.permute.xlu1 %1040 }
 0x162   : > { %12948 = vst [vmem:[#allocation16_spill] sm:$0xff] %v8273_v7  ;;  %12951 = vst [vmem:[#allocation19_spill] sm:$0xff] %v8281_v51 }
 0x165   : > { %v8277_v47 = vpop.permute.xlu0 %1042  ;;  %v8285_v46 = vpop.permute.xlu1 %1044 }
 0x169   : > { %v8279_v50 = vpop.permute.xlu0 %1147  ;;  %v8289_v0 = vpop.permute.xlu1 %1149 }
 0x16a   : > { %12950 = vst [vmem:[#allocation18_spill] sm:$0xff] %v8279_v50  ;;  %12954 = vst [vmem:[#allocation22_spill] sm:$0xff] %v8289_v0 }
 0x16d   : > { %v8283_v57 = vpop.permute.xlu0 %1151  ;;  %v8293_v6 = vpop.permute.xlu1 %1153 }
 0x16e   : > { %12952 = vst [vmem:[#allocation20_spill] sm:$0xff] %v8283_v57  ;;  %12955 = vst [vmem:[#allocation23_spill] sm:$0xff] %v8293_v6 }
 0x171   : > { %v8287_v45 = vpop.permute.xlu0 %1155  ;;  %v8297_v8 = vpop.permute.xlu1 %1157 }
 0x172   : > { %12953 = vst [vmem:[#allocation21_spill] sm:$0xff] %v8287_v45  ;;  %12957 = vst [vmem:[#allocation25_spill] sm:$0xff] %v8297_v8 }
 0x175   : > { %v8291_v5 = vpop.permute.xlu0 %1159  ;;  %v8301_v50 = vpop.permute.xlu1 %1161 }
 0x179   : > { %v8295_v7 = vpop.permute.xlu0 %1163  ;;  %v8305_v57 = vpop.permute.xlu1 %1165 }
 0x17a   : > { %12956 = vst [vmem:[#allocation24_spill] sm:$0xff] %v8295_v7  ;;  %12960 = vst [vmem:[#allocation28_spill] sm:$0xff] %v8305_v57 }
 0x17d   : > { %v8299_v39 = vpop.permute.xlu0 %1167  ;;  %v8309_v45 = vpop.permute.xlu1 %1169 }
 0x17e   : > { %12958 = vst [vmem:[#allocation26_spill] sm:$0xff] %v8299_v39  ;;  %12961 = vst [vmem:[#allocation29_spill] sm:$0xff] %v8309_v45 }
 0x181   : > { %v8303_v51 = vpop.permute.xlu0 %1171  ;;  %v8315_v39 = vpop.permute.xlu1 %1173 }
 0x182   : > { %12959 = vst [vmem:[#allocation27_spill] sm:$0xff] %v8303_v51  ;;  %12962 = vst [vmem:[#allocation30_spill] sm:$0xff] %v8315_v39 }
 0x185   : > { %v8307_v40 = vpop.permute.xlu0 %1175  ;;  %v8323_v8 = vpop.permute.xlu1 %1177 }
 0x196   : > { %v1225_v0 = vpop.permute.xlu0 %1224  ;;  %v1230_v39 = vpop.permute.xlu1 %1229 }
 0x197   : > { %v1233_v37 = vmul.f32 %v1225_v0, %v8016_v16  ;;  %v1232_v6 = vmul.f32 %v1225_v0, %v8019_v17  ;;  %v1235_v51 = vmul.f32 %v1225_v0, %v8026_v20  ;;  %v1234_v7 = vmul.f32 %v1225_v0, %v8029_v21 }
 0x198   : > { %v1237_v45 = vmul.f32 %v1225_v0, %v8036_v24  ;;  %v1236_v57 = vmul.f32 %v1225_v0, %v8039_v25 }
 0x199   : > { %1266 = vrot.lane.b32.xlu1 %v1233_v37, %s7870_s19  ;;  %1264 = vrot.lane.b32.xlu0 %v1232_v6, %s7870_s19  ;;  %v1239_v37 = vmul.f32 %v1225_v0, %v8137_v44  ;;  %v1238_v6 = vmul.f32 %v1225_v0, %v8078_v54  ;;  %v1245_v0 = vmul.f32 %v1230_v39, %v8168_v59 }
 0x19d   : > { %1270 = vrot.lane.b32.xlu1 %v1235_v51, %s7870_s19  ;;  %1268 = vrot.lane.b32.xlu0 %v1234_v7, %s7870_s19  ;;  %v1241_v51 = vmul.f32 %v1230_v39, %v8144_v48  ;;  %v1240_v7 = vmul.f32 %v1230_v39, %v8147_v49  ;;  %v1244_v48 = vmul.f32 %v1230_v39, %v8171_v60 }
 0x19e   : > { %v1247_v49 = vmul.f32 %v1230_v39, %v8182_v1  ;;  %v803_v60 = vsel %vm12814_vm0, %v8201_v10, %v8199_v9  ;;  %v698_v1 = vmul.f32 %v8039_v25, %v8053_v35 }
 0x1a1   : > { %1274 = vrot.lane.b32.xlu1 %v1237_v45, %s7870_s19  ;;  %1272 = vrot.lane.b32.xlu0 %v1236_v57, %s7870_s19  ;;  %v1243_v45 = vmul.f32 %v1230_v39, %v8154_v52  ;;  %v1242_v57 = vmul.f32 %v1230_v39, %v8157_v53  ;;  %v663_v52 = vld [vmem:[%s7989_s28 + $0x68] sm:$0x1]  ;;  %v662_v53 = vld [vmem:[%s7989_s28 + $0x60] sm:$0xff] }
 0x1a5   : > { %1278 = vrot.lane.b32.xlu1 %v1239_v37, %s7870_s19  ;;  %1276 = vrot.lane.b32.xlu0 %v1238_v6, %s7870_s19  ;;  %v1246_v37 = vmul.f32 %v1230_v39, %v8185_v2 }
 0x1a9   : > { %1282 = vrot.lane.b32.xlu1 %v1241_v51, %s7870_s19  ;;  %1280 = vrot.lane.b32.xlu0 %v1240_v7, %s7870_s19  ;;  %v936_v51 = vsel %vm12808_vm1, %v8233_v33, %v8231_v32  ;;  %v831_v7 = vadd.f32 %v803_v60, %v698_v1 }
 0x1ab   : > { %v964_v9 = vadd.f32 %v936_v51, %v831_v7  ;;  %v681_v51 = vld [vmem:[%s8005_s14 + $0x90] sm:$0x1] }
 0x1ac   : > { %v705_v7 = vmul.f32 %v8059_v42, %v681_v51 }
 0x1ad   : > { %1286 = vrot.lane.b32.xlu1 %v1243_v45, %s7870_s19  ;;  %1284 = vrot.lane.b32.xlu0 %v1242_v57, %s7870_s19  ;;  %v1053_v45 = vsel %vm12807_vm2, %v8263_v58, %v8265_v63 }
 0x1b1   : > { %1290 = vrot.lane.b32.xlu1 %v1245_v0, %s7870_s19  ;;  %1288 = vrot.lane.b32.xlu0 %v1244_v48, %s7870_s19  ;;  %v1186_v48 = vsel %vm1179_vm3, %v8291_v5, %v8301_v50  ;;  %v810_v50 = vsel %vm12814_vm0, %v8217_v23, %v8215_v11  ;;  %v1193_v11 = vsel %vm1179_vm3, %v8307_v40, %v8323_v8 }
 0x1b5   : > { %1294 = vrot.lane.b32.xlu1 %v1247_v49, %s7870_s19  ;;  %1292 = vrot.lane.b32.xlu0 %v1246_v37, %s7870_s19  ;;  %v1081_v49 = vadd.f32 %v1053_v45, %v964_v9  ;;  %s600_s19 = scalar_lea.vmem %s12703_s3, %s7476_s30  ;;  %s7878_s30 = smov 52  }
 0x1b7   : > { %v1214_v37 = vadd.f32 %v1186_v48, %v1081_v49  ;;  %v943_v48 = vsel %vm12808_vm1, %v8249_v43, %v8247_v41  ;;  %v838_v49 = vadd.f32 %v810_v50, %v705_v7 }
 0x1b9   : > { %1362 = vperm.xlu1 %7681, %v663_v52   ;;  %1357 = vperm.xlu0 %7680, %v662_v53  }
 0x20b   : > { %v8349_v6 = vpop.permute.xlu1 %1266  ;;  %v8351_v59 = vpop.permute.xlu0 %1264 }
 0x20f   : > { %v8358_v2 = vpop.permute.xlu1 %1270  ;;  %v8360_v39 = vpop.permute.xlu0 %1268 }
 0x210   : > { %12963 = vst [vmem:[#allocation31_spill] sm:$0xff] %v8358_v2  ;;  %12964 = vst [vmem:[#allocation32_spill] sm:$0xff] %v8360_v39 }
 0x213   : > { %v8368_v57 = vpop.permute.xlu1 %1274  ;;  %v8370_v0 = vpop.permute.xlu0 %1272 }
 0x214   : > { %12965 = vst [vmem:[#allocation33_spill] sm:$0xff] %v8368_v57  ;;  %12966 = vst [vmem:[#allocation34_spill] sm:$0xff] %v8370_v0  ;;  %v664_v57 = vld [vmem:[%s7989_s28 + $0x70] sm:$0xff] }
 0x217   : > { %v1279_v32 = vpop.permute.xlu1 %1278  ;;  %v8375_v52 = vpop.permute.xlu0 %1276 }
 0x218   : > { %12967 = vst [vmem:[#allocation35_spill] sm:$0xff] %v8375_v52  ;;  %v1303_v53 = vsel %vm1296_vm4, %v8375_v52, %v1279_v32  ;;  %v971_v32 = vadd.f32 %v943_v48, %v838_v49  ;;  %v665_v52 = vld [vmem:[%s7989_s28 + $0x78] sm:$0x1] }
 0x219   : > { %v8379_v63 = vadd.f32 %v1303_v53, %v1214_v37  ;;  %v1060_v37 = vsel %vm12807_vm2, %v8277_v47, %v8285_v46 }
 0x21a   : > { %v1088_v51 = vadd.f32 %v1060_v37, %v971_v32  ;;  %v8424_v37 = vld [vmem:[%s8005_s14 + $0x50] sm:$0xff] }
 0x21b   : > { %v8381_v60 = vpop.permute.xlu1 %1282  ;;  %v8383_v1 = vpop.permute.xlu0 %1280 }
 0x21c   : > { %12968 = vst [vmem:[#allocation36_spill] sm:$0xff] %v8381_v60  ;;  %12969 = vst [vmem:[#allocation37_spill] sm:$0xff] %v8383_v1 }
 0x21f   : > { %v8390_v45 = vpop.permute.xlu1 %1286  ;;  %v8392_v9 = vpop.permute.xlu0 %1284 }
 0x220   : > { %12970 = vst [vmem:[#allocation38_spill] sm:$0xff] %v8390_v45  ;;  %12971 = vst [vmem:[#allocation39_spill] sm:$0xff] %v8392_v9  ;;  %v1221_v45 = vadd.f32 %v1193_v11, %v1088_v51 }
 0x223   : > { %v8400_v53 = vpop.permute.xlu1 %1290  ;;  %v8402_v1 = vpop.permute.xlu0 %1288 }
 0x224   : > { %12972 = vst [vmem:[#allocation40_spill] sm:$0xff] %v8400_v53  ;;  %12973 = vst [vmem:[#allocation41_spill] sm:$0xff] %v8402_v1  ;;  %v1354_v53 = vld [vmem:[%s8005_s14 + $0xb0] sm:$0x1]  ;;  %v1353_v1 = vld [vmem:[%s8005_s14 + $0xa8] sm:$0x1] }
 0x227   : > { %v1295_v9 = vpop.permute.xlu1 %1294  ;;  %v8407_v60 = vpop.permute.xlu0 %1292 }
 0x228   : > { %12974 = vst [vmem:[#allocation42_spill] sm:$0xff] %v8407_v60  ;;  %v1310_v41 = vsel %vm1296_vm4, %v8407_v60, %v1295_v9 }
 0x229   : > { %v8411_v50 = vadd.f32 %v1310_v41, %v1221_v45  ;;  %v8431_v41 = vld [vmem:[%s8005_s14 + $0x80] sm:$0x1] }
 0x238   : > { %v1358_v46 = vpop.permute.xlu0 %1357  ;;  %v1363_v51 = vpop.permute.xlu1 %1362 }
 0x239   : > { %v1366_v7 = vmul.f32 %v1358_v46, %v8029_v21  ;;  %v1365_v48 = vmul.f32 %v1358_v46, %v8016_v16  ;;  %v1368_v8 = vmul.f32 %v1358_v46, %v8039_v25  ;;  %v1367_v49 = vmul.f32 %v1358_v46, %v8026_v20 }
 0x23a   : > { %v1370_v45 = vmul.f32 %v1358_v46, %v8078_v54  ;;  %v1369_v9 = vmul.f32 %v1358_v46, %v8036_v24  ;;  %v1372_v32 = vmul.f32 %v1358_v46, %v8424_v37  ;;  %v1371_v11 = vmul.f32 %v1358_v46, %v8137_v44 }
 0x23b   : > { %1399 = vrot.lane.b32.xlu1 %v1366_v7, %s7871_s20  ;;  %1397 = vrot.lane.b32.xlu0 %v1365_v48, %s7871_s20  ;;  %v1347_v7 = vld [vmem:[%s8005_s14 + $0x78] sm:$0x1]  ;;  %v1374_v48 = vmul.f32 %v1363_v51, %v8431_v41 }
 0x23f   : > { %1403 = vrot.lane.b32.xlu1 %v1368_v8, %s7871_s20  ;;  %1401 = vrot.lane.b32.xlu0 %v1367_v49, %s7871_s20  ;;  %v1373_v8 = vmul.f32 %v1363_v51, %v1347_v7  ;;  %v8438_v49 = vld [vmem:[%s8005_s14 + $0x90] sm:$0x1] }
 0x240   : > { %v1376_v46 = vmul.f32 %v1363_v51, %v8438_v49 }
 0x243   : > { %1407 = vrot.lane.b32.xlu1 %v1370_v45, %s7871_s20  ;;  %1405 = vrot.lane.b32.xlu0 %v1369_v9, %s7871_s20  ;;  %v8441_v45 = vld [vmem:[%s8005_s14 + $0x88] sm:$0x1] }
 0x244   : > { %v1375_v9 = vmul.f32 %v1363_v51, %v8441_v45 }
 0x247   : > { %1411 = vrot.lane.b32.xlu1 %v1372_v32, %s7871_s20  ;;  %1409 = vrot.lane.b32.xlu0 %v1371_v11, %s7871_s20  ;;  %v1352_v32 = vld [vmem:[%s8005_s14 + $0xa0] sm:$0x1]  ;;  %v1351_v11 = vld [vmem:[%s8005_s14 + $0x98] sm:$0x1] }
 0x248   : > { %v1378_v7 = vmul.f32 %v1363_v51, %v1352_v32  ;;  %v1377_v60 = vmul.f32 %v1363_v51, %v1351_v11 }
 0x24b   : > { %1415 = vrot.lane.b32.xlu1 %v1374_v48, %s7871_s20  ;;  %1413 = vrot.lane.b32.xlu0 %v1373_v8, %s7871_s20  ;;  %v1380_v48 = vmul.f32 %v1363_v51, %v1354_v53  ;;  %v1379_v8 = vmul.f32 %v1363_v51, %v1353_v1 }
 0x24f   : > { %1419 = vrot.lane.b32.xlu1 %v1376_v46, %s7871_s20  ;;  %1417 = vrot.lane.b32.xlu0 %v1375_v9, %s7871_s20 }
 0x253   : > { %1423 = vrot.lane.b32.xlu1 %v1378_v7, %s7871_s20  ;;  %1421 = vrot.lane.b32.xlu0 %v1377_v60, %s7871_s20 }
 0x257   : > { %1427 = vrot.lane.b32.xlu1 %v1380_v48, %s7871_s20  ;;  %1425 = vrot.lane.b32.xlu0 %v1379_v8, %s7871_s20  ;;  %s7875_s20 = smov 124  }
 0x25b   : > { %1479 = vperm.xlu1 %7681, %v665_v52   ;;  %1474 = vperm.xlu0 %7680, %v664_v57  }
 0x2ad   : > { %v8459_v46 = vpop.permute.xlu1 %1399  ;;  %v8461_v9 = vpop.permute.xlu0 %1397 }
 0x2ae   : > { %12975 = vst [vmem:[#allocation43_spill] sm:$0xff] %v8459_v46  ;;  %12976 = vst [vmem:[#allocation44_spill] sm:$0xff] %v8461_v9 }
 0x2b1   : > { %v8463_v0 = vpop.permute.xlu1 %1403  ;;  %v8465_v2 = vpop.permute.xlu0 %1401 }
 0x2b2   : > { %12977 = vst [vmem:[#allocation45_spill] sm:$0xff] %v8463_v0  ;;  %12978 = vst [vmem:[#allocation46_spill] sm:$0xff] %v8465_v2 }
 0x2b5   : > { %v8467_v7 = vpop.permute.xlu1 %1407  ;;  %v8469_v60 = vpop.permute.xlu0 %1405 }
 0x2b6   : > { %12979 = vst [vmem:[#allocation47_spill] sm:$0xff] %v8467_v7  ;;  %12980 = vst [vmem:[#allocation48_spill] sm:$0xff] %v8469_v60 }
 0x2b9   : > { %v1412_v51 = vpop.permute.xlu1 %1411  ;;  %v8471_v48 = vpop.permute.xlu0 %1409 }
 0x2ba   : > { %v1436_v52 = vsel %vm1429_vm5, %v8471_v48, %v1412_v51 }
 0x2bb   : > { %v8476_v57 = vadd.f32 %v1436_v52, %v8379_v63 }
 0x2bd   : > { %12981 = vst [vmem:[#allocation49_spill] sm:$0xff] %v8476_v57  ;;  %v8478_v8 = vpop.permute.xlu1 %1415  ;;  %v8480_v9 = vpop.permute.xlu0 %1413 }
 0x2c1   : > { %v8482_v0 = vpop.permute.xlu1 %1419  ;;  %v8484_v2 = vpop.permute.xlu0 %1417 }
 0x2c2   : > { %12982 = vst [vmem:[#allocation50_spill] sm:$0xff] %v8482_v0 }
 0x2c5   : > { %v8486_v7 = vpop.permute.xlu1 %1423  ;;  %v8488_v60 = vpop.permute.xlu0 %1421 }
 0x2c6   : > { %12983 = vst [vmem:[#allocation51_spill] sm:$0xff] %v8486_v7  ;;  %12984 = vst [vmem:[#allocation52_spill] sm:$0xff] %v8488_v60 }
 0x2c9   : > { %v1428_v46 = vpop.permute.xlu1 %1427  ;;  %v8490_v39 = vpop.permute.xlu0 %1425 }
 0x2ca   : > { %v1443_v51 = vsel %vm1429_vm5, %v8490_v39, %v1428_v46 }
 0x2cb   : > { %v8495_v63 = vadd.f32 %v1443_v51, %v8411_v50 }
 0x2cd   : > { %12985 = vst [vmem:[#allocation53_spill] sm:$0xff] %v8495_v63 }
 0x2da   : > { %v1475_v52 = vpop.permute.xlu0 %1474  ;;  %v1480_v51 = vpop.permute.xlu1 %1479 }
 0x2db   : > { %v1483_v57 = vmul.f32 %v1475_v52, %v8026_v20  ;;  %v1482_v0 = vmul.f32 %v1475_v52, %v8029_v21  ;;  %v1485_v7 = vmul.f32 %v1475_v52, %v8036_v24  ;;  %v1484_v60 = vmul.f32 %v1475_v52, %v8039_v25 }
 0x2dc   : > { %v1487_v50 = vmul.f32 %v1475_v52, %v8137_v44  ;;  %v1486_v46 = vmul.f32 %v1475_v52, %v8078_v54  ;;  %v1488_v24 = vmul.f32 %v1475_v52, %v8424_v37  ;;  %v1491_v25 = vmul.f32 %v1480_v51, %v8438_v49  ;;  %v666_v49 = vld [vmem:[%s7989_s28 + $0x80] sm:$0xff] }
 0x2dd   : > { %1512 = vrot.lane.b32.xlu1 %v1483_v57, %s7872_s26  ;;  %1510 = vrot.lane.b32.xlu0 %v1482_v0, %s7872_s26  ;;  %v1489_v57 = vmul.f32 %v1480_v51, %v8431_v41  ;;  %v1490_v44 = vmul.f32 %v1480_v51, %v8441_v45  ;;  %v1493_v54 = vmul.f32 %v1480_v51, %v1352_v32 }
 0x2de   : > { %v1492_v0 = vmul.f32 %v1480_v51, %v1351_v11  ;;  %v1495_v41 = vmul.f32 %v1480_v51, %v1354_v53 }
 0x2e1   : > { %1516 = vrot.lane.b32.xlu1 %v1485_v7, %s7872_s26  ;;  %1514 = vrot.lane.b32.xlu0 %v1484_v60, %s7872_s26  ;;  %v1494_v7 = vmul.f32 %v1480_v51, %v1353_v1  ;;  %v667_v60 = vld [vmem:[%s7989_s28 + $0x88] sm:$0x1]  ;;  %s7876_s28 = smov 120  }
 0x2e5   : > { %1520 = vrot.lane.b32.xlu1 %v1487_v50, %s7872_s26  ;;  %1518 = vrot.lane.b32.xlu0 %v1486_v46, %s7872_s26 }
 0x2e9   : > { %1524 = vrot.lane.b32.xlu1 %v1489_v57, %s7872_s26  ;;  %1522 = vrot.lane.b32.xlu0 %v1488_v24, %s7872_s26 }
 0x2ed   : > { %1528 = vrot.lane.b32.xlu1 %v1491_v25, %s7872_s26  ;;  %1526 = vrot.lane.b32.xlu0 %v1490_v44, %s7872_s26  ;;  %v1580_v44 = vld [vmem:[%s8005_s14 + $0x28] sm:$0xff] }
 0x2f1   : > { %1532 = vrot.lane.b32.xlu1 %v1493_v54, %s7872_s26  ;;  %1530 = vrot.lane.b32.xlu0 %v1492_v0, %s7872_s26  ;;  %v1579_v54 = vld [vmem:[%s8005_s14 + $0x20] sm:$0xff] }
 0x2f5   : > { %1536 = vrot.lane.b32.xlu1 %v1495_v41, %s7872_s26  ;;  %1534 = vrot.lane.b32.xlu0 %v1494_v7, %s7872_s26 }
 0x2f9   : > { %1602 = vperm.xlu1 %7681, %v667_v60   ;;  %1597 = vperm.xlu0 %7680, %v666_v49   ;;  %v1582_v60 = vld [vmem:[%s8005_s14 + $0x38] sm:$0xff]  ;;  %v1581_v49 = vld [vmem:[%s8005_s14 + $0x30] sm:$0xff] }
 0x34f   : > { %v8523_v45 = vpop.permute.xlu0 %1510  ;;  %v8529_v53 = vpop.permute.xlu1 %1512 }
 0x353   : > { %v8525_v32 = vpop.permute.xlu0 %1514  ;;  %v8533_v52 = vpop.permute.xlu1 %1516 }
 0x357   : > { %v8527_v11 = vpop.permute.xlu0 %1518  ;;  %v8537_v46 = vpop.permute.xlu1 %1520 }
 0x358   : > { %12988 = vst [vmem:[#allocation56_spill] sm:$0xff] %v8537_v46 }
 0x35b   : > { %v8531_v1 = vpop.permute.xlu0 %1522  ;;  %v8541_v57 = vpop.permute.xlu1 %1524 }
 0x35c   : > { %12986 = vst [vmem:[#allocation54_spill] sm:$0xff] %v8531_v1  ;;  %12990 = vst [vmem:[#allocation58_spill] sm:$0xff] %v8541_v57  ;;  %v1583_v57 = vld [vmem:[%s8005_s14 + $0x40] sm:$0xff] }
 0x35f   : > { %v8535_v50 = vpop.permute.xlu0 %1526  ;;  %v8545_v25 = vpop.permute.xlu1 %1528 }
 0x360   : > { %12987 = vst [vmem:[#allocation55_spill] sm:$0xff] %v8535_v50  ;;  %12992 = vst [vmem:[#allocation60_spill] sm:$0xff] %v8545_v25  ;;  %v1584_v25 = vld [vmem:[%s8005_s14 + $0x48] sm:$0xff] }
 0x363   : > { %v8539_v51 = vpop.permute.xlu0 %1530  ;;  %v8553_v63 = vpop.permute.xlu1 %1532 }
 0x364   : > { %12989 = vst [vmem:[#allocation57_spill] sm:$0xff] %v8539_v51  ;;  %12993 = vst [vmem:[#allocation61_spill] sm:$0xff] %v8553_v63  ;;  %v1587_v63 = vld [vmem:[%s8005_s14 + $0x80] sm:$0x1] }
 0x367   : > { %v8543_v24 = vpop.permute.xlu0 %1534  ;;  %v8559_v50 = vpop.permute.xlu1 %1536 }
 0x368   : > { %12991 = vst [vmem:[#allocation59_spill] sm:$0xff] %v8543_v24  ;;  %12994 = vst [vmem:[#allocation62_spill] sm:$0xff] %v8559_v50  ;;  %v1589_v50 = vld [vmem:[%s8005_s14 + $0x90] sm:$0x1] }
 0x378   : > { %v1598_v0 = vpop.permute.xlu0 %1597 }
 0x379   : > { %v1606_v41 = vmul.f32 %v1598_v0, %v1580_v44  ;;  %v1605_v7 = vmul.f32 %v1598_v0, %v1579_v54  ;;  %v1608_v24 = vmul.f32 %v1598_v0, %v1582_v60  ;;  %v1607_v51 = vmul.f32 %v1598_v0, %v1581_v49  ;;  %v1603_v49 = vpop.permute.xlu1 %1602 }
 0x37a   : > { %v1610_v44 = vmul.f32 %v1598_v0, %v1584_v25  ;;  %v1609_v54 = vmul.f32 %v1598_v0, %v1583_v57  ;;  %v1611_v60 = vmul.f32 %v1598_v0, %v8424_v37  ;;  %v1613_v57 = vmul.f32 %v1603_v49, %v1587_v63  ;;  %v1590_v25 = vld [vmem:[%s8005_s14 + $0x98] sm:$0x1]  ;;  %v8582_v63 = vld [vmem:[%s12701_s1] sm:$0x7f] }
 0x37b   : > { %1639 = vrot.lane.b32.xlu1 %v1606_v41, %s7873_s27  ;;  %1637 = vrot.lane.b32.xlu0 %v1605_v7, %s7873_s27  ;;  %v1586_v41 = vld [vmem:[%s8005_s14 + $0x58] sm:$0xff]  ;;  %v1824_v37 = vlaneseq  ;;  %12996 = vst [vmem:[#allocation64_spill] sm:$0xff] %v8582_v63 }
 0x37c   : > { %v1612_v7 = vmul.f32 %v1598_v0, %v1586_v41  ;;  %v1616_v0 = vmul.f32 %v1603_v49, %v1590_v25  ;;  %v1592_v41 = vld [vmem:[%s8005_s14 + $0xa8] sm:$0x1] }
 0x37f   : > { %1643 = vrot.lane.b32.xlu1 %v1608_v24, %s7873_s27  ;;  %1641 = vrot.lane.b32.xlu0 %v1607_v51, %s7873_s27  ;;  %v1588_v24 = vld [vmem:[%s8005_s14 + $0x88] sm:$0x1] }
 0x380   : > { %v1614_v51 = vmul.f32 %v1603_v49, %v1588_v24  ;;  %v1618_v24 = vmul.f32 %v1603_v49, %v1592_v41  ;;  %v1712_v41 = vld [vmem:[%s600_s19] sm:$0xff] }
 0x383   : > { %1647 = vrot.lane.b32.xlu1 %v1610_v44, %s7873_s27  ;;  %1645 = vrot.lane.b32.xlu0 %v1609_v54, %s7873_s27  ;;  %v1615_v44 = vmul.f32 %v1603_v49, %v1589_v50  ;;  %v8573_v54 = vshrl.u32 %v1824_v37, 7  ;;  %v1593_v50 = vld [vmem:[%s8005_s14 + $0xb0] sm:$0x1] }
 0x385   : > { %12995 = vst [vmem:[#allocation63_spill] sm:$0xff] %v8573_v54 }
 0x387   : > { %1651 = vrot.lane.b32.xlu1 %v1612_v7, %s7873_s27  ;;  %1649 = vrot.lane.b32.xlu0 %v1611_v60, %s7873_s27  ;;  %v1591_v7 = vld [vmem:[%s8005_s14 + $0xa0] sm:$0x1]  ;;  %v1850_v60 = vsub.s32 6, %v8573_v54 }
 0x389   : > { %v8589_v25 = vrot.slane %v8582_v63, %v1850_v60  ;;  %v676_v60 = vld [vmem:[%s8005_s14 + $0x68] sm:$0x1]  ;;  %v696_v63 = vmul.f32 %v8029_v21, %v8053_v35 }
 0x38b   : > { %1655 = vrot.lane.b32.xlu1 %v1614_v51, %s7873_s27  ;;  %1653 = vrot.lane.b32.xlu0 %v1613_v57, %s7873_s27  ;;  %v1617_v51 = vmul.f32 %v1603_v49, %v1591_v7  ;;  %v1594_v57 = vld [vmem:[%s8005_s14 + $0xb8] sm:$0x1]  ;;  %12997 = vst [vmem:[#allocation65_spill] sm:$0xff] %v8589_v25  ;;  %v675_v7 = vld [vmem:[%s8005_s14 + $0x60] sm:$0x1] }
 0x38c   : > { %v1620_v37 = vmul.f32 %v1603_v49, %v1594_v57  ;;  %v797_v57 = vsel %vm12814_vm0, %v8163_v56, %v8161_v55  ;;  %v679_v25 = vld [vmem:[%s8005_s14 + $0x80] sm:$0x1]  ;;  %v699_v54 = vmul.f32 %v8059_v42, %v675_v7  ;;  %v798_v56 = vsel %vm12814_vm0, %v8161_v55, %v8177_v62 }
 0x38d   : > { %v703_v21 = vmul.f32 %v8059_v42, %v679_v25  ;;  %v801_v55 = vsel %vm12814_vm0, %v8191_v4, %v8189_v3  ;;  %v802_v7 = vsel %vm12814_vm0, %v8189_v3, %v8201_v10 }
 0x38f   : > { %1659 = vrot.lane.b32.xlu1 %v1616_v0, %s7873_s27  ;;  %1657 = vrot.lane.b32.xlu0 %v1615_v44, %s7873_s27  ;;  %v1619_v0 = vmul.f32 %v1603_v49, %v1593_v50  ;;  %v1713_v44 = vld [vmem:[%s600_s19 + $0x8] sm:$0x1]  ;;  %v692_v49 = vmul.f32 %v8011_v12, %v8053_v35  ;;  %v697_v12 = vmul.f32 %v8026_v20, %v8053_v35  ;;  %s7882_s19 = smov 106  }
 0x390   : > { %v7836_v50 = vld [vmem:[%s8005_s14 + $0x8] sm:$0xff] }
 0x391   : > { %v825_v46 = vadd.f32 %v797_v57, %v692_v49 }
 0x393   : > { %1663 = vrot.lane.b32.xlu1 %v1618_v24, %s7873_s27  ;;  %1661 = vrot.lane.b32.xlu0 %v1617_v51, %s7873_s27  ;;  %v677_v24 = vld [vmem:[%s8005_s14 + $0x70] sm:$0x1]  ;;  %v678_v51 = vld [vmem:[%s8005_s14 + $0x78] sm:$0x1] }
 0x394   : > { %v702_v1 = vmul.f32 %v8059_v42, %v678_v51  ;;  %v829_v51 = vadd.f32 %v801_v55, %v696_v63  ;;  %v938_v63 = vsel %vm12808_vm1, %v8235_v34, %v8241_v38 }
 0x397   : > { %1667 = vrot.lane.b32.xlu1 %v1620_v37, %s7873_s27  ;;  %1665 = vrot.lane.b32.xlu0 %v1619_v0, %s7873_s27  ;;  %v693_v37 = vmul.f32 %v7836_v50, %v8053_v35  ;;  %v694_v0 = vmul.f32 %v8019_v17, %v8053_v35  ;;  %v700_v50 = vmul.f32 %v8059_v42, %v676_v60 }
 0x398   : > { %v701_v17 = vmul.f32 %v8059_v42, %v677_v24 }
 0x399   : > { %v826_v60 = vadd.f32 %v798_v56, %v693_v37 }
 0x39b   : > { %1721 = vperm.xlu1 %7681, %v1713_v44   ;;  %1716 = vperm.xlu0 %7680, %v1712_v41   ;;  %v680_v44 = vld [vmem:[%s8005_s14 + $0x88] sm:$0x1]  ;;  %v695_v41 = vmul.f32 %v8016_v16, %v8053_v35  ;;  %v799_v16 = vsel %vm12814_vm0, %v8177_v62, %v8175_v61  ;;  %v800_v35 = vsel %vm12814_vm0, %v8175_v61, %v8191_v4  ;;  %s7874_s14 = smov 126  }
 0x39c   : > { %v704_v20 = vmul.f32 %v8059_v42, %v680_v44  ;;  %v804_v62 = vsel %vm12814_vm0, %v8205_v14, %v8203_v13  ;;  %v805_v42 = vsel %vm12814_vm0, %v8203_v13, %v8209_v18  ;;  %v806_v61 = vsel %vm12814_vm0, %v8209_v18, %v8207_v15 }
 0x39d   : > { %v807_v4 = vsel %vm12814_vm0, %v8207_v15, %v8213_v22  ;;  %v827_v10 = vadd.f32 %v799_v16, %v694_v0  ;;  %v808_v14 = vsel %vm12814_vm0, %v8213_v22, %v8211_v19  ;;  %v809_v13 = vsel %vm12814_vm0, %v8211_v19, %v8217_v23 }
 0x39e   : > { %v930_v18 = vsel %vm12808_vm1, %v8221_v27, %v8219_v26  ;;  %v828_v24 = vadd.f32 %v800_v35, %v695_v41  ;;  %v830_v15 = vadd.f32 %v802_v7, %v697_v12  ;;  %v832_v49 = vadd.f32 %v804_v62, %v699_v54  ;;  %v12998_v41 = vld [vmem:[#allocation4_spill] sm:$0xff]  ;;  %v12999_v12 = vld [vmem:[#allocation6_spill] sm:$0xff] }
 0x39f   : > { %v833_v57 = vadd.f32 %v805_v42, %v700_v50  ;;  %v834_v37 = vadd.f32 %v806_v61, %v701_v17  ;;  %v835_v44 = vadd.f32 %v807_v4, %v702_v1  ;;  %v931_v0 = vsel %vm12808_vm1, %v8219_v26, %v8225_v29  ;;  %v13000_v17 = vld [vmem:[#allocation5_spill] sm:$0xff]  ;;  %v13003_v42 = vld [vmem:[#allocation10_spill] sm:$0xff] }
 0x3a0   : > { %v836_v22 = vadd.f32 %v808_v14, %v703_v21  ;;  %v837_v56 = vadd.f32 %v809_v13, %v704_v20  ;;  %v958_v16 = vadd.f32 %v930_v18, %v825_v46  ;;  %v932_v19 = vsel %vm12808_vm1, %v8225_v29, %v8223_v28  ;;  %v13002_v21 = vld [vmem:[#allocation8_spill] sm:$0xff]  ;;  %v13004_v18 = vld [vmem:[#allocation9_spill] sm:$0xff] }
 0x3a1   : > { %v933_v54 = vsel %vm12808_vm1, %v8223_v28, %v8229_v31  ;;  %v934_v1 = vsel %vm12808_vm1, %v8229_v31, %v8227_v30  ;;  %v935_v26 = vsel %vm12808_vm1, %v8227_v30, %v8233_v33  ;;  %v937_v29 = vsel %vm12808_vm1, %v8237_v36, %v8235_v34  ;;  %v13001_v36 = vld [vmem:[#allocation7_spill] sm:$0xff] }
 0x3a2   : > { %v959_v46 = vadd.f32 %v931_v0, %v826_v60  ;;  %v939_v28 = vsel %vm12808_vm1, %v8241_v38, %v12998_v41  ;;  %v940_v31 = vsel %vm12808_vm1, %v12998_v41, %v12999_v12  ;;  %v960_v50 = vadd.f32 %v932_v19, %v827_v10  ;;  %v13008_v0 = vld [vmem:[#allocation13_spill] sm:$0xff]  ;;  %v13012_v41 = vld [vmem:[#allocation19_spill] sm:$0xff] }
 0x3a3   : > { %v941_v30 = vsel %vm12808_vm1, %v12999_v12, %v13000_v17  ;;  %v942_v33 = vsel %vm12808_vm1, %v13000_v17, %v8249_v43  ;;  %v1047_v34 = vsel %vm12807_vm2, %v13002_v21, %v13001_v36  ;;  %v961_v20 = vadd.f32 %v933_v54, %v828_v24  ;;  %v13010_v54 = vld [vmem:[#allocation17_spill] sm:$0xff]  ;;  %v13014_v12 = vld [vmem:[#allocation18_spill] sm:$0xff] }
 0x3a4   : > { %v962_v35 = vadd.f32 %v934_v1, %v829_v51  ;;  %v963_v38 = vadd.f32 %v935_v26, %v830_v15  ;;  %v965_v55 = vadd.f32 %v937_v29, %v832_v49  ;;  %v966_v7 = vadd.f32 %v938_v63, %v833_v57  ;;  %v13005_v51 = vld [vmem:[#allocation11_spill] sm:$0xff]  ;;  %v13006_v49 = vld [vmem:[#allocation12_spill] sm:$0xff] }
 0x3a5   : > { %v967_v62 = vadd.f32 %v939_v28, %v834_v37  ;;  %v968_v60 = vadd.f32 %v940_v31, %v835_v44  ;;  %v1048_v61 = vsel %vm12807_vm2, %v13001_v36, %v13003_v42  ;;  %v969_v43 = vadd.f32 %v941_v30, %v836_v22  ;;  %v13007_v44 = vld [vmem:[#allocation15_spill] sm:$0xff]  ;;  %v13011_v26 = vld [vmem:[#allocation16_spill] sm:$0xff]  ;;  %v13013_v28 = vld [vmem:[#allocation22_spill] sm:$0xff] }
 0x3a6   : > { %v970_v14 = vadd.f32 %v942_v33, %v837_v56  ;;  %v1075_v13 = vadd.f32 %v1047_v34, %v958_v16  ;;  %v1049_v24 = vsel %vm12807_vm2, %v13003_v42, %v13004_v18  ;;  %v1050_v15 = vsel %vm12807_vm2, %v13004_v18, %v13005_v51  ;;  %v13009_v16 = vld [vmem:[#allocation14_spill] sm:$0xff] }
 0x3a7   : > { %v1051_v57 = vsel %vm12807_vm2, %v13005_v51, %v13006_v49  ;;  %v1052_v37 = vsel %vm12807_vm2, %v13006_v49, %v8263_v58  ;;  %v1054_v22 = vsel %vm12807_vm2, %v13008_v0, %v13007_v44  ;;  %v1076_v56 = vadd.f32 %v1048_v61, %v959_v46 }
 0x3a8   : > { %v1055_v19 = vsel %vm12807_vm2, %v13007_v44, %v13009_v16  ;;  %v1056_v1 = vsel %vm12807_vm2, %v13009_v16, %v13010_v54  ;;  %v1057_v29 = vsel %vm12807_vm2, %v13010_v54, %v13011_v26  ;;  %v1077_v63 = vadd.f32 %v1049_v24, %v960_v50  ;;  %v13015_v50 = vld [vmem:[#allocation20_spill] sm:$0xff]  ;;  %v13016_v44 = vld [vmem:[#allocation23_spill] sm:$0xff]  ;;  %v13024_v54 = vld [vmem:[#allocation30_spill] sm:$0xff] }
 0x3a9   : > { %v1058_v58 = vsel %vm12807_vm2, %v13011_v26, %v13012_v41  ;;  %v1059_v46 = vsel %vm12807_vm2, %v13012_v41, %v8277_v47  ;;  %v1180_v31 = vsel %vm1179_vm3, %v13014_v12, %v13013_v28  ;;  %v1078_v17 = vadd.f32 %v1050_v15, %v961_v20  ;;  %v13021_v15 = vld [vmem:[#allocation26_spill] sm:$0xff] }
 0x3aa   : > { %v1079_v30 = vadd.f32 %v1051_v57, %v962_v35  ;;  %v1080_v33 = vadd.f32 %v1052_v37, %v963_v38  ;;  %v1082_v36 = vadd.f32 %v1054_v22, %v965_v55  ;;  %v1083_v21 = vadd.f32 %v1055_v19, %v966_v7  ;;  %v13017_v35 = vld [vmem:[#allocation21_spill] sm:$0xff]  ;;  %v13023_v22 = vld [vmem:[#allocation27_spill] sm:$0xff] }
 0x3ab   : > { %v1084_v34 = vadd.f32 %v1056_v1, %v967_v62  ;;  %v1085_v42 = vadd.f32 %v1057_v29, %v968_v60  ;;  %v1181_v61 = vsel %vm1179_vm3, %v13013_v28, %v13015_v50  ;;  %v1086_v47 = vadd.f32 %v1058_v58, %v969_v43  ;;  %v13018_v55 = vld [vmem:[#allocation25_spill] sm:$0xff]  ;;  %v13019_v60 = vld [vmem:[#allocation28_spill] sm:$0xff] }
 0x3ac   : > { %v1087_v51 = vadd.f32 %v1059_v46, %v970_v14  ;;  %v1208_v49 = vadd.f32 %v1180_v31, %v1075_v13  ;;  %v1182_v20 = vsel %vm1179_vm3, %v13015_v50, %v13016_v44  ;;  %v1183_v38 = vsel %vm1179_vm3, %v13016_v44, %v13017_v35  ;;  %v13020_v43 = vld [vmem:[#allocation24_spill] sm:$0xff]  ;;  %v13022_v37 = vld [vmem:[#allocation29_spill] sm:$0xff] }
 0x3ad   : > { %v1184_v7 = vsel %vm1179_vm3, %v13017_v35, %v13018_v55  ;;  %v1185_v62 = vsel %vm1179_vm3, %v13018_v55, %v8291_v5  ;;  %v1187_v14 = vsel %vm1179_vm3, %v13020_v43, %v13019_v60  ;;  %v1209_v13 = vadd.f32 %v1181_v61, %v1076_v56  ;;  %v13026_v35 = vld [vmem:[#allocation31_spill] sm:$0xff]  ;;  %v13033_v55 = vld [vmem:[#allocation38_spill] sm:$0xff] }
 0x3ae   : > { %v1188_v57 = vsel %vm1179_vm3, %v13019_v60, %v13021_v15  ;;  %v1189_v0 = vsel %vm1179_vm3, %v13021_v15, %v13022_v37  ;;  %v1190_v16 = vsel %vm1179_vm3, %v13022_v37, %v13023_v22  ;;  %v1210_v19 = vadd.f32 %v1182_v20, %v1077_v63  ;;  %v13025_v63 = vld [vmem:[#allocation32_spill] sm:$0xff]  ;;  %v13037_v37 = vld [vmem:[#allocation43_spill] sm:$0xff] }
 0x3af   : > { %v1191_v5 = vsel %vm1179_vm3, %v13023_v22, %v13024_v54  ;;  %v1192_v56 = vsel %vm1179_vm3, %v13024_v54, %v8307_v40  ;;  %v1297_v1 = vsel %vm1296_vm4, %v8351_v59, %v8349_v6  ;;  %v1211_v26 = vadd.f32 %v1183_v38, %v1078_v17  ;;  %v13027_v17 = vld [vmem:[#allocation34_spill] sm:$0xff] }
 0x3b0   : > { %v1212_v29 = vadd.f32 %v1184_v7, %v1079_v30  ;;  %v1213_v41 = vadd.f32 %v1185_v62, %v1080_v33  ;;  %v1215_v58 = vadd.f32 %v1187_v14, %v1082_v36  ;;  %v1216_v46 = vadd.f32 %v1188_v57, %v1083_v21  ;;  %v13028_v33 = vld [vmem:[#allocation33_spill] sm:$0xff]  ;;  %v13035_v14 = vld [vmem:[#allocation40_spill] sm:$0xff]  ;;  %v13036_v57 = vld [vmem:[#allocation42_spill] sm:$0xff] }
 0x3b1   : > { %v1217_v28 = vadd.f32 %v1189_v0, %v1084_v34  ;;  %v1218_v12 = vadd.f32 %v1190_v16, %v1085_v42  ;;  %v1298_v31 = vsel %vm1296_vm4, %v8349_v6, %v13025_v63  ;;  %v1219_v40 = vadd.f32 %v1191_v5, %v1086_v47  ;;  %v13029_v6 = vld [vmem:[#allocation35_spill] sm:$0xff]  ;;  %v13030_v34 = vld [vmem:[#allocation36_spill] sm:$0xff]  ;;  %v13031_v42 = vld [vmem:[#allocation37_spill] sm:$0xff] }
 0x3b2   : > { %v1220_v44 = vadd.f32 %v1192_v56, %v1087_v51  ;;  %v1325_v20 = vadd.f32 %v1297_v1, %v1208_v49  ;;  %v1299_v59 = vsel %vm1296_vm4, %v13025_v63, %v13026_v35  ;;  %v1300_v30 = vsel %vm1296_vm4, %v13026_v35, %v13027_v17  ;;  %v13032_v49 = vld [vmem:[#allocation39_spill] sm:$0xff]  ;;  %v13034_v62 = vld [vmem:[#allocation41_spill] sm:$0xff]  ;;  %v13038_v0 = vld [vmem:[#allocation44_spill] sm:$0xff] }
 0x3b3   : > { %v1301_v36 = vsel %vm1296_vm4, %v13027_v17, %v13028_v33  ;;  %v1302_v21 = vsel %vm1296_vm4, %v13028_v33, %v13029_v6  ;;  %v1304_v47 = vsel %vm1296_vm4, %v13031_v42, %v13030_v34  ;;  %v1326_v51 = vadd.f32 %v1298_v31, %v1209_v13  ;;  %v13040_v42 = vld [vmem:[#allocation45_spill] sm:$0xff] }
 0x3b4   : > { %v1305_v38 = vsel %vm1296_vm4, %v13030_v34, %v13032_v49  ;;  %v1306_v7 = vsel %vm1296_vm4, %v13032_v49, %v13033_v55  ;;  %v1307_v60 = vsel %vm1296_vm4, %v13033_v55, %v13034_v62  ;;  %v1327_v43 = vadd.f32 %v1299_v59, %v1210_v19  ;;  %v13039_v19 = vld [vmem:[#allocation46_spill] sm:$0xff] }
 0x3b5   : > { %v1308_v15 = vsel %vm1296_vm4, %v13034_v62, %v13035_v14  ;;  %v1309_v13 = vsel %vm1296_vm4, %v13035_v14, %v13036_v57  ;;  %v1430_v22 = vsel %vm1429_vm5, %v13038_v0, %v13037_v37  ;;  %v1328_v16 = vadd.f32 %v1300_v30, %v1211_v26  ;;  %v13041_v26 = vld [vmem:[#allocation48_spill] sm:$0xff] }
 0x3b6   : > { %v1329_v54 = vadd.f32 %v1301_v36, %v1212_v29  ;;  %v1330_v5 = vadd.f32 %v1302_v21, %v1213_v41  ;;  %v1332_v56 = vadd.f32 %v1304_v47, %v1215_v58  ;;  %v1333_v1 = vadd.f32 %v1305_v38, %v1216_v46  ;;  %v13042_v41 = vld [vmem:[#allocation47_spill] sm:$0xff]  ;;  %v13044_v36 = vld [vmem:[#allocation52_spill] sm:$0xff] }
 0x3b7   : > { %v1334_v63 = vadd.f32 %v1306_v7, %v1217_v28  ;;  %v1335_v31 = vadd.f32 %v1307_v60, %v1218_v12  ;;  %v1431_v35 = vsel %vm1429_vm5, %v13037_v37, %v13039_v19  ;;  %v1336_v33 = vadd.f32 %v1308_v15, %v1219_v40  ;;  %v13046_v0 = vld [vmem:[#allocation56_spill] sm:$0xff] }
 0x3b8   : > { %v1337_v6 = vadd.f32 %v1309_v13, %v1220_v44  ;;  %v1458_v34 = vadd.f32 %v1430_v22, %v1325_v20  ;;  %v1432_v49 = vsel %vm1429_vm5, %v13039_v19, %v13040_v42  ;;  %v1433_v29 = vsel %vm1429_vm5, %v13040_v42, %v13041_v26  ;;  %v13043_v44 = vld [vmem:[#allocation50_spill] sm:$0xff] }
 0x3b9   : > { %v1434_v58 = vsel %vm1429_vm5, %v13041_v26, %v13042_v41  ;;  %v1435_v46 = vsel %vm1429_vm5, %v13042_v41, %v8471_v48  ;;  %v1459_v28 = vadd.f32 %v1431_v35, %v1326_v51  ;;  %v1437_v12 = vsel %vm1429_vm5, %v8480_v9, %v8478_v8  ;;  %v13045_v48 = vld [vmem:[#allocation51_spill] sm:$0xff]  ;;  %v13052_v35 = vld [vmem:[#allocation61_spill] sm:$0xff] }
 0x3ba   : > { %v1438_v40 = vsel %vm1429_vm5, %v8478_v8, %v8484_v2  ;;  %v1439_v20 = vsel %vm1429_vm5, %v8484_v2, %v13043_v44  ;;  %v1460_v30 = vadd.f32 %v1432_v49, %v1327_v43  ;;  %v1440_v21 = vsel %vm1429_vm5, %v13043_v44, %v13044_v36  ;;  %v13055_v41 = vld [vmem:[#allocation49_spill] sm:$0xff] }
 0x3bb   : > { %v1441_v47 = vsel %vm1429_vm5, %v13044_v36, %v13045_v48  ;;  %v1442_v9 = vsel %vm1429_vm5, %v13045_v48, %v8490_v39  ;;  %v1461_v51 = vadd.f32 %v1433_v29, %v1328_v16  ;;  %v1462_v38 = vadd.f32 %v1434_v58, %v1329_v54  ;;  %v13047_v16 = vld [vmem:[#allocation54_spill] sm:$0xff] }
 0x3bc   : > { %v1463_v8 = vadd.f32 %v1435_v46, %v1330_v5  ;;  %v1539_v2 = vsel %vm1538_vm6, %v8523_v45, %v8529_v53  ;;  %v1465_v55 = vadd.f32 %v1437_v12, %v1332_v56  ;;  %v1466_v7 = vadd.f32 %v1438_v40, %v1333_v1  ;;  %v13048_v5 = vld [vmem:[#allocation55_spill] sm:$0xff]  ;;  %v13049_v56 = vld [vmem:[#allocation58_spill] sm:$0xff] }
 0x3bd   : > { %v1467_v62 = vadd.f32 %v1439_v20, %v1334_v63  ;;  %v1540_v60 = vsel %vm1538_vm6, %v8529_v53, %v8525_v32  ;;  %v1468_v15 = vadd.f32 %v1440_v21, %v1335_v31  ;;  %v1469_v57 = vadd.f32 %v1441_v47, %v1336_v33  ;;  %v13050_v63 = vld [vmem:[#allocation60_spill] sm:$0xff]  ;;  %v13051_v31 = vld [vmem:[#allocation57_spill] sm:$0xff]  ;;  %v13053_v33 = vld [vmem:[#allocation59_spill] sm:$0xff] }
 0x3be   : > { %v1470_v13 = vadd.f32 %v1442_v9, %v1337_v6  ;;  %v1541_v39 = vsel %vm1538_vm6, %v8525_v32, %v8533_v52  ;;  %v1565_v37 = vadd.f32 %v1539_v2, %v1458_v34  ;;  %v1542_v45 = vsel %vm1538_vm6, %v8533_v52, %v8527_v11  ;;  %v13054_v34 = vld [vmem:[#allocation62_spill] sm:$0xff] }
 0x3bf   : > { %v1543_v22 = vsel %vm1538_vm6, %v8527_v11, %v13046_v0  ;;  %v1544_v53 = vsel %vm1538_vm6, %v13046_v0, %v13047_v16  ;;  %v1566_v54 = vadd.f32 %v1540_v60, %v1459_v28  ;;  %v1545_v1 = vsel %vm1538_vm6, %v13049_v56, %v13048_v5 }
 0x3c0   : > { %v1546_v32 = vsel %vm1538_vm6, %v13048_v5, %v13050_v63  ;;  %v1547_v52 = vsel %vm1538_vm6, %v13050_v63, %v13051_v31  ;;  %v1567_v19 = vadd.f32 %v1541_v39, %v1460_v30  ;;  %v1548_v11 = vsel %vm1538_vm6, %v13051_v31, %v13052_v35  ;;  %v13056_v30 = vld [vmem:[#allocation53_spill] sm:$0xff] }
 0x3c1   : > { %v1549_v6 = vsel %vm1538_vm6, %v13052_v35, %v13053_v33  ;;  %v1550_v42 = vsel %vm1538_vm6, %v13053_v33, %v13054_v34  ;;  %v1568_v49 = vadd.f32 %v1542_v45, %v1461_v51  ;;  %v1569_v26 = vadd.f32 %v1543_v22, %v1462_v38 }
 0x3c2   : > { %v1570_v29 = vadd.f32 %v1544_v53, %v1463_v8  ;;  %v1571_v58 = vadd.f32 %v13047_v16, %v13055_v41  ;;  %v1572_v46 = vadd.f32 %v1545_v1, %v1465_v55  ;;  %v1573_v28 = vadd.f32 %v1546_v32, %v1466_v7 }
 0x3c3   : > { %v1574_v12 = vadd.f32 %v1547_v52, %v1467_v62  ;;  %v1575_v20 = vadd.f32 %v1548_v11, %v1468_v15  ;;  %v1578_v36 = vadd.f32 %v13054_v34, %v13056_v30  ;;  %v1576_v21 = vadd.f32 %v1549_v6, %v1469_v57 }
 0x3c4   : > { %v1577_v48 = vadd.f32 %v1550_v42, %v1470_v13  ;;  %vm12810_vm2 = vcmask 207872   ;;  %vm2181_vm1 = vcmask 982016  }
 0x3ed   : > { %v8652_v25 = vpop.permute.xlu1 %1639  ;;  %v8654_v3 = vpop.permute.xlu0 %1637 }
 0x3ee   : > { %v1670_v8 = vsel %vm1669_vm7, %v8654_v3, %v8652_v25 }
 0x3f1   : > { %v8671_v23 = vpop.permute.xlu1 %1643  ;;  %v8673_v27 = vpop.permute.xlu0 %1641 }
 0x3f5   : > { %v8708_v4 = vpop.permute.xlu1 %1647  ;;  %v8710_v10 = vpop.permute.xlu0 %1645 }
 0x3f6   : > { %v1674_v3 = vsel %vm1669_vm7, %v8710_v10, %v8708_v4 }
 0x3f7   : > { %v1702_v32 = vadd.f32 %v1674_v3, %v1569_v26  ;;  %v13058_v3 = vld [vmem:[#allocation64_spill] sm:$0xff] }
 0x3f9   : > { %v8748_v18 = vpop.permute.xlu1 %1651  ;;  %v8750_v24 = vpop.permute.xlu0 %1649 }
 0x3fa   : > { %v1676_v1 = vsel %vm1669_vm7, %v8750_v24, %v8748_v18 }
 0x3fd   : > { %v8788_v50 = vpop.permute.xlu1 %1655  ;;  %v8790_v61 = vpop.permute.xlu0 %1653 }
 0x3fe   : > { %v1677_v47 = vsel %vm1669_vm7, %v8790_v61, %v8788_v50  ;;  %v1671_v61 = vsel %vm1669_vm7, %v8652_v25, %v8673_v27  ;;  %v1675_v25 = vsel %vm1669_vm7, %v8708_v4, %v8750_v24  ;;  %v1698_v4 = vadd.f32 %v1670_v8, %v1565_v37 }
 0x3ff   : > { %v1699_v5 = vadd.f32 %v1671_v61, %v1566_v54  ;;  %v1703_v31 = vadd.f32 %v1675_v25, %v1570_v29  ;;  %v1704_v54 = vadd.f32 %v1676_v1, %v1571_v58 }
 0x401   : > { %v1660_v59 = vpop.permute.xlu1 %1659  ;;  %v1658_v17 = vpop.permute.xlu0 %1657 }
 0x402   : > { %v1678_v9 = vsel %vm1669_vm7, %v8788_v50, %v1658_v17  ;;  %v1679_v51 = vsel %vm1669_vm7, %v1658_v17, %v1660_v59  ;;  %v1672_v50 = vsel %vm1669_vm7, %v8673_v27, %v8671_v23  ;;  %v1705_v17 = vadd.f32 %v1677_v47, %v1572_v46 }
 0x403   : > { %v1706_v62 = vadd.f32 %v1678_v9, %v1573_v28  ;;  %v1707_v60 = vadd.f32 %v1679_v51, %v1574_v12  ;;  %v1700_v56 = vadd.f32 %v1672_v50, %v1567_v19 }
 0x405   : > { %v1664_v43 = vpop.permute.xlu1 %1663  ;;  %v1662_v14 = vpop.permute.xlu0 %1661 }
 0x406   : > { %v1680_v38 = vsel %vm1669_vm7, %v1660_v59, %v1662_v14  ;;  %v1681_v2 = vsel %vm1669_vm7, %v1662_v14, %v1664_v43  ;;  %v1673_v59 = vsel %vm1669_vm7, %v8671_v23, %v8710_v10  ;;  %v13057_v10 = vld [vmem:[#allocation63_spill] sm:$0xff] }
 0x407   : > { %v1709_v14 = vadd.f32 %v1681_v2, %v1576_v21  ;;  %v1826_v0 = vsub.s32 0, %v13057_v10  ;;  %v1701_v63 = vadd.f32 %v1673_v59, %v1568_v49  ;;  %v1830_v30 = vsub.s32 1, %v13057_v10 }
 0x408   : > { %v1838_v21 = vsub.s32 3, %v13057_v10  ;;  %v1846_v47 = vsub.s32 5, %v13057_v10 }
 0x409   : > { %v1668_v40 = vpop.permute.xlu1 %1667  ;;  %v1666_v44 = vpop.permute.xlu0 %1665 }
 0x40a   : > { %v1682_v55 = vsel %vm1669_vm7, %v1664_v43, %v1666_v44  ;;  %v1683_v7 = vsel %vm1669_vm7, %v1666_v44, %v1668_v40  ;;  %v1708_v43 = vadd.f32 %v1680_v38, %v1575_v20  ;;  %v8987_v25 = vrot.slane %v13058_v3, %v1838_v21 }
 0x40b   : > { %v1710_v15 = vadd.f32 %v1682_v55, %v1577_v48  ;;  %v1711_v57 = vadd.f32 %v1683_v7, %v1578_v36  ;;  %v1834_v36 = vsub.s32 2, %v13057_v10  ;;  %v1842_v48 = vsub.s32 4, %v13057_v10 }
 0x41a   : > { %v1722_v27 = vpop.permute.xlu1 %1721  ;;  %v1717_v35 = vpop.permute.xlu0 %1716 }
 0x41b   : > { %v8926_v13 = vadd.f32 %v1722_v27, %v1705_v17  ;;  %v8928_v39 = vadd.f32 %v1722_v27, %v1706_v62  ;;  %v8930_v23 = vadd.f32 %v1722_v27, %v1707_v60  ;;  %v8932_v45 = vadd.f32 %v1722_v27, %v1708_v43 }
 0x41c   : > { %v8935_v22 = vadd.f32 %v1722_v27, %v1709_v14  ;;  %v8937_v16 = vadd.f32 %v1722_v27, %v1710_v15  ;;  %v8939_v53 = vadd.f32 %v1722_v27, %v1711_v57  ;;  %v8951_v26 = vadd.f32 %v1717_v35, %v1698_v4 }
 0x41d   : > { %v1759_v52 = vmin.f32 %v8926_v13, 0.0  ;;  %v1760_v11 = vmin.f32 %v8928_v39, 0.0  ;;  %v1761_v33 = vmin.f32 %v8930_v23, 0.0  ;;  %v1762_v6 = vmin.f32 %v8932_v45, 0.0 }
 0x41e   : > { %v1763_v37 = vmin.f32 %v8935_v22, 0.0  ;;  %v1764_v19 = vmin.f32 %v8937_v16, 0.0  ;;  %v1765_v34 = vmin.f32 %v8939_v53, 0.0  ;;  %v8953_v41 = vadd.f32 %v1717_v35, %v1699_v5 }
 0x41f   : > { %v1780_v18 = vmul.f32 1.442695, %v1759_v52  ;;  %v1782_v24 = vmul.f32 1.442695, %v1760_v11  ;;  %v1784_v42 = vmul.f32 1.442695, %v1761_v33  ;;  %v8955_v46 = vadd.f32 %v1717_v35, %v1700_v56 }
 0x420   : > { %v1786_v49 = vmul.f32 1.442695, %v1762_v6  ;;  %v1788_v29 = vmul.f32 1.442695, %v1763_v37  ;;  %v1790_v28 = vmul.f32 1.442695, %v1764_v19  ;;  %v8957_v58 = vadd.f32 %v1717_v35, %v1701_v63 }
 0x421   : > { %7682 = vpow2.f32 %v1780_v18  ;;  %v1792_v12 = vmul.f32 1.442695, %v1765_v34  ;;  %v8959_v40 = vadd.f32 %v1717_v35, %v1702_v32  ;;  %v8961_v44 = vadd.f32 %v1717_v35, %v1703_v31 }
 0x422   : > { %7684 = vpow2.f32 %v1782_v24  ;;  %v8963_v20 = vadd.f32 %v1717_v35, %v1704_v54  ;;  %v1752_v9 = vmin.f32 %v8951_v26, 0.0  ;;  %v1753_v51 = vmin.f32 %v8953_v41, 0.0 }
 0x423   : > { %7686 = vpow2.f32 %v1784_v42  ;;  %v1754_v38 = vmin.f32 %v8955_v46, 0.0  ;;  %v1755_v8 = vmin.f32 %v8957_v58, 0.0  ;;  %v1756_v2 = vmin.f32 %v8959_v40, 0.0 }
 0x424   : > { %7688 = vpow2.f32 %v1786_v49  ;;  %v1757_v55 = vmin.f32 %v8961_v44, 0.0  ;;  %v1758_v7 = vmin.f32 %v8963_v20, 0.0  ;;  %v1766_v61 = vmul.f32 1.442695, %v1752_v9 }
 0x425   : > { %7690 = vpow2.f32 %v1788_v29  ;;  %v1768_v50 = vmul.f32 1.442695, %v1753_v51  ;;  %v1770_v59 = vmul.f32 1.442695, %v1754_v38  ;;  %v8978_v17 = vrot.slane %v13058_v3, %v1826_v0 }
 0x426   : > { %7692 = vpow2.f32 %v1790_v28  ;;  %v8981_v62 = vrot.slane %v13058_v3, %v1830_v30  ;;  %v1772_v60 = vmul.f32 1.442695, %v1755_v8  ;;  %v8984_v43 = vrot.slane %v13058_v3, %v1834_v36  ;;  %v13059_v30 = vld [vmem:[#allocation65_spill] sm:$0xff] }
 0x427   : > { %7694 = vpow2.f32 %v1792_v12  ;;  %v1774_v14 = vmul.f32 1.442695, %v1756_v2  ;;  %v8990_v57 = vrot.slane %v13058_v3, %v1842_v48  ;;  %v8993_v27 = vrot.slane %v13058_v3, %v1846_v47 }
 0x428   : > { %7696 = vpow2.f32 %v1766_v61  ;;  %v1776_v10 = vmul.f32 1.442695, %v1757_v55  ;;  %vm1745_vm8 = vcmp.gt.f32.partialorder %v8926_v13, 0.0  ;;  %v1778_v5 = vmul.f32 1.442695, %v1758_v7 }
 0x429   : > { %7698 = vpow2.f32 %v1768_v50  ;;  %vm1746_vm9 = vcmp.gt.f32.partialorder %v8928_v39, 0.0  ;;  %vm1747_vm10 = vcmp.gt.f32.partialorder %v8930_v23, 0.0  ;;  %vm1748_vm11 = vcmp.gt.f32.partialorder %v8932_v45, 0.0 }
 0x42a   : > { %7700 = vpow2.f32 %v1770_v59  ;;  %vm1749_vm12 = vcmp.gt.f32.partialorder %v8935_v22, 0.0  ;;  %vm1750_vm13 = vcmp.gt.f32.partialorder %v8937_v16, 0.0  ;;  %vm1751_vm14 = vcmp.gt.f32.partialorder %v8939_v53, 0.0 }
 0x42b   : > { %v7683_v15 = vpop.eup %7682  ;;  %7702 = vpow2.f32 %v1772_v60  ;;  %vm1738_vm3 = vcmp.gt.f32.partialorder %v8951_v26, 0.0  ;;  %vm1739_vm4 = vcmp.gt.f32.partialorder %v8953_v41, 0.0  ;;  %vm1740_vm5 = vcmp.gt.f32.partialorder %v8955_v46, 0.0 }
 0x42c   : > { %v7685_v0 = vpop.eup %7684  ;;  %v7371_v4 = vadd.f32 -1.0, %v7683_v15  ;;  %7704 = vpow2.f32 %v1774_v14 }
 0x42d   : > { %v7687_v56 = vpop.eup %7686  ;;  %v7372_v1 = vadd.f32 -1.0, %v7685_v0  ;;  %7706 = vpow2.f32 %v1776_v10 }
 0x42e   : > { %v7689_v63 = vpop.eup %7688  ;;  %v7373_v32 = vadd.f32 -1.0, %v7687_v56  ;;  %v1815_v31 = vsel %vm1745_vm8, %v8926_v13, %v7371_v4  ;;  %7708 = vpow2.f32 %v1778_v5  ;;  %vm1741_vm8 = vcmp.gt.f32.partialorder %v8957_v58, 0.0 }
 0x42f   : > { %v7691_v52 = vpop.eup %7690  ;;  %v7374_v35 = vadd.f32 -1.0, %v7689_v63  ;;  %v1816_v11 = vsel %vm1746_vm9, %v8928_v39, %v7372_v1  ;;  %v9002_v33 = vmul.f32 %v8978_v17, %v1815_v31  ;;  %vm1742_vm9 = vcmp.gt.f32.partialorder %v8959_v40, 0.0 }
 0x430   : > { %v7693_v6 = vpop.eup %7692  ;;  %v7375_v37 = vadd.f32 -1.0, %v7691_v52  ;;  %v1817_v54 = vsel %vm1747_vm10, %v8930_v23, %v7373_v32  ;;  %v9006_v19 = vmul.f32 %v8981_v62, %v1816_v11  ;;  %vm1743_vm10 = vcmp.gt.f32.partialorder %v8961_v44, 0.0 }
 0x431   : > { %v7695_v34 = vpop.eup %7694  ;;  %v7376_v13 = vadd.f32 -1.0, %v7693_v6  ;;  %v1818_v39 = vsel %vm1748_vm11, %v8932_v45, %v7374_v35  ;;  %v9013_v18 = vmul.f32 %v8984_v43, %v1817_v54  ;;  %1880 = vst [vmem:[#allocation2 + $0x30] sm:$0x1] %v9002_v33  ;;  %vm1744_vm11 = vcmp.gt.f32.partialorder %v8963_v20, 0.0 }
 0x432   : > { %v7377_v23 = vadd.f32 -1.0, %v7695_v34  ;;  %v1819_v24 = vsel %vm1749_vm12, %v8935_v22, %v7375_v37  ;;  %v9019_v42 = vmul.f32 %v8987_v25, %v1818_v39  ;;  %1881 = vst [vmem:[#allocation2 + $0x38] sm:$0x1] %v9006_v19  ;;  %v7697_v29 = vpop.eup %7696  ;;  %vm1878_vm12 = vcmask 211968  }
 0x433   : > { %v1820_v49 = vsel %vm1750_vm13, %v8937_v16, %v7376_v13  ;;  %v9025_v45 = vmul.f32 %v8990_v57, %v1819_v24  ;;  %1882 = vst [vmem:[#allocation2 + $0x40] sm:$0x1] %v9013_v18  ;;  %v7699_v12 = vpop.eup %7698  ;;  %v7364_v16 = vadd.f32 -1.0, %v7697_v29  ;;  %v1906_v10 = vrot.slane %v9002_v33, 7 }
 0x434   : > { %v1821_v28 = vsel %vm1751_vm14, %v8939_v53, %v7377_v23  ;;  %v9030_v22 = vmul.f32 %v8993_v27, %v1820_v49  ;;  %1883 = vst [vmem:[#allocation2 + $0x48] sm:$0x1] %v9019_v42  ;;  %v7701_v21 = vpop.eup %7700  ;;  %v7365_v48 = vadd.f32 -1.0, %v7699_v12  ;;  %vm12802_vm13 = vcmask 1040384  }
 0x435   : > { %v9034_v36 = vmul.f32 %v13059_v30, %v1821_v28  ;;  %1884 = vst [vmem:[#allocation2 + $0x50] sm:$0x1] %v9025_v45  ;;  %v7703_v53 = vpop.eup %7702  ;;  %v7366_v47 = vadd.f32 -1.0, %v7701_v21  ;;  %v1808_v9 = vsel %vm1738_vm3, %v8951_v26, %v7364_v16  ;;  %v1908_v0 = vrot.slane %v9006_v19, 7 }
 0x436   : > { %1886 = vst.msk [vmem:[#allocation2 + $0x58] sm:$0x1] %vm1885_vm15, %v9030_v22  ;;  %v7705_v51 = vpop.eup %7704  ;;  %v7367_v38 = vadd.f32 -1.0, %v7703_v53  ;;  %v1809_v8 = vsel %vm1739_vm4, %v8953_v41, %v7365_v48  ;;  %v9047_v2 = vmul.f32 %v8978_v17, %v1808_v9  ;;  %v1910_v5 = vrot.slane %v9013_v18, 7 }
 0x437   : > { %13060 = vst [vmem:[#allocation4_spill] sm:$0xff] %v9034_v36  ;;  %v7707_v55 = vpop.eup %7706  ;;  %v7368_v7 = vadd.f32 -1.0, %v7705_v51  ;;  %v1810_v61 = vsel %vm1740_vm5, %v8955_v46, %v7366_v47  ;;  %v9052_v50 = vmul.f32 %v8981_v62, %v1809_v8  ;;  %v1912_v1 = vrot.slane %v9019_v42, 7 }
 0x438   : > { %v7709_v59 = vpop.eup %7708  ;;  %v7369_v26 = vadd.f32 -1.0, %v7707_v55  ;;  %v1811_v3 = vsel %vm1741_vm8, %v8957_v58, %v7367_v38  ;;  %v9056_v60 = vmul.f32 %v8984_v43, %v1810_v61  ;;  %v9059_v41 = vrot.slane %v9047_v2, 7 }
 0x439   : > { %v7370_v17 = vadd.f32 -1.0, %v7709_v59  ;;  %v1812_v14 = vsel %vm1742_vm9, %v8959_v40, %v7368_v7  ;;  %v9063_v15 = vmul.f32 %v8987_v25, %v1811_v3  ;;  %1874 = vst [vmem:[#allocation2 + $0x8] sm:$0xff] %v9052_v50  ;;  %v9067_v46 = vrot.slane %v9052_v50, 7 }
 0x43a   : > { %v1813_v58 = vsel %vm1743_vm10, %v8961_v44, %v7369_v26  ;;  %v9072_v62 = vmul.f32 %v8990_v57, %v1812_v14  ;;  %1875 = vst [vmem:[#allocation2 + $0x10] sm:$0xff] %v9056_v60  ;;  %1918 = vrot.lane.b32.xlu0 %v9059_v41, %s7874_s14  ;;  %v9089_v25 = vrot.slane %v9056_v60, 7  ;;  %v9114_v4 = vsel %vm12802_vm13, %v9059_v41, %v1906_v10 }
 0x43b   : > { %v1814_v40 = vsel %vm1744_vm11, %v8963_v20, %v7370_v17  ;;  %v9079_v43 = vmul.f32 %v8993_v27, %v1813_v58  ;;  %1876 = vst [vmem:[#allocation2 + $0x18] sm:$0xff] %v9063_v15  ;;  %1920 = vrot.lane.b32.xlu1 %v9067_v46, %s7874_s14  ;;  %v9092_v57 = vrot.slane %v9063_v15, 7  ;;  %v9119_v56 = vsel %vm12802_vm13, %v9067_v46, %v1908_v0 }
 0x43c   : > { %v9085_v44 = vmul.f32 %v13059_v30, %v1814_v40  ;;  %1877 = vst [vmem:[#allocation2 + $0x20] sm:$0xff] %v9072_v62  ;;  %v9101_v20 = vrot.slane %v9072_v62, 7  ;;  %v9128_v63 = vsel %vm12802_vm13, %v9089_v25, %v1910_v5  ;;  %v1914_v32 = vrot.slane %v9025_v45, 7 }
 0x43d   : > { %1879 = vst.msk [vmem:[#allocation2 + $0x28] sm:$0xff] %vm1878_vm12, %v9079_v43  ;;  %v9104_v27 = vrot.slane %v9079_v43, 7  ;;  %v9133_v31 = vsel %vm12802_vm13, %v9092_v57, %v1912_v1  ;;  %v1916_v52 = vrot.slane %v9030_v22, 7  ;;  %v9153_v6 = vrot.slane %v9047_v2, 6 }
 0x43e   : > { %13061 = vst [vmem:[#allocation6_spill] sm:$0xff] %v9085_v44  ;;  %1922 = vrot.lane.b32.xlu0 %v9089_v25, %s7874_s14  ;;  %v9142_v35 = vsel %vm12802_vm13, %v9101_v20, %v1914_v32  ;;  %v9156_v37 = vrot.slane %v9052_v50, 6  ;;  %v9163_v54 = vrot.slane %v9056_v60, 6  ;;  %v9166_v34 = vrot.slane %v9063_v15, 6 }
 0x43f   : > { %1924 = vrot.lane.b32.xlu1 %v9092_v57, %s7874_s14  ;;  %v9146_v11 = vsel %vm12802_vm13, %v9104_v27, %v1916_v52  ;;  %v9173_v13 = vrot.slane %v9072_v62, 6  ;;  %v9176_v39 = vrot.slane %v9079_v43, 6  ;;  %v1986_v23 = vrot.slane %v9002_v33, 6 }
 0x440   : > { %vm12797_vm14 = vcmask 1041408   ;;  %v1988_v24 = vrot.slane %v9006_v19, 6  ;;  %v1990_v29 = vrot.slane %v9013_v18, 6  ;;  %v1992_v12 = vrot.slane %v9019_v42, 6 }
 0x441   : > { %v9186_v49 = vsel %vm12797_vm14, %v9153_v6, %v1986_v23  ;;  %v1994_v16 = vrot.slane %v9025_v45, 6  ;;  %v1996_v48 = vrot.slane %v9030_v22, 6  ;;  %v9225_v9 = vrot.slane %v9047_v2, 5 }
 0x442   : > { %1926 = vrot.lane.b32.xlu0 %v9101_v20, %s7874_s14  ;;  %v9191_v28 = vsel %vm12797_vm14, %v9156_v37, %v1988_v24  ;;  %v9200_v30 = vsel %vm12797_vm14, %v9163_v54, %v1990_v29  ;;  %v9205_v21 = vsel %vm12797_vm14, %v9166_v34, %v1992_v12  ;;  %v9228_v51 = vrot.slane %v9052_v50, 5 }
 0x443   : > { %1928 = vrot.lane.b32.xlu1 %v9104_v27, %s7874_s14  ;;  %v9214_v53 = vsel %vm12797_vm14, %v9173_v13, %v1994_v16  ;;  %v9218_v47 = vsel %vm12797_vm14, %v9176_v39, %v1996_v48  ;;  %v9235_v38 = vrot.slane %v9056_v60, 5  ;;  %v9238_v8 = vrot.slane %v9063_v15, 5 }
 0x444   : > { %v9245_v55 = vrot.slane %v9072_v62, 5  ;;  %v9248_v7 = vrot.slane %v9079_v43, 5  ;;  %v2066_v61 = vrot.slane %v9002_v33, 5  ;;  %vm2059_vm3 = vcmask 1042432  }
 0x445   : > { %v2068_v59 = vrot.slane %v9006_v19, 5  ;;  %v2070_v3 = vrot.slane %v9013_v18, 5  ;;  %v2072_v14 = vrot.slane %v9019_v42, 5  ;;  %v2074_v40 = vrot.slane %v9025_v45, 5 }
 0x446   : > { %1930 = vrot.lane.b32.xlu0 %v9114_v4, %s7874_s14  ;;  %v9258_v26 = vsel %vm2059_vm3, %v9225_v9, %v2066_v61  ;;  %v2076_v0 = vrot.slane %v9030_v22, 5  ;;  %v2139_v32 = vrot.slane %v9047_v2, 4  ;;  %v9298_v52 = vrot.slane %v9052_v50, 4 }
 0x447   : > { %1932 = vrot.lane.b32.xlu1 %v9119_v56, %s7874_s14  ;;  %v9263_v17 = vsel %vm2059_vm3, %v9228_v51, %v2068_v59  ;;  %v9272_v58 = vsel %vm2059_vm3, %v9235_v38, %v2070_v3  ;;  %v9277_v10 = vsel %vm2059_vm3, %v9238_v8, %v2072_v14  ;;  %v9286_v5 = vsel %vm2059_vm3, %v9245_v55, %v2074_v40 }
 0x448   : > { %13062 = vst [vmem:[#allocation5_spill] sm:$0xff] %v9263_v17  ;;  %13063 = vst [vmem:[#allocation7_spill] sm:$0xff] %v9272_v58  ;;  %v9290_v1 = vsel %vm2059_vm3, %v9248_v7, %v2076_v0  ;;  %v9304_v23 = vrot.slane %v9056_v60, 4  ;;  %v9307_v24 = vrot.slane %v9063_v15, 4  ;;  %v9314_v29 = vrot.slane %v9072_v62, 4 }
 0x449   : > { %13064 = vst [vmem:[#allocation8_spill] sm:$0xff] %v9277_v10  ;;  %13065 = vst [vmem:[#allocation10_spill] sm:$0xff] %v9286_v5  ;;  %v9317_v12 = vrot.slane %v9079_v43, 4  ;;  %v2145_v16 = vrot.slane %v9002_v33, 4  ;;  %vm2138_vm4 = vcmask 1043456   ;;  %v2147_v48 = vrot.slane %v9006_v19, 4 }
 0x44a   : > { %1934 = vrot.lane.b32.xlu0 %v9128_v63, %s7874_s14  ;;  %13066 = vst [vmem:[#allocation9_spill] sm:$0xff] %v9290_v1  ;;  %13067 = vst [vmem:[#allocation11_spill] sm:$0xff] %v9298_v52  ;;  %v2149_v59 = vrot.slane %v9013_v18, 4  ;;  %v2151_v14 = vrot.slane %v9019_v42, 4  ;;  %v2153_v0 = vrot.slane %v9025_v45, 4  ;;  %v2225_v36 = vrot.slane %v9002_v33, 3 }
 0x44b   : > { %1936 = vrot.lane.b32.xlu1 %v9133_v31, %s7874_s14  ;;  %13068 = vst [vmem:[#allocation12_spill] sm:$0xff] %v9304_v23  ;;  %13069 = vst [vmem:[#allocation15_spill] sm:$0xff] %v9307_v24  ;;  %v2146_v61 = vsel %vm2138_vm4, %v2139_v32, %v2145_v16  ;;  %v9329_v3 = vsel %vm2138_vm4, %v9298_v52, %v2147_v48  ;;  %v2155_v16 = vrot.slane %v9030_v22, 4  ;;  %vm2218_vm5 = vcmask 1044480  }
 0x44c   : > { %13070 = vst [vmem:[#allocation13_spill] sm:$0xff] %v9314_v29  ;;  %13071 = vst [vmem:[#allocation14_spill] sm:$0xff] %v9317_v12  ;;  %v9337_v40 = vsel %vm2138_vm4, %v9304_v23, %v2149_v59  ;;  %v9351_v48 = vsel %vm2138_vm4, %v9314_v29, %v2153_v0  ;;  %v2219_v59 = vrot.slane %v9047_v2, 3  ;;  %v9369_v0 = vrot.slane %v9056_v60, 3 }
 0x44d   : > { %13072 = vst [vmem:[#allocation17_spill] sm:$0xff] %v9329_v3  ;;  %13073 = vst [vmem:[#allocation16_spill] sm:$0xff] %v9337_v40  ;;  %v2231_v44 = vrot.slane %v9019_v42, 3  ;;  %vm1942_vm8 = vcmask 1031168   ;;  %vm1970_vm9 = vcmask 211969   ;;  %vm2298_vm10 = vcmask 1045504  }
 0x44e   : > { %1938 = vrot.lane.b32.xlu0 %v9142_v35, %s7874_s14  ;;  %13075 = vst [vmem:[#allocation22_spill] sm:$0xff] %v9351_v48  ;;  %13078 = vst [vmem:[#allocation23_spill] sm:$0xff] %v9369_v0  ;;  %vm1977_vm11 = vcmask 205824   ;;  %vm2022_vm3 = vcmask 1014784   ;;  %vm2377_vm14 = vcmask 1046528   ;;  %vm2057_vm13 = vcmask 206848  }
 0x44f   : > { %1940 = vrot.lane.b32.xlu1 %v9146_v11, %s7874_s14 }
 0x452   : > { %1998 = vrot.lane.b32.xlu0 %v9153_v6, %s7875_s20 }
 0x453   : > { %2000 = vrot.lane.b32.xlu1 %v9156_v37, %s7875_s20 }
 0x456   : > { %2002 = vrot.lane.b32.xlu0 %v9163_v54, %s7875_s20 }
 0x457   : > { %2004 = vrot.lane.b32.xlu1 %v9166_v34, %s7875_s20 }
 0x45a   : > { %2006 = vrot.lane.b32.xlu0 %v9173_v13, %s7875_s20 }
 0x45b   : > { %2008 = vrot.lane.b32.xlu1 %v9176_v39, %s7875_s20 }
 0x45e   : > { %2010 = vrot.lane.b32.xlu0 %v9186_v49, %s7875_s20 }
 0x45f   : > { %2012 = vrot.lane.b32.xlu1 %v9191_v28, %s7875_s20 }
 0x462   : > { %2014 = vrot.lane.b32.xlu0 %v9200_v30, %s7875_s20 }
 0x463   : > { %2016 = vrot.lane.b32.xlu1 %v9205_v21, %s7875_s20 }
 0x466   : > { %2018 = vrot.lane.b32.xlu0 %v9214_v53, %s7875_s20 }
 0x467   : > { %2020 = vrot.lane.b32.xlu1 %v9218_v47, %s7875_s20 }
 0x46a   : > { %2078 = vrot.lane.b32.xlu0 %v9225_v9, %s7872_s26 }
 0x46b   : > { %2080 = vrot.lane.b32.xlu1 %v9228_v51, %s7872_s26 }
 0x46e   : > { %2082 = vrot.lane.b32.xlu0 %v9235_v38, %s7872_s26 }
 0x46f   : > { %2084 = vrot.lane.b32.xlu1 %v9238_v8, %s7872_s26 }
 0x472   : > { %2086 = vrot.lane.b32.xlu0 %v9245_v55, %s7872_s26 }
 0x473   : > { %2088 = vrot.lane.b32.xlu1 %v9248_v7, %s7872_s26 }
 0x476   : > { %2090 = vrot.lane.b32.xlu0 %v9258_v26, %s7872_s26 }
 0x477   : > { %2092 = vrot.lane.b32.xlu1 %v9263_v17, %s7872_s26 }
 0x47a   : > { %2094 = vrot.lane.b32.xlu0 %v9272_v58, %s7872_s26 }
 0x47b   : > { %2096 = vrot.lane.b32.xlu1 %v9277_v10, %s7872_s26 }
 0x47e   : > { %2098 = vrot.lane.b32.xlu0 %v9286_v5, %s7872_s26 }
 0x47f   : > { %2100 = vrot.lane.b32.xlu1 %v9290_v1, %s7872_s26 }
 0x482   : > { %2157 = vrot.lane.b32.xlu0 %v2139_v32, %s7876_s28  ;;  %v9342_v32 = vsel %vm2138_vm4, %v9307_v24, %v2151_v14  ;;  %v9363_v14 = vrot.slane %v9052_v50, 3 }
 0x483   : > { %2159 = vrot.lane.b32.xlu1 %v9298_v52, %s7876_s28  ;;  %13074 = vst [vmem:[#allocation19_spill] sm:$0xff] %v9342_v32 }
 0x484   : > { %13077 = vst [vmem:[#allocation20_spill] sm:$0xff] %v9363_v14 }
 0x486   : > { %2161 = vrot.lane.b32.xlu0 %v9304_v23, %s7876_s28 }
 0x487   : > { %2163 = vrot.lane.b32.xlu1 %v9307_v24, %s7876_s28  ;;  %v2233_v24 = vrot.slane %v9025_v45, 3 }
 0x48a   : > { %2165 = vrot.lane.b32.xlu0 %v9314_v29, %s7876_s28 }
 0x48b   : > { %2167 = vrot.lane.b32.xlu1 %v9317_v12, %s7876_s28 }
 0x48e   : > { %2169 = vrot.lane.b32.xlu0 %v2146_v61, %s7876_s28  ;;  %v9355_v61 = vsel %vm2138_vm4, %v9317_v12, %v2155_v16  ;;  %v9372_v16 = vrot.slane %v9063_v15, 3 }
 0x48f   : > { %2171 = vrot.lane.b32.xlu1 %v9329_v3, %s7876_s28  ;;  %13076 = vst [vmem:[#allocation18_spill] sm:$0xff] %v9355_v61  ;;  %v2229_v3 = vrot.slane %v9013_v18, 3 }
 0x490   : > { %13079 = vst [vmem:[#allocation21_spill] sm:$0xff] %v9372_v16 }
 0x491   : > { %v9402_v29 = vsel %vm2218_vm5, %v9369_v0, %v2229_v3 }
 0x492   : > { %2173 = vrot.lane.b32.xlu0 %v9337_v40, %s7876_s28  ;;  %v2226_v40 = vsel %vm2218_vm5, %v2219_v59, %v2225_v36  ;;  %13083 = vst [vmem:[#allocation26_spill] sm:$0xff] %v9402_v29  ;;  %v9407_v36 = vsel %vm2218_vm5, %v9372_v16, %v2231_v44 }
 0x493   : > { %2175 = vrot.lane.b32.xlu1 %v9342_v32, %s7876_s28  ;;  %v2227_v32 = vrot.slane %v9006_v19, 3  ;;  %13084 = vst [vmem:[#allocation29_spill] sm:$0xff] %v9407_v36 }
 0x495   : > { %v9394_v12 = vsel %vm2218_vm5, %v9363_v14, %v2227_v32 }
 0x496   : > { %2177 = vrot.lane.b32.xlu0 %v9351_v48, %s7876_s28  ;;  %v9382_v48 = vrot.slane %v9079_v43, 3  ;;  %13082 = vst [vmem:[#allocation24_spill] sm:$0xff] %v9394_v12 }
 0x497   : > { %2179 = vrot.lane.b32.xlu1 %v9355_v61, %s7876_s28  ;;  %v9379_v61 = vrot.slane %v9072_v62, 3 }
 0x498   : > { %13081 = vst [vmem:[#allocation28_spill] sm:$0xff] %v9382_v48 }
 0x499   : > { %13080 = vst [vmem:[#allocation25_spill] sm:$0xff] %v9379_v61  ;;  %v9416_v3 = vsel %vm2218_vm5, %v9379_v61, %v2233_v24 }
 0x49a   : > { %2237 = vrot.lane.b32.xlu0 %v2219_v59, %s7877_s29  ;;  %13085 = vst [vmem:[#allocation27_spill] sm:$0xff] %v9416_v3 }
 0x49b   : > { %2239 = vrot.lane.b32.xlu1 %v9363_v14, %s7877_s29 }
 0x49e   : > { %2241 = vrot.lane.b32.xlu0 %v9369_v0, %s7877_s29  ;;  %v9453_v0 = vrot.slane %v9079_v43, 2 }
 0x49f   : > { %2243 = vrot.lane.b32.xlu1 %v9372_v16, %s7877_s29 }
 0x4a0   : > { %13087 = vst [vmem:[#allocation32_spill] sm:$0xff] %v9453_v0 }
 0x4a2   : > { %2245 = vrot.lane.b32.xlu0 %v9379_v61, %s7877_s29  ;;  %v9430_v61 = vrot.slane %v9052_v50, 2 }
 0x4a3   : > { %2247 = vrot.lane.b32.xlu1 %v9382_v48, %s7877_s29 }
 0x4a6   : > { %2249 = vrot.lane.b32.xlu0 %v2226_v40, %s7877_s29  ;;  %v2235_v40 = vrot.slane %v9030_v22, 3 }
 0x4a7   : > { %2251 = vrot.lane.b32.xlu1 %v9394_v12, %s7877_s29 }
 0x4a8   : > { %v9421_v44 = vsel %vm2218_vm5, %v9382_v48, %v2235_v40  ;;  %v9437_v40 = vrot.slane %v9056_v60, 2 }
 0x4a9   : > { %13086 = vst [vmem:[#allocation30_spill] sm:$0xff] %v9421_v44 }
 0x4aa   : > { %2253 = vrot.lane.b32.xlu0 %v9402_v29, %s7877_s29  ;;  %v2299_v29 = vrot.slane %v9047_v2, 2 }
 0x4ab   : > { %2255 = vrot.lane.b32.xlu1 %v9407_v36, %s7877_s29 }
 0x4ac   : > { %v1919_v32 = vpop.permute.xlu0 %1918 }
 0x4ad   : > { %v1921_v59 = vpop.permute.xlu1 %1920 }
 0x4ae   : > { %v1943_v12 = vsel %vm1942_vm8, %v1919_v32, %v1921_v59  ;;  %2257 = vrot.lane.b32.xlu0 %v9416_v3, %s7877_s29  ;;  %v9441_v3 = vrot.slane %v9063_v15, 2 }
 0x4af   : > { %1965 = vst [vmem:[#allocation2 + $0x30] sm:$0xfe] %v1943_v12  ;;  %2259 = vrot.lane.b32.xlu1 %v9421_v44, %s7877_s29 }
 0x4b0   : > { %v1923_v36 = vpop.permute.xlu0 %1922 }
 0x4b1   : > { %v1925_v16 = vpop.permute.xlu1 %1924  ;;  %v1944_v24 = vsel %vm1942_vm8, %v1921_v59, %v1923_v36 }
 0x4b2   : > { %v1945_v32 = vsel %vm1942_vm8, %v1923_v36, %v1925_v16  ;;  %1966 = vst [vmem:[#allocation2 + $0x38] sm:$0xfe] %v1944_v24  ;;  %2317 = vrot.lane.b32.xlu0 %v2299_v29, %s7866_s15 }
 0x4b3   : > { %1967 = vst [vmem:[#allocation2 + $0x40] sm:$0xfe] %v1945_v32  ;;  %2319 = vrot.lane.b32.xlu1 %v9430_v61, %s7866_s15  ;;  %v9450_v32 = vrot.slane %v9072_v62, 2 }
 0x4b4   : > { %v1927_v12 = vpop.permute.xlu0 %1926 }
 0x4b5   : > { %v1929_v44 = vpop.permute.xlu1 %1928  ;;  %v1946_v59 = vsel %vm1942_vm8, %v1925_v16, %v1927_v12 }
 0x4b6   : > { %1971 = vst.msk [vmem:[#allocation2 + $0x58] sm:$0xfe] %vm1970_vm9, %v1929_v44  ;;  %v1947_v36 = vsel %vm1942_vm8, %v1927_v12, %v1929_v44  ;;  %1968 = vst [vmem:[#allocation2 + $0x48] sm:$0xfe] %v1946_v59  ;;  %2321 = vrot.lane.b32.xlu0 %v9437_v40, %s7866_s15  ;;  %v3085_v16 = vld [vmem:[#allocation2 + $0x30] sm:$0xff]  ;;  %v2305_v44 = vrot.slane %v9002_v33, 2 }
 0x4b7   : > { %1969 = vst [vmem:[#allocation2 + $0x50] sm:$0xfe] %v1947_v36  ;;  %2323 = vrot.lane.b32.xlu1 %v9441_v3, %s7866_s15  ;;  %v2307_v36 = vrot.slane %v9006_v19, 2  ;;  %v7479_v23 = vpack.c.bf16 %v3085_v16, %v9047_v2 }
 0x4b8   : > { %v1931_v24 = vpop.permute.xlu0 %1930  ;;  %v2306_v10 = vsel %vm2298_vm10, %v2299_v29, %v2305_v44 }
 0x4b9   : > { %v1933_v48 = vpop.permute.xlu1 %1932  ;;  %v3086_v14 = vld [vmem:[#allocation2 + $0x38] sm:$0xff] }
 0x4ba   : > { %v1948_v12 = vsel %vm1942_vm8, %v1931_v24, %v1933_v48  ;;  %2325 = vrot.lane.b32.xlu0 %v9450_v32, %s7866_s15  ;;  %v7477_v59 = vpack.c.bf16 %v3086_v14, %v9052_v50  ;;  %v3087_v1 = vld [vmem:[#allocation2 + $0x40] sm:$0xff]  ;;  %v2309_v14 = vrot.slane %v9013_v18, 2 }
 0x4bb   : > { %1972 = vst [vmem:[#allocation2 + $0x60] sm:$0x3] %v1948_v12  ;;  %2327 = vrot.lane.b32.xlu1 %v9453_v0, %s7866_s15  ;;  %v9470_v12 = vsel %vm2298_vm10, %v9430_v61, %v2307_v36 }
 0x4bc   : > { %7478 = vmatprep.subr.bf16.mxu0 %v7477_v59  ;;  %v1935_v52 = vpop.permute.xlu0 %1934  ;;  %13088 = vst [vmem:[#allocation31_spill] sm:$0xff] %v9470_v12  ;;  %v2311_v59 = vrot.slane %v9019_v42, 2 }
 0x4bd   : > { %v1937_v5 = vpop.permute.xlu1 %1936  ;;  %v1949_v24 = vsel %vm1942_vm8, %v1933_v48, %v1935_v52  ;;  %7480 = vmatpush1.bf16.msra.mxu0 %v7479_v23  ;;  %v3088_v58 = vld [vmem:[#allocation2 + $0x48] sm:$0xff]  ;;  %v7519_v23 = vpack.c.bf16 %v3087_v1, %v9056_v60 }
 0x4be   : > { %v1950_v17 = vsel %vm1942_vm8, %v1935_v52, %v1937_v5  ;;  %1973 = vst [vmem:[#allocation2 + $0x68] sm:$0x3] %v1949_v24  ;;  %2329 = vrot.lane.b32.xlu0 %v2306_v10, %s7866_s15  ;;  %v7517_v16 = vpack.c.bf16 %v3088_v58, %v9063_v15  ;;  %v9481_v10 = vsel %vm2298_vm10, %v9437_v40, %v2309_v14  ;;  %v2313_v58 = vrot.slane %v9025_v45, 2 }
 0x4bf   : > { %1974 = vst [vmem:[#allocation2 + $0x70] sm:$0x3] %v1950_v17  ;;  %2331 = vrot.lane.b32.xlu1 %v9470_v12, %s7866_s15  ;;  %13089 = vst [vmem:[#allocation34_spill] sm:$0xff] %v9481_v10  ;;  %v9488_v1 = vsel %vm2298_vm10, %v9441_v3, %v2311_v59  ;;  %v2388_v12 = vrot.slane %v9013_v18, 1 }
 0x4c0   : > { %7518 = vmatprep.subr.bf16.mxu1 %v7517_v16  ;;  %v1939_v52 = vpop.permute.xlu0 %1938  ;;  %13090 = vst [vmem:[#allocation33_spill] sm:$0xff] %v9488_v1  ;;  %v9497_v24 = vsel %vm2298_vm10, %v9450_v32, %v2313_v58 }
 0x4c1   : > { %v1941_v29 = vpop.permute.xlu1 %1940  ;;  %v1951_v48 = vsel %vm1942_vm8, %v1937_v5, %v1939_v52  ;;  %7520 = vmatpush1.bf16.msra.mxu1 %v7519_v23  ;;  %v2315_v5 = vrot.slane %v9030_v22, 2  ;;  %13091 = vst [vmem:[#allocation35_spill] sm:$0xff] %v9497_v24  ;;  %v2378_v23 = vrot.slane %v9047_v2, 1 }
 0x4c2   : > { %1978 = vst.msk [vmem:[#allocation2 + $0x88] sm:$0x3] %vm1977_vm11, %v1941_v29  ;;  %v1952_v17 = vsel %vm1942_vm8, %v1939_v52, %v1941_v29  ;;  %1975 = vst [vmem:[#allocation2 + $0x78] sm:$0x3] %v1951_v48  ;;  %2333 = vrot.lane.b32.xlu0 %v9481_v10, %s7866_s15  ;;  %v9511_v48 = vrot.slane %v9052_v50, 1  ;;  %vm2050_vm8 = vcmask 211970  }
 0x4c3   : > { %1976 = vst [vmem:[#allocation2 + $0x80] sm:$0x3] %v1952_v17  ;;  %2335 = vrot.lane.b32.xlu1 %v9488_v1, %s7866_s15  ;;  %v9502_v16 = vsel %vm2298_vm10, %v9453_v0, %v2315_v5  ;;  %v9518_v5 = vrot.slane %v9056_v60, 1 }
 0x4c4   : > { %v1999_v44 = vpop.permute.xlu0 %1998  ;;  %13092 = vst [vmem:[#allocation36_spill] sm:$0xff] %v9502_v16 }
 0x4c5   : > { %v2001_v36 = vpop.permute.xlu1 %2000 }
 0x4c6   : > { %v2023_v14 = vsel %vm2022_vm3, %v1999_v44, %v2001_v36  ;;  %2337 = vrot.lane.b32.xlu0 %v9497_v24, %s7866_s15  ;;  %v2384_v24 = vrot.slane %v9002_v33, 1 }
 0x4c7   : > { %2045 = vst [vmem:[#allocation2 + $0x60] sm:$0xfc] %v2023_v14  ;;  %2339 = vrot.lane.b32.xlu1 %v9502_v16, %s7866_s15  ;;  %v9522_v14 = vrot.slane %v9063_v15, 1  ;;  %v9534_v16 = vrot.slane %v9079_v43, 1 }
 0x4c8   : > { %v2003_v59 = vpop.permute.xlu0 %2002  ;;  %v2385_v10 = vsel %vm2377_vm14, %v2378_v23, %v2384_v24 }
 0x4c9   : > { %v2005_v52 = vpop.permute.xlu1 %2004  ;;  %v2024_v29 = vsel %vm2022_vm3, %v2001_v36, %v2003_v59 }
 0x4ca   : > { %v2025_v58 = vsel %vm2022_vm3, %v2003_v59, %v2005_v52  ;;  %2046 = vst [vmem:[#allocation2 + $0x68] sm:$0xfc] %v2024_v29  ;;  %2396 = vrot.lane.b32.xlu0 %v2378_v23, %s7878_s30 }
 0x4cb   : > { %2047 = vst [vmem:[#allocation2 + $0x70] sm:$0xfc] %v2025_v58  ;;  %2398 = vrot.lane.b32.xlu1 %v9511_v48, %s7878_s30  ;;  %v9531_v58 = vrot.slane %v9072_v62, 1 }
 0x4cc   : > { %v2007_v17 = vpop.permute.xlu0 %2006 }
 0x4cd   : > { %v2009_v44 = vpop.permute.xlu1 %2008  ;;  %v2026_v36 = vsel %vm2022_vm3, %v2005_v52, %v2007_v17 }
 0x4ce   : > { %2051 = vst.msk [vmem:[#allocation2 + $0x88] sm:$0xfc] %vm2050_vm8, %v2009_v44  ;;  %v2027_v59 = vsel %vm2022_vm3, %v2007_v17, %v2009_v44  ;;  %2048 = vst [vmem:[#allocation2 + $0x78] sm:$0xfc] %v2026_v36  ;;  %2400 = vrot.lane.b32.xlu0 %v9518_v5, %s7878_s30  ;;  %v2386_v44 = vrot.slane %v9006_v19, 1 }
 0x4cf   : > { %2049 = vst [vmem:[#allocation2 + $0x80] sm:$0xfc] %v2027_v59  ;;  %2402 = vrot.lane.b32.xlu1 %v9522_v14, %s7878_s30 }
 0x4d0   : > { %v2011_v29 = vpop.permute.xlu0 %2010  ;;  %v9549_v0 = vsel %vm2377_vm14, %v9511_v48, %v2386_v44  ;;  %v2392_v44 = vrot.slane %v9025_v45, 1 }
 0x4d1   : > { %v2013_v52 = vpop.permute.xlu1 %2012  ;;  %13093 = vst [vmem:[#allocation37_spill] sm:$0xff] %v9549_v0 }
 0x4d2   : > { %v2028_v17 = vsel %vm2022_vm3, %v2011_v29, %v2013_v52  ;;  %2404 = vrot.lane.b32.xlu0 %v9531_v58, %s7878_s30 }
 0x4d3   : > { %2052 = vst [vmem:[#allocation2 + $0x90] sm:$0x7] %v2028_v17  ;;  %2406 = vrot.lane.b32.xlu1 %v9534_v16, %s7878_s30  ;;  %v2390_v17 = vrot.slane %v9019_v42, 1 }
 0x4d4   : > { %v2015_v36 = vpop.permute.xlu0 %2014 }
 0x4d5   : > { %v2017_v59 = vpop.permute.xlu1 %2016  ;;  %v2029_v1 = vsel %vm2022_vm3, %v2013_v52, %v2015_v36 }
 0x4d6   : > { %v2030_v29 = vsel %vm2022_vm3, %v2015_v36, %v2017_v59  ;;  %2053 = vst [vmem:[#allocation2 + $0x98] sm:$0x7] %v2029_v1  ;;  %2408 = vrot.lane.b32.xlu0 %v2385_v10, %s7878_s30  ;;  %v9558_v1 = vsel %vm2377_vm14, %v9518_v5, %v2388_v12  ;;  %v9565_v36 = vsel %vm2377_vm14, %v9522_v14, %v2390_v17 }
 0x4d7   : > { %2054 = vst [vmem:[#allocation2 + $0xa0] sm:$0x7] %v2030_v29  ;;  %2410 = vrot.lane.b32.xlu1 %v9549_v0, %s7878_s30  ;;  %13094 = vst [vmem:[#allocation39_spill] sm:$0xff] %v9565_v36  ;;  %v9574_v0 = vsel %vm2377_vm14, %v9531_v58, %v2392_v44 }
 0x4d8   : > { %v2019_v52 = vpop.permute.xlu0 %2018  ;;  %13095 = vst [vmem:[#allocation38_spill] sm:$0xff] %v9574_v0 }
 0x4d9   : > { %v2021_v24 = vpop.permute.xlu1 %2020  ;;  %v2031_v23 = vsel %vm2022_vm3, %v2017_v59, %v2019_v52  ;;  %v2394_v59 = vrot.slane %v9030_v22, 1 }
 0x4da   : > { %2058 = vst.msk [vmem:[#allocation2 + $0xb8] sm:$0x7] %vm2057_vm13, %v2021_v24  ;;  %v2032_v10 = vsel %vm2022_vm3, %v2019_v52, %v2021_v24  ;;  %2055 = vst [vmem:[#allocation2 + $0xa8] sm:$0x7] %v2031_v23  ;;  %2412 = vrot.lane.b32.xlu0 %v9558_v1, %s7878_s30  ;;  %vm2129_vm3 = vcmask 211971  }
 0x4db   : > { %2056 = vst [vmem:[#allocation2 + $0xb0] sm:$0x7] %v2032_v10  ;;  %2414 = vrot.lane.b32.xlu1 %v9565_v36, %s7878_s30  ;;  %v9579_v17 = vsel %vm2377_vm14, %v9534_v16, %v2394_v59 }
 0x4dc   : > { %v2079_v12 = vpop.permute.xlu0 %2078  ;;  %13096 = vst [vmem:[#allocation41_spill] sm:$0xff] %v9579_v17 }
 0x4dd   : > { %v2081_v29 = vpop.permute.xlu1 %2080 }
 0x4de   : > { %v2102_v52 = vsel %vm1538_vm6, %v2079_v12, %v2081_v29  ;;  %2416 = vrot.lane.b32.xlu0 %v9574_v0, %s7878_s30  ;;  %v3094_v0 = vld [vmem:[#allocation2 + $0x78] sm:$0xff] }
 0x4df   : > { %2124 = vst [vmem:[#allocation2 + $0x90] sm:$0xf8] %v2102_v52  ;;  %2418 = vrot.lane.b32.xlu1 %v9579_v17, %s7878_s30  ;;  %s7883_s30 = smov 104  }
 0x4e0   : > { %v2083_v24 = vpop.permute.xlu0 %2082 }
 0x4e1   : > { %v2085_v23 = vpop.permute.xlu1 %2084  ;;  %v2103_v10 = vsel %vm1538_vm6, %v2081_v29, %v2083_v24 }
 0x4e2   : > { %v2104_v44 = vsel %vm1538_vm6, %v2083_v24, %v2085_v23  ;;  %2125 = vst [vmem:[#allocation2 + $0x98] sm:$0xf8] %v2103_v10  ;;  %2456 = vrot.lane.b32.xlu0 %v9047_v2, %s7879_s13  ;;  %v3092_v10 = vld [vmem:[#allocation2 + $0x68] sm:$0xff] }
 0x4e3   : > { %2126 = vst [vmem:[#allocation2 + $0xa0] sm:$0xf8] %v2104_v44  ;;  %2458 = vrot.lane.b32.xlu1 %v9052_v50, %s7879_s13 }
 0x4e4   : > { %v2087_v59 = vpop.permute.xlu0 %2086 }
 0x4e5   : > { %v2089_v12 = vpop.permute.xlu1 %2088  ;;  %v2105_v52 = vsel %vm1538_vm6, %v2085_v23, %v2087_v59 }
 0x4e6   : > { %2130 = vst.msk [vmem:[#allocation2 + $0xb8] sm:$0xf8] %vm2129_vm3, %v2089_v12  ;;  %v2106_v29 = vsel %vm1538_vm6, %v2087_v59, %v2089_v12  ;;  %2127 = vst [vmem:[#allocation2 + $0xa8] sm:$0xf8] %v2105_v52  ;;  %2460 = vrot.lane.b32.xlu0 %v9056_v60, %s7879_s13  ;;  %v3097_v24 = vld [vmem:[#allocation2 + $0x90] sm:$0xff]  ;;  %v3091_v59 = vld [vmem:[#allocation2 + $0x60] sm:$0xff] }
 0x4e7   : > { %2128 = vst [vmem:[#allocation2 + $0xb0] sm:$0xf8] %v2106_v29  ;;  %2462 = vrot.lane.b32.xlu1 %v9063_v15, %s7879_s13  ;;  %v7483_v60 = vpack.c.bf16 %v3097_v24, %v3091_v59 }
 0x4e8   : > { %v2091_v2 = vpop.permute.xlu0 %2090 }
 0x4e9   : > { %v2093_v50 = vpop.permute.xlu1 %2092  ;;  %v3098_v44 = vld [vmem:[#allocation2 + $0x98] sm:$0xff] }
 0x4ea   : > { %v2107_v17 = vsel %vm1538_vm6, %v2091_v2, %v2093_v50  ;;  %2464 = vrot.lane.b32.xlu0 %v9072_v62, %s7879_s13  ;;  %v7481_v23 = vpack.c.bf16 %v3098_v44, %v3092_v10  ;;  %v3099_v15 = vld [vmem:[#allocation2 + $0xa0] sm:$0xff] }
 0x4eb   : > { %2131 = vst [vmem:[#allocation2 + $0xc0] sm:$0xf] %v2107_v17  ;;  %2466 = vrot.lane.b32.xlu1 %v9079_v43, %s7879_s13  ;;  %v3093_v17 = vld [vmem:[#allocation2 + $0x70] sm:$0xff] }
 0x4ec   : > { %v2095_v12 = vpop.permute.xlu0 %2094  ;;  %7482 = vmatprep.subr.bf16.mxu0 %v7481_v23  ;;  %v7523_v24 = vpack.c.bf16 %v3099_v15, %v3093_v17 }
 0x4ed   : > { %v2097_v52 = vpop.permute.xlu1 %2096  ;;  %v2108_v29 = vsel %vm1538_vm6, %v2093_v50, %v2095_v12  ;;  %7484 = vmatpush1.bf16.msra.mxu0 %v7483_v60  ;;  %v3100_v36 = vld [vmem:[#allocation2 + $0xa8] sm:$0xff] }
 0x4ee   : > { %v2109_v2 = vsel %vm1538_vm6, %v2095_v12, %v2097_v52  ;;  %2132 = vst [vmem:[#allocation2 + $0xc8] sm:$0xf] %v2108_v29  ;;  %2468 = vrot.lane.b32.xlu0 %v9002_v33, %s7879_s13  ;;  %v7521_v62 = vpack.c.bf16 %v3100_v36, %v3094_v0 }
 0x4ef   : > { %2133 = vst [vmem:[#allocation2 + $0xd0] sm:$0xf] %v2109_v2  ;;  %2470 = vrot.lane.b32.xlu1 %v9006_v19, %s7879_s13 }
 0x4f0   : > { %7522 = vmatprep.subr.bf16.mxu1 %v7521_v62  ;;  %v2099_v10 = vpop.permute.xlu0 %2098 }
 0x4f1   : > { %v2101_v50 = vpop.permute.xlu1 %2100  ;;  %v2110_v44 = vsel %vm1538_vm6, %v2097_v52, %v2099_v10  ;;  %7524 = vmatpush1.bf16.msra.mxu1 %v7523_v24 }
 0x4f2   : > { %2137 = vst.msk [vmem:[#allocation2 + $0xe8] sm:$0xf] %vm12810_vm2, %v2101_v50  ;;  %v2111_v23 = vsel %vm1538_vm6, %v2099_v10, %v2101_v50  ;;  %2134 = vst [vmem:[#allocation2 + $0xd8] sm:$0xf] %v2110_v44  ;;  %2472 = vrot.lane.b32.xlu0 %v9013_v18, %s7879_s13  ;;  %vm12809_vm6 = vcmask 211972   ;;  %vm2261_vm2 = vcmask 965632  }
 0x4f3   : > { %2135 = vst [vmem:[#allocation2 + $0xe0] sm:$0xf] %v2111_v23  ;;  %2474 = vrot.lane.b32.xlu1 %v9019_v42, %s7879_s13 }
 0x4f4   : > { %v2158_v33 = vpop.permute.xlu0 %2157 }
 0x4f5   : > { %v2160_v0 = vpop.permute.xlu1 %2159 }
 0x4f6   : > { %v2182_v36 = vsel %vm2181_vm1, %v2158_v33, %v2160_v0  ;;  %2476 = vrot.lane.b32.xlu0 %v9025_v45, %s7879_s13 }
 0x4f7   : > { %2204 = vst [vmem:[#allocation2 + $0xc0] sm:$0xf0] %v2182_v36  ;;  %2478 = vrot.lane.b32.xlu1 %v9030_v22, %s7879_s13  ;;  %s12816_s13 = smov 102  }
 0x4f8   : > { %v2162_v59 = vpop.permute.xlu0 %2161 }
 0x4f9   : > { %v2164_v60 = vpop.permute.xlu1 %2163  ;;  %v2183_v12 = vsel %vm2181_vm1, %v2160_v0, %v2162_v59 }
 0x4fa   : > { %v2184_v15 = vsel %vm2181_vm1, %v2162_v59, %v2164_v60  ;;  %2205 = vst [vmem:[#allocation2 + $0xc8] sm:$0xf0] %v2183_v12  ;;  %2515 = vrot.lane.b32.xlu0 %v9059_v41, %s7873_s27 }
 0x4fb   : > { %2206 = vst [vmem:[#allocation2 + $0xd0] sm:$0xf0] %v2184_v15  ;;  %2517 = vrot.lane.b32.xlu1 %v9067_v46, %s7873_s27 }
 0x4fc   : > { %v2166_v52 = vpop.permute.xlu0 %2165 }
 0x4fd   : > { %v2168_v29 = vpop.permute.xlu1 %2167  ;;  %v2185_v2 = vsel %vm2181_vm1, %v2164_v60, %v2166_v52 }
 0x4fe   : > { %2210 = vst.msk [vmem:[#allocation2 + $0xe8] sm:$0xf0] %vm12809_vm6, %v2168_v29  ;;  %v2186_v62 = vsel %vm2181_vm1, %v2166_v52, %v2168_v29  ;;  %2207 = vst [vmem:[#allocation2 + $0xd8] sm:$0xf0] %v2185_v2  ;;  %2519 = vrot.lane.b32.xlu0 %v9089_v25, %s7873_s27  ;;  %vm2216_vm6 = vcmask 208896  }
 0x4ff   : > { %2208 = vst [vmem:[#allocation2 + $0xe0] sm:$0xf0] %v2186_v62  ;;  %2521 = vrot.lane.b32.xlu1 %v9092_v57, %s7873_s27 }
 0x500   : > { %v2170_v41 = vpop.permute.xlu0 %2169 }
 0x501   : > { %v2172_v17 = vpop.permute.xlu1 %2171 }
 0x502   : > { %v2187_v24 = vsel %vm2181_vm1, %v2170_v41, %v2172_v17  ;;  %2523 = vrot.lane.b32.xlu0 %v9101_v20, %s7873_s27 }
 0x503   : > { %2211 = vst [vmem:[#allocation2 + $0xf0] sm:$0x1f] %v2187_v24  ;;  %2525 = vrot.lane.b32.xlu1 %v9104_v27, %s7873_s27 }
 0x504   : > { %v2174_v10 = vpop.permute.xlu0 %2173 }
 0x505   : > { %v2176_v50 = vpop.permute.xlu1 %2175  ;;  %v2188_v44 = vsel %vm2181_vm1, %v2172_v17, %v2174_v10 }
 0x506   : > { %v2189_v23 = vsel %vm2181_vm1, %v2174_v10, %v2176_v50  ;;  %2212 = vst [vmem:[#allocation2 + $0xf8] sm:$0x1f] %v2188_v44  ;;  %2527 = vrot.lane.b32.xlu0 %v9114_v4, %s7873_s27 }
 0x507   : > { %2213 = vst [vmem:[#allocation2 + $0x100] sm:$0x1f] %v2189_v23  ;;  %2529 = vrot.lane.b32.xlu1 %v9119_v56, %s7873_s27 }
 0x508   : > { %v2178_v33 = vpop.permute.xlu0 %2177 }
 0x509   : > { %v2180_v0 = vpop.permute.xlu1 %2179  ;;  %v2190_v36 = vsel %vm2181_vm1, %v2176_v50, %v2178_v33  ;;  %v3104_v50 = vld [vmem:[#allocation2 + $0xc8] sm:$0xff] }
 0x50a   : > { %2217 = vst.msk [vmem:[#allocation2 + $0x118] sm:$0x1f] %vm2216_vm6, %v2180_v0  ;;  %v2191_v59 = vsel %vm2181_vm1, %v2178_v33, %v2180_v0  ;;  %2214 = vst [vmem:[#allocation2 + $0x108] sm:$0x1f] %v2190_v36  ;;  %2531 = vrot.lane.b32.xlu0 %v9128_v63, %s7873_s27  ;;  %vm12811_vm1 = vcmask 211973   ;;  %v3103_v0 = vld [vmem:[#allocation2 + $0xc0] sm:$0xff] }
 0x50b   : > { %2215 = vst [vmem:[#allocation2 + $0x110] sm:$0x1f] %v2191_v59  ;;  %2533 = vrot.lane.b32.xlu1 %v9133_v31, %s7873_s27 }
 0x50c   : > { %v2238_v4 = vpop.permute.xlu0 %2237 }
 0x50d   : > { %v2240_v60 = vpop.permute.xlu1 %2239 }
 0x50e   : > { %v2262_v12 = vsel %vm2261_vm2, %v2238_v4, %v2240_v60  ;;  %2535 = vrot.lane.b32.xlu0 %v9142_v35, %s7873_s27 }
 0x50f   : > { %2284 = vst [vmem:[#allocation2 + $0xf0] sm:$0xe0] %v2262_v12  ;;  %2537 = vrot.lane.b32.xlu1 %v9146_v11, %s7873_s27  ;;  %s12820_s27 = smov 44  }
 0x510   : > { %v2242_v15 = vpop.permute.xlu0 %2241 }
 0x511   : > { %v2244_v52 = vpop.permute.xlu1 %2243  ;;  %v2263_v29 = vsel %vm2261_vm2, %v2240_v60, %v2242_v15  ;;  %v3106_v60 = vld [vmem:[#allocation2 + $0xd8] sm:$0xff] }
 0x512   : > { %v2264_v2 = vsel %vm2261_vm2, %v2242_v15, %v2244_v52  ;;  %2285 = vst [vmem:[#allocation2 + $0xf8] sm:$0xe0] %v2263_v29  ;;  %2573 = vrot.lane.b32.xlu0 %v9153_v6, %s7880_s18 }
 0x513   : > { %2286 = vst [vmem:[#allocation2 + $0x100] sm:$0xe0] %v2264_v2  ;;  %2575 = vrot.lane.b32.xlu1 %v9156_v37, %s7880_s18 }
 0x514   : > { %v2246_v62 = vpop.permute.xlu0 %2245 }
 0x515   : > { %v2248_v41 = vpop.permute.xlu1 %2247  ;;  %v2265_v17 = vsel %vm2261_vm2, %v2244_v52, %v2246_v62  ;;  %v3105_v52 = vld [vmem:[#allocation2 + $0xd0] sm:$0xff] }
 0x516   : > { %2290 = vst.msk [vmem:[#allocation2 + $0x118] sm:$0xe0] %vm12811_vm1, %v2248_v41  ;;  %v2266_v24 = vsel %vm2261_vm2, %v2246_v62, %v2248_v41  ;;  %2287 = vst [vmem:[#allocation2 + $0x108] sm:$0xe0] %v2265_v17  ;;  %2577 = vrot.lane.b32.xlu0 %v9163_v54, %s7880_s18  ;;  %v3109_v10 = vld [vmem:[#allocation2 + $0xf0] sm:$0xff]  ;;  %vm12813_vm1 = vcmask 209920  }
 0x517   : > { %2288 = vst [vmem:[#allocation2 + $0x110] sm:$0xe0] %v2266_v24  ;;  %2579 = vrot.lane.b32.xlu1 %v9166_v34, %s7880_s18  ;;  %v7487_v54 = vpack.c.bf16 %v3109_v10, %v3103_v0 }
 0x518   : > { %v2250_v6 = vpop.permute.xlu0 %2249 }
 0x519   : > { %v2252_v37 = vpop.permute.xlu1 %2251  ;;  %v3110_v44 = vld [vmem:[#allocation2 + $0xf8] sm:$0xff] }
 0x51a   : > { %v2267_v23 = vsel %vm2261_vm2, %v2250_v6, %v2252_v37  ;;  %2581 = vrot.lane.b32.xlu0 %v9173_v13, %s7880_s18  ;;  %v7485_v33 = vpack.c.bf16 %v3110_v44, %v3104_v50  ;;  %v3111_v34 = vld [vmem:[#allocation2 + $0x100] sm:$0xff] }
 0x51b   : > { %2291 = vst [vmem:[#allocation2 + $0x120] sm:$0x3f] %v2267_v23  ;;  %2583 = vrot.lane.b32.xlu1 %v9176_v39, %s7880_s18  ;;  %v7527_v39 = vpack.c.bf16 %v3111_v34, %v3105_v52 }
 0x51c   : > { %v2254_v36 = vpop.permute.xlu0 %2253  ;;  %7486 = vmatprep.subr.bf16.mxu0 %v7485_v33 }
 0x51d   : > { %v2256_v59 = vpop.permute.xlu1 %2255  ;;  %v2268_v4 = vsel %vm2261_vm2, %v2252_v37, %v2254_v36  ;;  %7488 = vmatpush1.bf16.msra.mxu0 %v7487_v54  ;;  %v3112_v12 = vld [vmem:[#allocation2 + $0x108] sm:$0xff] }
 0x51e   : > { %v2269_v15 = vsel %vm2261_vm2, %v2254_v36, %v2256_v59  ;;  %2292 = vst [vmem:[#allocation2 + $0x128] sm:$0x3f] %v2268_v4  ;;  %2585 = vrot.lane.b32.xlu0 %v9186_v49, %s7880_s18  ;;  %v7525_v13 = vpack.c.bf16 %v3112_v12, %v3106_v60  ;;  %v13098_v36 = vld [vmem:[#allocation7_spill] sm:$0xff]  ;;  %v13100_v60 = vld [vmem:[#allocation10_spill] sm:$0xff]  ;;  %v13101_v12 = vld [vmem:[#allocation9_spill] sm:$0xff] }
 0x51f   : > { %2293 = vst [vmem:[#allocation2 + $0x130] sm:$0x3f] %v2269_v15  ;;  %2587 = vrot.lane.b32.xlu1 %v9191_v28, %s7880_s18 }
 0x520   : > { %7526 = vmatprep.subr.bf16.mxu1 %v7525_v13  ;;  %v2258_v29 = vpop.permute.xlu0 %2257 }
 0x521   : > { %v2260_v2 = vpop.permute.xlu1 %2259  ;;  %v2270_v62 = vsel %vm2261_vm2, %v2256_v59, %v2258_v29  ;;  %7528 = vmatpush1.bf16.msra.mxu1 %v7527_v39 }
 0x522   : > { %2297 = vst.msk [vmem:[#allocation2 + $0x148] sm:$0x3f] %vm12813_vm1, %v2260_v2  ;;  %v2271_v41 = vsel %vm2261_vm2, %v2258_v29, %v2260_v2  ;;  %2294 = vst [vmem:[#allocation2 + $0x138] sm:$0x3f] %v2270_v62  ;;  %2589 = vrot.lane.b32.xlu0 %v9200_v30, %s7880_s18  ;;  %vm12812_vm2 = vcmask 211974   ;;  %vm2420_vm1 = vcmask 424960  }
 0x523   : > { %2295 = vst [vmem:[#allocation2 + $0x140] sm:$0x3f] %v2271_v41  ;;  %2591 = vrot.lane.b32.xlu1 %v9205_v21, %s7880_s18  ;;  %v13102_v29 = vld [vmem:[#allocation11_spill] sm:$0xff]  ;;  %v13103_v2 = vld [vmem:[#allocation12_spill] sm:$0xff] }
 0x524   : > { %v2318_v49 = vpop.permute.xlu0 %2317 }
 0x525   : > { %v2320_v28 = vpop.permute.xlu1 %2319 }
 0x526   : > { %v2341_v17 = vsel %vm12814_vm0, %v2318_v49, %v2320_v28  ;;  %2593 = vrot.lane.b32.xlu0 %v9214_v53, %s7880_s18 }
 0x527   : > { %2363 = vst [vmem:[#allocation2 + $0x120] sm:$0xc0] %v2341_v17  ;;  %2595 = vrot.lane.b32.xlu1 %v9218_v47, %s7880_s18  ;;  %v13104_v17 = vld [vmem:[#allocation15_spill] sm:$0xff]  ;;  %s7885_s18 = smov 100  }
 0x528   : > { %v2322_v24 = vpop.permute.xlu0 %2321 }
 0x529   : > { %v2324_v6 = vpop.permute.xlu1 %2323  ;;  %v2342_v10 = vsel %vm12814_vm0, %v2320_v28, %v2322_v24 }
 0x52a   : > { %v2343_v30 = vsel %vm12814_vm0, %v2322_v24, %v2324_v6  ;;  %2364 = vst [vmem:[#allocation2 + $0x128] sm:$0xc0] %v2342_v10  ;;  %2632 = vrot.lane.b32.xlu0 %v9225_v9, %s12820_s27  ;;  %v13105_v24 = vld [vmem:[#allocation13_spill] sm:$0xff] }
 0x52b   : > { %2365 = vst [vmem:[#allocation2 + $0x130] sm:$0xc0] %v2343_v30  ;;  %2634 = vrot.lane.b32.xlu1 %v9228_v51, %s12820_s27 }
 0x52c   : > { %v2326_v21 = vpop.permute.xlu0 %2325 }
 0x52d   : > { %v2328_v53 = vpop.permute.xlu1 %2327  ;;  %v2344_v47 = vsel %vm12814_vm0, %v2324_v6, %v2326_v21 }
 0x52e   : > { %2369 = vst.msk [vmem:[#allocation2 + $0x148] sm:$0xc0] %vm12812_vm2, %v2328_v53  ;;  %v2345_v37 = vsel %vm12814_vm0, %v2326_v21, %v2328_v53  ;;  %2366 = vst [vmem:[#allocation2 + $0x138] sm:$0xc0] %v2344_v47  ;;  %2636 = vrot.lane.b32.xlu0 %v9235_v38, %s12820_s27  ;;  %vm2375_vm2 = vcmask 210944   ;;  %v13106_v21 = vld [vmem:[#allocation6_spill] sm:$0xff] }
 0x52f   : > { %2367 = vst [vmem:[#allocation2 + $0x140] sm:$0xc0] %v2345_v37  ;;  %2638 = vrot.lane.b32.xlu1 %v9238_v8, %s12820_s27  ;;  %v13097_v8 = vld [vmem:[#allocation5_spill] sm:$0xff]  ;;  %v2693_v53 = vrot.slane %v13106_v21, 4 }
 0x530   : > { %v2330_v9 = vpop.permute.xlu0 %2329 }
 0x531   : > { %v2332_v50 = vpop.permute.xlu1 %2331  ;;  %v3116_v47 = vld [vmem:[#allocation2 + $0x128] sm:$0xff] }
 0x532   : > { %v2346_v51 = vsel %vm12814_vm0, %v2330_v9, %v2332_v50  ;;  %2640 = vrot.lane.b32.xlu0 %v9245_v55, %s12820_s27 }
 0x533   : > { %2370 = vst [vmem:[#allocation2 + $0x150] sm:$0x7f] %v2346_v51  ;;  %2642 = vrot.lane.b32.xlu1 %v9248_v7, %s12820_s27 }
 0x534   : > { %v2334_v44 = vpop.permute.xlu0 %2333 }
 0x535   : > { %v2336_v23 = vpop.permute.xlu1 %2335  ;;  %v2347_v33 = vsel %vm12814_vm0, %v2332_v50, %v2334_v44  ;;  %v13107_v50 = vld [vmem:[#allocation14_spill] sm:$0xff] }
 0x536   : > { %v2348_v38 = vsel %vm12814_vm0, %v2334_v44, %v2336_v23  ;;  %2371 = vst [vmem:[#allocation2 + $0x158] sm:$0x7f] %v2347_v33  ;;  %2644 = vrot.lane.b32.xlu0 %v9258_v26, %s12820_s27  ;;  %v13099_v26 = vld [vmem:[#allocation8_spill] sm:$0xff]  ;;  %v3115_v44 = vld [vmem:[#allocation2 + $0x120] sm:$0xff] }
 0x537   : > { %2372 = vst [vmem:[#allocation2 + $0x160] sm:$0x7f] %v2348_v38  ;;  %2646 = vrot.lane.b32.xlu1 %v13097_v8, %s12820_s27 }
 0x538   : > { %v2338_v55 = vpop.permute.xlu0 %2337 }
 0x539   : > { %v2340_v0 = vpop.permute.xlu1 %2339  ;;  %v2349_v54 = vsel %vm12814_vm0, %v2336_v23, %v2338_v55 }
 0x53a   : > { %2376 = vst.msk [vmem:[#allocation2 + $0x178] sm:$0x7f] %vm2375_vm2, %v2340_v0  ;;  %v2350_v7 = vsel %vm12814_vm0, %v2338_v55, %v2340_v0  ;;  %2373 = vst [vmem:[#allocation2 + $0x168] sm:$0x7f] %v2349_v54  ;;  %2648 = vrot.lane.b32.xlu0 %v13098_v36, %s12820_s27  ;;  %vm12815_vm0 = vcmask 211975   ;;  %v3118_v0 = vld [vmem:[#allocation2 + $0x138] sm:$0xff] }
 0x53b   : > { %2374 = vst [vmem:[#allocation2 + $0x170] sm:$0x7f] %v2350_v7  ;;  %2650 = vrot.lane.b32.xlu1 %v13099_v26, %s12820_s27  ;;  %v13108_v36 = vld [vmem:[#allocation17_spill] sm:$0xff] }
 0x53c   : > { %v2397_v34 = vpop.permute.xlu0 %2396 }
 0x53d   : > { %v2399_v59 = vpop.permute.xlu1 %2398 }
 0x53e   : > { %v2421_v4 = vsel %vm2420_vm1, %v2397_v34, %v2399_v59  ;;  %2652 = vrot.lane.b32.xlu0 %v13100_v60, %s12820_s27  ;;  %v3117_v34 = vld [vmem:[#allocation2 + $0x130] sm:$0xff] }
 0x53f   : > { %2443 = vst [vmem:[#allocation2 + $0x150] sm:$0x80] %v2421_v4  ;;  %2654 = vrot.lane.b32.xlu1 %v13101_v12, %s12820_s27  ;;  %s9941_s27 = smul.u32 72, %s13449_s21 }
 0x540   : > { %v2401_v15 = vpop.permute.xlu0 %2400 }
 0x541   : > { %v2403_v13 = vpop.permute.xlu1 %2402  ;;  %v2422_v52 = vsel %vm2420_vm1, %v2399_v59, %v2401_v15  ;;  %v13109_v59 = vld [vmem:[#allocation16_spill] sm:$0xff]  ;;  %s10014_s25 = scalar_lea.vmem %s12707_s7, %s9941_s27 }
 0x542   : > { %v2423_v39 = vsel %vm2420_vm1, %v2401_v15, %v2403_v13  ;;  %2444 = vst [vmem:[#allocation2 + $0x158] sm:$0x80] %v2422_v52  ;;  %2696 = vrot.lane.b32.xlu0 %v13102_v29, %s7867_s16  ;;  %v13110_v52 = vld [vmem:[#allocation19_spill] sm:$0xff] }
 0x543   : > { %2445 = vst [vmem:[#allocation2 + $0x160] sm:$0x80] %v2423_v39  ;;  %2698 = vrot.lane.b32.xlu1 %v13103_v2, %s7867_s16  ;;  %v13111_v39 = vld [vmem:[#allocation4_spill] sm:$0xff]  ;;  %v13112_v2 = vld [vmem:[#allocation22_spill] sm:$0xff] }
 0x544   : > { %v2405_v62 = vpop.permute.xlu0 %2404  ;;  %v2694_v29 = vrot.slane %v13111_v39, 4 }
 0x545   : > { %v2407_v41 = vpop.permute.xlu1 %2406  ;;  %v2424_v49 = vsel %vm2420_vm1, %v2403_v13, %v2405_v62 }
 0x546   : > { %2449 = vst.msk [vmem:[#allocation2 + $0x178] sm:$0x80] %vm12815_vm0, %v2407_v41  ;;  %v2425_v28 = vsel %vm2420_vm1, %v2405_v62, %v2407_v41  ;;  %2446 = vst [vmem:[#allocation2 + $0x168] sm:$0x80] %v2424_v49  ;;  %2700 = vrot.lane.b32.xlu0 %v13104_v17, %s7867_s16  ;;  %v3121_v10 = vld [vmem:[#allocation2 + $0x150] sm:$0xff]  ;;  %vm2480_vm0 = vcmask 408576  }
 0x547   : > { %2447 = vst [vmem:[#allocation2 + $0x170] sm:$0x80] %v2425_v28  ;;  %2702 = vrot.lane.b32.xlu1 %v13105_v24, %s7867_s16  ;;  %v7491_v23 = vpack.c.bf16 %v3121_v10, %v3115_v44  ;;  %v2695_v28 = vsel %vm2138_vm4, %v2693_v53, %v2694_v29  ;;  %v13113_v17 = vld [vmem:[#allocation18_spill] sm:$0xff] }
 0x548   : > { %v2409_v6 = vpop.permute.xlu0 %2408 }
 0x549   : > { %v2411_v30 = vpop.permute.xlu1 %2410  ;;  %v3122_v37 = vld [vmem:[#allocation2 + $0x158] sm:$0xff] }
 0x54a   : > { %v2426_v9 = vsel %vm2420_vm1, %v2409_v6, %v2411_v30  ;;  %2704 = vrot.lane.b32.xlu0 %v13107_v50, %s7867_s16  ;;  %v7489_v51 = vpack.c.bf16 %v3122_v37, %v3116_v47  ;;  %v3123_v38 = vld [vmem:[#allocation2 + $0x160] sm:$0xff]  ;;  %v13114_v47 = vld [vmem:[#allocation20_spill] sm:$0xff]  ;;  %v13115_v50 = vld [vmem:[#allocation23_spill] sm:$0xff] }
 0x54b   : > { %2706 = vrot.lane.b32.xlu1 %v2693_v53, %s7867_s16  ;;  %v7531_v4 = vpack.c.bf16 %v3123_v38, %v3117_v34  ;;  %v13116_v38 = vld [vmem:[#allocation21_spill] sm:$0xff]  ;;  %v13118_v34 = vld [vmem:[#allocation28_spill] sm:$0xff] }
 0x54c   : > { %v2413_v33 = vpop.permute.xlu0 %2412  ;;  %7490 = vmatprep.subr.bf16.mxu0 %v7489_v51 }
 0x54d   : > { %v2415_v8 = vpop.permute.xlu1 %2414  ;;  %v2427_v55 = vsel %vm2420_vm1, %v2411_v30, %v2413_v33  ;;  %7492 = vmatpush1.bf16.msra.mxu0 %v7491_v23  ;;  %v3124_v54 = vld [vmem:[#allocation2 + $0x168] sm:$0xff] }
 0x54e   : > { %v2428_v7 = vsel %vm2420_vm1, %v2413_v33, %v2415_v8  ;;  %2708 = vrot.lane.b32.xlu0 %v13108_v36, %s7867_s16  ;;  %v7529_v26 = vpack.c.bf16 %v3124_v54, %v3118_v0  ;;  %v2754_v36 = vrot.slane %v13106_v21, 3 }
 0x54f   : > { %2710 = vrot.lane.b32.xlu1 %v13109_v59, %s7867_s16 }
 0x550   : > { %7530 = vmatprep.subr.bf16.mxu1 %v7529_v26  ;;  %v2417_v60 = vpop.permute.xlu0 %2416 }
 0x551   : > { %v2419_v12 = vpop.permute.xlu1 %2418  ;;  %v2429_v15 = vsel %vm2420_vm1, %v2415_v8, %v2417_v60  ;;  %7532 = vmatpush1.bf16.msra.mxu1 %v7531_v4 }
 0x552   : > { %2455 = vst.msk [vmem:[#allocation2 + $0x1a8] sm:$0xff] %vm1878_vm12, %v2419_v12  ;;  %v2430_v13 = vsel %vm2420_vm1, %v2417_v60, %v2419_v12  ;;  %2712 = vrot.lane.b32.xlu0 %v13110_v52, %s7867_s16  ;;  %v13119_v12 = vld [vmem:[#allocation24_spill] sm:$0xff] }
 0x553   : > { %2454 = vst [vmem:[#allocation2 + $0x1a0] sm:$0xff] %v2430_v13  ;;  %2714 = vrot.lane.b32.xlu1 %v13112_v2, %s7867_s16 }
 0x554   : > { %v2457_v62 = vpop.permute.xlu0 %2456 }
 0x555   : > { %v2459_v41 = vpop.permute.xlu1 %2458 }
 0x556   : > { %v2481_v49 = vsel %vm2480_vm0, %v2457_v62, %v2459_v41  ;;  %2716 = vrot.lane.b32.xlu0 %v13113_v17, %s7867_s16  ;;  %v13121_v62 = vld [vmem:[#allocation29_spill] sm:$0xff] }
 0x557   : > { %2718 = vrot.lane.b32.xlu1 %v2695_v28, %s7867_s16  ;;  %v7495_v53 = vpack.c.bf16 %v2481_v49, %v2426_v9  ;;  %v13122_v49 = vld [vmem:[#allocation27_spill] sm:$0xff] }
 0x558   : > { %v2461_v24 = vpop.permute.xlu0 %2460 }
 0x559   : > { %v2463_v6 = vpop.permute.xlu1 %2462  ;;  %v2482_v10 = vsel %vm2480_vm0, %v2459_v41, %v2461_v24  ;;  %v2755_v41 = vrot.slane %v13111_v39, 3 }
 0x55a   : > { %v2483_v30 = vsel %vm2480_vm0, %v2461_v24, %v2463_v6  ;;  %2757 = vrot.lane.b32.xlu0 %v13114_v47, %s7882_s19  ;;  %v7493_v37 = vpack.c.bf16 %v2482_v10, %v2427_v55  ;;  %v13117_v55 = vld [vmem:[#allocation25_spill] sm:$0xff]  ;;  %v13123_v10 = vld [vmem:[#allocation30_spill] sm:$0xff] }
 0x55b   : > { %2759 = vrot.lane.b32.xlu1 %v13115_v50, %s7882_s19  ;;  %v7535_v0 = vpack.c.bf16 %v2483_v30, %v2428_v7 }
 0x55c   : > { %v2465_v51 = vpop.permute.xlu0 %2464  ;;  %7494 = vmatprep.subr.bf16.mxu0 %v7493_v37 }
 0x55d   : > { %v2467_v44 = vpop.permute.xlu1 %2466  ;;  %v2484_v23 = vsel %vm2480_vm0, %v2463_v6, %v2465_v51  ;;  %7496 = vmatpush1.bf16.msra.mxu0 %v7495_v53  ;;  %v2756_v6 = vsel %vm2218_vm5, %v2754_v36, %v2755_v41 }
 0x55e   : > { %2508 = vst.msk [vmem:[#allocation2 + $0x1d8] sm:$0xff] %vm1878_vm12, %v2467_v44  ;;  %v2485_v33 = vsel %vm2480_vm0, %v2465_v51, %v2467_v44  ;;  %2761 = vrot.lane.b32.xlu0 %v13116_v38, %s7882_s19  ;;  %v7533_v8 = vpack.c.bf16 %v2484_v23, %v2429_v15  ;;  %v13120_v15 = vld [vmem:[#allocation26_spill] sm:$0xff] }
 0x55f   : > { %2507 = vst [vmem:[#allocation2 + $0x1d0] sm:$0xff] %v2485_v33  ;;  %2763 = vrot.lane.b32.xlu1 %v13117_v55, %s7882_s19 }
 0x560   : > { %v2469_v9 = vpop.permute.xlu0 %2468  ;;  %7534 = vmatprep.subr.bf16.mxu1 %v7533_v8  ;;  %v13124_v8 = vld [vmem:[#allocation32_spill] sm:$0xff] }
 0x561   : > { %v2471_v54 = vpop.permute.xlu1 %2470  ;;  %7536 = vmatpush1.bf16.msra.mxu1 %v7535_v0 }
 0x562   : > { %v2486_v26 = vsel %vm2480_vm0, %v2469_v9, %v2471_v54  ;;  %2765 = vrot.lane.b32.xlu0 %v13118_v34, %s7882_s19 }
 0x563   : > { %2509 = vst [vmem:[#allocation2 + $0x1e0] sm:$0x1] %v2486_v26  ;;  %2767 = vrot.lane.b32.xlu1 %v2754_v36, %s7882_s19 }
 0x564   : > { %v2473_v59 = vpop.permute.xlu0 %2472 }
 0x565   : > { %v2475_v4 = vpop.permute.xlu1 %2474  ;;  %v2487_v60 = vsel %vm2480_vm0, %v2471_v54, %v2473_v59  ;;  %v13126_v54 = vld [vmem:[#allocation34_spill] sm:$0xff] }
 0x566   : > { %v2488_v7 = vsel %vm2480_vm0, %v2473_v59, %v2475_v4  ;;  %2510 = vst [vmem:[#allocation2 + $0x1e8] sm:$0x1] %v2487_v60  ;;  %2769 = vrot.lane.b32.xlu0 %v13119_v12, %s7882_s19  ;;  %v2817_v60 = vrot.slane %v13111_v39, 2 }
 0x567   : > { %2511 = vst [vmem:[#allocation2 + $0x1f0] sm:$0x1] %v2488_v7  ;;  %2771 = vrot.lane.b32.xlu1 %v13120_v15, %s7882_s19  ;;  %v13128_v7 = vld [vmem:[#allocation35_spill] sm:$0xff] }
 0x568   : > { %v2477_v13 = vpop.permute.xlu0 %2476 }
 0x569   : > { %v2479_v52 = vpop.permute.xlu1 %2478  ;;  %v2489_v29 = vsel %vm2480_vm0, %v2475_v4, %v2477_v13  ;;  %v13127_v4 = vld [vmem:[#allocation33_spill] sm:$0xff] }
 0x56a   : > { %2514 = vst.msk [vmem:[#allocation2 + $0x208] sm:$0x1] %vm1885_vm15, %v2479_v52  ;;  %v2490_v2 = vsel %vm2480_vm0, %v2477_v13, %v2479_v52  ;;  %2512 = vst [vmem:[#allocation2 + $0x1f8] sm:$0x1] %v2489_v29  ;;  %2773 = vrot.lane.b32.xlu0 %v13121_v62, %s7882_s19  ;;  %vm2597_vm0 = vcmask 375808   ;;  %v13129_v29 = vld [vmem:[#allocation36_spill] sm:$0xff] }
 0x56b   : > { %2513 = vst [vmem:[#allocation2 + $0x200] sm:$0x1] %v2490_v2  ;;  %2775 = vrot.lane.b32.xlu1 %v13122_v49, %s7882_s19 }
 0x56c   : > { %v2516_v28 = vpop.permute.xlu0 %2515 }
 0x56d   : > { %v2518_v17 = vpop.permute.xlu1 %2517 }
 0x56e   : > { %v2539_v24 = vsel %vm1669_vm7, %v2516_v28, %v2518_v17  ;;  %2777 = vrot.lane.b32.xlu0 %v13123_v10, %s7882_s19 }
 0x56f   : > { %2561 = vst [vmem:[#allocation2 + $0x1e0] sm:$0xfe] %v2539_v24  ;;  %2779 = vrot.lane.b32.xlu1 %v2756_v6, %s7882_s19  ;;  %s7886_s19 = smov 98  }
 0x570   : > { %v2520_v30 = vpop.permute.xlu0 %2519 }
 0x571   : > { %v2522_v47 = vpop.permute.xlu1 %2521  ;;  %v2540_v37 = vsel %vm1669_vm7, %v2518_v17, %v2520_v30 }
 0x572   : > { %v2541_v50 = vsel %vm1669_vm7, %v2520_v30, %v2522_v47  ;;  %2562 = vst [vmem:[#allocation2 + $0x1e8] sm:$0xfe] %v2540_v37  ;;  %2819 = vrot.lane.b32.xlu0 %v9430_v61, %s7883_s30 }
 0x573   : > { %2563 = vst [vmem:[#allocation2 + $0x1f0] sm:$0xfe] %v2541_v50  ;;  %2821 = vrot.lane.b32.xlu1 %v9437_v40, %s7883_s30  ;;  %v2816_v40 = vrot.slane %v13106_v21, 2 }
 0x574   : > { %v2524_v53 = vpop.permute.xlu0 %2523 }
 0x575   : > { %v2526_v51 = vpop.permute.xlu1 %2525  ;;  %v2542_v44 = vsel %vm1669_vm7, %v2522_v47, %v2524_v53  ;;  %v2818_v52 = vsel %vm2298_vm10, %v2816_v40, %v2817_v60 }
 0x576   : > { %2566 = vst.msk [vmem:[#allocation2 + $0x208] sm:$0xfe] %vm1970_vm9, %v2526_v51  ;;  %v2543_v23 = vsel %vm1669_vm7, %v2524_v53, %v2526_v51  ;;  %2564 = vst [vmem:[#allocation2 + $0x1f8] sm:$0xfe] %v2542_v44  ;;  %2823 = vrot.lane.b32.xlu0 %v9441_v3, %s7883_s30  ;;  %v3139_v51 = vld [vmem:[#allocation2 + $0x1e0] sm:$0xff] }
 0x577   : > { %2565 = vst [vmem:[#allocation2 + $0x200] sm:$0xfe] %v2543_v23  ;;  %2825 = vrot.lane.b32.xlu1 %v9450_v32, %s7883_s30  ;;  %v13125_v32 = vld [vmem:[#allocation31_spill] sm:$0xff] }
 0x578   : > { %v2528_v61 = vpop.permute.xlu0 %2527 }
 0x579   : > { %v2530_v33 = vpop.permute.xlu1 %2529  ;;  %v3140_v47 = vld [vmem:[#allocation2 + $0x1e8] sm:$0xff] }
 0x57a   : > { %v2544_v38 = vsel %vm1669_vm7, %v2528_v61, %v2530_v33  ;;  %2827 = vrot.lane.b32.xlu0 %v13124_v8, %s7883_s30 }
 0x57b   : > { %2567 = vst [vmem:[#allocation2 + $0x210] sm:$0x3] %v2544_v38  ;;  %2829 = vrot.lane.b32.xlu1 %v2816_v40, %s7883_s30 }
 0x57c   : > { %v2532_v55 = vpop.permute.xlu0 %2531 }
 0x57d   : > { %v2534_v0 = vpop.permute.xlu1 %2533  ;;  %v2545_v3 = vsel %vm1669_vm7, %v2530_v33, %v2532_v55  ;;  %v3142_v33 = vld [vmem:[#allocation2 + $0x1f8] sm:$0xff] }
 0x57e   : > { %v2546_v9 = vsel %vm1669_vm7, %v2532_v55, %v2534_v0  ;;  %2568 = vst [vmem:[#allocation2 + $0x218] sm:$0x3] %v2545_v3  ;;  %2831 = vrot.lane.b32.xlu0 %v13125_v32, %s7883_s30  ;;  %v3141_v55 = vld [vmem:[#allocation2 + $0x1f0] sm:$0xff] }
 0x57f   : > { %2569 = vst [vmem:[#allocation2 + $0x220] sm:$0x3] %v2546_v9  ;;  %2833 = vrot.lane.b32.xlu1 %v13126_v54, %s7883_s30 }
 0x580   : > { %v2536_v36 = vpop.permute.xlu0 %2535 }
 0x581   : > { %v2538_v26 = vpop.permute.xlu1 %2537  ;;  %v2547_v34 = vsel %vm1669_vm7, %v2534_v0, %v2536_v36 }
 0x582   : > { %2572 = vst.msk [vmem:[#allocation2 + $0x238] sm:$0x3] %vm1977_vm11, %v2538_v26  ;;  %v2548_v59 = vsel %vm1669_vm7, %v2536_v36, %v2538_v26  ;;  %2570 = vst [vmem:[#allocation2 + $0x228] sm:$0x3] %v2547_v34  ;;  %2835 = vrot.lane.b32.xlu0 %v13127_v4, %s7883_s30  ;;  %v13131_v36 = vld [vmem:[#allocation39_spill] sm:$0xff]  ;;  %v2879_v26 = vrot.slane %v13111_v39, 1 }
 0x583   : > { %2571 = vst [vmem:[#allocation2 + $0x230] sm:$0x3] %v2548_v59  ;;  %2837 = vrot.lane.b32.xlu1 %v13128_v7, %s7883_s30  ;;  %vm2656_vm7 = vcmask 359424   ;;  %v13133_v7 = vld [vmem:[#allocation41_spill] sm:$0xff] }
 0x584   : > { %v2574_v12 = vpop.permute.xlu0 %2573 }
 0x585   : > { %v2576_v15 = vpop.permute.xlu1 %2575 }
 0x586   : > { %v2598_v13 = vsel %vm2597_vm0, %v2574_v12, %v2576_v15  ;;  %2839 = vrot.lane.b32.xlu0 %v13129_v29, %s7883_s30  ;;  %v7837_v29 = vld [vmem:[#allocation2 + $0x8] sm:$0xff] }
 0x587   : > { %2620 = vst [vmem:[#allocation2 + $0x210] sm:$0xfc] %v2598_v13  ;;  %2841 = vrot.lane.b32.xlu1 %v2818_v52, %s7883_s30 }
 0x588   : > { %v2578_v2 = vpop.permute.xlu0 %2577 }
 0x589   : > { %v2580_v62 = vpop.permute.xlu1 %2579  ;;  %v2599_v41 = vsel %vm2597_vm0, %v2576_v15, %v2578_v2 }
 0x58a   : > { %v2600_v49 = vsel %vm2597_vm0, %v2578_v2, %v2580_v62  ;;  %2621 = vst [vmem:[#allocation2 + $0x218] sm:$0xfc] %v2599_v41  ;;  %2881 = vrot.lane.b32.xlu0 %v9511_v48, %s12816_s13  ;;  %v7838_v2 = vld [vmem:[#allocation2 + $0x10] sm:$0xff] }
 0x58b   : > { %2622 = vst [vmem:[#allocation2 + $0x220] sm:$0xfc] %v2600_v49  ;;  %2883 = vrot.lane.b32.xlu1 %v9518_v5, %s12816_s13  ;;  %v2878_v5 = vrot.slane %v13106_v21, 1 }
 0x58c   : > { %v2582_v28 = vpop.permute.xlu0 %2581 }
 0x58d   : > { %v2584_v17 = vpop.permute.xlu1 %2583  ;;  %v2601_v24 = vsel %vm2597_vm0, %v2580_v62, %v2582_v28  ;;  %v2880_v60 = vsel %vm2377_vm14, %v2878_v5, %v2879_v26  ;;  %vm13135_vm14 = vcmask 883712  }
 0x58e   : > { %2625 = vst.msk [vmem:[#allocation2 + $0x238] sm:$0xfc] %vm2050_vm8, %v2584_v17  ;;  %v2602_v6 = vsel %vm2597_vm0, %v2582_v28, %v2584_v17  ;;  %2623 = vst [vmem:[#allocation2 + $0x228] sm:$0xfc] %v2601_v24  ;;  %2885 = vrot.lane.b32.xlu0 %v9522_v14, %s12816_s13  ;;  %v3145_v10 = vld [vmem:[#allocation2 + $0x210] sm:$0xff]  ;;  %v7839_v17 = vld [vmem:[#allocation2 + $0x18] sm:$0xff] }
 0x58f   : > { %2624 = vst [vmem:[#allocation2 + $0x230] sm:$0xfc] %v2602_v6  ;;  %2887 = vrot.lane.b32.xlu1 %v9531_v58, %s12816_s13  ;;  %v7499_v14 = vpack.c.bf16 %v3145_v10, %v3139_v51  ;;  %v7840_v24 = vld [vmem:[#allocation2 + $0x20] sm:$0xff]  ;;  %vm13136_vm4 = vmmov %vm13135_vm14  ;;  %vm13139_vm8 = vcmask 211972  }
 0x590   : > { %v2586_v48 = vpop.permute.xlu0 %2585  ;;  %vm13137_vm5 = vmmov %vm13136_vm4 }
 0x591   : > { %v2588_v30 = vpop.permute.xlu1 %2587  ;;  %v3146_v37 = vld [vmem:[#allocation2 + $0x218] sm:$0xff]  ;;  %vm13138_vm10 = vmmov %vm13136_vm4 }
 0x592   : > { %v2603_v50 = vsel %vm2597_vm0, %v2586_v48, %v2588_v30  ;;  %2889 = vrot.lane.b32.xlu0 %v9534_v16, %s12816_s13  ;;  %v7497_v53 = vpack.c.bf16 %v3146_v37, %v3140_v47  ;;  %v3147_v58 = vld [vmem:[#allocation2 + $0x220] sm:$0xff] }
 0x593   : > { %2626 = vst [vmem:[#allocation2 + $0x240] sm:$0x7] %v2603_v50  ;;  %2891 = vrot.lane.b32.xlu1 %v2878_v5, %s12816_s13  ;;  %v13130_v16 = vld [vmem:[#allocation37_spill] sm:$0xff]  ;;  %v7539_v0 = vpack.c.bf16 %v3147_v58, %v3141_v55 }
 0x594   : > { %v2590_v44 = vpop.permute.xlu0 %2589  ;;  %7498 = vmatprep.subr.bf16.mxu0 %v7497_v53 }
 0x595   : > { %v2592_v23 = vpop.permute.xlu1 %2591  ;;  %v2604_v61 = vsel %vm2597_vm0, %v2588_v30, %v2590_v44  ;;  %7500 = vmatpush1.bf16.msra.mxu0 %v7499_v14  ;;  %v3148_v40 = vld [vmem:[#allocation2 + $0x228] sm:$0xff] }
 0x596   : > { %v2605_v38 = vsel %vm2597_vm0, %v2590_v44, %v2592_v23  ;;  %2627 = vst [vmem:[#allocation2 + $0x248] sm:$0x7] %v2604_v61  ;;  %2893 = vrot.lane.b32.xlu0 %v13130_v16, %s12816_s13  ;;  %v7537_v8 = vpack.c.bf16 %v3148_v40, %v3142_v33 }
 0x597   : > { %2628 = vst [vmem:[#allocation2 + $0x250] sm:$0x7] %v2605_v38  ;;  %2895 = vrot.lane.b32.xlu1 %v9558_v1, %s12816_s13  ;;  %v13132_v1 = vld [vmem:[#allocation38_spill] sm:$0xff] }
 0x598   : > { %7538 = vmatprep.subr.bf16.mxu1 %v7537_v8  ;;  %v2594_v3 = vpop.permute.xlu0 %2593 }
 0x599   : > { %v2596_v9 = vpop.permute.xlu1 %2595  ;;  %v2606_v32 = vsel %vm2597_vm0, %v2592_v23, %v2594_v3  ;;  %7540 = vmatpush1.bf16.msra.mxu1 %v7539_v0 }
 0x59a   : > { %2631 = vst.msk [vmem:[#allocation2 + $0x268] sm:$0x7] %vm2057_vm13, %v2596_v9  ;;  %v2607_v54 = vsel %vm2597_vm0, %v2594_v3, %v2596_v9  ;;  %2629 = vst [vmem:[#allocation2 + $0x258] sm:$0x7] %v2606_v32  ;;  %2897 = vrot.lane.b32.xlu0 %v13131_v36, %s12816_s13  ;;  %vm13134_vm13 = vcmask 207872  }
 0x59b   : > { %2630 = vst [vmem:[#allocation2 + $0x260] sm:$0x7] %v2607_v54  ;;  %2899 = vrot.lane.b32.xlu1 %v13132_v1, %s12816_s13 }
 0x59c   : > { %v2633_v34 = vpop.permute.xlu0 %2632 }
 0x59d   : > { %v2635_v59 = vpop.permute.xlu1 %2634 }
 0x59e   : > { %v2657_v4 = vsel %vm2656_vm7, %v2633_v34, %v2635_v59  ;;  %2901 = vrot.lane.b32.xlu0 %v13133_v7, %s12816_s13  ;;  %v3000_v7 = vrot.slane %v13111_v39, 7 }
 0x59f   : > { %2679 = vst [vmem:[#allocation2 + $0x240] sm:$0xf8] %v2657_v4  ;;  %2903 = vrot.lane.b32.xlu1 %v2880_v60, %s12816_s13  ;;  %s9988_s13 = scalar_lea.vmem %s12706_s6, %s9941_s27 }
 0x5a0   : > { %v2637_v12 = vpop.permute.xlu0 %2636 }
 0x5a1   : > { %v2639_v15 = vpop.permute.xlu1 %2638  ;;  %v2658_v13 = vsel %vm2656_vm7, %v2635_v59, %v2637_v12 }
 0x5a2   : > { %v2659_v52 = vsel %vm2656_vm7, %v2637_v12, %v2639_v15  ;;  %2680 = vst [vmem:[#allocation2 + $0x248] sm:$0xf8] %v2658_v13  ;;  %2940 = vrot.lane.b32.xlu0 %v7837_v29, %s7885_s18 }
 0x5a3   : > { %2681 = vst [vmem:[#allocation2 + $0x250] sm:$0xf8] %v2659_v52  ;;  %2942 = vrot.lane.b32.xlu1 %v7838_v2, %s7885_s18 }
 0x5a4   : > { %v2641_v62 = vpop.permute.xlu0 %2640 }
 0x5a5   : > { %v2643_v41 = vpop.permute.xlu1 %2642  ;;  %v2660_v49 = vsel %vm2656_vm7, %v2639_v15, %v2641_v62 }
 0x5a6   : > { %2684 = vst.msk [vmem:[#allocation2 + $0x268] sm:$0xf8] %vm2129_vm3, %v2643_v41  ;;  %v2661_v28 = vsel %vm2656_vm7, %v2641_v62, %v2643_v41  ;;  %2682 = vst [vmem:[#allocation2 + $0x258] sm:$0xf8] %v2660_v49  ;;  %2944 = vrot.lane.b32.xlu0 %v7839_v17, %s7885_s18  ;;  %v3151_v3 = vld [vmem:[#allocation2 + $0x240] sm:$0xff] }
 0x5a7   : > { %2683 = vst [vmem:[#allocation2 + $0x260] sm:$0xf8] %v2661_v28  ;;  %2946 = vrot.lane.b32.xlu1 %v7840_v24, %s7885_s18  ;;  %vm13140_vm3 = vmmov %vm13136_vm4 }
 0x5a8   : > { %v2645_v6 = vpop.permute.xlu0 %2644  ;;  %vm13141_vm1 = vmmov %vm13140_vm3 }
 0x5a9   : > { %v2647_v48 = vpop.permute.xlu1 %2646  ;;  %v3152_v16 = vld [vmem:[#allocation2 + $0x248] sm:$0xff]  ;;  %vm13142_vm0 = vmmov %vm13141_vm1 }
 0x5aa   : > { %v2662_v10 = vsel %vm2656_vm7, %v2645_v6, %v2647_v48  ;;  %2948 = vrot.lane.b32.xlu0 %v9079_v43, %s7885_s18  ;;  %v3153_v1 = vld [vmem:[#allocation2 + $0x250] sm:$0xff] }
 0x5ab   : > { %2685 = vst [vmem:[#allocation2 + $0x270] sm:$0xf] %v2662_v10  ;;  %2950 = vrot.lane.b32.xlu1 %v13106_v21, %s7885_s18 }
 0x5ac   : > { %v2649_v30 = vpop.permute.xlu0 %2648 }
 0x5ad   : > { %v2651_v5 = vpop.permute.xlu1 %2650  ;;  %v2663_v47 = vsel %vm2656_vm7, %v2647_v48, %v2649_v30  ;;  %v3154_v54 = vld [vmem:[#allocation2 + $0x258] sm:$0xff] }
 0x5ae   : > { %v2664_v37 = vsel %vm2656_vm7, %v2649_v30, %v2651_v5  ;;  %2686 = vst [vmem:[#allocation2 + $0x278] sm:$0xf] %v2663_v47  ;;  %2952 = vrot.lane.b32.xlu0 %v9006_v19, %s7885_s18 }
 0x5af   : > { %2687 = vst [vmem:[#allocation2 + $0x280] sm:$0xf] %v2664_v37  ;;  %2954 = vrot.lane.b32.xlu1 %v9013_v18, %s7885_s18 }
 0x5b0   : > { %v2653_v50 = vpop.permute.xlu0 %2652 }
 0x5b1   : > { %v2655_v43 = vpop.permute.xlu1 %2654  ;;  %v2665_v53 = vsel %vm2656_vm7, %v2651_v5, %v2653_v50 }
 0x5b2   : > { %2690 = vst.msk [vmem:[#allocation2 + $0x298] sm:$0xf] %vm13134_vm13, %v2655_v43  ;;  %v2666_v51 = vsel %vm2656_vm7, %v2653_v50, %v2655_v43  ;;  %2688 = vst [vmem:[#allocation2 + $0x288] sm:$0xf] %v2665_v53  ;;  %2956 = vrot.lane.b32.xlu0 %v9019_v42, %s7885_s18 }
 0x5b3   : > { %2689 = vst [vmem:[#allocation2 + $0x290] sm:$0xf] %v2666_v51  ;;  %2958 = vrot.lane.b32.xlu1 %v9025_v45, %s7885_s18  ;;  %vm13143_vm7 = vmmov %vm13142_vm0 }
 0x5b4   : > { %v2697_v19 = vpop.permute.xlu0 %2696  ;;  %vm13144_vm13 = vmmov %vm13142_vm0 }
 0x5b5   : > { %v2699_v14 = vpop.permute.xlu1 %2698 }
 0x5b6   : > { %v2720_v18 = vsel %vm13135_vm14, %v2697_v19, %v2699_v14  ;;  %2960 = vrot.lane.b32.xlu0 %v9030_v22, %s7885_s18  ;;  %vm13145_vm14 = vcmask 277504  }
 0x5b7   : > { %2742 = vst [vmem:[#allocation2 + $0x270] sm:$0xf0] %v2720_v18  ;;  %2962 = vrot.lane.b32.xlu1 %v13111_v39, %s7885_s18  ;;  %s9962_s18 = scalar_lea.vmem %s12705_s5, %s9941_s27  ;;  %v3985_v18 = vld [vmem:[%s9988_s13] sm:$0xff] }
 0x5b8   : > { %v2701_v44 = vpop.permute.xlu0 %2700  ;;  %v3206_v52 = vld [vmem:[%s9962_s18 + $0x8] sm:$0xff]  ;;  %v3207_v41 = vld [vmem:[%s9962_s18 + $0x10] sm:$0xff]  ;;  %v3209_v6 = vld [vmem:[%s9962_s18 + $0x20] sm:$0xff] }
 0x5b9   : > { %v2703_v58 = vpop.permute.xlu1 %2702  ;;  %v2721_v23 = vsel %vm13136_vm4, %v2699_v14, %v2701_v44  ;;  %vm13146_vm4 = vmmov %vm13142_vm0  ;;  %v3210_v10 = vld [vmem:[%s9962_s18 + $0x28] sm:$0xff]  ;;  %v3211_v47 = vld [vmem:[%s9962_s18 + $0x30] sm:$0xff] }
 0x5ba   : > { %v2722_v42 = vsel %vm13137_vm5, %v2701_v44, %v2703_v58  ;;  %2743 = vst [vmem:[#allocation2 + $0x278] sm:$0xf0] %v2721_v23  ;;  %3002 = vrot.lane.b32.xlu0 %v9067_v46, %s7886_s19  ;;  %vm13147_vm5 = vmmov %vm13145_vm14  ;;  %v3212_v50 = vld [vmem:[%s9962_s18 + $0x38] sm:$0xff]  ;;  %v3213_v19 = vld [vmem:[%s9962_s18 + $0x40] sm:$0xff] }
 0x5bb   : > { %2744 = vst [vmem:[#allocation2 + $0x280] sm:$0xf0] %v2722_v42  ;;  %3004 = vrot.lane.b32.xlu1 %v9089_v25, %s7886_s19  ;;  %v2999_v25 = vrot.slane %v13106_v21, 7  ;;  %v3986_v42 = vld [vmem:[%s9988_s13 + $0x8] sm:$0xff] }
 0x5bc   : > { %v2705_v45 = vpop.permute.xlu0 %2704 }
 0x5bd   : > { %v2707_v22 = vpop.permute.xlu1 %2706  ;;  %v2723_v61 = vsel %vm13138_vm10, %v2703_v58, %v2705_v45  ;;  %vm2781_vm10 = vcmask 867328  }
 0x5be   : > { %2747 = vst.msk [vmem:[#allocation2 + $0x298] sm:$0xf0] %vm13139_vm8, %v2707_v22  ;;  %v2724_v33 = vsel %vm13140_vm3, %v2705_v45, %v2707_v22  ;;  %2745 = vst [vmem:[#allocation2 + $0x288] sm:$0xf0] %v2723_v61  ;;  %3006 = vrot.lane.b32.xlu0 %v9092_v57, %s7886_s19  ;;  %v3157_v40 = vld [vmem:[#allocation2 + $0x270] sm:$0xff]  ;;  %vm13149_vm8 = vcmask 211973  }
 0x5bf   : > { %2746 = vst [vmem:[#allocation2 + $0x290] sm:$0xf0] %v2724_v33  ;;  %3008 = vrot.lane.b32.xlu1 %v9101_v20, %s7886_s19  ;;  %v7503_v57 = vpack.c.bf16 %v3157_v40, %v3151_v3  ;;  %vm13150_vm3 = vcmask 209920   ;;  %v3987_v22 = vld [vmem:[%s9988_s13 + $0x10] sm:$0xff] }
 0x5c0   : > { %v2709_v46 = vpop.permute.xlu0 %2708  ;;  %v3991_v3 = vld [vmem:[%s9988_s13 + $0x30] sm:$0xff] }
 0x5c1   : > { %v2711_v38 = vpop.permute.xlu1 %2710  ;;  %v3158_v8 = vld [vmem:[#allocation2 + $0x278] sm:$0xff] }
 0x5c2   : > { %v2725_v55 = vsel %vm13141_vm1, %v2709_v46, %v2711_v38  ;;  %3010 = vrot.lane.b32.xlu0 %v9104_v27, %s7886_s19  ;;  %v7501_v0 = vpack.c.bf16 %v3158_v8, %v3152_v16  ;;  %v3159_v20 = vld [vmem:[#allocation2 + $0x280] sm:$0xff]  ;;  %vm2843_vm1 = vcmask 850944   ;;  %v3988_v46 = vld [vmem:[%s9988_s13 + $0x18] sm:$0xff] }
 0x5c3   : > { %2748 = vst [vmem:[#allocation2 + $0x2a0] sm:$0x1f] %v2725_v55  ;;  %3012 = vrot.lane.b32.xlu1 %v2999_v25, %s7886_s19  ;;  %v7543_v34 = vpack.c.bf16 %v3159_v20, %v3153_v1  ;;  %v3990_v55 = vld [vmem:[%s9988_s13 + $0x28] sm:$0xff] }
 0x5c4   : > { %v2713_v9 = vpop.permute.xlu0 %2712  ;;  %7502 = vmatprep.subr.bf16.mxu0 %v7501_v0 }
 0x5c5   : > { %v2715_v32 = vpop.permute.xlu1 %2714  ;;  %v2726_v21 = vsel %vm13142_vm0, %v2711_v38, %v2713_v9  ;;  %7504 = vmatpush1.bf16.msra.mxu0 %v7503_v57  ;;  %v3160_v36 = vld [vmem:[#allocation2 + $0x288] sm:$0xff]  ;;  %v3989_v38 = vld [vmem:[%s9988_s13 + $0x20] sm:$0xff]  ;;  %vm13151_vm0 = vcmask 211974  }
 0x5c6   : > { %v2727_v26 = vsel %vm13143_vm7, %v2713_v9, %v2715_v32  ;;  %2749 = vst [vmem:[#allocation2 + $0x2a8] sm:$0x1f] %v2726_v21  ;;  %3014 = vrot.lane.b32.xlu0 %v9119_v56, %s7886_s19  ;;  %v7541_v27 = vpack.c.bf16 %v3160_v36, %v3154_v54  ;;  %v9944_v56 = vld [vmem:[%s9938_s17 + $0x8] sm:$0xff]  ;;  %v3993_v54 = vld [vmem:[%s9988_s13 + $0x40] sm:$0xff]  ;;  %vm2905_vm7 = vcmask 834560  }
 0x5c7   : > { %2750 = vst [vmem:[#allocation2 + $0x2b0] sm:$0x1f] %v2727_v26  ;;  %3016 = vrot.lane.b32.xlu1 %v9128_v63, %s7886_s19  ;;  %7380 = vmatprep.mubr.msk.f32.mxu0 %vm13145_vm14, %v9944_v56 }
 0x5c8   : > { %7542 = vmatprep.subr.bf16.mxu1 %v7541_v27  ;;  %v2717_v59 = vpop.permute.xlu0 %2716  ;;  %7391 = vmatprep.mubr.msk.f32.mxu1 %vm13147_vm5, %v9944_v56 }
 0x5c9   : > { %v2719_v4 = vpop.permute.xlu1 %2718  ;;  %v2728_v60 = vsel %vm13144_vm13, %v2715_v32, %v2717_v59  ;;  %7544 = vmatpush1.bf16.msra.mxu1 %v7543_v34  ;;  %v3992_v32 = vld [vmem:[%s9988_s13 + $0x38] sm:$0xff]  ;;  %vm2964_vm13 = vcmask 818176   ;;  %s7889_s13 = smov 16  }
 0x5ca   : > { %2753 = vst.msk [vmem:[#allocation2 + $0x2c8] sm:$0x1f] %vm2216_vm6, %v2719_v4  ;;  %v2729_v63 = vsel %vm13146_vm4, %v2717_v59, %v2719_v4  ;;  %2751 = vst [vmem:[#allocation2 + $0x2b8] sm:$0x1f] %v2728_v60  ;;  %3018 = vrot.lane.b32.xlu0 %v9133_v31, %s7886_s19  ;;  %vm13148_vm6 = vcmask 1040384  }
 0x5cb   : > { %2752 = vst [vmem:[#allocation2 + $0x2c0] sm:$0x1f] %v2729_v63  ;;  %3020 = vrot.lane.b32.xlu1 %v9142_v35, %s7886_s19  ;;  %v3001_v39 = vsel %vm13148_vm6, %v2999_v25, %v3000_v7  ;;  %v3205_v35 = vld [vmem:[%s9962_s18] sm:$0xff]  ;;  %vm13159_vm6 = vmmov %vm13147_vm5 }
 0x5cc   : > { %v2758_v12 = vpop.permute.xlu0 %2757  ;;  %v4093_v63 = vld [vmem:[%s10014_s25] sm:$0xff] }
 0x5cd   : > { %v2760_v15 = vpop.permute.xlu1 %2759 }
 0x5ce   : > { %v2782_v31 = vsel %vm2781_vm10, %v2758_v12, %v2760_v15  ;;  %3022 = vrot.lane.b32.xlu0 %v9146_v11, %s7886_s19  ;;  %v3208_v11 = vld [vmem:[%s9962_s18 + $0x18] sm:$0xff]  ;;  %v4094_v12 = vld [vmem:[%s10014_s25 + $0x8] sm:$0xff]  ;;  %s7890_s18 = smov 114  }
 0x5cf   : > { %2804 = vst [vmem:[#allocation2 + $0x2a0] sm:$0xe0] %v2782_v31  ;;  %3024 = vrot.lane.b32.xlu1 %v3001_v39, %s7886_s19  ;;  %s13366_s19 = smov 44  }
 0x5d0   : > { %v2762_v13 = vpop.permute.xlu0 %2761 }
 0x5d1   : > { %v2764_v29 = vpop.permute.xlu1 %2763  ;;  %v2783_v2 = vsel %vm2781_vm10, %v2760_v15, %v2762_v13 }
 0x5d2   : > { %v2784_v62 = vsel %vm2781_vm10, %v2762_v13, %v2764_v29  ;;  %2805 = vst [vmem:[#allocation2 + $0x2a8] sm:$0xe0] %v2783_v2  ;;  %3216 = vperm.xlu0 %7680, %v3205_v35  }
 0x5d3   : > { %2806 = vst [vmem:[#allocation2 + $0x2b0] sm:$0xe0] %v2784_v62  ;;  %3221 = vperm.xlu1 %7681, %v3206_v52  }
 0x5d4   : > { %v2766_v49 = vpop.permute.xlu0 %2765 }
 0x5d5   : > { %v2768_v28 = vpop.permute.xlu1 %2767  ;;  %v2785_v17 = vsel %vm2781_vm10, %v2764_v29, %v2766_v49 }
 0x5d6   : > { %2809 = vst.msk [vmem:[#allocation2 + $0x2c8] sm:$0xe0] %vm13149_vm8, %v2768_v28  ;;  %v2786_v24 = vsel %vm2781_vm10, %v2766_v49, %v2768_v28  ;;  %2807 = vst [vmem:[#allocation2 + $0x2b8] sm:$0xe0] %v2785_v17  ;;  %3226 = vperm.xlu0 %7680, %v3207_v41   ;;  %v3163_v4 = vld [vmem:[#allocation2 + $0x2a0] sm:$0xff]  ;;  %v4095_v41 = vld [vmem:[%s10014_s25 + $0x10] sm:$0xff] }
 0x5d7   : > { %2808 = vst [vmem:[#allocation2 + $0x2c0] sm:$0xe0] %v2786_v24  ;;  %3231 = vperm.xlu1 %7681, %v3208_v11   ;;  %v4096_v11 = vld [vmem:[%s10014_s25 + $0x18] sm:$0xff]  ;;  %vm13160_vm8 = vmmov %vm13147_vm5 }
 0x5d8   : > { %v2770_v48 = vpop.permute.xlu0 %2769 }
 0x5d9   : > { %v2772_v30 = vpop.permute.xlu1 %2771  ;;  %v3164_v27 = vld [vmem:[#allocation2 + $0x2a8] sm:$0xff] }
 0x5da   : > { %v2787_v5 = vsel %vm2781_vm10, %v2770_v48, %v2772_v30  ;;  %3236 = vperm.xlu0 %7680, %v3209_v6   ;;  %v3165_v2 = vld [vmem:[#allocation2 + $0x2b0] sm:$0xff]  ;;  %v4097_v6 = vld [vmem:[%s10014_s25 + $0x20] sm:$0xff] }
 0x5db   : > { %2810 = vst [vmem:[#allocation2 + $0x2d0] sm:$0x3f] %v2787_v5  ;;  %3241 = vperm.xlu1 %7681, %v3210_v10   ;;  %v4098_v10 = vld [vmem:[%s10014_s25 + $0x28] sm:$0xff] }
 0x5dc   : > { %v2774_v37 = vpop.permute.xlu0 %2773 }
 0x5dd   : > { %v2776_v43 = vpop.permute.xlu1 %2775  ;;  %v2788_v53 = vsel %vm2781_vm10, %v2772_v30, %v2774_v37  ;;  %v3166_v35 = vld [vmem:[#allocation2 + $0x2b8] sm:$0xff] }
 0x5de   : > { %v2789_v51 = vsel %vm2781_vm10, %v2774_v37, %v2776_v43  ;;  %2811 = vst [vmem:[#allocation2 + $0x2d8] sm:$0x3f] %v2788_v53  ;;  %3246 = vperm.xlu0 %7680, %v3211_v47   ;;  %v4099_v47 = vld [vmem:[%s10014_s25 + $0x30] sm:$0xff] }
 0x5df   : > { %2812 = vst [vmem:[#allocation2 + $0x2e0] sm:$0x3f] %v2789_v51  ;;  %3251 = vperm.xlu1 %7681, %v3212_v50   ;;  %v4100_v50 = vld [vmem:[%s10014_s25 + $0x38] sm:$0xff] }
 0x5e0   : > { %v2778_v14 = vpop.permute.xlu0 %2777 }
 0x5e1   : > { %v2780_v44 = vpop.permute.xlu1 %2779  ;;  %v2790_v58 = vsel %vm2781_vm10, %v2776_v43, %v2778_v14 }
 0x5e2   : > { %2815 = vst.msk [vmem:[#allocation2 + $0x2f8] sm:$0x3f] %vm13150_vm3, %v2780_v44  ;;  %v2791_v23 = vsel %vm2781_vm10, %v2778_v14, %v2780_v44  ;;  %2813 = vst [vmem:[#allocation2 + $0x2e8] sm:$0x3f] %v2790_v58  ;;  %3256 = vperm.xlu0 %7680, %v3213_v19   ;;  %v4101_v19 = vld [vmem:[%s10014_s25 + $0x40] sm:$0xff]  ;;  %s13371_s25 = smov 34  }
 0x5e3   : > { %2814 = vst [vmem:[#allocation2 + $0x2f0] sm:$0x3f] %v2791_v23  ;;  %3996 = vperm.xlu1 %7681, %v3985_v18   ;;  %vm13158_vm10 = vmmov %vm13147_vm5 }
 0x5e4   : > { %v2820_v45 = vpop.permute.xlu0 %2819  ;;  %vm13161_vm3 = vmmov %vm13147_vm5 }
 0x5e5   : > { %v2822_v61 = vpop.permute.xlu1 %2821 }
 0x5e6   : > { %v2844_v33 = vsel %vm2843_vm1, %v2820_v45, %v2822_v61  ;;  %4001 = vperm.xlu0 %7680, %v3986_v42  }
 0x5e7   : > { %2866 = vst [vmem:[#allocation2 + $0x2d0] sm:$0xc0] %v2844_v33  ;;  %4006 = vperm.xlu1 %7681, %v3987_v22  }
 0x5e8   : > { %v2824_v40 = vpop.permute.xlu0 %2823 }
 0x5e9   : > { %v2826_v25 = vpop.permute.xlu1 %2825  ;;  %v2845_v16 = vsel %vm2843_vm1, %v2822_v61, %v2824_v40 }
 0x5ea   : > { %v2846_v8 = vsel %vm2843_vm1, %v2824_v40, %v2826_v25  ;;  %2867 = vst [vmem:[#allocation2 + $0x2d8] sm:$0xc0] %v2845_v16  ;;  %4011 = vperm.xlu0 %7680, %v3988_v46  }
 0x5eb   : > { %2868 = vst [vmem:[#allocation2 + $0x2e0] sm:$0xc0] %v2846_v8  ;;  %4016 = vperm.xlu1 %7681, %v3989_v38  }
 0x5ec   : > { %v2828_v0 = vpop.permute.xlu0 %2827 }
 0x5ed   : > { %v2830_v57 = vpop.permute.xlu1 %2829  ;;  %v2847_v9 = vsel %vm2843_vm1, %v2826_v25, %v2828_v0 }
 0x5ee   : > { %2871 = vst.msk [vmem:[#allocation2 + $0x2f8] sm:$0xc0] %vm13151_vm0, %v2830_v57  ;;  %v2848_v20 = vsel %vm2843_vm1, %v2828_v0, %v2830_v57  ;;  %2869 = vst [vmem:[#allocation2 + $0x2e8] sm:$0xc0] %v2847_v9  ;;  %4021 = vperm.xlu0 %7680, %v3990_v55   ;;  %v3169_v36 = vld [vmem:[#allocation2 + $0x2d0] sm:$0xff] }
 0x5ef   : > { %2870 = vst [vmem:[#allocation2 + $0x2f0] sm:$0xc0] %v2848_v20  ;;  %4026 = vperm.xlu1 %7681, %v3991_v3   ;;  %v7507_v60 = vpack.c.bf16 %v3169_v36, %v3163_v4 }
 0x5f0   : > { %v2832_v21 = vpop.permute.xlu0 %2831 }
 0x5f1   : > { %v2834_v26 = vpop.permute.xlu1 %2833  ;;  %v3170_v1 = vld [vmem:[#allocation2 + $0x2d8] sm:$0xff] }
 0x5f2   : > { %v2849_v34 = vsel %vm2843_vm1, %v2832_v21, %v2834_v26  ;;  %4031 = vperm.xlu0 %7680, %v3992_v32   ;;  %v7505_v59 = vpack.c.bf16 %v3170_v1, %v3164_v27  ;;  %v3171_v15 = vld [vmem:[#allocation2 + $0x2e0] sm:$0xff] }
 0x5f3   : > { %2872 = vst [vmem:[#allocation2 + $0x300] sm:$0x7f] %v2849_v34  ;;  %4036 = vperm.xlu1 %7681, %v3993_v54   ;;  %v7547_v62 = vpack.c.bf16 %v3171_v15, %v3165_v2 }
 0x5f4   : > { %v2836_v7 = vpop.permute.xlu0 %2835  ;;  %7506 = vmatprep.subr.bf16.mxu0 %v7505_v59 }
 0x5f5   : > { %v2838_v31 = vpop.permute.xlu1 %2837  ;;  %v2850_v39 = vsel %vm2843_vm1, %v2834_v26, %v2836_v7  ;;  %7508 = vmatpush1.bf16.msra.mxu0 %v7507_v60  ;;  %v3172_v13 = vld [vmem:[#allocation2 + $0x2e8] sm:$0xff] }
 0x5f6   : > { %v2851_v52 = vsel %vm2843_vm1, %v2836_v7, %v2838_v31  ;;  %2873 = vst [vmem:[#allocation2 + $0x308] sm:$0x7f] %v2850_v39  ;;  %4104 = vperm.xlu0 %7680, %v4093_v63   ;;  %v7545_v29 = vpack.c.bf16 %v3172_v13, %v3166_v35 }
 0x5f7   : > { %2874 = vst [vmem:[#allocation2 + $0x310] sm:$0x7f] %v2851_v52  ;;  %4109 = vperm.xlu1 %7681, %v4094_v12  }
 0x5f8   : > { %7546 = vmatprep.subr.bf16.mxu1 %v7545_v29  ;;  %v2840_v49 = vpop.permute.xlu0 %2839 }
 0x5f9   : > { %v2842_v28 = vpop.permute.xlu1 %2841  ;;  %v2852_v17 = vsel %vm2843_vm1, %v2838_v31, %v2840_v49  ;;  %7548 = vmatpush1.bf16.msra.mxu1 %v7547_v62 }
 0x5fa   : > { %2877 = vst.msk [vmem:[#allocation2 + $0x328] sm:$0x7f] %vm2375_vm2, %v2842_v28  ;;  %v2853_v24 = vsel %vm2843_vm1, %v2840_v49, %v2842_v28  ;;  %2875 = vst [vmem:[#allocation2 + $0x318] sm:$0x7f] %v2852_v17  ;;  %4114 = vperm.xlu0 %7680, %v4095_v41   ;;  %vm13152_vm2 = vcmask 211975  }
 0x5fb   : > { %2876 = vst [vmem:[#allocation2 + $0x320] sm:$0x7f] %v2853_v24  ;;  %4119 = vperm.xlu1 %7681, %v4096_v11   ;;  %vm13162_vm1 = vmmov %vm13161_vm3 }
 0x5fc   : > { %v2882_v48 = vpop.permute.xlu0 %2881  ;;  %vm13163_vm0 = vmmov %vm13162_vm1 }
 0x5fd   : > { %v2884_v30 = vpop.permute.xlu1 %2883 }
 0x5fe   : > { %v2906_v5 = vsel %vm2905_vm7, %v2882_v48, %v2884_v30  ;;  %4124 = vperm.xlu0 %7680, %v4097_v6  }
 0x5ff   : > { %2928 = vst [vmem:[#allocation2 + $0x300] sm:$0x80] %v2906_v5  ;;  %4129 = vperm.xlu1 %7681, %v4098_v10  }
 0x600   : > { %v2886_v37 = vpop.permute.xlu0 %2885 }
 0x601   : > { %v2888_v43 = vpop.permute.xlu1 %2887  ;;  %v2907_v53 = vsel %vm2905_vm7, %v2884_v30, %v2886_v37 }
 0x602   : > { %v2908_v51 = vsel %vm2905_vm7, %v2886_v37, %v2888_v43  ;;  %2929 = vst [vmem:[#allocation2 + $0x308] sm:$0x80] %v2907_v53  ;;  %4134 = vperm.xlu0 %7680, %v4099_v47  }
 0x603   : > { %2930 = vst [vmem:[#allocation2 + $0x310] sm:$0x80] %v2908_v51  ;;  %4139 = vperm.xlu1 %7681, %v4100_v50  }
 0x604   : > { %v2890_v14 = vpop.permute.xlu0 %2889 }
 0x605   : > { %v2892_v18 = vpop.permute.xlu1 %2891  ;;  %v2909_v44 = vsel %vm2905_vm7, %v2888_v43, %v2890_v14 }
 0x606   : > { %2933 = vst.msk [vmem:[#allocation2 + $0x328] sm:$0x80] %vm13152_vm2, %v2892_v18  ;;  %v2910_v58 = vsel %vm2905_vm7, %v2890_v14, %v2892_v18  ;;  %2931 = vst [vmem:[#allocation2 + $0x318] sm:$0x80] %v2909_v44  ;;  %4144 = vperm.xlu0 %7680, %v4101_v19   ;;  %v3175_v25 = vld [vmem:[#allocation2 + $0x300] sm:$0xff] }
 0x607   : > { %2932 = vst [vmem:[#allocation2 + $0x320] sm:$0x80] %v2910_v58  ;;  %vm13165_vm2 = vmmov %vm13163_vm0 }
 0x608   : > { %v2894_v23 = vpop.permute.xlu0 %2893 }
 0x609   : > { %v2896_v42 = vpop.permute.xlu1 %2895  ;;  %v3176_v46 = vld [vmem:[#allocation2 + $0x308] sm:$0xff] }
 0x60a   : > { %v2911_v45 = vsel %vm2905_vm7, %v2894_v23, %v2896_v42  ;;  %v3177_v20 = vld [vmem:[#allocation2 + $0x310] sm:$0xff] }
 0x60b   : > { %v7511_v16 = vpack.c.bf16 %v2911_v45, %v3175_v25  ;;  %v3084_v25 = vld [vmem:[#allocation2 + $0x28] sm:$0xff] }
 0x60c   : > { %v2898_v22 = vpop.permute.xlu0 %2897 }
 0x60d   : > { %v2900_v61 = vpop.permute.xlu1 %2899  ;;  %v2912_v33 = vsel %vm2905_vm7, %v2896_v42, %v2898_v22  ;;  %v3178_v3 = vld [vmem:[#allocation2 + $0x318] sm:$0xff] }
 0x60e   : > { %v2913_v40 = vsel %vm2905_vm7, %v2898_v22, %v2900_v61  ;;  %v7509_v38 = vpack.c.bf16 %v2912_v33, %v3176_v46 }
 0x60f   : > { %v7551_v32 = vpack.c.bf16 %v2913_v40, %v3177_v20  ;;  %v3083_v20 = vld [vmem:[#allocation2 + $0x20] sm:$0xff] }
 0x610   : > { %v2902_v8 = vpop.permute.xlu0 %2901  ;;  %7510 = vmatprep.subr.bf16.mxu0 %v7509_v38  ;;  %v3090_v38 = vld [vmem:[#allocation2 + $0x58] sm:$0xff] }
 0x611   : > { %v2904_v55 = vpop.permute.xlu1 %2903  ;;  %v2914_v0 = vsel %vm2905_vm7, %v2900_v61, %v2902_v8  ;;  %7512 = vmatpush1.bf16.msra.mxu0 %v7511_v16  ;;  %v3089_v16 = vld [vmem:[#allocation2 + $0x50] sm:$0xff] }
 0x612   : > { %2939 = vst.msk [vmem:[#allocation2 + $0x358] sm:$0xff] %vm1878_vm12, %v2904_v55  ;;  %v10043_v57 = vsel %vm2905_vm7, %v2902_v8, %v2904_v55  ;;  %v7549_v9 = vpack.c.bf16 %v2914_v0, %v3178_v3  ;;  %v10075_v55 = vld [vmem:[%s9938_s17] sm:$0xff]  ;;  %v3102_v0 = vld [vmem:[#allocation2 + $0xb8] sm:$0xff]  ;;  %vm13164_vm7 = vmmov %vm13163_vm0 }
 0x614   : > { %v2941_v21 = vpop.permute.xlu0 %2940  ;;  %7550 = vmatprep.subr.bf16.mxu1 %v7549_v9  ;;  %v7557_v9 = vpack.c.bf16 %v3090_v38, %v3084_v25  ;;  %v3076_v25 = vld [vmem:[%s9938_s17 + $0x78] sm:$0xff] }
 0x615   : > { %v2943_v54 = vpop.permute.xlu1 %2942  ;;  %7552 = vmatpush1.bf16.msra.mxu1 %v7551_v32  ;;  %v10079_v32 = vld [vmem:[%s9938_s17 + $0x18] sm:$0xff] }
 0x616   : > { %v2965_v36 = vsel %vm2964_vm13, %v2941_v21, %v2943_v54  ;;  %v7559_v21 = vpack.c.bf16 %v3089_v16, %v3083_v20  ;;  %v3173_v16 = vld [vmem:[#allocation2 + $0x2f0] sm:$0xff]  ;;  %v3180_v20 = vld [vmem:[#allocation2 + $0x328] sm:$0xff] }
 0x618   : > { %v2945_v26 = vpop.permute.xlu0 %2944 }
 0x619   : > { %v2947_v27 = vpop.permute.xlu1 %2946  ;;  %v2966_v1 = vsel %vm2964_vm13, %v2943_v54, %v2945_v26  ;;  %v3096_v54 = vld [vmem:[#allocation2 + $0x88] sm:$0xff] }
 0x61a   : > { %v10048_v34 = vsel %vm2964_vm13, %v2945_v26, %v2947_v27  ;;  %v3101_v26 = vld [vmem:[#allocation2 + $0xb0] sm:$0xff] }
 0x61c   : > { %v2949_v59 = vpop.permute.xlu0 %2948 }
 0x61d   : > { %v2951_v4 = vpop.permute.xlu1 %2950  ;;  %v2968_v60 = vsel %vm2964_vm13, %v2947_v27, %v2949_v59 }
 0x61e   : > { %2992 = vst.msk [vmem:[#allocation2 + $0x388] sm:$0xff] %vm1878_vm12, %v2951_v4  ;;  %v10053_v63 = vsel %vm2964_vm13, %v2949_v59, %v2951_v4  ;;  %vm3026_vm12 = vcmask 801792   ;;  %v3095_v4 = vld [vmem:[#allocation2 + $0x80] sm:$0xff] }
 0x620   : > { %v2953_v7 = vpop.permute.xlu0 %2952 }
 0x621   : > { %v2955_v12 = vpop.permute.xlu1 %2954 }
 0x622   : > { %v2970_v15 = vsel %vm2964_vm13, %v2953_v7, %v2955_v12  ;;  %v3108_v7 = vld [vmem:[#allocation2 + $0xe8] sm:$0xff] }
 0x623   : > { %2993 = vst [vmem:[#allocation2 + $0x390] sm:$0x1] %v2970_v15  ;;  %v10093_v15 = vld [vmem:[%s9938_s17 + $0x28] sm:$0xff] }
 0x624   : > { %v2957_v31 = vpop.permute.xlu0 %2956 }
 0x625   : > { %v2959_v39 = vpop.permute.xlu1 %2958  ;;  %v2971_v35 = vsel %vm2964_vm13, %v2955_v12, %v2957_v31 }
 0x626   : > { %v2972_v13 = vsel %vm2964_vm13, %v2957_v31, %v2959_v39  ;;  %2994 = vst [vmem:[#allocation2 + $0x398] sm:$0x1] %v2971_v35  ;;  %v3113_v31 = vld [vmem:[#allocation2 + $0x110] sm:$0xff]  ;;  %v3126_v35 = vld [vmem:[#allocation2 + $0x178] sm:$0xff] }
 0x627   : > { %2995 = vst [vmem:[#allocation2 + $0x3a0] sm:$0x1] %v2972_v13  ;;  %v3107_v13 = vld [vmem:[#allocation2 + $0xe0] sm:$0xff] }
 0x628   : > { %v2961_v52 = vpop.permute.xlu0 %2960 }
 0x629   : > { %v2963_v29 = vpop.permute.xlu1 %2962  ;;  %v2973_v2 = vsel %vm2964_vm13, %v2959_v39, %v2961_v52  ;;  %v10096_v39 = vld [vmem:[%s9938_s17 + $0x20] sm:$0xff] }
 0x62a   : > { %2998 = vst.msk [vmem:[#allocation2 + $0x3b8] sm:$0x1] %vm1885_vm15, %v2963_v29  ;;  %v2974_v62 = vsel %vm2964_vm13, %v2961_v52, %v2963_v29  ;;  %2996 = vst [vmem:[#allocation2 + $0x3a8] sm:$0x1] %v2973_v2  ;;  %vm13153_vm15 = vcmask 1041408   ;;  %v7567_v52 = vpack.c.bf16 %v3113_v31, %v3107_v13  ;;  %v3120_v29 = vld [vmem:[#allocation2 + $0x148] sm:$0xff] }
 0x62b   : > { %2997 = vst [vmem:[#allocation2 + $0x3b0] sm:$0x1] %v2974_v62  ;;  %v7569_v2 = vpack.c.bf16 %v3126_v35, %v3120_v29  ;;  %v10104_v62 = vld [vmem:[%s9938_s17 + $0x38] sm:$0xff]  ;;  %vm13166_vm13 = vmmov %vm13163_vm0 }
 0x62c   : > { %v3003_v41 = vpop.permute.xlu0 %3002 }
 0x62d   : > { %v3005_v49 = vpop.permute.xlu1 %3004 }
 0x62e   : > { %v3027_v11 = vsel %vm3026_vm12, %v3003_v41, %v3005_v49  ;;  %v3125_v41 = vld [vmem:[#allocation2 + $0x170] sm:$0xff] }
 0x62f   : > { %3049 = vst [vmem:[#allocation2 + $0x390] sm:$0xfe] %v3027_v11  ;;  %v3138_v11 = vld [vmem:[#allocation2 + $0x1d8] sm:$0xff] }
 0x630   : > { %v3007_v28 = vpop.permute.xlu0 %3006 }
 0x631   : > { %v3009_v17 = vpop.permute.xlu1 %3008  ;;  %v3028_v24 = vsel %vm3026_vm12, %v3005_v49, %v3007_v28  ;;  %v10108_v49 = vld [vmem:[%s9938_s17 + $0x30] sm:$0xff] }
 0x632   : > { %v3029_v6 = vsel %vm3026_vm12, %v3007_v28, %v3009_v17  ;;  %3050 = vst [vmem:[#allocation2 + $0x398] sm:$0xfe] %v3028_v24  ;;  %v3119_v28 = vld [vmem:[#allocation2 + $0x140] sm:$0xff]  ;;  %v3132_v24 = vld [vmem:[#allocation2 + $0x1a8] sm:$0xff] }
 0x633   : > { %3051 = vst [vmem:[#allocation2 + $0x3a0] sm:$0xfe] %v3029_v6  ;;  %v7573_v6 = vpack.c.bf16 %v3138_v11, %v3132_v24 }
 0x634   : > { %v3011_v48 = vpop.permute.xlu0 %3010 }
 0x635   : > { %v3013_v10 = vpop.permute.xlu1 %3012  ;;  %v3030_v30 = vsel %vm3026_vm12, %v3009_v17, %v3011_v48  ;;  %v7571_v17 = vpack.c.bf16 %v3125_v41, %v3119_v28 }
 0x636   : > { %3054 = vst.msk [vmem:[#allocation2 + $0x3b8] sm:$0xfe] %vm1970_vm9, %v3013_v10  ;;  %v3031_v5 = vsel %vm3026_vm12, %v3011_v48, %v3013_v10  ;;  %3052 = vst [vmem:[#allocation2 + $0x3a8] sm:$0xfe] %v3030_v30  ;;  %v3193_v37 = vld [vmem:[#allocation2 + $0x390] sm:$0xff]  ;;  %v10116_v48 = vld [vmem:[%s9938_s17 + $0x48] sm:$0xff] }
 0x637   : > { %3053 = vst [vmem:[#allocation2 + $0x3b0] sm:$0xfe] %v3031_v5  ;;  %v7515_v19 = vpack.c.bf16 %v3193_v37, %v2965_v36  ;;  %vm13154_vm9 = vmmov %vm13153_vm15  ;;  %v7561_v36 = vpack.c.bf16 %v3102_v0, %v3096_v54  ;;  %v3137_v10 = vld [vmem:[#allocation2 + $0x1d0] sm:$0xff]  ;;  %v10120_v30 = vld [vmem:[%s9938_s17 + $0x40] sm:$0xff] }
 0x638   : > { %v3015_v47 = vpop.permute.xlu0 %3014  ;;  %vm13156_vm14 = vmmov %vm13154_vm9  ;;  %v3150_v5 = vld [vmem:[#allocation2 + $0x238] sm:$0xff]  ;;  %v3078_v54 = vld [vmem:[%s9938_s17 + $0x88] sm:$0xff] }
 0x639   : > { %v3017_v50 = vpop.permute.xlu1 %3016  ;;  %v3194_v43 = vld [vmem:[#allocation2 + $0x398] sm:$0xff]  ;;  %vm13157_vm4 = vmmov %vm13154_vm9 }
 0x63a   : > { %v3032_v53 = vsel %vm3026_vm12, %v3015_v47, %v3017_v50  ;;  %v7513_v51 = vpack.c.bf16 %v3194_v43, %v2966_v1  ;;  %v3195_v18 = vld [vmem:[#allocation2 + $0x3a0] sm:$0xff]  ;;  %v10086_v1 = vld [vmem:[%s9938_s17 + $0x10] sm:$0xff]  ;;  %v3186_v0 = vld [vmem:[#allocation2 + $0x358] sm:$0xff] }
 0x63b   : > { %3055 = vst [vmem:[#allocation2 + $0x3c0] sm:$0x3] %v3032_v53  ;;  %v7555_v22 = vpack.c.bf16 %v3195_v18, %v10048_v34  ;;  %v3114_v34 = vld [vmem:[#allocation2 + $0x118] sm:$0xff]  ;;  %v3131_v47 = vld [vmem:[#allocation2 + $0x1a0] sm:$0xff] }
 0x63c   : > { %v3019_v14 = vpop.permute.xlu0 %3018  ;;  %7514 = vmatprep.subr.bf16.mxu0 %v7513_v51  ;;  %v7565_v12 = vpack.c.bf16 %v3114_v34, %v3108_v7  ;;  %v7575_v37 = vpack.c.bf16 %v3137_v10, %v3131_v47  ;;  %v10128_v53 = vld [vmem:[%s9938_s17 + $0x58] sm:$0xff]  ;;  %v3149_v51 = vld [vmem:[#allocation2 + $0x230] sm:$0xff]  ;;  %v3143_v18 = vld [vmem:[#allocation2 + $0x200] sm:$0xff] }
 0x63d   : > { %v3021_v44 = vpop.permute.xlu1 %3020  ;;  %v3033_v58 = vsel %vm3026_vm12, %v3017_v50, %v3019_v14  ;;  %7516 = vmatpush1.bf16.msra.mxu0 %v7515_v19  ;;  %v3196_v23 = vld [vmem:[#allocation2 + $0x3a8] sm:$0xff]  ;;  %v10132_v19 = vld [vmem:[%s9938_s17 + $0x50] sm:$0xff] }
 0x63e   : > { %v3034_v42 = vsel %vm3026_vm12, %v3019_v14, %v3021_v44  ;;  %3056 = vst [vmem:[#allocation2 + $0x3c8] sm:$0x3] %v3033_v58  ;;  %v7553_v45 = vpack.c.bf16 %v3196_v23, %v2968_v60  ;;  %v7563_v60 = vpack.c.bf16 %v3101_v26, %v3095_v4  ;;  %v3144_v50 = vld [vmem:[#allocation2 + $0x208] sm:$0xff]  ;;  %v3162_v14 = vld [vmem:[#allocation2 + $0x298] sm:$0xff] }
 0x63f   : > { %3057 = vst [vmem:[#allocation2 + $0x3d0] sm:$0x3] %v3034_v42  ;;  %v7577_v43 = vpack.c.bf16 %v3150_v5, %v3144_v50  ;;  %v3156_v58 = vld [vmem:[#allocation2 + $0x268] sm:$0xff]  ;;  %v3198_v26 = vld [vmem:[#allocation2 + $0x3b8] sm:$0xff] }
 0x640   : > { %7554 = vmatprep.subr.bf16.mxu1 %v7553_v45  ;;  %v3023_v61 = vpop.permute.xlu0 %3022  ;;  %v7581_v23 = vpack.c.bf16 %v3162_v14, %v3156_v58  ;;  %v10140_v42 = vld [vmem:[%s9938_s17 + $0x68] sm:$0xff]  ;;  %v3161_v45 = vld [vmem:[#allocation2 + $0x290] sm:$0xff] }
 0x641   : > { %v3025_v33 = vpop.permute.xlu1 %3024  ;;  %v3035_v46 = vsel %vm3026_vm12, %v3021_v44, %v3023_v61  ;;  %7556 = vmatpush1.bf16.msra.mxu1 %v7555_v22  ;;  %v7579_v44 = vpack.c.bf16 %v3149_v51, %v3143_v18  ;;  %v10144_v22 = vld [vmem:[%s9938_s17 + $0x60] sm:$0xff] }
 0x642   : > { %3060 = vst.msk [vmem:[#allocation2 + $0x3e8] sm:$0x3] %vm1977_vm11, %v3025_v33  ;;  %v3036_v40 = vsel %vm3026_vm12, %v3023_v61, %v3025_v33  ;;  %3058 = vst [vmem:[#allocation2 + $0x3d8] sm:$0x3] %v3035_v46  ;;  %v3199_v3 = vld [vmem:[#allocation2 + $0x3c0] sm:$0x3] }
 0x643   : > { %3059 = vst [vmem:[#allocation2 + $0x3e0] sm:$0x3] %v3036_v40  ;;  %vm13155_vm11 = vmmov %vm13147_vm5  ;;  %v3174_v61 = vld [vmem:[#allocation2 + $0x2f8] sm:$0xff]  ;;  %v3155_v33 = vld [vmem:[#allocation2 + $0x260] sm:$0xff] }
 0x644   : > { %v7583_v46 = vpack.c.bf16 %v3161_v45, %v3155_v33  ;;  %v3168_v40 = vld [vmem:[#allocation2 + $0x2c8] sm:$0xff]  ;;  %vm13167_vm12 = vmmov %vm13163_vm0 }
 0x645   : > { %v3200_v8 = vld [vmem:[#allocation2 + $0x3c8] sm:$0x3]  ;;  %v7585_v38 = vpack.c.bf16 %v3174_v61, %v3168_v40 }
 0x646   : > { %7378 = vmatprep.subr.msk.mxu0 %vm13153_vm15, %v3200_v8  ;;  %v3201_v59 = vld [vmem:[#allocation2 + $0x3d0] sm:$0x3]  ;;  %vm13168_vm15 = vmmov %vm13163_vm0 }
 0x647   : > { %7379 = vmatpush1.msk.msra.mxu0 %vm13154_vm9, %v3199_v3  ;;  %v3075_v8 = vld [vmem:[%s9938_s17 + $0x70] sm:$0xff]  ;;  %v3167_v3 = vld [vmem:[#allocation2 + $0x2c0] sm:$0xff]  ;;  %vm13169_vm9 = vmmov %vm13163_vm0 }
 0x648   : > { %3369 = vmatmul.mubr.f32.vlgmr.msra.gmra.mrb[0].mxu0 %v10075_v55  ;;  %7558 = vmatprep.subr.bf16.mxu0 %v7557_v9 }
 0x649   : > { %7560 = vmatpush1.bf16.msra.mxu0 %v7559_v21  ;;  %v3202_v27 = vld [vmem:[#allocation2 + $0x3d8] sm:$0x3]  ;;  %7381 = vmatprep.mubr.msk.f32.mxu0 %vm13155_vm11, %v10079_v32  ;;  %vm13170_vm11 = vmmov %vm13163_vm0 }
 0x64a   : > { %7389 = vmatprep.subr.msk.mxu1 %vm13156_vm14, %v3202_v27  ;;  %7562 = vmatprep.subr.bf16.mxu0 %v7561_v36  ;;  %v3179_v27 = vld [vmem:[#allocation2 + $0x320] sm:$0xff]  ;;  %vm13171_vm14 = vmmov %vm13163_vm0 }
 0x64b   : > { %7390 = vmatpush1.msk.msra.mxu1 %vm13157_vm4, %v3201_v59  ;;  %v7591_v34 = vpack.c.bf16 %v10043_v57, %v3179_v27  ;;  %v3192_v59 = vld [vmem:[#allocation2 + $0x388] sm:$0xff]  ;;  %vm13172_vm4 = vmmov %vm13163_vm0 }
 0x64c   : > { %3375 = vmatmul.mubr.f32.gmra.mrb[2].mxu0 %v10086_v1  ;;  %3488 = vmatmul.mubr.f32.vlgmr.msra.gmra.mrb[0].mxu1 %v10075_v55  ;;  %v7593_v4 = vpack.c.bf16 %v3198_v26, %v3192_v59  ;;  %v3204_v57 = vld [vmem:[#allocation2 + $0x3e8] sm:$0x3] }
 0x64d   : > { %7597 = vmatprep.subr.bf16.mxu1 %v7557_v9  ;;  %7564 = vmatpush1.bf16.msra.mxu0 %v7563_v60  ;;  %v7587_v9 = vpack.c.bf16 %v3173_v16, %v3167_v3 }
 0x64e   : > { %7608 = vmatpush1.bf16.msra.mxu1 %v7559_v21  ;;  %7566 = vmatprep.subr.bf16.mxu0 %v7565_v12  ;;  %v7589_v21 = vpack.c.bf16 %v3186_v0, %v3180_v20 }
 0x64f   : > { %7598 = vmatprep.subr.bf16.mxu1 %v7561_v36  ;;  %7382 = vmatprep.mubr.msk.f32.mxu0 %vm13147_vm5, %v10093_v15  ;;  %v3077_v36 = vld [vmem:[%s9938_s17 + $0x80] sm:$0xff]  ;;  %vm13173_vm5 = vcmask 1041408   ;;  %s7888_s17 = smov 6  }
 0x650   : > { %7392 = vmatprep.mubr.msk.f32.mxu1 %vm13158_vm10, %v10079_v32  ;;  %3381 = vmatmul.mubr.f32.gmra.mrb[4].mxu0 %v10096_v39  ;;  %vm13174_vm10 = vmmov %vm13163_vm0 }
 0x651   : > { %3494 = vmatmul.mubr.f32.gmra.mrb[2].mxu1 %v10086_v1  ;;  %7568 = vmatpush1.bf16.msra.mxu0 %v7567_v52 }
 0x652   : > { %7609 = vmatpush1.bf16.msra.mxu1 %v7563_v60  ;;  %7570 = vmatprep.subr.bf16.mxu0 %v7569_v2  ;;  %v3197_v60 = vld [vmem:[#allocation2 + $0x3b0] sm:$0xff] }
 0x653   : > { %7599 = vmatprep.subr.bf16.mxu1 %v7565_v12  ;;  %7383 = vmatprep.mubr.msk.f32.mxu0 %vm13159_vm6, %v10104_v62  ;;  %v7595_v7 = vpack.c.bf16 %v3197_v60, %v10053_v63  ;;  %v3203_v12 = vld [vmem:[#allocation2 + $0x3e0] sm:$0x3]  ;;  %vm13175_vm6 = vmmov %vm13173_vm5 }
 0x654   : > { %7393 = vmatprep.mubr.msk.f32.mxu1 %vm13160_vm8, %v10093_v15  ;;  %3387 = vmatmul.mubr.f32.gmra.mrb[6].mxu0 %v10108_v49  ;;  %vm13176_vm8 = vmmov %vm13173_vm5 }
 0x655   : > { %3500 = vmatmul.mubr.f32.gmra.mrb[4].mxu1 %v10096_v39  ;;  %7572 = vmatpush1.bf16.msra.mxu0 %v7571_v17 }
 0x656   : > { %7610 = vmatpush1.bf16.msra.mxu1 %v7567_v52  ;;  %7574 = vmatprep.subr.bf16.mxu0 %v7573_v6 }
 0x657   : > { %7600 = vmatprep.subr.bf16.mxu1 %v7569_v2  ;;  %7384 = vmatprep.mubr.msk.f32.mxu0 %vm13161_vm3, %v10116_v48  ;;  %vm13177_vm3 = vmmov %vm13163_vm0 }
 0x658   : > { %7394 = vmatprep.mubr.msk.f32.mxu1 %vm13162_vm1, %v10104_v62  ;;  %3393 = vmatmul.mubr.f32.gmra.mrb[8].mxu0 %v10120_v30  ;;  %vm13178_vm1 = vmmov %vm13173_vm5 }
 0x659   : > { %3506 = vmatmul.mubr.f32.gmra.mrb[6].mxu1 %v10108_v49  ;;  %7576 = vmatpush1.bf16.msra.mxu0 %v7575_v37 }
 0x65a   : > { %7611 = vmatpush1.bf16.msra.mxu1 %v7571_v17  ;;  %7578 = vmatprep.subr.bf16.mxu0 %v7577_v43 }
 0x65b   : > { %7601 = vmatprep.subr.bf16.mxu1 %v7573_v6  ;;  %7385 = vmatprep.mubr.msk.f32.mxu0 %vm13163_vm0, %v10128_v53 }
 0x65c   : > { %7395 = vmatprep.mubr.msk.f32.mxu1 %vm13164_vm7, %v10116_v48  ;;  %3399 = vmatmul.mubr.f32.gmra.mrb[10].mxu0 %v10132_v19  ;;  %vm13179_vm7 = vmmov %vm13163_vm0 }
 0x65d   : > { %3512 = vmatmul.mubr.f32.gmra.mrb[8].mxu1 %v10120_v30  ;;  %7580 = vmatpush1.bf16.msra.mxu0 %v7579_v44 }
 0x65e   : > { %7612 = vmatpush1.bf16.msra.mxu1 %v7575_v37  ;;  %7582 = vmatprep.subr.bf16.mxu0 %v7581_v23 }
 0x65f   : > { %7602 = vmatprep.subr.bf16.mxu1 %v7577_v43  ;;  %7386 = vmatprep.mubr.msk.f32.mxu0 %vm13165_vm2, %v10140_v42  ;;  %vm13180_vm2 = vmmov %vm13163_vm0 }
 0x660   : > { %7396 = vmatprep.mubr.msk.f32.mxu1 %vm13166_vm13, %v10128_v53  ;;  %3405 = vmatmul.mubr.f32.gmra.mrb[12].mxu0 %v10144_v22  ;;  %vm13181_vm13 = vmmov %vm13163_vm0 }
 0x661   : > { %3518 = vmatmul.mubr.f32.gmra.mrb[10].mxu1 %v10132_v19  ;;  %7584 = vmatpush1.bf16.msra.mxu0 %v7583_v46 }
 0x662   : > { %7613 = vmatpush1.bf16.msra.mxu1 %v7579_v44  ;;  %7586 = vmatprep.subr.bf16.mxu0 %v7585_v38 }
 0x663   : > { %7603 = vmatprep.subr.bf16.mxu1 %v7581_v23  ;;  %7387 = vmatprep.mubr.msk.f32.mxu0 %vm13167_vm12, %v3076_v25  ;;  %vm13182_vm12 = vmmov %vm13163_vm0 }
 0x664   : > { %7397 = vmatprep.mubr.msk.f32.mxu1 %vm13168_vm15, %v10140_v42  ;;  %3411 = vmatmul.mubr.f32.gmra.mrb[14].mxu0 %v3075_v8  ;;  %vm13183_vm15 = vmmov %vm13163_vm0 }
 0x665   : > { %3524 = vmatmul.mubr.f32.gmra.mrb[12].mxu1 %v10144_v22  ;;  %7588 = vmatpush1.bf16.msra.mxu0 %v7587_v9 }
 0x666   : > { %7614 = vmatpush1.bf16.msra.mxu1 %v7583_v46  ;;  %7590 = vmatprep.subr.bf16.mxu0 %v7589_v21 }
 0x667   : > { %7604 = vmatprep.subr.bf16.mxu1 %v7585_v38  ;;  %7388 = vmatprep.mubr.msk.f32.mxu0 %vm13169_vm9, %v3078_v54 }
 0x668   : > { %7398 = vmatprep.mubr.msk.f32.mxu1 %vm13170_vm11, %v3076_v25  ;;  %3417 = vmatmul.mubr.f32.gmra.mrb[16].mxu0 %v3077_v36 }
 0x669   : > { %3530 = vmatmul.mubr.f32.gmra.mrb[14].mxu1 %v3075_v8  ;;  %7592 = vmatpush1.bf16.msra.mxu0 %v7591_v34 }
 0x66a   : > { %7615 = vmatpush1.bf16.msra.mxu1 %v7587_v9  ;;  %7594 = vmatprep.subr.bf16.mxu0 %v7593_v4 }
 0x66b   : > { %7605 = vmatprep.subr.bf16.mxu1 %v7589_v21  ;;  %7399 = vmatprep.mubr.msk.f32.mxu1 %vm13171_vm14, %v3078_v54 }
 0x66c   : > { %7402 = vmatprep.mubr.msk.f32.mxu0 %vm13172_vm4, %v9944_v56  ;;  %v10192_v56 = vpop.permute.xlu0 %3216 }
 0x66d   : > { %3536 = vmatmul.mubr.f32.gmra.mrb[16].mxu1 %v3077_v36  ;;  %7596 = vmatpush1.bf16.msra.mxu0 %v7595_v7  ;;  %13184 = vst [vmem:[#allocation40_spill] sm:$0xff] %v10192_v56 }
 0x66e   : > { %7616 = vmatpush1.bf16.msra.mxu1 %v7591_v34  ;;  %7400 = vmatprep.subr.msk.mxu0 %vm13173_vm5, %v3204_v57 }
 0x66f   : > { %7606 = vmatprep.subr.bf16.mxu1 %v7593_v4  ;;  %7407 = vmatprep.mubr.msk.f32.mxu1 %vm13174_vm10, %v10128_v53 }
 0x670   : > { %v10194_v63 = vpop.permute.xlu0 %3226 }
 0x671   : > { %7401 = vmatpush1.msk.msra.mxu0 %vm13175_vm6, %v3203_v12  ;;  %13185 = vst [vmem:[#allocation42_spill] sm:$0xff] %v10194_v63 }
 0x672   : > { %7617 = vmatpush1.bf16.msra.mxu1 %v7595_v7  ;;  %3607 = vmatmul.mubr.f32.vlgmr.msra.gmra.mrb[18].mxu0 %v10075_v55  ;;  %v10196_v55 = vpop.permute.xlu1 %3221 }
 0x673   : > { %7607 = vmatprep.subr.msk.mxu1 %vm13176_vm8, %v3204_v57  ;;  %7403 = vmatprep.mubr.msk.f32.mxu0 %vm13177_vm3, %v10079_v32  ;;  %13186 = vst [vmem:[#allocation43_spill] sm:$0xff] %v10196_v55 }
 0x676   : > { %7618 = vmatpush1.msk.msra.mxu1 %vm13178_vm1, %v3203_v12  ;;  %3613 = vmatmul.mubr.f32.gmra.mrb[20].mxu0 %v10086_v1  ;;  %v10204_v52 = vpop.permute.xlu1 %3231 }
 0x677   : > { %3637 = vmatmul.mubr.f32.vlgmr.msra.gmra.mrb[18].mxu1 %v10132_v19  ;;  %7404 = vmatprep.mubr.msk.f32.mxu0 %vm13163_vm0, %v10093_v15  ;;  %v10198_v15 = vpop.permute.xlu0 %3236  ;;  %13189 = vst [vmem:[#allocation45_spill] sm:$0xff] %v10204_v52 }
 0x678   : > { %7408 = vmatprep.mubr.msk.f32.mxu1 %vm13179_vm7, %v10140_v42  ;;  %13187 = vst [vmem:[#allocation44_spill] sm:$0xff] %v10198_v15 }
 0x67a   : > { %3619 = vmatmul.mubr.f32.gmra.mrb[22].mxu0 %v10096_v39  ;;  %v10215_v28 = vpop.permute.xlu1 %3241 }
 0x67b   : > { %3643 = vmatmul.mubr.f32.gmra.mrb[20].mxu1 %v10144_v22  ;;  %7405 = vmatprep.mubr.msk.f32.mxu0 %vm13180_vm2, %v10104_v62  ;;  %v10208_v41 = vpop.permute.xlu0 %3246  ;;  %13192 = vst [vmem:[#allocation50_spill] sm:$0xff] %v10215_v28 }
 0x67c   : > { %7409 = vmatprep.mubr.msk.f32.mxu1 %vm13181_vm13, %v3076_v25  ;;  %13190 = vst [vmem:[#allocation48_spill] sm:$0xff] %v10208_v41 }
 0x67e   : > { %3625 = vmatmul.mubr.f32.gmra.mrb[24].mxu0 %v10108_v49  ;;  %v10233_v51 = vpop.permute.xlu1 %3251 }
 0x67f   : > { %3649 = vmatmul.mubr.f32.gmra.mrb[22].mxu1 %v3075_v8  ;;  %7406 = vmatprep.mubr.msk.f32.mxu0 %vm13182_vm12, %v10116_v48  ;;  %v10225_v5 = vpop.permute.xlu0 %3256  ;;  %13195 = vst [vmem:[#allocation56_spill] sm:$0xff] %v10233_v51 }
 0x680   : > { %7410 = vmatprep.mubr.msk.f32.mxu1 %vm13183_vm15, %v3078_v54  ;;  %13194 = vst [vmem:[#allocation51_spill] sm:$0xff] %v10225_v5 }
 0x682   : > { %3631 = vmatmul.mubr.f32.gmra.mrb[26].mxu0 %v10120_v30  ;;  %v10247_v33 = vpop.permute.xlu1 %3996 }
 0x683   : > { %3655 = vmatmul.mubr.f32.gmra.mrb[24].mxu1 %v3077_v36  ;;  %v10240_v45 = vpop.permute.xlu0 %4001  ;;  %13199 = vst [vmem:[#allocation60_spill] sm:$0xff] %v10247_v33 }
 0x684   : > { %13197 = vst [vmem:[#allocation55_spill] sm:$0xff] %v10240_v45 }
 0x686   : > { %v10269_v54 = vpop.permute.xlu1 %4006 }
 0x687   : > { %v10258_v0 = vpop.permute.xlu0 %4011  ;;  %13204 = vst [vmem:[#allocation49_spill] sm:$0xff] %v10269_v54 }
 0x688   : > { %13202 = vst [vmem:[#allocation59_spill] sm:$0xff] %v10258_v0 }
 0x71b   : > { %v3370_v32 = vpop.f32.mrb[0].mxu0 }
 0x71c   : > { %v3372_v1 = vpop.f32.mrb[1].mxu0  ;;  %v10213_v11 = vadd.f32 %v3370_v32, %v10192_v56  ;;  %v10286_v32 = vpop.permute.xlu0 %4021 }
 0x71d   : > { %v10218_v17 = vadd.f32 %v3372_v1, %v10192_v56  ;;  %13207 = vst [vmem:[#allocation64_spill] sm:$0xff] %v10286_v32 }
 0x71e   : > { %v3715_v30 = vmin.f32 %v10213_v11, 0.0  ;;  %vm3661_vm9 = vcmp.gt.f32.partialorder %v10213_v11, 0.0 }
 0x71f   : > { %v3376_v31 = vpop.f32.mrb[2].mxu0  ;;  %v10200_v39 = vpop.f32.mrb[0].mxu1  ;;  %v3716_v47 = vmin.f32 %v10218_v17, 0.0  ;;  %vm3662_vm11 = vcmp.gt.f32.partialorder %v10218_v17, 0.0 }
 0x720   : > { %v3378_v35 = vpop.f32.mrb[3].mxu0  ;;  %v10202_v13 = vpop.f32.mrb[1].mxu1  ;;  %v10229_v50 = vadd.f32 %v3376_v31, %v10196_v55  ;;  %v3769_v14 = vmul.f32 1.442695, %v3715_v30 }
 0x721   : > { %13188 = vst [vmem:[#allocation46_spill] sm:$0xff] %v10202_v13  ;;  %v3771_v18 = vmul.f32 1.442695, %v3716_v47  ;;  %v10243_v22 = vadd.f32 %v3378_v35, %v10196_v55 }
 0x722   : > { %v3721_v58 = vmin.f32 %v10229_v50, 0.0  ;;  %7710 = vpow2.f32 %v3769_v14  ;;  %vm3667_vm14 = vcmp.gt.f32.partialorder %v10229_v50, 0.0 }
 0x723   : > { %v3382_v29 = vpop.f32.mrb[4].mxu0  ;;  %7712 = vpow2.f32 %v3771_v18  ;;  %v3722_v16 = vmin.f32 %v10243_v22, 0.0  ;;  %vm3668_vm4 = vcmp.gt.f32.partialorder %v10243_v22, 0.0 }
 0x724   : > { %v10206_v2 = vpop.f32.mrb[2].mxu1  ;;  %v3384_v62 = vpop.f32.mrb[5].mxu0  ;;  %v3781_v40 = vmul.f32 1.442695, %v3721_v58  ;;  %v10261_v3 = vadd.f32 %v3382_v29, %v10194_v63 }
 0x725   : > { %v10210_v49 = vpop.f32.mrb[3].mxu1  ;;  %v3783_v36 = vmul.f32 1.442695, %v3722_v16  ;;  %v10272_v26 = vadd.f32 %v3384_v62, %v10194_v63  ;;  %v10294_v29 = vpop.permute.xlu1 %4016 }
 0x726   : > { %13191 = vst [vmem:[#allocation47_spill] sm:$0xff] %v10210_v49  ;;  %7714 = vpow2.f32 %v3781_v40  ;;  %v3727_v34 = vmin.f32 %v10261_v3, 0.0  ;;  %13209 = vst [vmem:[#allocation5_spill] sm:$0xff] %v10294_v29  ;;  %vm3673_vm5 = vcmp.gt.f32.partialorder %v10261_v3, 0.0 }
 0x727   : > { %v3388_v24 = vpop.f32.mrb[6].mxu0  ;;  %7716 = vpow2.f32 %v3783_v36  ;;  %v3728_v1 = vmin.f32 %v10272_v26, 0.0  ;;  %vm3674_vm10 = vcmp.gt.f32.partialorder %v10272_v26, 0.0 }
 0x728   : > { %v10220_v6 = vpop.f32.mrb[4].mxu1  ;;  %v3390_v48 = vpop.f32.mrb[7].mxu0  ;;  %v10278_v59 = vadd.f32 %v3388_v24, %v10204_v52  ;;  %v3793_v62 = vmul.f32 1.442695, %v3727_v34 }
 0x729   : > { %v10222_v10 = vpop.f32.mrb[5].mxu1  ;;  %v10292_v35 = vadd.f32 %v3390_v48, %v10204_v52  ;;  %v3795_v58 = vmul.f32 1.442695, %v3728_v1 }
 0x72a   : > { %13193 = vst [vmem:[#allocation52_spill] sm:$0xff] %v10222_v10  ;;  %v3733_v24 = vmin.f32 %v10278_v59, 0.0  ;;  %7718 = vpow2.f32 %v3793_v62  ;;  %vm3679_vm6 = vcmp.gt.f32.partialorder %v10278_v59, 0.0  ;;  %v7887_v10 = vmov 0.0  }
 0x72b   : > { %v3394_v37 = vpop.f32.mrb[8].mxu0  ;;  %v3734_v36 = vmin.f32 %v10292_v35, 0.0  ;;  %7720 = vpow2.f32 %v3795_v58  ;;  %vm3680_vm8 = vcmp.gt.f32.partialorder %v10292_v35, 0.0 }
 0x72c   : > { %v10231_v43 = vpop.f32.mrb[6].mxu1  ;;  %v3396_v53 = vpop.f32.mrb[9].mxu0  ;;  %v10298_v30 = vadd.f32 %v3394_v37, %v10198_v15 }
 0x72d   : > { %v10235_v19 = vpop.f32.mrb[7].mxu1  ;;  %v7711_v60 = vpop.eup %7710  ;;  %v10303_v40 = vadd.f32 %v3396_v53, %v10198_v15 }
 0x72e   : > { %13196 = vst [vmem:[#allocation54_spill] sm:$0xff] %v10235_v19  ;;  %v7713_v12 = vpop.eup %7712  ;;  %v7411_v47 = vadd.f32 -1.0, %v7711_v60  ;;  %v10312_v37 = vpop.permute.xlu0 %4031  ;;  %v3805_v60 = vmul.f32 1.442695, %v3733_v24  ;;  %vm3685_vm3 = vcmp.gt.f32.partialorder %v10298_v30, 0.0 }
 0x72f   : > { %v3400_v44 = vpop.f32.mrb[10].mxu0  ;;  %v7412_v14 = vadd.f32 -1.0, %v7713_v12  ;;  %13212 = vst [vmem:[#allocation10_spill] sm:$0xff] %v10312_v37  ;;  %v3739_v12 = vmin.f32 %v10298_v30, 0.0  ;;  %vm3686_vm1 = vcmp.gt.f32.partialorder %v10303_v40, 0.0 }
 0x730   : > { %v10238_v23 = vpop.f32.mrb[8].mxu1  ;;  %v3402_v42 = vpop.f32.mrb[11].mxu0  ;;  %v10310_v34 = vadd.f32 %v3400_v44, %v10215_v28  ;;  %v3931_v53 = vsel %vm3661_vm9, %v10213_v11, %v7411_v47  ;;  %7722 = vpow2.f32 %v3805_v60 }
 0x731   : > { %v10245_v61 = vpop.f32.mrb[9].mxu1  ;;  %v7715_v48 = vpop.eup %7714  ;;  %v3932_v1 = vsel %vm3662_vm11, %v10218_v17, %v7412_v14  ;;  %v10322_v44 = vadd.f32 %v3402_v42, %v10215_v28  ;;  %v4039_v11 = vmul.f32 %v10247_v33, %v3931_v53  ;;  %v3817_v47 = vmul.f32 1.442695, %v3739_v12 }
 0x732   : > { %13198 = vst [vmem:[#allocation58_spill] sm:$0xff] %v10245_v61  ;;  %v3807_v61 = vmul.f32 1.442695, %v3734_v36  ;;  %v3745_v62 = vmin.f32 %v10310_v34, 0.0  ;;  %v7717_v19 = vpop.eup %7716  ;;  %v4040_v17 = vmul.f32 %v10247_v33, %v3932_v1  ;;  %v10332_v14 = vpop.permute.xlu0 %4104  ;;  %vm3691_vm0 = vcmp.gt.f32.partialorder %v10310_v34, 0.0 }
 0x733   : > { %v10249_v46 = vpop.f32.mrb[12].mxu0  ;;  %13216 = vst [vmem:[#allocation15_spill] sm:$0xff] %v10332_v14  ;;  %vm3692_vm7 = vcmp.gt.f32.partialorder %v10322_v44, 0.0 }
 0x734   : > { %v10251_v38 = vpop.f32.mrb[10].mxu1  ;;  %v10253_v25 = vpop.f32.mrb[13].mxu0  ;;  %7724 = vpow2.f32 %v3807_v61  ;;  %v10340_v53 = vadd.f32 %v10249_v46, %v10208_v41 }
 0x735   : > { %13200 = vst [vmem:[#allocation57_spill] sm:$0xff] %v10251_v38  ;;  %v10256_v8 = vpop.f32.mrb[11].mxu1  ;;  %7726 = vpow2.f32 %v3817_v47  ;;  %v7719_v46 = vpop.eup %7718 }
 0x736   : > { %13201 = vst [vmem:[#allocation61_spill] sm:$0xff] %v10256_v8  ;;  %vm3697_vm2 = vcmp.gt.f32.partialorder %v10340_v53, 0.0 }
 0x737   : > { %v10263_v9 = vpop.f32.mrb[14].mxu0 }
 0x738   : > { %v10265_v20 = vpop.f32.mrb[12].mxu1  ;;  %v10267_v21 = vpop.f32.mrb[15].mxu0 }
 0x739   : > { %13203 = vst [vmem:[#allocation62_spill] sm:$0xff] %v10265_v20  ;;  %v10274_v27 = vpop.f32.mrb[13].mxu1 }
 0x73a   : > { %13205 = vst [vmem:[#allocation53_spill] sm:$0xff] %v10274_v27  ;;  %v3740_v27 = vmin.f32 %v10303_v40, 0.0 }
 0x73b   : > { %v10280_v4 = vpop.f32.mrb[16].mxu0 }
 0x73c   : > { %v10282_v7 = vpop.f32.mrb[14].mxu1  ;;  %v10284_v57 = vpop.f32.mrb[17].mxu0  ;;  %v3819_v58 = vmul.f32 1.442695, %v3740_v27  ;;  %v10353_v27 = vadd.f32 %v10332_v14, %v4039_v11 }
 0x73d   : > { %13206 = vst [vmem:[#allocation63_spill] sm:$0xff] %v10282_v7  ;;  %v10289_v31 = vpop.f32.mrb[15].mxu1 }
 0x73e   : > { %13208 = vst [vmem:[#allocation65_spill] sm:$0xff] %v10289_v31  ;;  %v7417_v31 = vadd.f32 -1.0, %v7715_v48  ;;  %v3746_v48 = vmin.f32 %v10322_v44, 0.0  ;;  %7728 = vpow2.f32 %v3819_v58  ;;  %4229 = vrot.lane.b32.xlu1 %v10353_v27, %s7866_s15  ;;  %v7721_v58 = vpop.eup %7720 }
 0x740   : > { %v10300_v18 = vpop.f32.mrb[16].mxu1  ;;  %v3937_v42 = vsel %vm3667_vm14, %v10229_v50, %v7417_v31  ;;  %v10350_v50 = vadd.f32 %v10253_v25, %v10208_v41  ;;  %v3831_v31 = vmul.f32 1.442695, %v3746_v48  ;;  %vm13251_vm14 = vcmask 441344  }
 0x741   : > { %13210 = vst [vmem:[#allocation7_spill] sm:$0xff] %v10300_v18  ;;  %v10305_v16 = vpop.f32.mrb[17].mxu1 }
 0x742   : > { %13211 = vst [vmem:[#allocation8_spill] sm:$0xff] %v10305_v16  ;;  %v10318_v16 = vpop.permute.xlu1 %4026  ;;  %v3752_v48 = vmin.f32 %v10350_v50, 0.0  ;;  %vm3698_vm13 = vcmp.gt.f32.partialorder %v10350_v50, 0.0 }
 0x743   : > { %13213 = vst [vmem:[#allocation9_spill] sm:$0xff] %v10318_v16 }
 0x745   : > { %v10324_v8 = vpop.f32.mrb[18].mxu0 }
 0x746   : > { %13214 = vst [vmem:[#allocation11_spill] sm:$0xff] %v10324_v8  ;;  %v10327_v24 = vpop.f32.mrb[19].mxu0  ;;  %v7418_v8 = vadd.f32 -1.0, %v7717_v19  ;;  %v10346_v1 = vpop.permute.xlu1 %4036  ;;  %v10356_v19 = vadd.f32 %v10332_v14, %v4040_v17  ;;  %v3751_v17 = vmin.f32 %v10340_v53, 0.0 }
 0x747   : > { %13215 = vst [vmem:[#allocation12_spill] sm:$0xff] %v10327_v24  ;;  %v3829_v24 = vmul.f32 1.442695, %v3745_v62  ;;  %13220 = vst [vmem:[#allocation17_spill] sm:$0xff] %v10346_v1  ;;  %v4045_v62 = vmul.f32 %v10240_v45, %v3937_v42 }
 0x748   : > { %13221 = vst [vmem:[#allocation16_spill] sm:$0xff] %v10356_v19  ;;  %4231 = vrot.lane.b32.xlu0 %v10356_v19, %s7866_s15  ;;  %v3938_v11 = vsel %vm3668_vm4, %v10243_v22, %v7418_v8  ;;  %v10382_v22 = vadd.f32 %v10263_v9, %v10233_v51  ;;  %vm13252_vm4 = vmmov %vm13251_vm14 }
 0x749   : > { %v10336_v36 = vpop.f32.mrb[20].mxu0  ;;  %7730 = vpow2.f32 %v3829_v24  ;;  %v4046_v42 = vmul.f32 %v10240_v45, %v3938_v11  ;;  %v7424_v24 = vadd.f32 -1.0, %v7721_v58 }
 0x74a   : > { %13217 = vst [vmem:[#allocation13_spill] sm:$0xff] %v10336_v36  ;;  %v10342_v60 = vpop.f32.mrb[18].mxu1  ;;  %v10344_v12 = vpop.f32.mrb[21].mxu0  ;;  %7732 = vpow2.f32 %v3831_v31  ;;  %vm3703_vm12 = vcmp.gt.f32.partialorder %v10382_v22, 0.0 }
 0x74b   : > { %13218 = vst [vmem:[#allocation6_spill] sm:$0xff] %v10342_v60  ;;  %13219 = vst [vmem:[#allocation14_spill] sm:$0xff] %v10344_v12  ;;  %v10358_v61 = vpop.f32.mrb[19].mxu1  ;;  %v7423_v60 = vadd.f32 -1.0, %v7719_v46  ;;  %v7723_v36 = vpop.eup %7722 }
 0x74c   : > { %13222 = vst [vmem:[#allocation19_spill] sm:$0xff] %v10358_v61  ;;  %v10377_v14 = vpop.permute.xlu1 %4109  ;;  %v7725_v31 = vpop.eup %7724  ;;  %v7429_v45 = vadd.f32 -1.0, %v7723_v36 }
 0x74d   : > { %v10365_v25 = vpop.f32.mrb[22].mxu0  ;;  %13227 = vst [vmem:[#allocation23_spill] sm:$0xff] %v10377_v14  ;;  %v3943_v9 = vsel %vm3673_vm5, %v10261_v3, %v7423_v60  ;;  %v10402_v58 = vadd.f32 %v10377_v14, %v4046_v42  ;;  %v10409_v3 = vadd.f32 %v10267_v21, %v10233_v51  ;;  %v7430_v21 = vadd.f32 -1.0, %v7725_v31  ;;  %vm13253_vm5 = vmmov %vm13252_vm4 }
 0x74e   : > { %13223 = vst [vmem:[#allocation4_spill] sm:$0xff] %v10365_v25  ;;  %v10370_v47 = vpop.f32.mrb[20].mxu1  ;;  %v10372_v61 = vpop.f32.mrb[23].mxu0 }
 0x74f   : > { %13224 = vst [vmem:[#allocation22_spill] sm:$0xff] %v10370_v47  ;;  %13225 = vst [vmem:[#allocation18_spill] sm:$0xff] %v10372_v61  ;;  %v10375_v12 = vpop.f32.mrb[21].mxu1  ;;  %v3841_v61 = vmul.f32 1.442695, %v3751_v17  ;;  %v10387_v47 = vadd.f32 %v10377_v14, %v4045_v62  ;;  %v7727_v17 = vpop.eup %7726  ;;  %v3757_v62 = vmin.f32 %v10382_v22, 0.0  ;;  %4235 = vrot.lane.b32.xlu0 %v10402_v58, %s7866_s15 }
 0x750   : > { %13226 = vst [vmem:[#allocation20_spill] sm:$0xff] %v10375_v12  ;;  %v3843_v12 = vmul.f32 1.442695, %v3752_v48  ;;  %13232 = vst [vmem:[#allocation26_spill] sm:$0xff] %v10402_v58  ;;  %v3944_v48 = vsel %vm3674_vm10, %v10272_v26, %v7424_v24  ;;  %v7435_v24 = vadd.f32 -1.0, %v7727_v17  ;;  %v10428_v14 = vpop.permute.xlu0 %4114  ;;  %vm3704_vm15 = vcmp.gt.f32.partialorder %v10409_v3, 0.0 }
 0x751   : > { %v10384_v8 = vpop.f32.mrb[24].mxu0  ;;  %4233 = vrot.lane.b32.xlu1 %v10387_v47, %s7866_s15  ;;  %7734 = vpow2.f32 %v3841_v61  ;;  %v3949_v61 = vsel %vm3679_vm6, %v10278_v59, %v7429_v45  ;;  %13237 = vst [vmem:[#allocation31_spill] sm:$0xff] %v10428_v14  ;;  %v3950_v59 = vsel %vm3680_vm8, %v10292_v35, %v7430_v21  ;;  %vm13254_vm10 = vmmov %vm13252_vm4 }
 0x752   : > { %13228 = vst [vmem:[#allocation21_spill] sm:$0xff] %v10384_v8  ;;  %v10389_v25 = vpop.f32.mrb[22].mxu1  ;;  %v10391_v46 = vpop.f32.mrb[25].mxu0  ;;  %7736 = vpow2.f32 %v3843_v12  ;;  %v3758_v12 = vmin.f32 %v10409_v3, 0.0  ;;  %vm13255_vm6 = vmmov %vm13252_vm4 }
 0x753   : > { %13229 = vst [vmem:[#allocation25_spill] sm:$0xff] %v10389_v25  ;;  %13230 = vst [vmem:[#allocation28_spill] sm:$0xff] %v10391_v46  ;;  %v10394_v11 = vpop.f32.mrb[23].mxu1  ;;  %v4051_v25 = vmul.f32 %v10269_v54, %v3943_v9  ;;  %v3853_v9 = vmul.f32 1.442695, %v3757_v62  ;;  %v10443_v62 = vpop.permute.xlu1 %4119 }
 0x754   : > { %13231 = vst [vmem:[#allocation24_spill] sm:$0xff] %v10394_v11  ;;  %v7729_v11 = vpop.eup %7728  ;;  %13239 = vst [vmem:[#allocation33_spill] sm:$0xff] %v10443_v62 }
 0x755   : > { %v10404_v46 = vpop.f32.mrb[26].mxu0  ;;  %v7731_v26 = vpop.eup %7730  ;;  %7738 = vpow2.f32 %v3853_v9  ;;  %vm13256_vm8 = vmmov %vm13252_vm4 }
 0x756   : > { %13233 = vst [vmem:[#allocation29_spill] sm:$0xff] %v10404_v46  ;;  %v10411_v36 = vpop.f32.mrb[24].mxu1  ;;  %v10413_v60 = vpop.f32.mrb[27].mxu0  ;;  %v7436_v46 = vadd.f32 -1.0, %v7729_v11  ;;  %v7441_v45 = vadd.f32 -1.0, %v7731_v26  ;;  %v10437_v11 = vadd.f32 %v10428_v14, %v4051_v25 }
 0x757   : > { %13234 = vst [vmem:[#allocation27_spill] sm:$0xff] %v10411_v36  ;;  %13235 = vst [vmem:[#allocation30_spill] sm:$0xff] %v10413_v60  ;;  %v10419_v42 = vpop.f32.mrb[25].mxu1  ;;  %v10424_v36 = vadd.f32 %v10280_v4, %v10225_v5  ;;  %v4052_v60 = vmul.f32 %v10269_v54, %v3944_v48  ;;  %v7733_v8 = vpop.eup %7732  ;;  %v3955_v4 = vsel %vm3685_vm3, %v10298_v30, %v7435_v24  ;;  %v3855_v26 = vmul.f32 1.442695, %v3758_v12 }
 0x758   : > { %13236 = vst [vmem:[#allocation32_spill] sm:$0xff] %v10419_v42  ;;  %v4057_v42 = vmul.f32 %v10258_v0, %v3949_v61  ;;  %v3956_v48 = vsel %vm3686_vm1, %v10303_v40, %v7436_v46  ;;  %v7442_v35 = vadd.f32 -1.0, %v7733_v8  ;;  %4237 = vrot.lane.b32.xlu1 %v10437_v11, %s7866_s15  ;;  %v4058_v30 = vmul.f32 %v10258_v0, %v3950_v59  ;;  %v10463_v9 = vpop.permute.xlu0 %4124  ;;  %vm13257_vm3 = vmmov %vm13252_vm4 }
 0x759   : > { %v3763_v31 = vmin.f32 %v10424_v36, 0.0  ;;  %v10441_v17 = vadd.f32 %v10428_v14, %v4052_v60  ;;  %v4063_v25 = vmul.f32 %v10294_v29, %v3955_v4  ;;  %v3961_v61 = vsel %vm3691_vm0, %v10310_v34, %v7441_v45  ;;  %13240 = vst [vmem:[#allocation35_spill] sm:$0xff] %v10463_v9  ;;  %vm13258_vm1 = vmmov %vm13257_vm3 }
 0x75a   : > { %v10455_v60 = vadd.f32 %v10443_v62, %v4057_v42  ;;  %v10459_v8 = vadd.f32 %v10284_v57, %v10225_v5  ;;  %v4064_v24 = vmul.f32 %v10294_v29, %v3956_v48  ;;  %v4069_v34 = vmul.f32 %v10286_v32, %v3961_v61  ;;  %vm13259_vm0 = vmmov %vm13258_vm1 }
 0x75b   : > { %13238 = vst [vmem:[#allocation34_spill] sm:$0xff] %v10441_v17  ;;  %4239 = vrot.lane.b32.xlu0 %v10441_v17, %s7866_s15  ;;  %v7735_v40 = vpop.eup %7734  ;;  %v3865_v46 = vmul.f32 1.442695, %v3763_v31  ;;  %v3962_v12 = vsel %vm3692_vm7, %v10322_v44, %v7442_v35  ;;  %7740 = vpow2.f32 %v3855_v26  ;;  %v10470_v42 = vadd.f32 %v10443_v62, %v4058_v30  ;;  %v10476_v31 = vpop.permute.xlu1 %4129 }
 0x75c   : > { %v7737_v21 = vpop.eup %7736  ;;  %4241 = vrot.lane.b32.xlu1 %v10455_v60, %s7866_s15  ;;  %v10473_v57 = vadd.f32 %v10463_v9, %v4063_v25  ;;  %v7447_v45 = vadd.f32 -1.0, %v7735_v40  ;;  %v3764_v4 = vmin.f32 %v10459_v8, 0.0  ;;  %13242 = vst [vmem:[#allocation37_spill] sm:$0xff] %v10476_v31  ;;  %v4070_v48 = vmul.f32 %v10286_v32, %v3962_v12 }
 0x75d   : > { %13241 = vst [vmem:[#allocation36_spill] sm:$0xff] %v10470_v42  ;;  %v7448_v59 = vadd.f32 -1.0, %v7737_v21  ;;  %7742 = vpow2.f32 %v3865_v46  ;;  %v10482_v44 = vadd.f32 %v10463_v9, %v4064_v24  ;;  %v10487_v35 = vadd.f32 %v10476_v31, %v4069_v34 }
 0x75e   : > { %v3967_v30 = vsel %vm3697_vm2, %v10340_v53, %v7447_v45  ;;  %v3867_v61 = vmul.f32 1.442695, %v3764_v4  ;;  %v10496_v40 = vadd.f32 %v10476_v31, %v4070_v48  ;;  %vm3709_vm9 = vcmp.gt.f32.partialorder %v10424_v36, 0.0 }
 0x75f   : > { %4243 = vrot.lane.b32.xlu0 %v10470_v42, %s7866_s15  ;;  %13243 = vst [vmem:[#allocation39_spill] sm:$0xff] %v10482_v44  ;;  %v7739_v26 = vpop.eup %7738  ;;  %v3968_v25 = vsel %vm3698_vm13, %v10350_v50, %v7448_v59  ;;  %v4075_v21 = vmul.f32 %v10318_v16, %v3967_v30  ;;  %v10505_v50 = vpop.permute.xlu0 %4134  ;;  %vm3710_vm11 = vcmp.gt.f32.partialorder %v10459_v8, 0.0  ;;  %vm4201_vm7 = vcmask 523264  }
 0x760   : > { %4245 = vrot.lane.b32.xlu1 %v10473_v57, %s7866_s15  ;;  %13244 = vst [vmem:[#allocation38_spill] sm:$0xff] %v10496_v40  ;;  %v7453_v46 = vadd.f32 -1.0, %v7739_v26  ;;  %v4076_v24 = vmul.f32 %v10318_v16, %v3968_v25  ;;  %7744 = vpow2.f32 %v3867_v61  ;;  %13245 = vst [vmem:[#allocation41_spill] sm:$0xff] %v10505_v50  ;;  %v10521_v30 = vpop.permute.xlu1 %4139 }
 0x761   : > { %v10509_v59 = vadd.f32 %v10505_v50, %v4075_v21  ;;  %13247 = vst [vmem:[#allocation67_spill] sm:$0xff] %v10521_v30  ;;  %4202 = vst.msk [vmem:[#allocation3] sm:$0xff] %vm4201_vm7, %v7887_v10 }
 0x762   : > { %v3973_v12 = vsel %vm3703_vm12, %v10382_v22, %v7453_v46  ;;  %v10512_v4 = vadd.f32 %v10505_v50, %v4076_v24  ;;  %4203 = vst.msk [vmem:[#allocation3 + $0x8] sm:$0xff] %vm4201_vm7, %v7887_v10  ;;  %4204 = vst.msk [vmem:[#allocation3 + $0x10] sm:$0xff] %vm4201_vm7, %v7887_v10 }
 0x763   : > { %4247 = vrot.lane.b32.xlu0 %v10482_v44, %s7866_s15  ;;  %v4081_v48 = vmul.f32 %v10312_v37, %v3973_v12  ;;  %4205 = vst.msk [vmem:[#allocation3 + $0x18] sm:$0xff] %vm4201_vm7, %v7887_v10  ;;  %4206 = vst.msk [vmem:[#allocation3 + $0x20] sm:$0xff] %vm4201_vm7, %v7887_v10 }
 0x764   : > { %4249 = vrot.lane.b32.xlu1 %v10487_v35, %s7866_s15  ;;  %13246 = vst [vmem:[#allocation66_spill] sm:$0xff] %v10512_v4  ;;  %4207 = vst.msk [vmem:[#allocation3 + $0x28] sm:$0xff] %vm4201_vm7, %v7887_v10 }
 0x765   : > { %v7741_v34 = vpop.eup %7740  ;;  %v10526_v61 = vadd.f32 %v10521_v30, %v4081_v48  ;;  %4208 = vst.msk [vmem:[#allocation3 + $0x30] sm:$0xff] %vm4201_vm7, %v7887_v10  ;;  %4209 = vst.msk [vmem:[#allocation3 + $0x38] sm:$0xff] %vm4201_vm7, %v7887_v10 }
 0x766   : > { %v7454_v45 = vadd.f32 -1.0, %v7741_v34  ;;  %4210 = vst.msk [vmem:[#allocation3 + $0x40] sm:$0xff] %vm4201_vm7, %v7887_v10 }
 0x767   : > { %4251 = vrot.lane.b32.xlu0 %v10496_v40, %s7866_s15  ;;  %v7743_v53 = vpop.eup %7742 }
 0x768   : > { %v7459_v26 = vadd.f32 -1.0, %v7743_v53  ;;  %4253 = vrot.lane.b32.xlu1 %v10509_v59, %s7866_s15  ;;  %v3974_v22 = vsel %vm3704_vm15, %v10409_v3, %v7454_v45  ;;  %v10535_v53 = vpop.permute.xlu0 %4144 }
 0x769   : > { %v4082_v21 = vmul.f32 %v10312_v37, %v3974_v22  ;;  %13249 = vst [vmem:[#allocation69_spill] sm:$0xff] %v10535_v53 }
 0x76a   : > { %v3979_v25 = vsel %vm3709_vm9, %v10424_v36, %v7459_v26  ;;  %v7745_v46 = vpop.eup %7744 }
 0x76b   : > { %4255 = vrot.lane.b32.xlu0 %v10512_v4, %s7866_s15  ;;  %v4087_v24 = vmul.f32 %v10346_v1, %v3979_v25  ;;  %v7460_v34 = vadd.f32 -1.0, %v7745_v46  ;;  %v10533_v3 = vadd.f32 %v10521_v30, %v4082_v21 }
 0x76c   : > { %4257 = vrot.lane.b32.xlu1 %v10526_v61, %s7866_s15 }
 0x76d   : > { %13248 = vst [vmem:[#allocation68_spill] sm:$0xff] %v10533_v3  ;;  %v10541_v36 = vadd.f32 %v10535_v53, %v4087_v24  ;;  %v3980_v12 = vsel %vm3710_vm11, %v10459_v8, %v7460_v34 }
 0x76e   : > { %v4088_v45 = vmul.f32 %v10346_v1, %v3980_v12 }
 0x76f   : > { %4259 = vrot.lane.b32.xlu0 %v10533_v3, %s7866_s15 }
 0x770   : > { %4261 = vrot.lane.b32.xlu1 %v10541_v36, %s7866_s15  ;;  %v10550_v48 = vadd.f32 %v10535_v53, %v4088_v45 }
 0x772   : > { %13250 = vst [vmem:[#allocation70_spill] sm:$0xff] %v10550_v48 }
 0x773   : > { %4263 = vrot.lane.b32.xlu0 %v10550_v48, %s7866_s15 }
 0x774   : > { %4292 = vrot.lane.b32.xlu1 %v10356_v19, %s7867_s16 }
 0x777   : > { %4294 = vrot.lane.b32.xlu0 %v10402_v58, %s7867_s16 }
 0x778   : > { %4296 = vrot.lane.b32.xlu1 %v10441_v17, %s7867_s16 }
 0x77b   : > { %4298 = vrot.lane.b32.xlu0 %v10470_v42, %s7867_s16 }
 0x77c   : > { %4300 = vrot.lane.b32.xlu1 %v10482_v44, %s7867_s16 }
 0x77f   : > { %4302 = vrot.lane.b32.xlu0 %v10496_v40, %s7867_s16 }
 0x780   : > { %4304 = vrot.lane.b32.xlu1 %v10512_v4, %s7867_s16 }
 0x783   : > { %4306 = vrot.lane.b32.xlu0 %v10533_v3, %s7867_s16 }
 0x784   : > { %4308 = vrot.lane.b32.xlu1 %v10550_v48, %s7867_s16 }
 0x7b0   : > { %v4230_v8 = vpop.permute.xlu1 %4229 }
 0x7ba   : > { %v4232_v26 = vpop.permute.xlu0 %4231 }
 0x7bb   : > { %v4265_v48 = vsel %vm13251_vm14, %v4230_v8, %v4232_v26 }
 0x7bc   : > { %v4283_v3 = vadd.f32 %v4265_v48, %v10353_v27 }
 0x7c1   : > { %v4236_v25 = vpop.permute.xlu0 %4235 }
 0x7c3   : > { %v4234_v22 = vpop.permute.xlu1 %4233 }
 0x7c4   : > { %v4266_v50 = vsel %vm13252_vm4, %v4234_v22, %v4236_v25 }
 0x7c5   : > { %v4284_v1 = vadd.f32 %v4266_v50, %v10387_v47 }
 0x7ca   : > { %v4238_v46 = vpop.permute.xlu1 %4237 }
 0x7cd   : > { %v4240_v21 = vpop.permute.xlu0 %4239 }
 0x7ce   : > { %v4242_v24 = vpop.permute.xlu1 %4241  ;;  %v4267_v8 = vsel %vm13253_vm5, %v4238_v46, %v4240_v21 }
 0x7d1   : > { %v4244_v12 = vpop.permute.xlu0 %4243 }
 0x7d2   : > { %v4246_v34 = vpop.permute.xlu1 %4245 }
 0x7d5   : > { %v4248_v4 = vpop.permute.xlu0 %4247 }
 0x7d6   : > { %v4250_v45 = vpop.permute.xlu1 %4249 }
 0x7d9   : > { %v4252_v42 = vpop.permute.xlu0 %4251 }
 0x7da   : > { %v4254_v44 = vpop.permute.xlu1 %4253 }
 0x7dd   : > { %v4256_v17 = vpop.permute.xlu0 %4255 }
 0x7de   : > { %v4258_v40 = vpop.permute.xlu1 %4257 }
 0x7e1   : > { %v4260_v19 = vpop.permute.xlu0 %4259 }
 0x7e2   : > { %v4262_v58 = vpop.permute.xlu1 %4261 }
 0x7e5   : > { %v4264_v31 = vpop.permute.xlu0 %4263 }
 0x7e6   : > { %v4293_v53 = vpop.permute.xlu1 %4292 }
 0x7e7   : > { %v10572_v30 = vadd.f32 %v4293_v53, %v4283_v3  ;;  %v4285_v53 = vadd.f32 %v4267_v8, %v10437_v11  ;;  %v4269_v11 = vsel %vm13255_vm6, %v4246_v34, %v4248_v4 }
 0x7e8   : > { %v4287_v46 = vadd.f32 %v4269_v11, %v10473_v57  ;;  %v4271_v57 = vsel %vm13257_vm3, %v4254_v44, %v4256_v17  ;;  %v4273_v17 = vsel %vm13259_vm0, %v4262_v58, %v4264_v31  ;;  %vm4599_vm0 = vcmask 162960  }
 0x7e9   : > { %4373 = vrot.lane.b32.xlu1 %v10572_v30, %s7875_s20  ;;  %4337 = vrot.lane.b32.xlu0 %v10572_v30, %s7874_s14  ;;  %v4295_v27 = vpop.permute.xlu0 %4294  ;;  %v4289_v8 = vadd.f32 %v4271_v57, %v10509_v59 }
 0x7ea   : > { %v10583_v48 = vadd.f32 %v4295_v27, %v4284_v1  ;;  %v4297_v3 = vpop.permute.xlu1 %4296  ;;  %v4268_v1 = vsel %vm13254_vm10, %v4242_v24, %v4244_v12 }
 0x7eb   : > { %v10590_v26 = vadd.f32 %v4297_v3, %v4285_v53  ;;  %v4286_v50 = vadd.f32 %v4268_v1, %v10455_v60  ;;  %v4270_v60 = vsel %vm13256_vm8, %v4250_v45, %v4252_v42  ;;  %v4272_v42 = vsel %vm13258_vm1, %v4258_v40, %v4260_v19 }
 0x7ec   : > { %v4288_v12 = vadd.f32 %v4270_v60, %v10487_v35  ;;  %v4290_v27 = vadd.f32 %v4272_v42, %v10526_v61  ;;  %v4291_v3 = vadd.f32 %v4273_v17, %v10541_v36  ;;  %vm4562_vm1 = vcmask 146560  }
 0x7ed   : > { %4409 = vrot.lane.b32.xlu0 %v10572_v30, %s7872_s26  ;;  %4339 = vrot.lane.b32.xlu1 %v10583_v48, %s7874_s14  ;;  %v4299_v47 = vpop.permute.xlu0 %4298 }
 0x7ee   : > { %v10603_v22 = vadd.f32 %v4299_v47, %v4286_v50  ;;  %v4301_v25 = vpop.permute.xlu1 %4300 }
 0x7ef   : > { %v10611_v21 = vadd.f32 %v4301_v25, %v4287_v46 }
 0x7f1   : > { %4375 = vrot.lane.b32.xlu0 %v10583_v48, %s7875_s20  ;;  %4411 = vrot.lane.b32.xlu1 %v10583_v48, %s7872_s26  ;;  %v4303_v24 = vpop.permute.xlu0 %4302 }
 0x7f2   : > { %v10619_v4 = vadd.f32 %v4303_v24, %v4288_v12  ;;  %v4305_v34 = vpop.permute.xlu1 %4304 }
 0x7f3   : > { %v10627_v35 = vadd.f32 %v4305_v34, %v4289_v8 }
 0x7f5   : > { %4341 = vrot.lane.b32.xlu0 %v10590_v26, %s7874_s14  ;;  %4377 = vrot.lane.b32.xlu1 %v10590_v26, %s7875_s20  ;;  %v4307_v45 = vpop.permute.xlu0 %4306 }
 0x7f6   : > { %v10635_v44 = vadd.f32 %v4307_v45, %v4290_v27  ;;  %v4309_v59 = vpop.permute.xlu1 %4308 }
 0x7f7   : > { %v10642_v19 = vadd.f32 %v4309_v59, %v4291_v3 }
 0x7f9   : > { %4413 = vrot.lane.b32.xlu0 %v10590_v26, %s7872_s26  ;;  %4343 = vrot.lane.b32.xlu1 %v10603_v22, %s7874_s14 }
 0x7fd   : > { %4379 = vrot.lane.b32.xlu0 %v10603_v22, %s7875_s20  ;;  %4415 = vrot.lane.b32.xlu1 %v10603_v22, %s7872_s26 }
 0x801   : > { %4345 = vrot.lane.b32.xlu0 %v10611_v21, %s7874_s14  ;;  %4381 = vrot.lane.b32.xlu1 %v10611_v21, %s7875_s20 }
 0x805   : > { %4383 = vrot.lane.b32.xlu0 %v10619_v4, %s7875_s20  ;;  %4347 = vrot.lane.b32.xlu1 %v10619_v4, %s7874_s14 }
 0x809   : > { %4349 = vrot.lane.b32.xlu0 %v10627_v35, %s7874_s14  ;;  %4385 = vrot.lane.b32.xlu1 %v10627_v35, %s7875_s20 }
 0x80d   : > { %4387 = vrot.lane.b32.xlu0 %v10635_v44, %s7875_s20  ;;  %4351 = vrot.lane.b32.xlu1 %v10635_v44, %s7874_s14 }
 0x811   : > { %4353 = vrot.lane.b32.xlu0 %v10642_v19, %s7874_s14  ;;  %4389 = vrot.lane.b32.xlu1 %v10642_v19, %s7875_s20 }
 0x815   : > { %4417 = vrot.lane.b32.xlu0 %v10611_v21, %s7872_s26  ;;  %4419 = vrot.lane.b32.xlu1 %v10619_v4, %s7872_s26 }
 0x819   : > { %4421 = vrot.lane.b32.xlu0 %v10627_v35, %s7872_s26  ;;  %4423 = vrot.lane.b32.xlu1 %v10635_v44, %s7872_s26 }
 0x81d   : > { %4425 = vrot.lane.b32.xlu0 %v10642_v19, %s7872_s26  ;;  %4445 = vrot.lane.b32.xlu1 %v10572_v30, %s7876_s28 }
 0x821   : > { %4447 = vrot.lane.b32.xlu0 %v10583_v48, %s7876_s28  ;;  %4449 = vrot.lane.b32.xlu1 %v10590_v26, %s7876_s28 }
 0x825   : > { %4451 = vrot.lane.b32.xlu0 %v10603_v22, %s7876_s28  ;;  %4453 = vrot.lane.b32.xlu1 %v10611_v21, %s7876_s28 }
 0x829   : > { %4455 = vrot.lane.b32.xlu0 %v10619_v4, %s7876_s28  ;;  %4457 = vrot.lane.b32.xlu1 %v10627_v35, %s7876_s28 }
 0x82d   : > { %4459 = vrot.lane.b32.xlu0 %v10635_v44, %s7876_s28  ;;  %4461 = vrot.lane.b32.xlu1 %v10642_v19, %s7876_s28 }
 0x831   : > { %4481 = vrot.lane.b32.xlu0 %v10572_v30, %s7877_s29  ;;  %4483 = vrot.lane.b32.xlu1 %v10583_v48, %s7877_s29 }
 0x835   : > { %4485 = vrot.lane.b32.xlu0 %v10590_v26, %s7877_s29  ;;  %4487 = vrot.lane.b32.xlu1 %v10603_v22, %s7877_s29 }
 0x839   : > { %4489 = vrot.lane.b32.xlu0 %v10611_v21, %s7877_s29  ;;  %4491 = vrot.lane.b32.xlu1 %v10619_v4, %s7877_s29 }
 0x83d   : > { %4493 = vrot.lane.b32.xlu0 %v10627_v35, %s7877_s29  ;;  %4495 = vrot.lane.b32.xlu1 %v10635_v44, %s7877_s29 }
 0x841   : > { %4497 = vrot.lane.b32.xlu0 %v10642_v19, %s7877_s29 }
 0x85b   : > { %v4338_v58 = vpop.permute.xlu0 %4337  ;;  %v4374_v31 = vpop.permute.xlu1 %4373 }
 0x85c   : > { %v4364_v0 = vadd.f32 %v4338_v58, %v10572_v30 }
 0x85e   : > { %v4400_v49 = vadd.f32 %v4374_v31, %v4364_v0 }
 0x85f   : > { %v4410_v40 = vpop.permute.xlu0 %4409  ;;  %v4340_v61 = vpop.permute.xlu1 %4339 }
 0x860   : > { %v4436_v30 = vadd.f32 %v4410_v40, %v4400_v49  ;;  %v4365_v58 = vadd.f32 %v4340_v61, %v10583_v48 }
 0x863   : > { %v4376_v36 = vpop.permute.xlu0 %4375  ;;  %v4412_v53 = vpop.permute.xlu1 %4411 }
 0x864   : > { %v4401_v5 = vadd.f32 %v4376_v36, %v4365_v58 }
 0x866   : > { %v4437_v41 = vadd.f32 %v4412_v53, %v4401_v5 }
 0x867   : > { %v4342_v1 = vpop.permute.xlu0 %4341  ;;  %v4378_v47 = vpop.permute.xlu1 %4377 }
 0x868   : > { %v4366_v49 = vadd.f32 %v4342_v1, %v10590_v26 }
 0x86a   : > { %v4402_v0 = vadd.f32 %v4378_v47, %v4366_v49 }
 0x86b   : > { %v10696_v50 = vpop.permute.xlu0 %4413  ;;  %v10698_v11 = vpop.permute.xlu1 %4343 }
 0x86f   : > { %v10700_v25 = vpop.permute.xlu0 %4379  ;;  %v10702_v46 = vpop.permute.xlu1 %4415 }
 0x873   : > { %v10704_v60 = vpop.permute.xlu0 %4345  ;;  %v10706_v24 = vpop.permute.xlu1 %4381 }
 0x877   : > { %v10708_v12 = vpop.permute.xlu0 %4383  ;;  %v10710_v57 = vpop.permute.xlu1 %4347 }
 0x878   : > { %v4369_v36 = vadd.f32 %v10710_v57, %v10619_v4  ;;  %v10800_v57 = vadd.f32 %v10200_v39, %v10192_v56 }
 0x87a   : > { %v4405_v1 = vadd.f32 %v10708_v12, %v4369_v36  ;;  %v13271_v36 = vld [vmem:[#allocation7_spill] sm:$0xff]  ;;  %vm3663_vm2 = vcmp.gt.f32.partialorder %v10800_v57, 0.0 }
 0x87b   : > { %v10712_v34 = vpop.permute.xlu0 %4349  ;;  %v10714_v8 = vpop.permute.xlu1 %4385 }
 0x87c   : > { %v4370_v4 = vadd.f32 %v10712_v34, %v10627_v35 }
 0x87f   : > { %v10716_v42 = vpop.permute.xlu0 %4387  ;;  %v10718_v45 = vpop.permute.xlu1 %4351 }
 0x880   : > { %v4371_v35 = vadd.f32 %v10718_v45, %v10635_v44  ;;  %v10814_v44 = vadd.f32 %v10220_v6, %v10194_v63 }
 0x882   : > { %vm3675_vm12 = vcmp.gt.f32.partialorder %v10814_v44, 0.0 }
 0x883   : > { %v10720_v27 = vpop.permute.xlu0 %4353  ;;  %v10722_v17 = vpop.permute.xlu1 %4389 }
 0x884   : > { %13260 = vst [vmem:[#allocation71_spill] sm:$0xff] %v10722_v17 }
 0x887   : > { %v10724_v59 = vpop.permute.xlu0 %4417  ;;  %v10726_v3 = vpop.permute.xlu1 %4419 }
 0x888   : > { %v4441_v47 = vadd.f32 %v10726_v3, %v4405_v1  ;;  %v3729_v3 = vmin.f32 %v10814_v44, 0.0 }
 0x88a   : > { %v3797_v49 = vmul.f32 1.442695, %v3729_v3 }
 0x88b   : > { %v10728_v37 = vpop.permute.xlu0 %4421  ;;  %v10730_v9 = vpop.permute.xlu1 %4423 }
 0x88f   : > { %v10732_v62 = vpop.permute.xlu0 %4425  ;;  %v4446_v16 = vpop.permute.xlu1 %4445 }
 0x890   : > { %13261 = vst [vmem:[#allocation72_spill] sm:$0xff] %v10732_v62  ;;  %v4472_v7 = vadd.f32 %v4446_v16, %v4436_v30  ;;  %v10834_v30 = vadd.f32 %v10238_v23, %v10198_v15 }
 0x892   : > { %v3741_v23 = vmin.f32 %v10834_v30, 0.0  ;;  %vm3687_vm9 = vcmp.gt.f32.partialorder %v10834_v30, 0.0 }
 0x893   : > { %v4448_v32 = vpop.permute.xlu0 %4447  ;;  %v4450_v14 = vpop.permute.xlu1 %4449 }
 0x894   : > { %v4473_v17 = vadd.f32 %v4448_v32, %v4437_v41  ;;  %v4438_v41 = vadd.f32 %v10696_v50, %v4402_v0  ;;  %v13264_v0 = vld [vmem:[#allocation57_spill] sm:$0xff] }
 0x896   : > { %v4474_v32 = vadd.f32 %v4450_v14, %v4438_v41  ;;  %v13265_v41 = vld [vmem:[#allocation48_spill] sm:$0xff] }
 0x897   : > { %v4452_v29 = vpop.permute.xlu0 %4451  ;;  %v10735_v54 = vpop.permute.xlu1 %4453 }
 0x89b   : > { %v10737_v33 = vpop.permute.xlu0 %4455  ;;  %v10739_v13 = vpop.permute.xlu1 %4457 }
 0x89f   : > { %v10741_v18 = vpop.permute.xlu0 %4459  ;;  %v10744_v51 = vpop.permute.xlu1 %4461 }
 0x8a3   : > { %v4482_v62 = vpop.permute.xlu0 %4481  ;;  %v4484_v28 = vpop.permute.xlu1 %4483 }
 0x8a4   : > { %v4508_v20 = vadd.f32 %v4482_v62, %v4472_v7  ;;  %v4509_v10 = vadd.f32 %v4484_v28, %v4473_v17 }
 0x8a6   : > { %v4517_v38 = vmul.f32 0.055555556, %v4508_v20  ;;  %v4518_v7 = vmul.f32 0.055555556, %v4509_v10  ;;  %v4367_v20 = vadd.f32 %v10698_v11, %v10603_v22  ;;  %v4368_v22 = vadd.f32 %v10704_v60, %v10611_v21 }
 0x8a7   : > { %v4486_v5 = vpop.permute.xlu0 %4485  ;;  %v4488_v48 = vpop.permute.xlu1 %4487 }
 0x8a8   : > { %4572 = vrot.lane.b32.xlu0 %v4517_v38, %s7888_s17  ;;  %4535 = vrot.lane.b32.xlu1 %v4517_v38, %s7889_s13  ;;  %v4403_v28 = vadd.f32 %v10700_v25, %v4367_v20  ;;  %v4510_v16 = vadd.f32 %v4486_v5, %v4474_v32  ;;  %v4404_v40 = vadd.f32 %v10706_v24, %v4368_v22  ;;  %v13266_v5 = vld [vmem:[#allocation62_spill] sm:$0xff]  ;;  %v13267_v32 = vld [vmem:[#allocation72_spill] sm:$0xff]  ;;  %v13269_v22 = vld [vmem:[#allocation63_spill] sm:$0xff] }
 0x8a9   : > { %v10849_v20 = vadd.f32 %v13266_v5, %v13265_v41 }
 0x8aa   : > { %v4519_v62 = vmul.f32 0.055555556, %v4510_v16 }
 0x8ab   : > { %v4490_v61 = vpop.permute.xlu0 %4489  ;;  %v4492_v11 = vpop.permute.xlu1 %4491  ;;  %vm3699_vm14 = vcmp.gt.f32.partialorder %v10849_v20, 0.0 }
 0x8ac   : > { %4646 = vrot.lane.b32.xlu0 %v4517_v38, %s7890_s18  ;;  %4609 = vrot.lane.b32.xlu1 %v4517_v38, %s7875_s20 }
 0x8af   : > { %v4494_v12 = vpop.permute.xlu0 %4493 }
 0x8b0   : > { %4683 = vrot.lane.b32.xlu1 %v4517_v38, %s7883_s30  ;;  %4537 = vrot.lane.b32.xlu0 %v4518_v7, %s7889_s13  ;;  %v4439_v38 = vadd.f32 %v10702_v46, %v4403_v28  ;;  %v4406_v46 = vadd.f32 %v10714_v8, %v4370_v4  ;;  %v4407_v8 = vadd.f32 %v10716_v42, %v4371_v35 }
 0x8b1   : > { %v4372_v42 = vadd.f32 %v10720_v27, %v10642_v19 }
 0x8b2   : > { %v4475_v26 = vadd.f32 %v4452_v29, %v4439_v38  ;;  %v4440_v29 = vadd.f32 %v10724_v59, %v4404_v40  ;;  %v4442_v60 = vadd.f32 %v10728_v37, %v4406_v46  ;;  %v10804_v37 = vadd.f32 %v10206_v2, %v10196_v55  ;;  %v4496_v2 = vpop.permute.xlu1 %4495 }
 0x8b3   : > { %v4443_v39 = vadd.f32 %v10730_v9, %v4407_v8  ;;  %v10830_v9 = vadd.f32 %v10231_v43, %v10204_v52  ;;  %v13263_v43 = vld [vmem:[#allocation50_spill] sm:$0xff]  ;;  %v4498_v38 = vpop.permute.xlu0 %4497  ;;  %v3821_v40 = vmul.f32 1.442695, %v3741_v23 }
 0x8b4   : > { %4574 = vrot.lane.b32.xlu1 %v4518_v7, %s7888_s17  ;;  %4611 = vrot.lane.b32.xlu0 %v4518_v7, %s7875_s20  ;;  %v4511_v14 = vadd.f32 %v4488_v48, %v4475_v26  ;;  %v4476_v53 = vadd.f32 %v10735_v54, %v4440_v29  ;;  %v4477_v54 = vadd.f32 %v10737_v33, %v4441_v47  ;;  %v3723_v17 = vmin.f32 %v10804_v37, 0.0 }
 0x8b5   : > { %v4478_v33 = vadd.f32 %v10739_v13, %v4442_v60  ;;  %v3717_v13 = vmin.f32 %v10800_v57, 0.0  ;;  %v4479_v59 = vadd.f32 %v10741_v18, %v4443_v39  ;;  %v13262_v18 = vld [vmem:[#allocation71_spill] sm:$0xff]  ;;  %v3735_v10 = vmin.f32 %v10830_v9, 0.0 }
 0x8b6   : > { %v4520_v31 = vmul.f32 0.055555556, %v4511_v14  ;;  %v4512_v21 = vadd.f32 %v4490_v61, %v4476_v53  ;;  %v4513_v25 = vadd.f32 %v4492_v11, %v4477_v54  ;;  %v3785_v27 = vmul.f32 1.442695, %v3723_v17  ;;  %v13268_v14 = vld [vmem:[#allocation56_spill] sm:$0xff]  ;;  %v13270_v61 = vld [vmem:[#allocation51_spill] sm:$0xff] }
 0x8b7   : > { %v4514_v34 = vadd.f32 %v4494_v12, %v4478_v33  ;;  %v3773_v6 = vmul.f32 1.442695, %v3717_v13  ;;  %v4515_v19 = vadd.f32 %v4496_v2, %v4479_v59  ;;  %v4408_v58 = vadd.f32 %v13262_v18, %v4372_v42  ;;  %v13273_v60 = vld [vmem:[#allocation47_spill] sm:$0xff]  ;;  %v13274_v17 = vld [vmem:[#allocation52_spill] sm:$0xff] }
 0x8b8   : > { %4648 = vrot.lane.b32.xlu1 %v4518_v7, %s7890_s18  ;;  %4685 = vrot.lane.b32.xlu0 %v4518_v7, %s7883_s30  ;;  %v4521_v50 = vmul.f32 0.055555556, %v4512_v21  ;;  %v10790_v24 = vmul.f32 0.055555556, %v4513_v25  ;;  %v10844_v7 = vadd.f32 %v13264_v0, %v13263_v43  ;;  %v3809_v48 = vmul.f32 1.442695, %v3735_v10 }
 0x8b9   : > { %v10817_v45 = vmul.f32 0.055555556, %v4514_v34  ;;  %7746 = vpow2.f32 %v3773_v6  ;;  %v4444_v28 = vadd.f32 %v13267_v32, %v4408_v58  ;;  %v10852_v16 = vmul.f32 0.055555556, %v4515_v19  ;;  %v13272_v21 = vld [vmem:[#allocation46_spill] sm:$0xff]  ;;  %v13276_v0 = vld [vmem:[#allocation60_spill] sm:$0xff] }
 0x8ba   : > { %7748 = vpow2.f32 %v3785_v27  ;;  %v3747_v26 = vmin.f32 %v10844_v7, 0.0  ;;  %v3753_v29 = vmin.f32 %v10849_v20, 0.0  ;;  %v10871_v1 = vadd.f32 %v13272_v21, %v10192_v56  ;;  %v13280_v21 = vld [vmem:[#allocation15_spill] sm:$0xff] }
 0x8bb   : > { %7750 = vpow2.f32 %v3797_v49  ;;  %v10882_v12 = vadd.f32 %v13273_v60, %v10196_v55  ;;  %v10890_v42 = vadd.f32 %v13274_v17, %v10194_v63  ;;  %v13275_v49 = vld [vmem:[#allocation54_spill] sm:$0xff]  ;;  %vm3669_vm13 = vcmp.gt.f32.partialorder %v10804_v37, 0.0 }
 0x8bc   : > { %4539 = vrot.lane.b32.xlu1 %v4519_v62, %s7889_s13  ;;  %4576 = vrot.lane.b32.xlu0 %v4519_v62, %s7888_s17  ;;  %7752 = vpow2.f32 %v3809_v48  ;;  %v3833_v47 = vmul.f32 1.442695, %v3747_v26  ;;  %v3845_v11 = vmul.f32 1.442695, %v3753_v29  ;;  %v3718_v46 = vmin.f32 %v10871_v1, 0.0 }
 0x8bd   : > { %7754 = vpow2.f32 %v3821_v40  ;;  %v3724_v2 = vmin.f32 %v10882_v12, 0.0  ;;  %v3730_v58 = vmin.f32 %v10890_v42, 0.0  ;;  %v10899_v10 = vadd.f32 %v13275_v49, %v10204_v52  ;;  %v13279_v40 = vld [vmem:[#allocation49_spill] sm:$0xff] }
 0x8be   : > { %7756 = vpow2.f32 %v3833_v47  ;;  %v3775_v39 = vmul.f32 1.442695, %v3718_v46  ;;  %vm3681_vm15 = vcmp.gt.f32.partialorder %v10830_v9, 0.0  ;;  %v13281_v46 = vld [vmem:[#allocation59_spill] sm:$0xff]  ;;  %vm3693_vm11 = vcmp.gt.f32.partialorder %v10844_v7, 0.0  ;;  %v13287_v49 = vld [vmem:[#allocation53_spill] sm:$0xff] }
 0x8bf   : > { %7758 = vpow2.f32 %v3845_v11  ;;  %v3787_v27 = vmul.f32 1.442695, %v3724_v2  ;;  %v3799_v48 = vmul.f32 1.442695, %v3730_v58  ;;  %v3736_v26 = vmin.f32 %v10899_v10, 0.0 }
 0x8c0   : > { %4613 = vrot.lane.b32.xlu1 %v4519_v62, %s7875_s20  ;;  %4650 = vrot.lane.b32.xlu0 %v4519_v62, %s7890_s18  ;;  %vm3664_vm10 = vcmp.gt.f32.partialorder %v10871_v1, 0.0  ;;  %vm3670_vm6 = vcmp.gt.f32.partialorder %v10882_v12, 0.0  ;;  %vm3676_vm8 = vcmp.gt.f32.partialorder %v10890_v42, 0.0  ;;  %vm3682_vm3 = vcmp.gt.f32.partialorder %v10899_v10, 0.0 }
 0x8c3   : > { %v7747_v25 = vpop.eup %7746 }
 0x8c4   : > { %4687 = vrot.lane.b32.xlu1 %v4519_v62, %s7883_s30  ;;  %4541 = vrot.lane.b32.xlu0 %v4520_v31, %s7889_s13  ;;  %v4480_v62 = vadd.f32 %v10744_v51, %v4444_v28  ;;  %v10867_v51 = vadd.f32 %v13271_v36, %v13270_v61  ;;  %v7749_v33 = vpop.eup %7748  ;;  %v7413_v13 = vadd.f32 -1.0, %v7747_v25 }
 0x8c5   : > { %v7751_v8 = vpop.eup %7750  ;;  %v7419_v59 = vadd.f32 -1.0, %v7749_v33 }
 0x8c6   : > { %v4516_v53 = vadd.f32 %v4498_v38, %v4480_v62  ;;  %v3765_v4 = vmin.f32 %v10867_v51, 0.0  ;;  %v7425_v6 = vadd.f32 -1.0, %v7751_v8  ;;  %v7753_v3 = vpop.eup %7752  ;;  %v3933_v19 = vsel %vm3663_vm2, %v10800_v57, %v7413_v13  ;;  %v13284_v13 = vld [vmem:[#allocation23_spill] sm:$0xff] }
 0x8c7   : > { %v7755_v18 = vpop.eup %7754  ;;  %v4041_v57 = vmul.f32 %v13276_v0, %v3933_v19  ;;  %v3939_v23 = vsel %vm3669_vm13, %v10804_v37, %v7419_v59  ;;  %v7431_v32 = vadd.f32 -1.0, %v7753_v3  ;;  %v13278_v37 = vld [vmem:[#allocation55_spill] sm:$0xff]  ;;  %vm3711_vm5 = vcmp.gt.f32.partialorder %v10867_v51, 0.0 }
 0x8c8   : > { %4578 = vrot.lane.b32.xlu1 %v4520_v31, %s7888_s17  ;;  %4615 = vrot.lane.b32.xlu0 %v4520_v31, %s7875_s20  ;;  %v4525_v54 = vmul.f32 0.055555556, %v4516_v53  ;;  %v3869_v34 = vmul.f32 1.442695, %v3765_v4  ;;  %v3945_v5 = vsel %vm3675_vm12, %v10814_v44, %v7425_v6  ;;  %v7757_v28 = vpop.eup %7756  ;;  %v7437_v38 = vadd.f32 -1.0, %v7755_v18 }
 0x8c9   : > { %v7759_v62 = vpop.eup %7758  ;;  %v4047_v44 = vmul.f32 %v13278_v37, %v3939_v23  ;;  %v4053_v29 = vmul.f32 %v13279_v40, %v3945_v5  ;;  %v3951_v36 = vsel %vm3681_vm15, %v10830_v9, %v7431_v32  ;;  %v7443_v53 = vadd.f32 -1.0, %v7757_v28  ;;  %v13289_v5 = vld [vmem:[#allocation33_spill] sm:$0xff]  ;;  %v13291_v28 = vld [vmem:[#allocation35_spill] sm:$0xff] }
 0x8ca   : > { %v10924_v47 = vadd.f32 %v13280_v21, %v4041_v57  ;;  %v7449_v11 = vadd.f32 -1.0, %v7759_v62  ;;  %v4059_v60 = vmul.f32 %v13281_v46, %v3951_v36  ;;  %v10955_v57 = vadd.f32 %v13287_v49, %v13265_v41  ;;  %v13293_v36 = vld [vmem:[#allocation65_spill] sm:$0xff] }
 0x8cb   : > { %v3963_v8 = vsel %vm3693_vm11, %v10844_v7, %v7443_v53  ;;  %v10977_v53 = vadd.f32 %v13293_v36, %v13268_v14  ;;  %vm4636_vm2 = vcmask 179360   ;;  %vm4673_vm13 = vcmask 195760  }
 0x8cc   : > { %4652 = vrot.lane.b32.xlu1 %v4520_v31, %s7890_s18  ;;  %4689 = vrot.lane.b32.xlu0 %v4520_v31, %s7883_s30  ;;  %v10862_v31 = vadd.f32 %v13269_v22, %v13268_v14  ;;  %v3969_v17 = vsel %vm3699_vm14, %v10849_v20, %v7449_v11  ;;  %v13288_v20 = vld [vmem:[#allocation9_spill] sm:$0xff]  ;;  %v10961_v32 = vadd.f32 %v13289_v5, %v4059_v60  ;;  %vm4710_vm15 = vcmask 212160  }
 0x8cd   : > { %v4077_v23 = vmul.f32 %v13288_v20, %v3969_v17  ;;  %v13296_v11 = vld [vmem:[#allocation37_spill] sm:$0xff]  ;;  %v13300_v17 = vld [vmem:[#allocation8_spill] sm:$0xff]  ;;  %vm3706_vm11 = vcmp.gt.f32.partialorder %v10977_v53, 0.0 }
 0x8ce   : > { %vm3705_vm4 = vcmp.gt.f32.partialorder %v10862_v31, 0.0  ;;  %13290 = vst [vmem:[#allocation71_spill] sm:$0xff] %v10961_v32 }
 0x8d0   : > { %4543 = vrot.lane.b32.xlu1 %v4521_v50, %s7889_s13  ;;  %4580 = vrot.lane.b32.xlu0 %v4521_v50, %s7888_s17 }
 0x8d4   : > { %4617 = vrot.lane.b32.xlu1 %v4521_v50, %s7875_s20  ;;  %4654 = vrot.lane.b32.xlu0 %v4521_v50, %s7890_s18 }
 0x8d8   : > { %4691 = vrot.lane.b32.xlu1 %v4521_v50, %s7883_s30  ;;  %4545 = vrot.lane.b32.xlu0 %v10790_v24, %s7889_s13  ;;  %v3759_v50 = vmin.f32 %v10862_v31, 0.0 }
 0x8da   : > { %v3857_v35 = vmul.f32 1.442695, %v3759_v50 }
 0x8dc   : > { %4582 = vrot.lane.b32.xlu1 %v10790_v24, %s7888_s17  ;;  %4619 = vrot.lane.b32.xlu0 %v10790_v24, %s7875_s20  ;;  %7760 = vpow2.f32 %v3857_v35  ;;  %v13282_v35 = vld [vmem:[#allocation61_spill] sm:$0xff] }
 0x8dd   : > { %7762 = vpow2.f32 %v3869_v34  ;;  %v10935_v33 = vadd.f32 %v13282_v35, %v13263_v43 }
 0x8de   : > { %7764 = vpow2.f32 %v3775_v39  ;;  %v13285_v39 = vld [vmem:[#allocation31_spill] sm:$0xff] }
 0x8df   : > { %7766 = vpow2.f32 %v3787_v27  ;;  %v10944_v2 = vadd.f32 %v13285_v39, %v4053_v29  ;;  %v13286_v27 = vld [vmem:[#allocation64_spill] sm:$0xff]  ;;  %v3748_v58 = vmin.f32 %v10935_v33, 0.0  ;;  %v3754_v29 = vmin.f32 %v10955_v57, 0.0 }
 0x8e0   : > { %4656 = vrot.lane.b32.xlu1 %v10790_v24, %s7890_s18  ;;  %4584 = vrot.lane.b32.xlu0 %v10817_v45, %s7888_s17  ;;  %7768 = vpow2.f32 %v3799_v48  ;;  %v4071_v18 = vmul.f32 %v13286_v27, %v3963_v8  ;;  %v3760_v8 = vmin.f32 %v10977_v53, 0.0  ;;  %vm3694_vm12 = vcmp.gt.f32.partialorder %v10935_v33, 0.0 }
 0x8e1   : > { %v3847_v35 = vmul.f32 1.442695, %v3754_v29 }
 0x8e4   : > { %4547 = vrot.lane.b32.xlu1 %v10817_v45, %s7889_s13  ;;  %4658 = vrot.lane.b32.xlu0 %v10817_v45, %s7890_s18 }
 0x8e6   : > { %v7761_v50 = vpop.eup %7760 }
 0x8e7   : > { %v7763_v4 = vpop.eup %7762  ;;  %v7455_v59 = vadd.f32 -1.0, %v7761_v50  ;;  %v13294_v50 = vld [vmem:[#allocation10_spill] sm:$0xff] }
 0x8e8   : > { %4621 = vrot.lane.b32.xlu1 %v10817_v45, %s7875_s20  ;;  %4549 = vrot.lane.b32.xlu0 %v10852_v16, %s7889_s13  ;;  %v7765_v9 = vpop.eup %7764  ;;  %v7461_v6 = vadd.f32 -1.0, %v7763_v4  ;;  %v10982_v4 = vadd.f32 %v13296_v11, %v4071_v18 }
 0x8e9   : > { %v7414_v3 = vadd.f32 -1.0, %v7765_v9  ;;  %v7767_v7 = vpop.eup %7766  ;;  %v3975_v62 = vsel %vm3705_vm4, %v10862_v31, %v7455_v59  ;;  %v10997_v59 = vadd.f32 %v13300_v17, %v13270_v61  ;;  %vm13322_vm4 = vcmask 883712  }
 0x8ea   : > { %v3981_v48 = vsel %vm3711_vm5, %v10867_v51, %v7461_v6  ;;  %v7769_v31 = vpop.eup %7768  ;;  %v4083_v51 = vmul.f32 %v13294_v50, %v3975_v62  ;;  %13297 = vst [vmem:[#allocation62_spill] sm:$0xff] %v10982_v4  ;;  %v13301_v6 = vld [vmem:[#allocation67_spill] sm:$0xff]  ;;  %vm13324_vm5 = vmmov %vm13322_vm4 }
 0x8eb   : > { %v7426_v18 = vadd.f32 -1.0, %v7769_v31  ;;  %v3766_v49 = vmin.f32 %v10997_v59, 0.0  ;;  %vm3712_vm14 = vcmp.gt.f32.partialorder %v10997_v59, 0.0 }
 0x8ec   : > { %4586 = vrot.lane.b32.xlu1 %v10852_v16, %s7888_s17  ;;  %4623 = vrot.lane.b32.xlu0 %v10852_v16, %s7875_s20 }
 0x8f0   : > { %4660 = vrot.lane.b32.xlu1 %v10852_v16, %s7890_s18  ;;  %4588 = vrot.lane.b32.xlu0 %v4525_v54, %s7888_s17  ;;  %s7892_s17 = smov 24  }
 0x8f4   : > { %4551 = vrot.lane.b32.xlu1 %v4525_v54, %s7889_s13  ;;  %4662 = vrot.lane.b32.xlu0 %v4525_v54, %s7890_s18  ;;  %s7895_s13 = smov 82  }
 0x8f8   : > { %4625 = vrot.lane.b32.xlu1 %v4525_v54, %s7875_s20  ;;  %4693 = vrot.lane.b32.xlu0 %v10790_v24, %s7883_s30  ;;  %v13277_v24 = vld [vmem:[#allocation58_spill] sm:$0xff] }
 0x8f9   : > { %v10912_v22 = vadd.f32 %v13277_v24, %v10198_v15  ;;  %v7420_v24 = vadd.f32 -1.0, %v7767_v7 }
 0x8fb   : > { %v3742_v25 = vmin.f32 %v10912_v22, 0.0  ;;  %v3940_v60 = vsel %vm3670_vm6, %v10882_v12, %v7420_v24  ;;  %vm3688_vm7 = vcmp.gt.f32.partialorder %v10912_v22, 0.0  ;;  %vm13330_vm6 = vmmov %vm13322_vm4 }
 0x8fc   : > { %4695 = vrot.lane.b32.xlu1 %v10817_v45, %s7883_s30  ;;  %4697 = vrot.lane.b32.xlu0 %v10852_v16, %s7883_s30  ;;  %v3957_v45 = vsel %vm3687_vm9, %v10834_v30, %v7437_v38  ;;  %v3811_v16 = vmul.f32 1.442695, %v3736_v26  ;;  %v13283_v30 = vld [vmem:[#allocation5_spill] sm:$0xff]  ;;  %v3934_v26 = vsel %vm3664_vm10, %v10871_v1, %v7414_v3  ;;  %v11000_v3 = vadd.f32 %v13301_v6, %v4083_v51  ;;  %vm13327_vm10 = vmmov %vm13322_vm4 }
 0x8fd   : > { %v4065_v34 = vmul.f32 %v13283_v30, %v3957_v45  ;;  %v3823_v19 = vmul.f32 1.442695, %v3742_v25  ;;  %v13295_v45 = vld [vmem:[#allocation17_spill] sm:$0xff]  ;;  %v4042_v9 = vmul.f32 %v13276_v0, %v3934_v26  ;;  %v4048_v12 = vmul.f32 %v13278_v37, %v3940_v60 }
 0x8fe   : > { %7770 = vpow2.f32 %v3811_v16  ;;  %v4089_v1 = vmul.f32 %v13295_v45, %v3981_v48  ;;  %v13298_v16 = vld [vmem:[#allocation41_spill] sm:$0xff]  ;;  %13302 = vst [vmem:[#allocation63_spill] sm:$0xff] %v11000_v3  ;;  %v3946_v48 = vsel %vm3676_vm8, %v10890_v42, %v7426_v18  ;;  %vm3700_vm9 = vcmp.gt.f32.partialorder %v10955_v57, 0.0  ;;  %vm13333_vm8 = vmmov %vm13322_vm4 }
 0x8ff   : > { %v10964_v38 = vadd.f32 %v13291_v28, %v4065_v34  ;;  %7772 = vpow2.f32 %v3823_v19  ;;  %v10985_v25 = vadd.f32 %v13298_v16, %v4077_v23  ;;  %v13303_v19 = vld [vmem:[#allocation69_spill] sm:$0xff]  ;;  %v11013_v23 = vadd.f32 %v13280_v21, %v4042_v9 }
 0x900   : > { %4699 = vrot.lane.b32.xlu1 %v4525_v54, %s7883_s30  ;;  %4729 = vrot.lane.b32.xlu0 %v10924_v47, %s7866_s15  ;;  %v10941_v54 = vadd.f32 %v13284_v13, %v4047_v44  ;;  %v3835_v44 = vmul.f32 1.442695, %v3748_v58  ;;  %v11003_v7 = vadd.f32 %v13303_v19, %v4089_v1  ;;  %v3859_v58 = vmul.f32 1.442695, %v3760_v8  ;;  %s7891_s30 = smov 64  }
 0x901   : > { %13292 = vst [vmem:[#allocation57_spill] sm:$0xff] %v10964_v38  ;;  %13299 = vst [vmem:[#allocation72_spill] sm:$0xff] %v10985_v25  ;;  %v4054_v24 = vmul.f32 %v13279_v40, %v3946_v48  ;;  %v11023_v29 = vadd.f32 %v13284_v13, %v4048_v12 }
 0x902   : > { %7774 = vpow2.f32 %v3835_v44  ;;  %13304 = vst [vmem:[#allocation7_spill] sm:$0xff] %v11003_v7  ;;  %13305 = vst [vmem:[#allocation46_spill] sm:$0xff] %v11013_v23  ;;  %v3871_v44 = vmul.f32 1.442695, %v3766_v49 }
 0x903   : > { %7776 = vpow2.f32 %v3847_v35  ;;  %13306 = vst [vmem:[#allocation47_spill] sm:$0xff] %v11023_v29  ;;  %v11033_v60 = vadd.f32 %v13285_v39, %v4054_v24 }
 0x904   : > { %4731 = vrot.lane.b32.xlu1 %v10941_v54, %s7866_s15  ;;  %4733 = vrot.lane.b32.xlu0 %v10944_v2, %s7866_s15  ;;  %7778 = vpow2.f32 %v3859_v58 }
 0x905   : > { %7780 = vpow2.f32 %v3871_v44  ;;  %13307 = vst [vmem:[#allocation52_spill] sm:$0xff] %v11033_v60 }
 0x908   : > { %4735 = vrot.lane.b32.xlu1 %v10961_v32, %s7866_s15  ;;  %4737 = vrot.lane.b32.xlu0 %v10964_v38, %s7866_s15  ;;  %v7771_v34 = vpop.eup %7770 }
 0x909   : > { %v7773_v62 = vpop.eup %7772  ;;  %v7432_v26 = vadd.f32 -1.0, %v7771_v34 }
 0x90a   : > { %v7438_v42 = vadd.f32 -1.0, %v7773_v62 }
 0x90b   : > { %v3952_v31 = vsel %vm3682_vm3, %v10899_v10, %v7432_v26  ;;  %vm13336_vm3 = vmmov %vm13322_vm4 }
 0x90c   : > { %4739 = vrot.lane.b32.xlu1 %v10982_v4, %s7866_s15  ;;  %4741 = vrot.lane.b32.xlu0 %v10985_v25, %s7866_s15  ;;  %v7775_v36 = vpop.eup %7774  ;;  %v4060_v51 = vmul.f32 %v13281_v46, %v3952_v31  ;;  %v3958_v10 = vsel %vm3688_vm7, %v10912_v22, %v7438_v42 }
 0x90d   : > { %v7444_v35 = vadd.f32 -1.0, %v7775_v36  ;;  %v7777_v34 = vpop.eup %7776  ;;  %v4066_v8 = vmul.f32 %v13283_v30, %v3958_v10 }
 0x90e   : > { %v11045_v18 = vadd.f32 %v13289_v5, %v4060_v51  ;;  %v7450_v58 = vadd.f32 -1.0, %v7777_v34  ;;  %v7779_v49 = vpop.eup %7778 }
 0x90f   : > { %v3964_v12 = vsel %vm3694_vm12, %v10935_v33, %v7444_v35  ;;  %v11057_v33 = vadd.f32 %v13291_v28, %v4066_v8  ;;  %v7456_v44 = vadd.f32 -1.0, %v7779_v49  ;;  %v7781_v36 = vpop.eup %7780  ;;  %v13343_v28 = vld [vmem:[#allocation70_spill] sm:$0xff]  ;;  %vm5235_vm12 = vcmask 294160  }
 0x910   : > { %4743 = vrot.lane.b32.xlu1 %v11000_v3, %s7866_s15  ;;  %4745 = vrot.lane.b32.xlu0 %v11003_v7, %s7866_s15  ;;  %13308 = vst [vmem:[#allocation54_spill] sm:$0xff] %v11045_v18  ;;  %v4072_v62 = vmul.f32 %v13286_v27, %v3964_v12  ;;  %v3970_v24 = vsel %vm3700_vm9, %v10955_v57, %v7450_v58 }
 0x911   : > { %13309 = vst [vmem:[#allocation58_spill] sm:$0xff] %v11057_v33  ;;  %v4078_v31 = vmul.f32 %v13288_v20, %v3970_v24 }
 0x912   : > { %v11069_v57 = vadd.f32 %v13296_v11, %v4072_v62 }
 0x913   : > { %v11081_v8 = vadd.f32 %v13298_v16, %v4078_v31 }
 0x914   : > { %4783 = vrot.lane.b32.xlu1 %v10924_v47, %s7867_s16  ;;  %4785 = vrot.lane.b32.xlu0 %v11013_v23, %s7867_s16  ;;  %13310 = vst [vmem:[#allocation61_spill] sm:$0xff] %v11069_v57 }
 0x915   : > { %13311 = vst [vmem:[#allocation53_spill] sm:$0xff] %v11081_v8 }
 0x918   : > { %4787 = vrot.lane.b32.xlu1 %v10941_v54, %s7867_s16  ;;  %4789 = vrot.lane.b32.xlu0 %v11023_v29, %s7867_s16  ;;  %v13334_v29 = vld [vmem:[#allocation38_spill] sm:$0xff] }
 0x91a   : > { %v4573_v1 = vpop.permute.xlu0 %4572  ;;  %v4536_v9 = vpop.permute.xlu1 %4535 }
 0x91b   : > { %4563 = vst.msk [vmem:[#allocation3] sm:$0xff] %vm4562_vm1, %v4536_v9  ;;  %v7462_v9 = vadd.f32 -1.0, %v7781_v36 }
 0x91c   : > { %4791 = vrot.lane.b32.xlu1 %v10944_v2, %s7867_s16  ;;  %4793 = vrot.lane.b32.xlu0 %v11033_v60, %s7867_s16  ;;  %4600 = vst.msk [vmem:[#allocation3] sm:$0xff] %vm4599_vm0, %v4573_v1  ;;  %v3976_v1 = vsel %vm3706_vm11, %v10977_v53, %v7456_v44 }
 0x91d   : > { %v4084_v10 = vmul.f32 %v13294_v50, %v3976_v1  ;;  %v3982_v53 = vsel %vm3712_vm14, %v10997_v59, %v7462_v9 }
 0x91e   : > { %v4647_v17 = vpop.permute.xlu0 %4646  ;;  %v4610_v22 = vpop.permute.xlu1 %4609 }
 0x91f   : > { %4637 = vst.msk [vmem:[#allocation3] sm:$0xff] %vm4636_vm2, %v4610_v22  ;;  %v11092_v58 = vadd.f32 %v13301_v6, %v4084_v10  ;;  %v13340_v6 = vld [vmem:[#allocation68_spill] sm:$0xff] }
 0x920   : > { %4795 = vrot.lane.b32.xlu1 %v10961_v32, %s7867_s16  ;;  %4797 = vrot.lane.b32.xlu0 %v11045_v18, %s7867_s16  ;;  %4674 = vst.msk [vmem:[#allocation3] sm:$0xff] %vm4673_vm13, %v4647_v17  ;;  %v4090_v17 = vmul.f32 %v13295_v45, %v3982_v53  ;;  %v13331_v18 = vld [vmem:[#allocation39_spill] sm:$0xff] }
 0x921   : > { %13312 = vst [vmem:[#allocation65_spill] sm:$0xff] %v11092_v58 }
 0x922   : > { %v4538_v48 = vpop.permute.xlu0 %4537  ;;  %v4684_v26 = vpop.permute.xlu1 %4683  ;;  %v11101_v62 = vadd.f32 %v13303_v19, %v4090_v17  ;;  %v13337_v19 = vld [vmem:[#allocation66_spill] sm:$0xff] }
 0x923   : > { %4564 = vst.msk [vmem:[#allocation3 + $0x8] sm:$0xff] %vm4562_vm1, %v4538_v48 }
 0x924   : > { %4711 = vst.msk [vmem:[#allocation3] sm:$0xff] %vm4710_vm15, %v4684_v26  ;;  %4799 = vrot.lane.b32.xlu1 %v10964_v38, %s7867_s16  ;;  %4801 = vrot.lane.b32.xlu0 %v11057_v33, %s7867_s16  ;;  %13313 = vst [vmem:[#allocation8_spill] sm:$0xff] %v11101_v62 }
 0x926   : > { %v4612_v42 = vpop.permute.xlu0 %4611  ;;  %v4575_v51 = vpop.permute.xlu1 %4574 }
 0x927   : > { %4601 = vst.msk [vmem:[#allocation3 + $0x8] sm:$0xff] %vm4599_vm0, %v4575_v51 }
 0x928   : > { %4638 = vst.msk [vmem:[#allocation3 + $0x8] sm:$0xff] %vm4636_vm2, %v4612_v42  ;;  %4803 = vrot.lane.b32.xlu1 %v10982_v4, %s7867_s16  ;;  %4805 = vrot.lane.b32.xlu0 %v11069_v57, %s7867_s16  ;;  %v13328_v57 = vld [vmem:[#allocation36_spill] sm:$0xff] }
 0x92a   : > { %v4686_v35 = vpop.permute.xlu0 %4685  ;;  %v4649_v34 = vpop.permute.xlu1 %4648 }
 0x92b   : > { %4675 = vst.msk [vmem:[#allocation3 + $0x8] sm:$0xff] %vm4673_vm13, %v4649_v34 }
 0x92c   : > { %4712 = vst.msk [vmem:[#allocation3 + $0x8] sm:$0xff] %vm4710_vm15, %v4686_v35  ;;  %4807 = vrot.lane.b32.xlu1 %v10985_v25, %s7867_s16  ;;  %4809 = vrot.lane.b32.xlu0 %v11081_v8, %s7867_s16 }
 0x92e   : > { %v4577_v22 = vpop.permute.xlu0 %4576  ;;  %v4540_v12 = vpop.permute.xlu1 %4539 }
 0x92f   : > { %4565 = vst.msk [vmem:[#allocation3 + $0x10] sm:$0xff] %vm4562_vm1, %v4540_v12 }
 0x930   : > { %4602 = vst.msk [vmem:[#allocation3 + $0x10] sm:$0xff] %vm4599_vm0, %v4577_v22  ;;  %4811 = vrot.lane.b32.xlu1 %v11000_v3, %s7867_s16  ;;  %4813 = vrot.lane.b32.xlu0 %v11092_v58, %s7867_s16  ;;  %v13325_v58 = vld [vmem:[#allocation34_spill] sm:$0xff] }
 0x932   : > { %v4651_v59 = vpop.permute.xlu0 %4650  ;;  %v4614_v49 = vpop.permute.xlu1 %4613 }
 0x933   : > { %4639 = vst.msk [vmem:[#allocation3 + $0x10] sm:$0xff] %vm4636_vm2, %v4614_v49 }
 0x934   : > { %4676 = vst.msk [vmem:[#allocation3 + $0x10] sm:$0xff] %vm4673_vm13, %v4651_v59  ;;  %4815 = vrot.lane.b32.xlu1 %v11003_v7, %s7867_s16  ;;  %4817 = vrot.lane.b32.xlu0 %v11101_v62, %s7867_s16 }
 0x936   : > { %v4542_v48 = vpop.permute.xlu0 %4541  ;;  %v4688_v26 = vpop.permute.xlu1 %4687 }
 0x937   : > { %4566 = vst.msk [vmem:[#allocation3 + $0x18] sm:$0xff] %vm4562_vm1, %v4542_v48 }
 0x938   : > { %4713 = vst.msk [vmem:[#allocation3 + $0x10] sm:$0xff] %vm4710_vm15, %v4688_v26 }
 0x93a   : > { %v4616_v24 = vpop.permute.xlu0 %4615  ;;  %v4579_v44 = vpop.permute.xlu1 %4578 }
 0x93b   : > { %4603 = vst.msk [vmem:[#allocation3 + $0x18] sm:$0xff] %vm4599_vm0, %v4579_v44 }
 0x93c   : > { %4640 = vst.msk [vmem:[#allocation3 + $0x18] sm:$0xff] %vm4636_vm2, %v4616_v24 }
 0x93e   : > { %v4690_v36 = vpop.permute.xlu0 %4689  ;;  %v4653_v31 = vpop.permute.xlu1 %4652 }
 0x93f   : > { %4677 = vst.msk [vmem:[#allocation3 + $0x18] sm:$0xff] %vm4673_vm13, %v4653_v31 }
 0x940   : > { %4714 = vst.msk [vmem:[#allocation3 + $0x18] sm:$0xff] %vm4710_vm15, %v4690_v36 }
 0x942   : > { %v4581_v42 = vpop.permute.xlu0 %4580  ;;  %v4544_v51 = vpop.permute.xlu1 %4543 }
 0x943   : > { %4567 = vst.msk [vmem:[#allocation3 + $0x20] sm:$0xff] %vm4562_vm1, %v4544_v51 }
 0x944   : > { %4604 = vst.msk [vmem:[#allocation3 + $0x20] sm:$0xff] %vm4599_vm0, %v4581_v42 }
 0x946   : > { %v4655_v1 = vpop.permute.xlu0 %4654  ;;  %v4618_v9 = vpop.permute.xlu1 %4617 }
 0x947   : > { %4641 = vst.msk [vmem:[#allocation3 + $0x20] sm:$0xff] %vm4636_vm2, %v4618_v9 }
 0x948   : > { %4678 = vst.msk [vmem:[#allocation3 + $0x20] sm:$0xff] %vm4673_vm13, %v4655_v1 }
 0x94a   : > { %v4546_v10 = vpop.permute.xlu0 %4545  ;;  %v4692_v35 = vpop.permute.xlu1 %4691 }
 0x94b   : > { %4568 = vst.msk [vmem:[#allocation3 + $0x28] sm:$0xff] %vm4562_vm1, %v4546_v10 }
 0x94c   : > { %4715 = vst.msk [vmem:[#allocation3 + $0x20] sm:$0xff] %vm4710_vm15, %v4692_v35 }
 0x94e   : > { %v4620_v34 = vpop.permute.xlu0 %4619  ;;  %v4583_v53 = vpop.permute.xlu1 %4582 }
 0x94f   : > { %4605 = vst.msk [vmem:[#allocation3 + $0x28] sm:$0xff] %vm4599_vm0, %v4583_v53 }
 0x950   : > { %4642 = vst.msk [vmem:[#allocation3 + $0x28] sm:$0xff] %vm4636_vm2, %v4620_v34 }
 0x952   : > { %v4585_v17 = vpop.permute.xlu0 %4584  ;;  %v4657_v22 = vpop.permute.xlu1 %4656 }
 0x953   : > { %4679 = vst.msk [vmem:[#allocation3 + $0x28] sm:$0xff] %vm4673_vm13, %v4657_v22 }
 0x956   : > { %v4659_v12 = vpop.permute.xlu0 %4658  ;;  %v4548_v59 = vpop.permute.xlu1 %4547 }
 0x957   : > { %4569 = vst.msk [vmem:[#allocation3 + $0x30] sm:$0xff] %vm4562_vm1, %v4548_v59 }
 0x958   : > { %4606 = vst.msk [vmem:[#allocation3 + $0x30] sm:$0xff] %vm4599_vm0, %v4585_v17 }
 0x95a   : > { %v4550_v49 = vpop.permute.xlu0 %4549  ;;  %v4622_v48 = vpop.permute.xlu1 %4621 }
 0x95b   : > { %4570 = vst.msk [vmem:[#allocation3 + $0x38] sm:$0xff] %vm4562_vm1, %v4550_v49 }
 0x95c   : > { %4643 = vst.msk [vmem:[#allocation3 + $0x30] sm:$0xff] %vm4636_vm2, %v4622_v48 }
 0x95d   : > { %4680 = vst.msk [vmem:[#allocation3 + $0x30] sm:$0xff] %vm4673_vm13, %v4659_v12 }
 0x95e   : > { %v4624_v26 = vpop.permute.xlu0 %4623  ;;  %v4587_v24 = vpop.permute.xlu1 %4586 }
 0x95f   : > { %4607 = vst.msk [vmem:[#allocation3 + $0x38] sm:$0xff] %vm4599_vm0, %v4587_v24  ;;  %v13321_v24 = vld [vmem:[#allocation16_spill] sm:$0xff] }
 0x960   : > { %4644 = vst.msk [vmem:[#allocation3 + $0x38] sm:$0xff] %vm4636_vm2, %v4624_v26 }
 0x962   : > { %v4589_v44 = vpop.permute.xlu0 %4588  ;;  %v4661_v36 = vpop.permute.xlu1 %4660 }
 0x963   : > { %4681 = vst.msk [vmem:[#allocation3 + $0x38] sm:$0xff] %vm4673_vm13, %v4661_v36 }
 0x966   : > { %v4663_v31 = vpop.permute.xlu0 %4662  ;;  %v4552_v42 = vpop.permute.xlu1 %4551 }
 0x967   : > { %4571 = vst.msk [vmem:[#allocation3 + $0x40] sm:$0xff] %vm4562_vm1, %v4552_v42  ;;  %vm13339_vm1 = vmmov %vm13336_vm3 }
 0x968   : > { %4608 = vst.msk [vmem:[#allocation3 + $0x40] sm:$0xff] %vm4599_vm0, %v4589_v44  ;;  %vm13342_vm0 = vmmov %vm13339_vm1 }
 0x969   : > { %vm13345_vm7 = vmmov %vm13342_vm0 }
 0x96a   : > { %v4694_v51 = vpop.permute.xlu0 %4693  ;;  %v4626_v1 = vpop.permute.xlu1 %4625 }
 0x96b   : > { %4716 = vst.msk [vmem:[#allocation3 + $0x28] sm:$0xff] %vm4710_vm15, %v4694_v51 }
 0x96c   : > { %4645 = vst.msk [vmem:[#allocation3 + $0x40] sm:$0xff] %vm4636_vm2, %v4626_v1  ;;  %v13323_v1 = vld [vmem:[#allocation26_spill] sm:$0xff]  ;;  %vm5098_vm2 = vcmask 261360  }
 0x96d   : > { %4682 = vst.msk [vmem:[#allocation3 + $0x40] sm:$0xff] %vm4673_vm13, %v4663_v31  ;;  %vm5135_vm13 = vcmask 277760  }
 0x96e   : > { %v4698_v9 = vpop.permute.xlu0 %4697  ;;  %v4696_v10 = vpop.permute.xlu1 %4695 }
 0x96f   : > { %4718 = vst.msk [vmem:[#allocation3 + $0x38] sm:$0xff] %vm4710_vm15, %v4698_v9  ;;  %4717 = vst.msk [vmem:[#allocation3 + $0x30] sm:$0xff] %vm4710_vm15, %v4696_v10 }
 0x972   : > { %v11139_v35 = vpop.permute.xlu0 %4729  ;;  %v4700_v34 = vpop.permute.xlu1 %4699 }
 0x973   : > { %4719 = vst.msk [vmem:[#allocation3 + $0x40] sm:$0xff] %vm4710_vm15, %v4700_v34  ;;  %v4756_v44 = vadd.f32 %v11139_v35, %v13321_v24 }
 0x976   : > { %v11142_v53 = vpop.permute.xlu0 %4733  ;;  %v11144_v17 = vpop.permute.xlu1 %4731 }
 0x977   : > { %13314 = vst [vmem:[#allocation73_spill] sm:$0xff] %v11142_v53  ;;  %v4758_v9 = vadd.f32 %v11144_v17, %v13323_v1  ;;  %v4760_v8 = vadd.f32 %v11142_v53, %v13325_v58 }
 0x97a   : > { %v11146_v22 = vpop.permute.xlu0 %4737  ;;  %v11148_v12 = vpop.permute.xlu1 %4735 }
 0x97b   : > { %13315 = vst [vmem:[#allocation74_spill] sm:$0xff] %v11146_v22  ;;  %13316 = vst [vmem:[#allocation75_spill] sm:$0xff] %v11148_v12  ;;  %v4762_v33 = vadd.f32 %v11148_v12, %v13328_v57  ;;  %v4764_v60 = vadd.f32 %v11146_v22, %v13331_v18 }
 0x97e   : > { %v11150_v59 = vpop.permute.xlu0 %4741  ;;  %v11152_v49 = vpop.permute.xlu1 %4739 }
 0x97f   : > { %13317 = vst [vmem:[#allocation76_spill] sm:$0xff] %v11150_v59  ;;  %13318 = vst [vmem:[#allocation77_spill] sm:$0xff] %v11152_v49  ;;  %v4766_v23 = vadd.f32 %v11152_v49, %v13334_v29  ;;  %v4768_v16 = vadd.f32 %v11150_v59, %v13337_v19 }
 0x982   : > { %v11154_v48 = vpop.permute.xlu0 %4745  ;;  %v11156_v26 = vpop.permute.xlu1 %4743 }
 0x983   : > { %13319 = vst [vmem:[#allocation78_spill] sm:$0xff] %v11154_v48  ;;  %13320 = vst [vmem:[#allocation79_spill] sm:$0xff] %v11156_v26  ;;  %v4770_v45 = vadd.f32 %v11156_v26, %v13340_v6  ;;  %v4772_v11 = vadd.f32 %v11154_v48, %v13343_v28 }
 0x986   : > { %v11160_v36 = vpop.permute.xlu0 %4785  ;;  %v4784_v31 = vpop.permute.xlu1 %4783 }
 0x987   : > { %v4819_v42 = vsel %vm13322_vm4, %v4784_v31, %v11160_v36 }
 0x988   : > { %v11164_v51 = vadd.f32 %v4819_v42, %v4756_v44 }
 0x98a   : > { %v11168_v10 = vpop.permute.xlu0 %4789  ;;  %4873 = vrot.lane.b32.xlu1 %v11164_v51, %s7874_s14  ;;  %v4788_v34 = vpop.permute.xlu1 %4787 }
 0x98b   : > { %v4820_v24 = vsel %vm13324_vm5, %v4788_v34, %v11168_v10 }
 0x98c   : > { %v11174_v62 = vadd.f32 %v4820_v24, %v4758_v9 }
 0x98e   : > { %v11178_v31 = vpop.permute.xlu0 %4793  ;;  %4875 = vrot.lane.b32.xlu0 %v11174_v62, %s7874_s14  ;;  %v4792_v44 = vpop.permute.xlu1 %4791 }
 0x98f   : > { %13326 = vst [vmem:[#allocation16_spill] sm:$0xff] %v11178_v31  ;;  %v4821_v42 = vsel %vm13327_vm10, %v4792_v44, %v11178_v31 }
 0x990   : > { %v11184_v1 = vadd.f32 %v4821_v42, %v4760_v8 }
 0x992   : > { %v11188_v34 = vpop.permute.xlu0 %4797  ;;  %4877 = vrot.lane.b32.xlu1 %v11184_v1, %s7874_s14  ;;  %v4796_v58 = vpop.permute.xlu1 %4795 }
 0x993   : > { %13329 = vst [vmem:[#allocation26_spill] sm:$0xff] %v11188_v34  ;;  %v4822_v9 = vsel %vm13330_vm6, %v4796_v58, %v11188_v34 }
 0x994   : > { %v11194_v24 = vadd.f32 %v4822_v9, %v4762_v33 }
 0x996   : > { %v11198_v44 = vpop.permute.xlu0 %4801  ;;  %4879 = vrot.lane.b32.xlu0 %v11194_v24, %s7874_s14  ;;  %v4800_v57 = vpop.permute.xlu1 %4799 }
 0x997   : > { %13332 = vst [vmem:[#allocation34_spill] sm:$0xff] %v11198_v44  ;;  %v4823_v8 = vsel %vm13333_vm8, %v4800_v57, %v11198_v44 }
 0x998   : > { %v11204_v42 = vadd.f32 %v4823_v8, %v4764_v60 }
 0x99a   : > { %v11208_v58 = vpop.permute.xlu0 %4805  ;;  %4881 = vrot.lane.b32.xlu1 %v11204_v42, %s7874_s14  ;;  %v4804_v18 = vpop.permute.xlu1 %4803 }
 0x99b   : > { %13335 = vst [vmem:[#allocation36_spill] sm:$0xff] %v11208_v58  ;;  %v4824_v33 = vsel %vm13336_vm3, %v4804_v18, %v11208_v58 }
 0x99c   : > { %v11214_v9 = vadd.f32 %v4824_v33, %v4766_v23 }
 0x99e   : > { %v11218_v57 = vpop.permute.xlu0 %4809  ;;  %4883 = vrot.lane.b32.xlu0 %v11214_v9, %s7874_s14  ;;  %v4808_v29 = vpop.permute.xlu1 %4807 }
 0x99f   : > { %13338 = vst [vmem:[#allocation39_spill] sm:$0xff] %v11218_v57  ;;  %v4825_v60 = vsel %vm13339_vm1, %v4808_v29, %v11218_v57 }
 0x9a0   : > { %v11224_v8 = vadd.f32 %v4825_v60, %v4768_v16 }
 0x9a2   : > { %v11228_v18 = vpop.permute.xlu0 %4813  ;;  %4885 = vrot.lane.b32.xlu1 %v11224_v8, %s7874_s14  ;;  %v4812_v19 = vpop.permute.xlu1 %4811 }
 0x9a3   : > { %13341 = vst [vmem:[#allocation38_spill] sm:$0xff] %v11228_v18  ;;  %v4826_v23 = vsel %vm13342_vm0, %v4812_v19, %v11228_v18 }
 0x9a4   : > { %v11234_v33 = vadd.f32 %v4826_v23, %v4770_v45 }
 0x9a6   : > { %v11238_v29 = vpop.permute.xlu0 %4817  ;;  %4887 = vrot.lane.b32.xlu0 %v11234_v33, %s7874_s14  ;;  %v4816_v16 = vpop.permute.xlu1 %4815 }
 0x9a7   : > { %13344 = vst [vmem:[#allocation66_spill] sm:$0xff] %v11238_v29  ;;  %v4827_v6 = vsel %vm13345_vm7, %v4816_v16, %v11238_v29 }
 0x9a8   : > { %v11244_v60 = vadd.f32 %v4827_v6, %v4772_v11 }
 0x9aa   : > { %4909 = vrot.lane.b32.xlu0 %v11164_v51, %s7875_s20  ;;  %4889 = vrot.lane.b32.xlu1 %v11244_v60, %s7874_s14 }
 0x9ae   : > { %4913 = vrot.lane.b32.xlu0 %v11184_v1, %s7875_s20  ;;  %4911 = vrot.lane.b32.xlu1 %v11174_v62, %s7875_s20 }
 0x9b2   : > { %4917 = vrot.lane.b32.xlu0 %v11204_v42, %s7875_s20  ;;  %4915 = vrot.lane.b32.xlu1 %v11194_v24, %s7875_s20 }
 0x9b6   : > { %4921 = vrot.lane.b32.xlu0 %v11224_v8, %s7875_s20  ;;  %4919 = vrot.lane.b32.xlu1 %v11214_v9, %s7875_s20 }
 0x9ba   : > { %4925 = vrot.lane.b32.xlu0 %v11244_v60, %s7875_s20  ;;  %4923 = vrot.lane.b32.xlu1 %v11234_v33, %s7875_s20 }
 0x9be   : > { %4947 = vrot.lane.b32.xlu0 %v11174_v62, %s7872_s26  ;;  %4945 = vrot.lane.b32.xlu1 %v11164_v51, %s7872_s26 }
 0x9c2   : > { %4951 = vrot.lane.b32.xlu0 %v11194_v24, %s7872_s26  ;;  %4949 = vrot.lane.b32.xlu1 %v11184_v1, %s7872_s26 }
 0x9c6   : > { %4955 = vrot.lane.b32.xlu0 %v11214_v9, %s7872_s26  ;;  %4953 = vrot.lane.b32.xlu1 %v11204_v42, %s7872_s26 }
 0x9ca   : > { %4959 = vrot.lane.b32.xlu0 %v11234_v33, %s7872_s26  ;;  %4957 = vrot.lane.b32.xlu1 %v11224_v8, %s7872_s26 }
 0x9ce   : > { %4981 = vrot.lane.b32.xlu0 %v11164_v51, %s7876_s28  ;;  %4961 = vrot.lane.b32.xlu1 %v11244_v60, %s7872_s26 }
 0x9d2   : > { %4985 = vrot.lane.b32.xlu0 %v11184_v1, %s7876_s28  ;;  %4983 = vrot.lane.b32.xlu1 %v11174_v62, %s7876_s28 }
 0x9d6   : > { %4989 = vrot.lane.b32.xlu0 %v11204_v42, %s7876_s28  ;;  %4987 = vrot.lane.b32.xlu1 %v11194_v24, %s7876_s28 }
 0x9da   : > { %4993 = vrot.lane.b32.xlu0 %v11224_v8, %s7876_s28  ;;  %4991 = vrot.lane.b32.xlu1 %v11214_v9, %s7876_s28 }
 0x9de   : > { %4997 = vrot.lane.b32.xlu0 %v11244_v60, %s7876_s28  ;;  %4995 = vrot.lane.b32.xlu1 %v11234_v33, %s7876_s28 }
 0x9e2   : > { %5019 = vrot.lane.b32.xlu0 %v11174_v62, %s7877_s29  ;;  %5017 = vrot.lane.b32.xlu1 %v11164_v51, %s7877_s29 }
 0x9e6   : > { %5023 = vrot.lane.b32.xlu0 %v11194_v24, %s7877_s29  ;;  %5021 = vrot.lane.b32.xlu1 %v11184_v1, %s7877_s29 }
 0x9ea   : > { %5027 = vrot.lane.b32.xlu0 %v11214_v9, %s7877_s29  ;;  %5025 = vrot.lane.b32.xlu1 %v11204_v42, %s7877_s29 }
 0x9ee   : > { %5031 = vrot.lane.b32.xlu0 %v11234_v33, %s7877_s29  ;;  %5029 = vrot.lane.b32.xlu1 %v11224_v8, %s7877_s29 }
 0x9f2   : > { %5033 = vrot.lane.b32.xlu1 %v11244_v60, %s7877_s29 }
 0x9fc   : > { %v4874_v28 = vpop.permute.xlu1 %4873 }
 0x9fd   : > { %v4900_v3 = vadd.f32 %v4874_v28, %v11164_v51 }
 0xa00   : > { %v4876_v45 = vpop.permute.xlu0 %4875 }
 0xa01   : > { %v4901_v59 = vadd.f32 %v4876_v45, %v11174_v62 }
 0xa04   : > { %v4878_v11 = vpop.permute.xlu1 %4877 }
 0xa05   : > { %v4902_v4 = vadd.f32 %v4878_v11, %v11184_v1 }
 0xa08   : > { %v4880_v19 = vpop.permute.xlu0 %4879 }
 0xa09   : > { %v4903_v22 = vadd.f32 %v4880_v19, %v11194_v24 }
 0xa0c   : > { %v4882_v23 = vpop.permute.xlu1 %4881 }
 0xa0d   : > { %v4904_v51 = vadd.f32 %v4882_v23, %v11204_v42  ;;  %v4759_v23 = vadd.f32 %v11144_v17, %v10941_v54 }
 0xa10   : > { %v4884_v16 = vpop.permute.xlu0 %4883 }
 0xa11   : > { %v4905_v62 = vadd.f32 %v4884_v16, %v11214_v9 }
 0xa14   : > { %v4886_v6 = vpop.permute.xlu1 %4885 }
 0xa18   : > { %v4888_v50 = vpop.permute.xlu0 %4887 }
 0xa1c   : > { %v4910_v20 = vpop.permute.xlu0 %4909  ;;  %v11320_v39 = vpop.permute.xlu1 %4889 }
 0xa1d   : > { %v4936_v25 = vadd.f32 %v4910_v20, %v4900_v3 }
 0xa20   : > { %v4914_v5 = vpop.permute.xlu0 %4913  ;;  %v4912_v30 = vpop.permute.xlu1 %4911 }
 0xa21   : > { %v4937_v58 = vadd.f32 %v4912_v30, %v4901_v59  ;;  %v4938_v31 = vadd.f32 %v4914_v5, %v4902_v4  ;;  %v4906_v4 = vadd.f32 %v4886_v6, %v11224_v8  ;;  %v11391_v6 = vadd.f32 %v11168_v10, %v4759_v23  ;;  %v13352_v10 = vld [vmem:[#allocation74_spill] sm:$0xff] }
 0xa24   : > { %v4918_v27 = vpop.permute.xlu0 %4917  ;;  %v4916_v21 = vpop.permute.xlu1 %4915 }
 0xa25   : > { %v4939_v12 = vadd.f32 %v4916_v21, %v4903_v22 }
 0xa28   : > { %v4922_v13 = vpop.permute.xlu0 %4921  ;;  %v4920_v46 = vpop.permute.xlu1 %4919 }
 0xa2c   : > { %v11322_v40 = vpop.permute.xlu0 %4925  ;;  %v4924_v37 = vpop.permute.xlu1 %4923 }
 0xa30   : > { %v4948_v0 = vpop.permute.xlu0 %4947  ;;  %v4946_v61 = vpop.permute.xlu1 %4945 }
 0xa31   : > { %v4973_v38 = vadd.f32 %v4948_v0, %v4937_v58  ;;  %v4972_v34 = vadd.f32 %v4946_v61, %v4936_v25  ;;  %v4940_v0 = vadd.f32 %v4918_v27, %v4904_v51  ;;  %v4941_v61 = vadd.f32 %v4920_v46, %v4905_v62  ;;  %v13346_v51 = vld [vmem:[#allocation73_spill] sm:$0xff] }
 0xa32   : > { %v4907_v25 = vadd.f32 %v4888_v50, %v11234_v33  ;;  %v4942_v46 = vadd.f32 %v4922_v13, %v4906_v4  ;;  %v4761_v62 = vadd.f32 %v13346_v51, %v10944_v2  ;;  %v13354_v2 = vld [vmem:[#allocation77_spill] sm:$0xff]  ;;  %v13357_v4 = vld [vmem:[#allocation72_spill] sm:$0xff] }
 0xa34   : > { %v4952_v14 = vpop.permute.xlu0 %4951  ;;  %v4950_v41 = vpop.permute.xlu1 %4949  ;;  %v4943_v27 = vadd.f32 %v4924_v37, %v4907_v25  ;;  %v13358_v25 = vld [vmem:[#allocation76_spill] sm:$0xff] }
 0xa35   : > { %v4975_v3 = vadd.f32 %v4952_v14, %v4939_v12  ;;  %v4974_v59 = vadd.f32 %v4950_v41, %v4938_v31 }
 0xa38   : > { %v4956_v15 = vpop.permute.xlu0 %4955  ;;  %v4954_v43 = vpop.permute.xlu1 %4953 }
 0xa39   : > { %v4977_v22 = vadd.f32 %v4956_v15, %v4941_v61  ;;  %v4976_v41 = vadd.f32 %v4954_v43, %v4940_v0  ;;  %v4908_v43 = vadd.f32 %v11320_v39, %v11244_v60  ;;  %v13355_v0 = vld [vmem:[#allocation34_spill] sm:$0xff] }
 0xa3b   : > { %v4944_v37 = vadd.f32 %v11322_v40, %v4908_v43 }
 0xa3c   : > { %v4960_v52 = vpop.permute.xlu0 %4959  ;;  %v4958_v63 = vpop.permute.xlu1 %4957 }
 0xa3d   : > { %v4979_v58 = vadd.f32 %v4960_v52, %v4943_v27 }
 0xa40   : > { %v4982_v55 = vpop.permute.xlu0 %4981  ;;  %v11324_v56 = vpop.permute.xlu1 %4961 }
 0xa41   : > { %v11330_v32 = vadd.f32 %v4982_v55, %v4972_v34 }
 0xa44   : > { %v4986_v29 = vpop.permute.xlu0 %4985  ;;  %v4984_v48 = vpop.permute.xlu1 %4983 }
 0xa45   : > { %v11332_v53 = vadd.f32 %v4984_v48, %v4973_v38  ;;  %v11338_v5 = vadd.f32 %v4986_v29, %v4974_v59 }
 0xa48   : > { %v4990_v7 = vpop.permute.xlu0 %4989  ;;  %v4988_v18 = vpop.permute.xlu1 %4987 }
 0xa49   : > { %v11340_v55 = vadd.f32 %v4988_v18, %v4975_v3  ;;  %v11348_v34 = vadd.f32 %v4990_v7, %v4976_v41  ;;  %v4978_v18 = vadd.f32 %v4958_v63, %v4942_v46  ;;  %v4980_v63 = vadd.f32 %v11324_v56, %v4944_v37  ;;  %v13362_v46 = vld [vmem:[#allocation38_spill] sm:$0xff] }
 0xa4c   : > { %v4994_v57 = vpop.permute.xlu0 %4993  ;;  %v4992_v26 = vpop.permute.xlu1 %4991 }
 0xa4d   : > { %v11350_v42 = vadd.f32 %v4992_v26, %v4977_v22  ;;  %v11359_v13 = vadd.f32 %v4994_v57, %v4978_v18  ;;  %v4769_v22 = vadd.f32 %v13358_v25, %v13357_v4 }
 0xa50   : > { %v4998_v44 = vpop.permute.xlu0 %4997  ;;  %v4996_v49 = vpop.permute.xlu1 %4995 }
 0xa51   : > { %v11361_v7 = vadd.f32 %v4996_v49, %v4979_v58  ;;  %v11368_v11 = vadd.f32 %v4998_v44, %v4980_v63  ;;  %v4757_v44 = vadd.f32 %v11139_v35, %v10924_v47  ;;  %v13349_v47 = vld [vmem:[#allocation16_spill] sm:$0xff]  ;;  %v13350_v35 = vld [vmem:[#allocation26_spill] sm:$0xff] }
 0xa52   : > { %v11402_v54 = vadd.f32 %v13349_v47, %v4761_v62  ;;  %v13365_v58 = vld [vmem:[#allocation66_spill] sm:$0xff] }
 0xa53   : > { %v11388_v16 = vadd.f32 %v11160_v36, %v4757_v44  ;;  %v13351_v36 = vld [vmem:[#allocation57_spill] sm:$0xff] }
 0xa54   : > { %v5020_v20 = vpop.permute.xlu0 %5019  ;;  %v5018_v30 = vpop.permute.xlu1 %5017  ;;  %v4765_v59 = vadd.f32 %v13352_v10, %v13351_v36 }
 0xa55   : > { %v5045_v1 = vadd.f32 %v5020_v20, %v11332_v53  ;;  %v5044_v24 = vadd.f32 %v5018_v30, %v11330_v32  ;;  %v13347_v20 = vld [vmem:[#allocation71_spill] sm:$0xff] }
 0xa56   : > { %v13348_v30 = vld [vmem:[#allocation75_spill] sm:$0xff]  ;;  %v11416_v61 = vadd.f32 %v13355_v0, %v4765_v59 }
 0xa57   : > { %v5054_v21 = vmul.f32 0.055555556, %v5045_v1  ;;  %v5053_v38 = vmul.f32 0.055555556, %v5044_v24  ;;  %v4763_v3 = vadd.f32 %v13348_v30, %v13347_v20  ;;  %v13353_v1 = vld [vmem:[#allocation62_spill] sm:$0xff] }
 0xa58   : > { %v5024_v48 = vpop.permute.xlu0 %5023  ;;  %v5022_v14 = vpop.permute.xlu1 %5021  ;;  %v4767_v24 = vadd.f32 %v13354_v2, %v13353_v1 }
 0xa59   : > { %v5047_v12 = vadd.f32 %v5024_v48, %v11340_v55  ;;  %v5046_v31 = vadd.f32 %v5022_v14, %v11338_v5  ;;  %5073 = vrot.lane.b32.xlu1 %v5054_v21, %s7891_s30  ;;  %5071 = vrot.lane.b32.xlu0 %v5053_v38, %s7891_s30  ;;  %v11405_v17 = vadd.f32 %v13350_v35, %v4763_v3  ;;  %v13359_v48 = vld [vmem:[#allocation63_spill] sm:$0xff] }
 0xa5a   : > { %v13360_v14 = vld [vmem:[#allocation79_spill] sm:$0xff] }
 0xa5b   : > { %v5056_v50 = vmul.f32 0.055555556, %v5047_v12  ;;  %v5055_v15 = vmul.f32 0.055555556, %v5046_v31  ;;  %v4771_v41 = vadd.f32 %v13360_v14, %v13359_v48  ;;  %v13361_v12 = vld [vmem:[#allocation39_spill] sm:$0xff] }
 0xa5c   : > { %v5028_v9 = vpop.permute.xlu0 %5027  ;;  %v5026_v8 = vpop.permute.xlu1 %5025  ;;  %v11430_v31 = vadd.f32 %v13361_v12, %v4769_v22 }
 0xa5d   : > { %v5049_v33 = vadd.f32 %v5028_v9, %v11350_v42  ;;  %v5048_v29 = vadd.f32 %v5026_v8, %v11348_v34  ;;  %5077 = vrot.lane.b32.xlu1 %v5056_v50, %s7891_s30  ;;  %5075 = vrot.lane.b32.xlu0 %v5055_v15, %s7891_s30  ;;  %v11433_v27 = vadd.f32 %v13362_v46, %v4771_v41 }
 0xa5f   : > { %v5058_v26 = vmul.f32 0.055555556, %v5049_v33  ;;  %v5057_v39 = vmul.f32 0.055555556, %v5048_v29 }
 0xa60   : > { %v5032_v52 = vpop.permute.xlu0 %5031  ;;  %v5030_v60 = vpop.permute.xlu1 %5029 }
 0xa61   : > { %v5051_v28 = vadd.f32 %v5032_v52, %v11361_v7  ;;  %v5050_v45 = vadd.f32 %v5030_v60, %v11359_v13  ;;  %5081 = vrot.lane.b32.xlu1 %v5058_v26, %s7891_s30  ;;  %5079 = vrot.lane.b32.xlu0 %v5057_v39, %s7891_s30 }
 0xa63   : > { %v5060_v40 = vmul.f32 0.055555556, %v5051_v28  ;;  %v5059_v57 = vmul.f32 0.055555556, %v5050_v45 }
 0xa64   : > { %v5034_v49 = vpop.permute.xlu1 %5033 }
 0xa65   : > { %v5052_v19 = vadd.f32 %v5034_v49, %v11368_v11  ;;  %5085 = vrot.lane.b32.xlu1 %v5060_v40, %s7891_s30  ;;  %5083 = vrot.lane.b32.xlu0 %v5059_v57, %s7891_s30 }
 0xa67   : > { %v5061_v56 = vmul.f32 0.055555556, %v5052_v19 }
 0xa69   : > { %5108 = vrot.lane.b32.xlu1 %v5053_v38, %s7866_s15  ;;  %5087 = vrot.lane.b32.xlu0 %v5061_v56, %s7891_s30  ;;  %s7896_s30 = smov 72  }
 0xa6d   : > { %5112 = vrot.lane.b32.xlu1 %v5055_v15, %s7866_s15  ;;  %5110 = vrot.lane.b32.xlu0 %v5054_v21, %s7866_s15  ;;  %v13356_v21 = vld [vmem:[#allocation36_spill] sm:$0xff]  ;;  %v13364_v15 = vld [vmem:[#allocation78_spill] sm:$0xff] }
 0xa6e   : > { %v11419_v38 = vadd.f32 %v13356_v21, %v4767_v24 }
 0xa71   : > { %5116 = vrot.lane.b32.xlu1 %v5057_v39, %s7866_s15  ;;  %5114 = vrot.lane.b32.xlu0 %v5056_v50, %s7866_s15  ;;  %v13363_v50 = vld [vmem:[#allocation7_spill] sm:$0xff] }
 0xa72   : > { %v4773_v43 = vadd.f32 %v13364_v15, %v13363_v50 }
 0xa74   : > { %v11442_v9 = vadd.f32 %v13365_v58, %v4773_v43 }
 0xa75   : > { %5120 = vrot.lane.b32.xlu1 %v5059_v57, %s7866_s15  ;;  %5118 = vrot.lane.b32.xlu0 %v5058_v26, %s7866_s15 }
 0xa79   : > { %5124 = vrot.lane.b32.xlu1 %v5061_v56, %s7866_s15  ;;  %5122 = vrot.lane.b32.xlu0 %v5060_v40, %s7866_s15 }
 0xa7d   : > { %5156 = vrot.lane.b32.xlu1 %v11391_v6, %s7877_s29  ;;  %5154 = vrot.lane.b32.xlu0 %v11388_v16, %s7877_s29 }
 0xa81   : > { %5160 = vrot.lane.b32.xlu1 %v11405_v17, %s7877_s29  ;;  %5158 = vrot.lane.b32.xlu0 %v11402_v54, %s7877_s29 }
 0xa85   : > { %5164 = vrot.lane.b32.xlu1 %v11419_v38, %s7877_s29  ;;  %5162 = vrot.lane.b32.xlu0 %v11416_v61, %s7877_s29 }
 0xa89   : > { %5168 = vrot.lane.b32.xlu1 %v11433_v27, %s7877_s29  ;;  %5166 = vrot.lane.b32.xlu0 %v11430_v31, %s7877_s29 }
 0xa8d   : > { %5170 = vrot.lane.b32.xlu0 %v11442_v9, %s7877_s29 }
 0xacb   : > { %v5072_v8 = vpop.permute.xlu0 %5071  ;;  %v5074_v18 = vpop.permute.xlu1 %5073 }
 0xacc   : > { %5099 = vst.msk [vmem:[#allocation3] sm:$0xff] %vm5098_vm2, %v5072_v8  ;;  %5100 = vst.msk [vmem:[#allocation3 + $0x8] sm:$0xff] %vm5098_vm2, %v5074_v18 }
 0xacf   : > { %v5076_v33 = vpop.permute.xlu0 %5075  ;;  %v5078_v29 = vpop.permute.xlu1 %5077 }
 0xad0   : > { %5101 = vst.msk [vmem:[#allocation3 + $0x10] sm:$0xff] %vm5098_vm2, %v5076_v33  ;;  %5102 = vst.msk [vmem:[#allocation3 + $0x18] sm:$0xff] %vm5098_vm2, %v5078_v29 }
 0xad3   : > { %v5080_v37 = vpop.permute.xlu0 %5079  ;;  %v5082_v26 = vpop.permute.xlu1 %5081 }
 0xad4   : > { %5103 = vst.msk [vmem:[#allocation3 + $0x20] sm:$0xff] %vm5098_vm2, %v5080_v37  ;;  %5104 = vst.msk [vmem:[#allocation3 + $0x28] sm:$0xff] %vm5098_vm2, %v5082_v26 }
 0xad7   : > { %v5084_v39 = vpop.permute.xlu0 %5083  ;;  %v5086_v52 = vpop.permute.xlu1 %5085 }
 0xad8   : > { %5105 = vst.msk [vmem:[#allocation3 + $0x30] sm:$0xff] %vm5098_vm2, %v5084_v39  ;;  %5106 = vst.msk [vmem:[#allocation3 + $0x38] sm:$0xff] %vm5098_vm2, %v5086_v52 }
 0xadb   : > { %v5088_v60 = vpop.permute.xlu0 %5087  ;;  %v5109_v63 = vpop.permute.xlu1 %5108 }
 0xadc   : > { %5107 = vst.msk [vmem:[#allocation3 + $0x40] sm:$0xff] %vm5098_vm2, %v5088_v60 }
 0xadd   : > { %5136 = vst.msk [vmem:[#allocation3] sm:$0xff] %vm5135_vm13, %v5109_v63 }
 0xadf   : > { %v5111_v28 = vpop.permute.xlu0 %5110  ;;  %v5113_v45 = vpop.permute.xlu1 %5112 }
 0xae0   : > { %5137 = vst.msk [vmem:[#allocation3 + $0x8] sm:$0xff] %vm5135_vm13, %v5111_v28  ;;  %5138 = vst.msk [vmem:[#allocation3 + $0x10] sm:$0xff] %vm5135_vm13, %v5113_v45 }
 0xae3   : > { %v5115_v40 = vpop.permute.xlu0 %5114  ;;  %v5117_v57 = vpop.permute.xlu1 %5116 }
 0xae4   : > { %5139 = vst.msk [vmem:[#allocation3 + $0x18] sm:$0xff] %vm5135_vm13, %v5115_v40  ;;  %5140 = vst.msk [vmem:[#allocation3 + $0x20] sm:$0xff] %vm5135_vm13, %v5117_v57 }
 0xae7   : > { %v5119_v49 = vpop.permute.xlu0 %5118  ;;  %v5121_v19 = vpop.permute.xlu1 %5120 }
 0xae8   : > { %5141 = vst.msk [vmem:[#allocation3 + $0x28] sm:$0xff] %vm5135_vm13, %v5119_v49  ;;  %5142 = vst.msk [vmem:[#allocation3 + $0x30] sm:$0xff] %vm5135_vm13, %v5121_v19 }
 0xaeb   : > { %v5123_v56 = vpop.permute.xlu0 %5122  ;;  %v5125_v44 = vpop.permute.xlu1 %5124 }
 0xaec   : > { %5143 = vst.msk [vmem:[#allocation3 + $0x38] sm:$0xff] %vm5135_vm13, %v5123_v56  ;;  %5144 = vst.msk [vmem:[#allocation3 + $0x40] sm:$0xff] %vm5135_vm13, %v5125_v44 }
 0xaef   : > { %v11464_v23 = vpop.permute.xlu0 %5154  ;;  %v11466_v51 = vpop.permute.xlu1 %5156 }
 0xaf0   : > { %v5181_v62 = vadd.f32 %v11464_v23, %v11330_v32  ;;  %v5182_v20 = vadd.f32 %v11466_v51, %v11332_v53 }
 0xaf2   : > { %v5190_v30 = vmul.f32 0.055555556, %v5181_v62  ;;  %v5191_v3 = vmul.f32 0.055555556, %v5182_v20 }
 0xaf3   : > { %v11472_v47 = vpop.permute.xlu0 %5158  ;;  %v11474_v35 = vpop.permute.xlu1 %5160 }
 0xaf4   : > { %v5183_v36 = vadd.f32 %v11472_v47, %v11338_v5  ;;  %v5184_v10 = vadd.f32 %v11474_v35, %v11340_v55  ;;  %5208 = vrot.lane.b32.xlu1 %v5190_v30, %s13366_s19  ;;  %5210 = vrot.lane.b32.xlu0 %v5191_v3, %s13366_s19 }
 0xaf6   : > { %v5192_v32 = vmul.f32 0.055555556, %v5183_v36  ;;  %v5193_v59 = vmul.f32 0.055555556, %v5184_v10 }
 0xaf7   : > { %v11482_v1 = vpop.permute.xlu0 %5162  ;;  %v11484_v53 = vpop.permute.xlu1 %5164 }
 0xaf8   : > { %v5185_v2 = vadd.f32 %v11482_v1, %v11348_v34  ;;  %v5186_v24 = vadd.f32 %v11484_v53, %v11350_v42  ;;  %5212 = vrot.lane.b32.xlu1 %v5192_v32, %s13366_s19  ;;  %5214 = vrot.lane.b32.xlu0 %v5193_v59, %s13366_s19 }
 0xafa   : > { %v5194_v5 = vmul.f32 0.055555556, %v5185_v2  ;;  %v5195_v55 = vmul.f32 0.055555556, %v5186_v24 }
 0xafb   : > { %v11492_v0 = vpop.permute.xlu0 %5166  ;;  %v11494_v21 = vpop.permute.xlu1 %5168 }
 0xafc   : > { %v5187_v4 = vadd.f32 %v11492_v0, %v11359_v13  ;;  %v5188_v25 = vadd.f32 %v11494_v21, %v11361_v7  ;;  %5216 = vrot.lane.b32.xlu1 %v5194_v5, %s13366_s19  ;;  %5218 = vrot.lane.b32.xlu0 %v5195_v55, %s13366_s19 }
 0xafe   : > { %v5196_v34 = vmul.f32 0.055555556, %v5187_v4  ;;  %v5197_v42 = vmul.f32 0.055555556, %v5188_v25 }
 0xaff   : > { %v11502_v22 = vpop.permute.xlu0 %5170 }
 0xb00   : > { %v5189_v48 = vadd.f32 %v11502_v22, %v11368_v11  ;;  %5220 = vrot.lane.b32.xlu1 %v5196_v34, %s13366_s19  ;;  %5222 = vrot.lane.b32.xlu0 %v5197_v42, %s13366_s19 }
 0xb02   : > { %v5198_v14 = vmul.f32 0.055555556, %v5189_v48 }
 0xb04   : > { %5224 = vrot.lane.b32.xlu1 %v5198_v14, %s13366_s19  ;;  %5245 = vrot.lane.b32.xlu0 %v11388_v16, %s7874_s14  ;;  %s7622_s19 = smul.u32 432, %s13449_s21  ;;  %s7897_s21 = smov 110  }
 0xb08   : > { %5247 = vrot.lane.b32.xlu1 %v11391_v6, %s7874_s14  ;;  %5249 = vrot.lane.b32.xlu0 %v11402_v54, %s7874_s14 }
 0xb0c   : > { %5251 = vrot.lane.b32.xlu1 %v11405_v17, %s7874_s14  ;;  %5253 = vrot.lane.b32.xlu0 %v11416_v61, %s7874_s14 }
 0xb10   : > { %5255 = vrot.lane.b32.xlu1 %v11419_v38, %s7874_s14  ;;  %5257 = vrot.lane.b32.xlu0 %v11430_v31, %s7874_s14 }
 0xb14   : > { %5259 = vrot.lane.b32.xlu1 %v11433_v27, %s7874_s14  ;;  %5261 = vrot.lane.b32.xlu0 %v11442_v9, %s7874_s14 }
 0xb18   : > { %5281 = vrot.lane.b32.xlu1 %v11388_v16, %s7875_s20  ;;  %5283 = vrot.lane.b32.xlu0 %v11391_v6, %s7875_s20 }
 0xb1c   : > { %5285 = vrot.lane.b32.xlu1 %v11402_v54, %s7875_s20  ;;  %5287 = vrot.lane.b32.xlu0 %v11405_v17, %s7875_s20 }
 0xb20   : > { %5289 = vrot.lane.b32.xlu1 %v11416_v61, %s7875_s20  ;;  %5291 = vrot.lane.b32.xlu0 %v11419_v38, %s7875_s20 }
 0xb24   : > { %5293 = vrot.lane.b32.xlu1 %v11430_v31, %s7875_s20  ;;  %5295 = vrot.lane.b32.xlu0 %v11433_v27, %s7875_s20 }
 0xb28   : > { %5297 = vrot.lane.b32.xlu1 %v11442_v9, %s7875_s20  ;;  %5317 = vrot.lane.b32.xlu0 %v11388_v16, %s7872_s26 }
 0xb2c   : > { %5319 = vrot.lane.b32.xlu1 %v11391_v6, %s7872_s26  ;;  %5321 = vrot.lane.b32.xlu0 %v11402_v54, %s7872_s26 }
 0xb30   : > { %5323 = vrot.lane.b32.xlu1 %v11405_v17, %s7872_s26  ;;  %5325 = vrot.lane.b32.xlu0 %v11416_v61, %s7872_s26 }
 0xb34   : > { %5327 = vrot.lane.b32.xlu1 %v11419_v38, %s7872_s26  ;;  %5329 = vrot.lane.b32.xlu0 %v11430_v31, %s7872_s26 }
 0xb38   : > { %5331 = vrot.lane.b32.xlu1 %v11433_v27, %s7872_s26  ;;  %5333 = vrot.lane.b32.xlu0 %v11442_v9, %s7872_s26 }
 0xb3c   : > { %5353 = vrot.lane.b32.xlu1 %v11388_v16, %s7876_s28  ;;  %5355 = vrot.lane.b32.xlu0 %v11391_v6, %s7876_s28 }
 0xb40   : > { %5357 = vrot.lane.b32.xlu1 %v11402_v54, %s7876_s28  ;;  %5359 = vrot.lane.b32.xlu0 %v11405_v17, %s7876_s28 }
 0xb44   : > { %5361 = vrot.lane.b32.xlu1 %v11416_v61, %s7876_s28  ;;  %5363 = vrot.lane.b32.xlu0 %v11419_v38, %s7876_s28 }
 0xb48   : > { %5365 = vrot.lane.b32.xlu1 %v11430_v31, %s7876_s28  ;;  %5367 = vrot.lane.b32.xlu0 %v11433_v27, %s7876_s28 }
 0xb4c   : > { %5369 = vrot.lane.b32.xlu1 %v11442_v9, %s7876_s28 }
 0xb66   : > { %v5211_v13 = vpop.permute.xlu0 %5210  ;;  %v5209_v7 = vpop.permute.xlu1 %5208 }
 0xb67   : > { %5237 = vst.msk [vmem:[#allocation3 + $0x8] sm:$0xff] %vm5235_vm12, %v5211_v13  ;;  %5236 = vst.msk [vmem:[#allocation3] sm:$0xff] %vm5235_vm12, %v5209_v7 }
 0xb6a   : > { %v5215_v11 = vpop.permute.xlu0 %5214  ;;  %v5213_v41 = vpop.permute.xlu1 %5212 }
 0xb6b   : > { %5239 = vst.msk [vmem:[#allocation3 + $0x18] sm:$0xff] %vm5235_vm12, %v5215_v11  ;;  %5238 = vst.msk [vmem:[#allocation3 + $0x10] sm:$0xff] %vm5235_vm12, %v5213_v41 }
 0xb6e   : > { %v5219_v12 = vpop.permute.xlu0 %5218  ;;  %v5217_v46 = vpop.permute.xlu1 %5216 }
 0xb6f   : > { %5241 = vst.msk [vmem:[#allocation3 + $0x28] sm:$0xff] %vm5235_vm12, %v5219_v12  ;;  %5240 = vst.msk [vmem:[#allocation3 + $0x20] sm:$0xff] %vm5235_vm12, %v5217_v46  ;;  %v13368_v12 = vld [vmem:[#allocation11_spill] sm:$0xff] }
 0xb70   : > { %v13369_v46 = vld [vmem:[#allocation43_spill] sm:$0xff] }
 0xb72   : > { %v5223_v50 = vpop.permute.xlu0 %5222  ;;  %v5221_v15 = vpop.permute.xlu1 %5220 }
 0xb73   : > { %5243 = vst.msk [vmem:[#allocation3 + $0x38] sm:$0xff] %vm5235_vm12, %v5223_v50  ;;  %5242 = vst.msk [vmem:[#allocation3 + $0x30] sm:$0xff] %vm5235_vm12, %v5221_v15  ;;  %v13370_v50 = vld [vmem:[#allocation13_spill] sm:$0xff] }
 0xb74   : > { %v11606_v15 = vadd.f32 %v13370_v50, %v13369_v46  ;;  %v13378_v50 = vld [vmem:[#allocation44_spill] sm:$0xff] }
 0xb76   : > { %v5246_v43 = vpop.permute.xlu0 %5245  ;;  %v5225_v58 = vpop.permute.xlu1 %5224  ;;  %vm3671_vm9 = vcmp.gt.f32.partialorder %v11606_v15, 0.0 }
 0xb77   : > { %5244 = vst.msk [vmem:[#allocation3 + $0x40] sm:$0xff] %vm5235_vm12, %v5225_v58  ;;  %v5272_v32 = vadd.f32 %v5246_v43, %v11388_v16  ;;  %v13367_v16 = vld [vmem:[#allocation40_spill] sm:$0xff] }
 0xb7a   : > { %v5250_v8 = vpop.permute.xlu0 %5249  ;;  %v5248_v18 = vpop.permute.xlu1 %5247 }
 0xb7b   : > { %v5273_v59 = vadd.f32 %v5248_v18, %v11391_v6  ;;  %v5274_v4 = vadd.f32 %v5250_v8, %v11402_v54  ;;  %v11602_v6 = vadd.f32 %v13368_v12, %v13367_v16 }
 0xb7d   : > { %vm3665_vm15 = vcmp.gt.f32.partialorder %v11602_v6, 0.0 }
 0xb7e   : > { %v5254_v33 = vpop.permute.xlu0 %5253  ;;  %v5252_v29 = vpop.permute.xlu1 %5251 }
 0xb7f   : > { %v5275_v25 = vadd.f32 %v5252_v29, %v11405_v17  ;;  %v5276_v54 = vadd.f32 %v5254_v33, %v11416_v61  ;;  %v3719_v61 = vmin.f32 %v11602_v6, 0.0 }
 0xb82   : > { %v5258_v37 = vpop.permute.xlu0 %5257  ;;  %v5256_v26 = vpop.permute.xlu1 %5255 }
 0xb83   : > { %v5277_v17 = vadd.f32 %v5256_v26, %v11419_v38  ;;  %v5278_v38 = vadd.f32 %v5258_v37, %v11430_v31  ;;  %v13374_v31 = vld [vmem:[#allocation45_spill] sm:$0xff] }
 0xb86   : > { %v11590_v39 = vpop.permute.xlu0 %5261  ;;  %v5260_v52 = vpop.permute.xlu1 %5259 }
 0xb87   : > { %v5279_v33 = vadd.f32 %v5260_v52, %v11433_v27  ;;  %v13375_v27 = vld [vmem:[#allocation21_spill] sm:$0xff] }
 0xb88   : > { %v11632_v37 = vadd.f32 %v13375_v27, %v13374_v31  ;;  %v13384_v27 = vld [vmem:[#allocation51_spill] sm:$0xff] }
 0xb8a   : > { %v5284_v60 = vpop.permute.xlu0 %5283  ;;  %v5282_v63 = vpop.permute.xlu1 %5281  ;;  %v3737_v12 = vmin.f32 %v11632_v37, 0.0  ;;  %vm3683_vm14 = vcmp.gt.f32.partialorder %v11632_v37, 0.0 }
 0xb8b   : > { %v5309_v5 = vadd.f32 %v5284_v60, %v5273_v59  ;;  %v5308_v55 = vadd.f32 %v5282_v63, %v5272_v32 }
 0xb8e   : > { %v5288_v28 = vpop.permute.xlu0 %5287  ;;  %v5286_v45 = vpop.permute.xlu1 %5285 }
 0xb8f   : > { %v5311_v13 = vadd.f32 %v5288_v28, %v5275_v25  ;;  %v5310_v7 = vadd.f32 %v5286_v45, %v5274_v4  ;;  %v3777_v25 = vmul.f32 1.442695, %v3719_v61  ;;  %v13383_v61 = vld [vmem:[#allocation25_spill] sm:$0xff] }
 0xb91   : > { %7782 = vpow2.f32 %v3777_v25 }
 0xb92   : > { %v5292_v40 = vpop.permute.xlu0 %5291  ;;  %v5290_v57 = vpop.permute.xlu1 %5289 }
 0xb93   : > { %v5313_v29 = vadd.f32 %v5292_v40, %v5277_v17  ;;  %v5312_v60 = vadd.f32 %v5290_v57, %v5276_v54  ;;  %v13379_v54 = vld [vmem:[#allocation29_spill] sm:$0xff] }
 0xb96   : > { %v5296_v49 = vpop.permute.xlu0 %5295  ;;  %v5294_v19 = vpop.permute.xlu1 %5293 }
 0xb97   : > { %v5315_v52 = vadd.f32 %v5296_v49, %v5279_v33 }
 0xb9a   : > { %v5318_v56 = vpop.permute.xlu0 %5317  ;;  %v11592_v44 = vpop.permute.xlu1 %5297 }
 0xb9b   : > { %v5344_v34 = vadd.f32 %v5318_v56, %v5308_v55 }
 0xb9e   : > { %v5322_v62 = vpop.permute.xlu0 %5321  ;;  %v5320_v20 = vpop.permute.xlu1 %5319 }
 0xb9f   : > { %v5345_v42 = vadd.f32 %v5320_v20, %v5309_v5  ;;  %v5346_v43 = vadd.f32 %v5322_v62, %v5310_v7  ;;  %v13372_v62 = vld [vmem:[#allocation42_spill] sm:$0xff] }
 0xba2   : > { %v5326_v30 = vpop.permute.xlu0 %5325  ;;  %v5324_v3 = vpop.permute.xlu1 %5323 }
 0xba3   : > { %v5347_v58 = vadd.f32 %v5324_v3, %v5311_v13  ;;  %v5348_v26 = vadd.f32 %v5326_v30, %v5312_v60  ;;  %v13373_v3 = vld [vmem:[#allocation4_spill] sm:$0xff]  ;;  %v5314_v30 = vadd.f32 %v5294_v19, %v5278_v38 }
 0xba4   : > { %v11628_v59 = vadd.f32 %v13373_v3, %v13372_v62 }
 0xba6   : > { %v5330_v36 = vpop.permute.xlu0 %5329  ;;  %v5328_v10 = vpop.permute.xlu1 %5327  ;;  %vm3677_vm11 = vcmp.gt.f32.partialorder %v11628_v59, 0.0 }
 0xba7   : > { %v5350_v13 = vadd.f32 %v5330_v36, %v5314_v30 }
 0xbaa   : > { %v11596_v2 = vpop.permute.xlu0 %5333  ;;  %v5332_v24 = vpop.permute.xlu1 %5331 }
 0xbab   : > { %v5351_v49 = vadd.f32 %v5332_v24, %v5315_v52  ;;  %v13385_v52 = vld [vmem:[#allocation27_spill] sm:$0xff] }
 0xbac   : > { %v11685_v30 = vadd.f32 %v13385_v52, %v13384_v27 }
 0xbae   : > { %v5356_v48 = vpop.permute.xlu0 %5355  ;;  %v5354_v14 = vpop.permute.xlu1 %5353  ;;  %vm3713_vm8 = vcmp.gt.f32.partialorder %v11685_v30, 0.0 }
 0xbaf   : > { %v5381_v11 = vadd.f32 %v5356_v48, %v5345_v42  ;;  %v5380_v41 = vadd.f32 %v5354_v14, %v5344_v34  ;;  %v13376_v34 = vld [vmem:[#allocation50_spill] sm:$0xff]  ;;  %v5280_v14 = vadd.f32 %v11590_v39, %v11442_v9  ;;  %v11654_v9 = vadd.f32 %v13379_v54, %v13378_v50 }
 0xbb0   : > { %v13377_v42 = vld [vmem:[#allocation6_spill] sm:$0xff] }
 0xbb1   : > { %v5390_v8 = vadd.f32 %v5381_v11, %v11466_v51  ;;  %v5389_v18 = vadd.f32 %v5380_v41, %v11464_v23  ;;  %v3725_v51 = vmin.f32 %v11606_v15, 0.0  ;;  %v5349_v23 = vadd.f32 %v5328_v10, %v5313_v29 }
 0xbb2   : > { %v5360_v63 = vpop.permute.xlu0 %5359  ;;  %v5358_v28 = vpop.permute.xlu1 %5357  ;;  %v11640_v48 = vadd.f32 %v13377_v42, %v13376_v34  ;;  %v3731_v41 = vmin.f32 %v11628_v59, 0.0  ;;  %v5316_v39 = vadd.f32 %v11592_v44, %v5280_v14  ;;  %v3767_v42 = vmin.f32 %v11685_v30, 0.0 }
 0xbb3   : > { %v11612_v45 = vmul.f32 0.055555556, %v5390_v8  ;;  %v11614_v56 = vmul.f32 0.055555556, %v5389_v18  ;;  %v5383_v20 = vadd.f32 %v5360_v63, %v5347_v58  ;;  %v5382_v32 = vadd.f32 %v5358_v28, %v5346_v43  ;;  %v13380_v8 = vld [vmem:[#allocation48_spill] sm:$0xff]  ;;  %v13381_v18 = vld [vmem:[#allocation22_spill] sm:$0xff] }
 0xbb4   : > { %v3789_v7 = vmul.f32 1.442695, %v3725_v51  ;;  %v3749_v58 = vmin.f32 %v11640_v48, 0.0  ;;  %v11662_v29 = vadd.f32 %v13381_v18, %v13380_v8  ;;  %v5352_v60 = vadd.f32 %v11596_v2, %v5316_v39 }
 0xbb5   : > { %v5392_v40 = vadd.f32 %v5383_v20, %v11474_v35  ;;  %v5391_v57 = vadd.f32 %v5382_v32, %v11472_v47  ;;  %5418 = vrot.lane.b32.xlu1 %v11612_v45, %s13371_s25  ;;  %5416 = vrot.lane.b32.xlu0 %v11614_v56, %s13371_s25  ;;  %v3801_v28 = vmul.f32 1.442695, %v3731_v41  ;;  %v3813_v20 = vmul.f32 1.442695, %v3737_v12  ;;  %v13382_v32 = vld [vmem:[#allocation56_spill] sm:$0xff] }
 0xbb6   : > { %v5364_v10 = vpop.permute.xlu0 %5363  ;;  %v5362_v35 = vpop.permute.xlu1 %5361  ;;  %7784 = vpow2.f32 %v3789_v7  ;;  %v11672_v38 = vadd.f32 %v13383_v61, %v13382_v32  ;;  %vm3695_vm4 = vcmp.gt.f32.partialorder %v11640_v48, 0.0  ;;  %vm3689_vm5 = vcmp.gt.f32.partialorder %v11654_v9, 0.0 }
 0xbb7   : > { %v11634_v5 = vmul.f32 0.055555556, %v5392_v40  ;;  %v11636_v47 = vmul.f32 0.055555556, %v5391_v57  ;;  %v5385_v55 = vadd.f32 %v5364_v10, %v5349_v23  ;;  %v5384_v4 = vadd.f32 %v5362_v35, %v5348_v26 }
 0xbb8   : > { %v3743_v26 = vmin.f32 %v11654_v9, 0.0  ;;  %v3755_v23 = vmin.f32 %v11662_v29, 0.0  ;;  %7786 = vpow2.f32 %v3801_v28  ;;  %v3761_v57 = vmin.f32 %v11672_v38, 0.0 }
 0xbb9   : > { %v5394_v19 = vadd.f32 %v5385_v55, %v11484_v53  ;;  %v5393_v11 = vadd.f32 %v5384_v4, %v11482_v1  ;;  %5422 = vrot.lane.b32.xlu1 %v11634_v5, %s13371_s25  ;;  %5420 = vrot.lane.b32.xlu0 %v11636_v47, %s13371_s25  ;;  %7788 = vpow2.f32 %v3813_v20  ;;  %v7783_v4 = vpop.eup %7782  ;;  %vm3701_vm10 = vcmp.gt.f32.partialorder %v11662_v29, 0.0 }
 0xbba   : > { %v5368_v36 = vpop.permute.xlu0 %5367  ;;  %v5366_v53 = vpop.permute.xlu1 %5365  ;;  %v3825_v3 = vmul.f32 1.442695, %v3743_v26  ;;  %v3849_v35 = vmul.f32 1.442695, %v3755_v23  ;;  %v3861_v25 = vmul.f32 1.442695, %v3761_v57 }
 0xbbb   : > { %v11657_v24 = vmul.f32 0.055555556, %v5394_v19  ;;  %v5402_v1 = vmul.f32 0.055555556, %v5393_v11  ;;  %v5387_v17 = vadd.f32 %v5368_v36, %v5351_v49  ;;  %v5386_v43 = vadd.f32 %v5366_v53, %v5350_v13  ;;  %v13387_v13 = vld [vmem:[#allocation14_spill] sm:$0xff]  ;;  %v13392_v26 = vld [vmem:[#allocation49_spill] sm:$0xff] }
 0xbbc   : > { %v11697_v7 = vadd.f32 %v13387_v13, %v13369_v46  ;;  %v7415_v19 = vadd.f32 -1.0, %v7783_v4  ;;  %v13388_v46 = vld [vmem:[#allocation18_spill] sm:$0xff]  ;;  %vm3707_vm6 = vcmp.gt.f32.partialorder %v11672_v38, 0.0 }
 0xbbd   : > { %v5396_v63 = vadd.f32 %v5387_v17, %v11494_v21  ;;  %v5395_v44 = vadd.f32 %v5386_v43, %v11492_v0  ;;  %5426 = vrot.lane.b32.xlu1 %v11657_v24, %s13371_s25  ;;  %5424 = vrot.lane.b32.xlu0 %v5402_v1, %s13371_s25  ;;  %v3837_v0 = vmul.f32 1.442695, %v3749_v58  ;;  %v11707_v54 = vadd.f32 %v13388_v46, %v13372_v62  ;;  %v13394_v23 = vld [vmem:[#allocation30_spill] sm:$0xff] }
 0xbbe   : > { %v5370_v33 = vpop.permute.xlu1 %5369  ;;  %v3726_v12 = vmin.f32 %v11697_v7, 0.0  ;;  %v3935_v36 = vsel %vm3665_vm15, %v11602_v6, %v7415_v19  ;;  %vm3672_vm1 = vcmp.gt.f32.partialorder %v11697_v7, 0.0 }
 0xbbf   : > { %v11675_v2 = vmul.f32 0.055555556, %v5396_v63  ;;  %v5404_v21 = vmul.f32 0.055555556, %v5395_v44  ;;  %v5388_v51 = vadd.f32 %v5370_v33, %v5352_v60  ;;  %7790 = vpow2.f32 %v3837_v0  ;;  %v13391_v63 = vld [vmem:[#allocation55_spill] sm:$0xff] }
 0xbc0   : > { %7792 = vpow2.f32 %v3825_v3  ;;  %v7785_v14 = vpop.eup %7784  ;;  %v3791_v58 = vmul.f32 1.442695, %v3726_v12  ;;  %v13393_v0 = vld [vmem:[#allocation59_spill] sm:$0xff]  ;;  %vm3678_vm0 = vcmp.gt.f32.partialorder %v11707_v54, 0.0 }
 0xbc1   : > { %v5397_v40 = vadd.f32 %v5388_v51, %v11502_v22  ;;  %5430 = vrot.lane.b32.xlu1 %v11675_v2, %s13371_s25  ;;  %5428 = vrot.lane.b32.xlu0 %v5404_v21, %s13371_s25  ;;  %v13386_v22 = vld [vmem:[#allocation12_spill] sm:$0xff]  ;;  %7794 = vpow2.f32 %v3849_v35  ;;  %v7421_v11 = vadd.f32 -1.0, %v7785_v14  ;;  %v13396_v3 = vld [vmem:[#allocation15_spill] sm:$0xff]  ;;  %v13399_v14 = vld [vmem:[#allocation5_spill] sm:$0xff] }
 0xbc2   : > { %v11692_v55 = vadd.f32 %v13386_v22, %v13367_v16  ;;  %7796 = vpow2.f32 %v3861_v25  ;;  %v7787_v49 = vpop.eup %7786  ;;  %v13397_v22 = vld [vmem:[#allocation19_spill] sm:$0xff] }
 0xbc3   : > { %v5406_v10 = vmul.f32 0.055555556, %v5397_v40  ;;  %v7789_v41 = vpop.eup %7788  ;;  %v7427_v39 = vadd.f32 -1.0, %v7787_v49  ;;  %v3941_v53 = vsel %vm3671_vm9, %v11606_v15, %v7421_v11  ;;  %v13390_v15 = vld [vmem:[#allocation60_spill] sm:$0xff]  ;;  %v11741_v40 = vadd.f32 %v13394_v23, %v13378_v50  ;;  %v13401_v49 = vld [vmem:[#allocation31_spill] sm:$0xff] }
 0xbc4   : > { %v3720_v16 = vmin.f32 %v11692_v55, 0.0  ;;  %v7433_v17 = vadd.f32 -1.0, %v7789_v41  ;;  %v4043_v60 = vmul.f32 %v13390_v15, %v3935_v36  ;;  %v4049_v44 = vmul.f32 %v13391_v63, %v3941_v53  ;;  %v13398_v50 = vld [vmem:[#allocation64_spill] sm:$0xff] }
 0xbc5   : > { %5453 = vrot.lane.b32.xlu1 %v11614_v56, %s7892_s17  ;;  %5432 = vrot.lane.b32.xlu0 %v5406_v10, %s13371_s25  ;;  %v3873_v56 = vmul.f32 1.442695, %v3767_v42  ;;  %v3947_v28 = vsel %vm3677_vm11, %v11628_v59, %v7427_v39  ;;  %v11750_v4 = vadd.f32 %v13397_v22, %v13376_v34  ;;  %v3744_v34 = vmin.f32 %v11741_v40, 0.0 }
 0xbc6   : > { %v4151_v52 = vadd.f32 %v13396_v3, %v4043_v60  ;;  %vm3666_vm3 = vcmp.gt.f32.partialorder %v11692_v55, 0.0  ;;  %vm3690_vm2 = vcmp.gt.f32.partialorder %v11741_v40, 0.0  ;;  %vm5443_vm11 = vcmask 310560  }
 0xbc7   : > { %7798 = vpow2.f32 %v3873_v56  ;;  %v3750_v46 = vmin.f32 %v11750_v4, 0.0  ;;  %vm3696_vm13 = vcmp.gt.f32.partialorder %v11750_v4, 0.0 }
 0xbc9   : > { %5457 = vrot.lane.b32.xlu1 %v11636_v47, %s7892_s17  ;;  %5455 = vrot.lane.b32.xlu0 %v11612_v45, %s7892_s17  ;;  %v7791_v45 = vpop.eup %7790  ;;  %v3779_v47 = vmul.f32 1.442695, %v3720_v16  ;;  %v13400_v16 = vld [vmem:[#allocation33_spill] sm:$0xff] }
 0xbca   : > { %v7793_v62 = vpop.eup %7792  ;;  %v7445_v43 = vadd.f32 -1.0, %v7791_v45 }
 0xbcb   : > { %7800 = vpow2.f32 %v3779_v47  ;;  %v7795_v6 = vpop.eup %7794  ;;  %v7439_v20 = vadd.f32 -1.0, %v7793_v62  ;;  %v13403_v47 = vld [vmem:[#allocation20_spill] sm:$0xff]  ;;  %v13405_v62 = vld [vmem:[#allocation37_spill] sm:$0xff] }
 0xbcc   : > { %v7797_v61 = vpop.eup %7796  ;;  %v3965_v33 = vsel %vm3695_vm4, %v11640_v48, %v7445_v43  ;;  %7802 = vpow2.f32 %v3791_v58  ;;  %v7451_v59 = vadd.f32 -1.0, %v7795_v6  ;;  %v13395_v48 = vld [vmem:[#allocation23_spill] sm:$0xff]  ;;  %v11776_v39 = vadd.f32 %v13403_v47, %v13380_v8 }
 0xbcd   : > { %5461 = vrot.lane.b32.xlu1 %v5402_v1, %s7892_s17  ;;  %5459 = vrot.lane.b32.xlu0 %v11634_v5, %s7892_s17  ;;  %v3732_v1 = vmin.f32 %v11707_v54, 0.0  ;;  %v13389_v5 = vld [vmem:[#allocation28_spill] sm:$0xff]  ;;  %v11744_v57 = vadd.f32 %v13395_v48, %v4049_v44  ;;  %v4073_v25 = vmul.f32 %v13398_v50, %v3965_v33  ;;  %v13406_v58 = vld [vmem:[#allocation35_spill] sm:$0xff]  ;;  %v3839_v8 = vmul.f32 1.442695, %v3750_v46 }
 0xbce   : > { %v11723_v18 = vadd.f32 %v13389_v5, %v13374_v31  ;;  %v3971_v42 = vsel %vm3701_vm10, %v11662_v29, %v7451_v59  ;;  %v13402_v29 = vld [vmem:[#allocation9_spill] sm:$0xff]  ;;  %v3756_v60 = vmin.f32 %v11776_v39, 0.0  ;;  %v13407_v44 = vld [vmem:[#allocation24_spill] sm:$0xff]  ;;  %vm3702_vm12 = vcmp.gt.f32.partialorder %v11776_v39, 0.0 }
 0xbcf   : > { %v3803_v31 = vmul.f32 1.442695, %v3732_v1  ;;  %v4079_v45 = vmul.f32 %v13402_v29, %v3971_v42  ;;  %v11781_v43 = vadd.f32 %v13405_v62, %v4073_v25  ;;  %vm13414_vm4 = vcmask 883712  }
 0xbd0   : > { %v3738_v51 = vmin.f32 %v11723_v18, 0.0  ;;  %vm3684_vm7 = vcmp.gt.f32.partialorder %v11723_v18, 0.0  ;;  %vm13418_vm10 = vmmov %vm13414_vm4 }
 0xbd1   : > { %5465 = vrot.lane.b32.xlu1 %v5404_v21, %s7892_s17  ;;  %5463 = vrot.lane.b32.xlu0 %v11657_v24, %s7892_s17  ;;  %v3953_v24 = vsel %vm3683_vm14, %v11632_v37, %v7433_v17  ;;  %v4055_v21 = vmul.f32 %v13392_v26, %v3947_v28  ;;  %v7799_v35 = vpop.eup %7798  ;;  %7804 = vpow2.f32 %v3803_v31  ;;  %v3827_v17 = vmul.f32 1.442695, %v3744_v34  ;;  %v13410_v31 = vld [vmem:[#allocation41_spill] sm:$0xff] }
 0xbd2   : > { %v4061_v37 = vmul.f32 %v13393_v0, %v3953_v24  ;;  %v7463_v12 = vadd.f32 -1.0, %v7799_v35  ;;  %v11795_v28 = vadd.f32 %v13407_v44, %v13382_v32  ;;  %v3851_v32 = vmul.f32 1.442695, %v3756_v60 }
 0xbd3   : > { %v11765_v19 = vadd.f32 %v13401_v49, %v4055_v21  ;;  %v11802_v21 = vadd.f32 %v13410_v31, %v4079_v45  ;;  %vm5480_vm14 = vcmask 326960  }
 0xbd4   : > { %v11762_v56 = vadd.f32 %v13400_v16, %v4061_v37  ;;  %v3983_v6 = vsel %vm3713_vm8, %v11685_v30, %v7463_v12  ;;  %v13409_v30 = vld [vmem:[#allocation67_spill] sm:$0xff]  ;;  %v3762_v23 = vmin.f32 %v11795_v28, 0.0  ;;  %vm3708_vm15 = vcmp.gt.f32.partialorder %v11795_v28, 0.0  ;;  %vm13422_vm8 = vmmov %vm13414_vm4 }
 0xbd5   : > { %5469 = vrot.lane.b32.xlu1 %v5406_v10, %s7892_s17  ;;  %5467 = vrot.lane.b32.xlu0 %v11675_v2, %s7892_s17  ;;  %v7457_v10 = vadd.f32 -1.0, %v7797_v61  ;;  %v3959_v2 = vsel %vm3689_vm5, %v11654_v9, %v7439_v20  ;;  %v3815_v9 = vmul.f32 1.442695, %v3738_v51  ;;  %v7801_v11 = vpop.eup %7800  ;;  %v13408_v20 = vld [vmem:[#allocation17_spill] sm:$0xff]  ;;  %vm13416_vm5 = vmmov %vm13414_vm4  ;;  %s635_s17 = scalar_lea.vmem %s12710_s10, %s9941_s27 }
 0xbd6   : > { %v4067_v13 = vmul.f32 %v13399_v14, %v3959_v2  ;;  %v7803_v36 = vpop.eup %7802  ;;  %v7416_v5 = vadd.f32 -1.0, %v7801_v11  ;;  %v4091_v61 = vmul.f32 %v13408_v20, %v3983_v6 }
 0xbd7   : > { %v3977_v41 = vsel %vm3707_vm6, %v11672_v38, %v7457_v10  ;;  %7806 = vpow2.f32 %v3815_v9  ;;  %v13404_v38 = vld [vmem:[#allocation10_spill] sm:$0xff]  ;;  %v7422_v51 = vadd.f32 -1.0, %v7803_v36  ;;  %v13411_v10 = vld [vmem:[#allocation32_spill] sm:$0xff]  ;;  %v3863_v9 = vmul.f32 1.442695, %v3762_v23  ;;  %vm13420_vm6 = vmmov %vm13414_vm4 }
 0xbd8   : > { %v4085_v53 = vmul.f32 %v13404_v38, %v3977_v41  ;;  %v11784_v1 = vadd.f32 %v13406_v58, %v4067_v13  ;;  %7808 = vpow2.f32 %v3827_v17  ;;  %v3936_v59 = vsel %vm3666_vm3, %v11692_v55, %v7416_v5  ;;  %v13412_v55 = vld [vmem:[#allocation69_spill] sm:$0xff]  ;;  %vm13424_vm3 = vmmov %vm13414_vm4 }
 0xbd9   : > { %5501 = vrot.lane.b32.xlu1 %v11744_v57, %s7866_s15  ;;  %5499 = vrot.lane.b32.xlu0 %v4151_v52, %s7866_s15  ;;  %7810 = vpow2.f32 %v3839_v8  ;;  %v4044_v37 = vmul.f32 %v13390_v15, %v3936_v59  ;;  %v11814_v2 = vadd.f32 %v13411_v10, %v13384_v27  ;;  %v11817_v35 = vadd.f32 %v13412_v55, %v4091_v61 }
 0xbda   : > { %v11799_v33 = vadd.f32 %v13409_v30, %v4085_v53  ;;  %v3942_v25 = vsel %vm3672_vm1, %v11697_v7, %v7422_v51  ;;  %7812 = vpow2.f32 %v3851_v32  ;;  %vm13426_vm1 = vmmov %vm13424_vm3 }
 0xbdb   : > { %v7805_v24 = vpop.eup %7804  ;;  %v4050_v15 = vmul.f32 %v13391_v63, %v3942_v25  ;;  %v3768_v27 = vmin.f32 %v11814_v2, 0.0  ;;  %v4152_v13 = vadd.f32 %v13396_v3, %v4044_v37  ;;  %7814 = vpow2.f32 %v3863_v9 }
 0xbdc   : > { %v7428_v42 = vadd.f32 -1.0, %v7805_v24  ;;  %vm3714_vm9 = vcmp.gt.f32.partialorder %v11814_v2, 0.0 }
 0xbdd   : > { %5505 = vrot.lane.b32.xlu1 %v11762_v56, %s7866_s15  ;;  %5503 = vrot.lane.b32.xlu0 %v11765_v19, %s7866_s15  ;;  %v3875_v63 = vmul.f32 1.442695, %v3768_v27  ;;  %v4158_v41 = vadd.f32 %v13395_v48, %v4050_v15  ;;  %v13413_v27 = vld [vmem:[#allocation46_spill] sm:$0xff] }
 0xbde   : > { %v3948_v34 = vsel %vm3678_vm0, %v11707_v54, %v7428_v42  ;;  %vm13428_vm0 = vmmov %vm13426_vm1 }
 0xbdf   : > { %7816 = vpow2.f32 %v3875_v63  ;;  %v13415_v63 = vld [vmem:[#allocation47_spill] sm:$0xff] }
 0xbe1   : > { %5509 = vrot.lane.b32.xlu1 %v11781_v43, %s7866_s15  ;;  %5507 = vrot.lane.b32.xlu0 %v11784_v1, %s7866_s15  ;;  %v7807_v22 = vpop.eup %7806 }
 0xbe2   : > { %v7434_v11 = vadd.f32 -1.0, %v7807_v22  ;;  %v7809_v7 = vpop.eup %7808 }
 0xbe3   : > { %v7811_v12 = vpop.eup %7810  ;;  %v7440_v46 = vadd.f32 -1.0, %v7809_v7 }
 0xbe4   : > { %v3954_v3 = vsel %vm3684_vm7, %v11723_v18, %v7434_v11  ;;  %v7446_v45 = vadd.f32 -1.0, %v7811_v12  ;;  %vm13430_vm7 = vmmov %vm13428_vm0 }
 0xbe5   : > { %5513 = vrot.lane.b32.xlu1 %v11799_v33, %s7866_s15  ;;  %5511 = vrot.lane.b32.xlu0 %v11802_v21, %s7866_s15  ;;  %v4062_v54 = vmul.f32 %v13393_v0, %v3954_v3  ;;  %v3960_v48 = vsel %vm3690_vm2, %v11741_v40, %v7440_v46  ;;  %vm5841_vm2 = vcmask 376160  }
 0xbe6   : > { %v4068_v18 = vmul.f32 %v13399_v14, %v3960_v48 }
 0xbe7   : > { %v4170_v0 = vadd.f32 %v13400_v16, %v4062_v54 }
 0xbe9   : > { %5544 = vrot.lane.b32.xlu1 %v4151_v52, %s7867_s16  ;;  %5515 = vrot.lane.b32.xlu0 %v11817_v35, %s7866_s15  ;;  %v4056_v52 = vmul.f32 %v13392_v26, %v3948_v34  ;;  %s7893_s15 = smov 112  }
 0xbeb   : > { %v4164_v26 = vadd.f32 %v13401_v49, %v4056_v52 }
 0xbed   : > { %5548 = vrot.lane.b32.xlu1 %v11744_v57, %s7867_s16  ;;  %5546 = vrot.lane.b32.xlu0 %v4152_v13, %s7867_s16  ;;  %v7813_v57 = vpop.eup %7812 }
 0xbee   : > { %v7452_v47 = vadd.f32 -1.0, %v7813_v57  ;;  %v7815_v36 = vpop.eup %7814 }
 0xbef   : > { %v7458_v14 = vadd.f32 -1.0, %v7815_v36  ;;  %v7817_v53 = vpop.eup %7816 }
 0xbf0   : > { %v3972_v49 = vsel %vm3702_vm12, %v11776_v39, %v7452_v47  ;;  %v7464_v17 = vadd.f32 -1.0, %v7817_v53  ;;  %vm5915_vm12 = vcmask 408960  }
 0xbf1   : > { %5552 = vrot.lane.b32.xlu1 %v11765_v19, %s7867_s16  ;;  %5550 = vrot.lane.b32.xlu0 %v4158_v41, %s7867_s16  ;;  %v3966_v19 = vsel %vm3696_vm13, %v11750_v4, %v7446_v45  ;;  %v4080_v4 = vmul.f32 %v13402_v29, %v3972_v49  ;;  %vm5878_vm13 = vcmask 392560  }
 0xbf2   : > { %v4074_v40 = vmul.f32 %v13398_v50, %v3966_v19  ;;  %v3978_v50 = vsel %vm3708_vm15, %v11795_v28, %v7458_v14  ;;  %v3984_v29 = vsel %vm3714_vm9, %v11814_v2, %v7464_v17  ;;  %v13419_v19 = vld [vmem:[#allocation54_spill] sm:$0xff]  ;;  %vm5952_vm15 = vcmask 425360  }
 0xbf3   : > { %v4086_v39 = vmul.f32 %v13404_v38, %v3978_v50  ;;  %v13421_v14 = vld [vmem:[#allocation58_spill] sm:$0xff]  ;;  %vm5989_vm9 = vcmask 441760  }
 0xbf4   : > { %v4182_v16 = vadd.f32 %v13405_v62, %v4074_v40  ;;  %v4092_v62 = vmul.f32 %v13408_v20, %v3984_v29 }
 0xbf5   : > { %5556 = vrot.lane.b32.xlu1 %v11762_v56, %s7867_s16  ;;  %5554 = vrot.lane.b32.xlu0 %v4164_v26, %s7867_s16  ;;  %v4176_v56 = vadd.f32 %v13406_v58, %v4068_v18  ;;  %v4194_v58 = vadd.f32 %v13409_v30, %v4086_v39  ;;  %v13417_v26 = vld [vmem:[#allocation52_spill] sm:$0xff]  ;;  %v13423_v39 = vld [vmem:[#allocation61_spill] sm:$0xff] }
 0xbf6   : > { %v4200_v38 = vadd.f32 %v13412_v55, %v4092_v62 }
 0xbf9   : > { %5560 = vrot.lane.b32.xlu1 %v11784_v1, %s7867_s16  ;;  %5558 = vrot.lane.b32.xlu0 %v4170_v0, %s7867_s16 }
 0xbfd   : > { %5564 = vrot.lane.b32.xlu1 %v11781_v43, %s7867_s16  ;;  %5562 = vrot.lane.b32.xlu0 %v4176_v56, %s7867_s16  ;;  %v4188_v43 = vadd.f32 %v13410_v31, %v4080_v4 }
 0xc01   : > { %5568 = vrot.lane.b32.xlu1 %v11802_v21, %s7867_s16  ;;  %5566 = vrot.lane.b32.xlu0 %v4182_v16, %s7867_s16 }
 0xc05   : > { %5572 = vrot.lane.b32.xlu1 %v11799_v33, %s7867_s16  ;;  %5570 = vrot.lane.b32.xlu0 %v4188_v43, %s7867_s16 }
 0xc09   : > { %5576 = vrot.lane.b32.xlu1 %v11817_v35, %s7867_s16  ;;  %5574 = vrot.lane.b32.xlu0 %v4194_v58, %s7867_s16 }
 0xc0d   : > { %5578 = vrot.lane.b32.xlu0 %v4200_v38, %s7867_s16 }
 0xc27   : > { %v5417_v1 = vpop.permute.xlu0 %5416  ;;  %v5419_v5 = vpop.permute.xlu1 %5418 }
 0xc28   : > { %5444 = vst.msk [vmem:[#allocation3] sm:$0xff] %vm5443_vm11, %v5417_v1  ;;  %5445 = vst.msk [vmem:[#allocation3 + $0x8] sm:$0xff] %vm5443_vm11, %v5419_v5  ;;  %v13425_v1 = vld [vmem:[#allocation53_spill] sm:$0xff] }
 0xc2b   : > { %v5421_v6 = vpop.permute.xlu0 %5420  ;;  %v5423_v8 = vpop.permute.xlu1 %5422 }
 0xc2c   : > { %5446 = vst.msk [vmem:[#allocation3 + $0x10] sm:$0xff] %vm5443_vm11, %v5421_v6  ;;  %5447 = vst.msk [vmem:[#allocation3 + $0x18] sm:$0xff] %vm5443_vm11, %v5423_v8 }
 0xc2f   : > { %v5425_v60 = vpop.permute.xlu0 %5424  ;;  %v5427_v44 = vpop.permute.xlu1 %5426 }
 0xc30   : > { %5448 = vst.msk [vmem:[#allocation3 + $0x20] sm:$0xff] %vm5443_vm11, %v5425_v60  ;;  %5449 = vst.msk [vmem:[#allocation3 + $0x28] sm:$0xff] %vm5443_vm11, %v5427_v44 }
 0xc33   : > { %v5429_v28 = vpop.permute.xlu0 %5428  ;;  %v5431_v24 = vpop.permute.xlu1 %5430 }
 0xc34   : > { %5450 = vst.msk [vmem:[#allocation3 + $0x30] sm:$0xff] %vm5443_vm11, %v5429_v28  ;;  %5451 = vst.msk [vmem:[#allocation3 + $0x38] sm:$0xff] %vm5443_vm11, %v5431_v24  ;;  %v13427_v28 = vld [vmem:[#allocation65_spill] sm:$0xff] }
 0xc37   : > { %v5433_v20 = vpop.permute.xlu0 %5432  ;;  %v5454_v61 = vpop.permute.xlu1 %5453 }
 0xc38   : > { %5452 = vst.msk [vmem:[#allocation3 + $0x40] sm:$0xff] %vm5443_vm11, %v5433_v20 }
 0xc39   : > { %5481 = vst.msk [vmem:[#allocation3] sm:$0xff] %vm5480_vm14, %v5454_v61 }
 0xc3b   : > { %v5456_v30 = vpop.permute.xlu0 %5455  ;;  %v5458_v33 = vpop.permute.xlu1 %5457 }
 0xc3c   : > { %5482 = vst.msk [vmem:[#allocation3 + $0x8] sm:$0xff] %vm5480_vm14, %v5456_v30  ;;  %5483 = vst.msk [vmem:[#allocation3 + $0x10] sm:$0xff] %vm5480_vm14, %v5458_v33  ;;  %v13429_v33 = vld [vmem:[#allocation8_spill] sm:$0xff] }
 0xc3f   : > { %v5460_v31 = vpop.permute.xlu0 %5459  ;;  %v5462_v21 = vpop.permute.xlu1 %5461 }
 0xc40   : > { %5484 = vst.msk [vmem:[#allocation3 + $0x18] sm:$0xff] %vm5480_vm14, %v5460_v31  ;;  %5485 = vst.msk [vmem:[#allocation3 + $0x20] sm:$0xff] %vm5480_vm14, %v5462_v21 }
 0xc43   : > { %v5464_v59 = vpop.permute.xlu0 %5463  ;;  %v5466_v51 = vpop.permute.xlu1 %5465 }
 0xc44   : > { %5486 = vst.msk [vmem:[#allocation3 + $0x28] sm:$0xff] %vm5480_vm14, %v5464_v59  ;;  %5487 = vst.msk [vmem:[#allocation3 + $0x30] sm:$0xff] %vm5480_vm14, %v5466_v51 }
 0xc47   : > { %v5468_v32 = vpop.permute.xlu0 %5467  ;;  %v5470_v37 = vpop.permute.xlu1 %5469 }
 0xc48   : > { %5488 = vst.msk [vmem:[#allocation3 + $0x38] sm:$0xff] %vm5480_vm14, %v5468_v32  ;;  %5489 = vst.msk [vmem:[#allocation3 + $0x40] sm:$0xff] %vm5480_vm14, %v5470_v37 }
 0xc4b   : > { %v5500_v23 = vpop.permute.xlu0 %5499  ;;  %v5502_v10 = vpop.permute.xlu1 %5501 }
 0xc4c   : > { %v5526_v13 = vadd.f32 %v5500_v23, %v13413_v27  ;;  %v5527_v41 = vadd.f32 %v5502_v10, %v13415_v63 }
 0xc4f   : > { %v5504_v2 = vpop.permute.xlu0 %5503  ;;  %v5506_v55 = vpop.permute.xlu1 %5505 }
 0xc50   : > { %v5528_v57 = vadd.f32 %v5504_v2, %v13417_v26  ;;  %v5529_v47 = vadd.f32 %v5506_v55, %v13419_v19 }
 0xc53   : > { %v5508_v35 = vpop.permute.xlu0 %5507  ;;  %v5510_v22 = vpop.permute.xlu1 %5509 }
 0xc54   : > { %v5530_v53 = vadd.f32 %v5508_v35, %v13421_v14  ;;  %v5531_v43 = vadd.f32 %v5510_v22, %v13423_v39 }
 0xc57   : > { %v5512_v25 = vpop.permute.xlu0 %5511  ;;  %v5514_v42 = vpop.permute.xlu1 %5513 }
 0xc58   : > { %v5532_v5 = vadd.f32 %v5512_v25, %v13425_v1  ;;  %v5533_v24 = vadd.f32 %v5514_v42, %v13427_v28 }
 0xc5b   : > { %v5516_v15 = vpop.permute.xlu0 %5515  ;;  %v5545_v9 = vpop.permute.xlu1 %5544 }
 0xc5c   : > { %v5534_v31 = vadd.f32 %v5516_v15, %v13429_v33 }
 0xc5f   : > { %v5547_v34 = vpop.permute.xlu0 %5546  ;;  %v5549_v11 = vpop.permute.xlu1 %5548 }
 0xc60   : > { %v5580_v7 = vsel %vm13414_vm4, %v5545_v9, %v5547_v34 }
 0xc61   : > { %v11900_v52 = vadd.f32 %v5580_v7, %v5526_v13 }
 0xc63   : > { %v5551_v12 = vpop.permute.xlu0 %5550  ;;  %5616 = vrot.lane.b32.xlu1 %v11900_v52, %s7874_s14  ;;  %v5553_v3 = vpop.permute.xlu1 %5552 }
 0xc64   : > { %v5581_v46 = vsel %vm13416_vm5, %v5549_v11, %v5551_v12 }
 0xc65   : > { %v11906_v54 = vadd.f32 %v5581_v46, %v5527_v41 }
 0xc67   : > { %v5555_v45 = vpop.permute.xlu0 %5554  ;;  %5618 = vrot.lane.b32.xlu0 %v11906_v54, %s7874_s14  ;;  %v5557_v48 = vpop.permute.xlu1 %5556 }
 0xc68   : > { %v5582_v18 = vsel %vm13418_vm10, %v5553_v3, %v5555_v45 }
 0xc69   : > { %v11912_v0 = vadd.f32 %v5582_v18, %v5528_v57 }
 0xc6b   : > { %v5559_v36 = vpop.permute.xlu0 %5558  ;;  %5620 = vrot.lane.b32.xlu1 %v11912_v0, %s7874_s14  ;;  %v5561_v40 = vpop.permute.xlu1 %5560 }
 0xc6c   : > { %v5583_v56 = vsel %vm13420_vm6, %v5557_v48, %v5559_v36 }
 0xc6d   : > { %v11918_v49 = vadd.f32 %v5583_v56, %v5529_v47 }
 0xc6f   : > { %v5563_v4 = vpop.permute.xlu0 %5562  ;;  %5622 = vrot.lane.b32.xlu0 %v11918_v49, %s7874_s14  ;;  %v5565_v16 = vpop.permute.xlu1 %5564 }
 0xc70   : > { %v5584_v50 = vsel %vm13422_vm8, %v5561_v40, %v5563_v4 }
 0xc71   : > { %v11924_v17 = vadd.f32 %v5584_v50, %v5530_v53 }
 0xc73   : > { %v5567_v29 = vpop.permute.xlu0 %5566  ;;  %5624 = vrot.lane.b32.xlu1 %v11924_v17, %s7874_s14  ;;  %v5569_v62 = vpop.permute.xlu1 %5568 }
 0xc74   : > { %v5585_v58 = vsel %vm13424_vm3, %v5565_v16, %v5567_v29 }
 0xc75   : > { %v11930_v38 = vadd.f32 %v5585_v58, %v5531_v43 }
 0xc77   : > { %v5571_v6 = vpop.permute.xlu0 %5570  ;;  %5626 = vrot.lane.b32.xlu0 %v11930_v38, %s7874_s14  ;;  %v5573_v44 = vpop.permute.xlu1 %5572 }
 0xc78   : > { %v5586_v8 = vsel %vm13426_vm1, %v5569_v62, %v5571_v6 }
 0xc79   : > { %v11936_v60 = vadd.f32 %v5586_v8, %v5532_v5 }
 0xc7b   : > { %v5575_v20 = vpop.permute.xlu0 %5574  ;;  %5628 = vrot.lane.b32.xlu1 %v11936_v60, %s7874_s14  ;;  %v5577_v21 = vpop.permute.xlu1 %5576 }
 0xc7c   : > { %v5587_v61 = vsel %vm13428_vm0, %v5573_v44, %v5575_v20  ;;  %vm7124_vm0 = vcmask 15360  }
 0xc7d   : > { %v11942_v30 = vadd.f32 %v5587_v61, %v5533_v24 }
 0xc7f   : > { %v5579_v59 = vpop.permute.xlu0 %5578  ;;  %5630 = vrot.lane.b32.xlu0 %v11942_v30, %s7874_s14 }
 0xc80   : > { %v5588_v51 = vsel %vm13430_vm7, %v5577_v21, %v5579_v59 }
 0xc81   : > { %v11948_v32 = vadd.f32 %v5588_v51, %v5534_v31 }
 0xc83   : > { %5652 = vrot.lane.b32.xlu0 %v11900_v52, %s7875_s20  ;;  %5632 = vrot.lane.b32.xlu1 %v11948_v32, %s7874_s14 }
 0xc87   : > { %5656 = vrot.lane.b32.xlu0 %v11912_v0, %s7875_s20  ;;  %5654 = vrot.lane.b32.xlu1 %v11906_v54, %s7875_s20 }
 0xc8b   : > { %5660 = vrot.lane.b32.xlu0 %v11924_v17, %s7875_s20  ;;  %5658 = vrot.lane.b32.xlu1 %v11918_v49, %s7875_s20 }
 0xc8f   : > { %5664 = vrot.lane.b32.xlu0 %v11936_v60, %s7875_s20  ;;  %5662 = vrot.lane.b32.xlu1 %v11930_v38, %s7875_s20 }
 0xc93   : > { %5668 = vrot.lane.b32.xlu0 %v11948_v32, %s7875_s20  ;;  %5666 = vrot.lane.b32.xlu1 %v11942_v30, %s7875_s20 }
 0xc97   : > { %5690 = vrot.lane.b32.xlu0 %v11906_v54, %s7872_s26  ;;  %5688 = vrot.lane.b32.xlu1 %v11900_v52, %s7872_s26 }
 0xc9b   : > { %5694 = vrot.lane.b32.xlu0 %v11918_v49, %s7872_s26  ;;  %5692 = vrot.lane.b32.xlu1 %v11912_v0, %s7872_s26 }
 0xc9f   : > { %5698 = vrot.lane.b32.xlu0 %v11930_v38, %s7872_s26  ;;  %5696 = vrot.lane.b32.xlu1 %v11924_v17, %s7872_s26 }
 0xca3   : > { %5702 = vrot.lane.b32.xlu0 %v11942_v30, %s7872_s26  ;;  %5700 = vrot.lane.b32.xlu1 %v11936_v60, %s7872_s26 }
 0xca7   : > { %5724 = vrot.lane.b32.xlu0 %v11900_v52, %s7876_s28  ;;  %5704 = vrot.lane.b32.xlu1 %v11948_v32, %s7872_s26 }
 0xcab   : > { %5728 = vrot.lane.b32.xlu0 %v11912_v0, %s7876_s28  ;;  %5726 = vrot.lane.b32.xlu1 %v11906_v54, %s7876_s28 }
 0xcaf   : > { %5732 = vrot.lane.b32.xlu0 %v11924_v17, %s7876_s28  ;;  %5730 = vrot.lane.b32.xlu1 %v11918_v49, %s7876_s28 }
 0xcb3   : > { %5736 = vrot.lane.b32.xlu0 %v11936_v60, %s7876_s28  ;;  %5734 = vrot.lane.b32.xlu1 %v11930_v38, %s7876_s28 }
 0xcb7   : > { %5740 = vrot.lane.b32.xlu0 %v11948_v32, %s7876_s28  ;;  %5738 = vrot.lane.b32.xlu1 %v11942_v30, %s7876_s28  ;;  %s13431_s28 = smov 102  }
 0xcbb   : > { %5762 = vrot.lane.b32.xlu0 %v11906_v54, %s7877_s29  ;;  %5760 = vrot.lane.b32.xlu1 %v11900_v52, %s7877_s29 }
 0xcbf   : > { %5766 = vrot.lane.b32.xlu0 %v11918_v49, %s7877_s29  ;;  %5764 = vrot.lane.b32.xlu1 %v11912_v0, %s7877_s29 }
 0xcc3   : > { %5770 = vrot.lane.b32.xlu0 %v11930_v38, %s7877_s29  ;;  %5768 = vrot.lane.b32.xlu1 %v11924_v17, %s7877_s29 }
 0xcc7   : > { %5774 = vrot.lane.b32.xlu0 %v11942_v30, %s7877_s29  ;;  %5772 = vrot.lane.b32.xlu1 %v11936_v60, %s7877_s29 }
 0xccb   : > { %5776 = vrot.lane.b32.xlu1 %v11948_v32, %s7877_s29  ;;  %s7894_s29 = smov 92  }
 0xcd5   : > { %v5617_v37 = vpop.permute.xlu1 %5616 }
 0xcd6   : > { %v5643_v16 = vadd.f32 %v5617_v37, %v11900_v52 }
 0xcd9   : > { %v5619_v23 = vpop.permute.xlu0 %5618 }
 0xcda   : > { %v5644_v50 = vadd.f32 %v5619_v23, %v11906_v54 }
 0xcdd   : > { %v5621_v10 = vpop.permute.xlu1 %5620 }
 0xcde   : > { %v5645_v58 = vadd.f32 %v5621_v10, %v11912_v0 }
 0xce1   : > { %v5623_v2 = vpop.permute.xlu0 %5622 }
 0xce2   : > { %v5646_v1 = vadd.f32 %v5623_v2, %v11918_v49 }
 0xce5   : > { %v5625_v55 = vpop.permute.xlu1 %5624 }
 0xce6   : > { %v5647_v20 = vadd.f32 %v5625_v55, %v11924_v17 }
 0xce9   : > { %v5627_v35 = vpop.permute.xlu0 %5626 }
 0xcea   : > { %v5648_v52 = vadd.f32 %v5627_v35, %v11930_v38 }
 0xced   : > { %v5629_v22 = vpop.permute.xlu1 %5628 }
 0xcee   : > { %v5649_v2 = vadd.f32 %v5629_v22, %v11936_v60 }
 0xcf1   : > { %v5631_v25 = vpop.permute.xlu0 %5630 }
 0xcf2   : > { %v5650_v17 = vadd.f32 %v5631_v25, %v11942_v30 }
 0xcf5   : > { %v5653_v42 = vpop.permute.xlu0 %5652  ;;  %v12024_v15 = vpop.permute.xlu1 %5632 }
 0xcf6   : > { %v5679_v39 = vadd.f32 %v5653_v42, %v5643_v16  ;;  %v5651_v22 = vadd.f32 %v12024_v15, %v11948_v32 }
 0xcf9   : > { %v5657_v9 = vpop.permute.xlu0 %5656  ;;  %v5655_v27 = vpop.permute.xlu1 %5654 }
 0xcfa   : > { %v5680_v43 = vadd.f32 %v5655_v27, %v5644_v50  ;;  %v5681_v8 = vadd.f32 %v5657_v9, %v5645_v58 }
 0xcfd   : > { %v5661_v13 = vpop.permute.xlu0 %5660  ;;  %v5659_v34 = vpop.permute.xlu1 %5658 }
 0xcfe   : > { %v5682_v44 = vadd.f32 %v5659_v34, %v5646_v1  ;;  %v5683_v51 = vadd.f32 %v5661_v13, %v5647_v20 }
 0xd01   : > { %v5665_v11 = vpop.permute.xlu0 %5664  ;;  %v5663_v7 = vpop.permute.xlu1 %5662 }
 0xd02   : > { %v5684_v0 = vadd.f32 %v5663_v7, %v5648_v52  ;;  %v5685_v13 = vadd.f32 %v5665_v11, %v5649_v2 }
 0xd05   : > { %v12026_v63 = vpop.permute.xlu0 %5668  ;;  %v5667_v41 = vpop.permute.xlu1 %5666 }
 0xd06   : > { %v5686_v34 = vadd.f32 %v5667_v41, %v5650_v17  ;;  %v5687_v11 = vadd.f32 %v12026_v63, %v5651_v22 }
 0xd09   : > { %v5691_v12 = vpop.permute.xlu0 %5690  ;;  %v5689_v3 = vpop.permute.xlu1 %5688 }
 0xd0a   : > { %v5716_v5 = vadd.f32 %v5691_v12, %v5680_v43  ;;  %v5715_v6 = vadd.f32 %v5689_v3, %v5679_v39 }
 0xd0d   : > { %v5695_v46 = vpop.permute.xlu0 %5694  ;;  %v5693_v26 = vpop.permute.xlu1 %5692 }
 0xd0e   : > { %v5718_v33 = vadd.f32 %v5695_v46, %v5682_v44  ;;  %v5717_v31 = vadd.f32 %v5693_v26, %v5681_v8 }
 0xd11   : > { %v5699_v57 = vpop.permute.xlu0 %5698  ;;  %v5697_v45 = vpop.permute.xlu1 %5696 }
 0xd12   : > { %v5720_v55 = vadd.f32 %v5699_v57, %v5684_v0  ;;  %v5719_v42 = vadd.f32 %v5697_v45, %v5683_v51 }
 0xd15   : > { %v5703_v48 = vpop.permute.xlu0 %5702  ;;  %v5701_v18 = vpop.permute.xlu1 %5700 }
 0xd16   : > { %v5722_v25 = vadd.f32 %v5703_v48, %v5686_v34  ;;  %v5721_v26 = vadd.f32 %v5701_v18, %v5685_v13 }
 0xd19   : > { %v5725_v19 = vpop.permute.xlu0 %5724  ;;  %v12028_v47 = vpop.permute.xlu1 %5704 }
 0xd1a   : > { %v5751_v28 = vadd.f32 %v5725_v19, %v5715_v6  ;;  %v5723_v15 = vadd.f32 %v12028_v47, %v5687_v11 }
 0xd1d   : > { %v5729_v36 = vpop.permute.xlu0 %5728  ;;  %v5727_v40 = vpop.permute.xlu1 %5726 }
 0xd1e   : > { %v5752_v24 = vadd.f32 %v5727_v40, %v5716_v5  ;;  %v5753_v37 = vadd.f32 %v5729_v36, %v5717_v31 }
 0xd21   : > { %v5733_v56 = vpop.permute.xlu0 %5732  ;;  %v5731_v14 = vpop.permute.xlu1 %5730 }
 0xd22   : > { %v5754_v49 = vadd.f32 %v5731_v14, %v5718_v33  ;;  %v5755_v7 = vadd.f32 %v5733_v56, %v5719_v42 }
 0xd25   : > { %v5737_v53 = vpop.permute.xlu0 %5736  ;;  %v5735_v4 = vpop.permute.xlu1 %5734 }
 0xd26   : > { %v5756_v12 = vadd.f32 %v5735_v4, %v5720_v55  ;;  %v5757_v41 = vadd.f32 %v5737_v53, %v5721_v26 }
 0xd29   : > { %v5741_v29 = vpop.permute.xlu0 %5740  ;;  %v5739_v62 = vpop.permute.xlu1 %5738 }
 0xd2a   : > { %v5758_v19 = vadd.f32 %v5739_v62, %v5722_v25  ;;  %v5759_v14 = vadd.f32 %v5741_v29, %v5723_v15 }
 0xd2d   : > { %v5763_v61 = vpop.permute.xlu0 %5762  ;;  %v5761_v54 = vpop.permute.xlu1 %5760 }
 0xd2e   : > { %v5788_v21 = vadd.f32 %v5763_v61, %v5752_v24  ;;  %v5787_v59 = vadd.f32 %v5761_v54, %v5751_v28 }
 0xd30   : > { %v12036_v23 = vmul.f32 0.055555556, %v5788_v21  ;;  %v12038_v10 = vmul.f32 0.055555556, %v5787_v59 }
 0xd31   : > { %v5767_v38 = vpop.permute.xlu0 %5766  ;;  %v5765_v35 = vpop.permute.xlu1 %5764 }
 0xd32   : > { %v5790_v9 = vadd.f32 %v5767_v38, %v5754_v49  ;;  %v5789_v27 = vadd.f32 %v5765_v35, %v5753_v37  ;;  %5816 = vrot.lane.b32.xlu1 %v12036_v23, %s7893_s15  ;;  %5814 = vrot.lane.b32.xlu0 %v12038_v10, %s7893_s15 }
 0xd34   : > { %v12046_v60 = vmul.f32 0.055555556, %v5790_v9  ;;  %v12048_v30 = vmul.f32 0.055555556, %v5789_v27 }
 0xd35   : > { %v5771_v3 = vpop.permute.xlu0 %5770  ;;  %v5769_v46 = vpop.permute.xlu1 %5768 }
 0xd36   : > { %v5792_v57 = vadd.f32 %v5771_v3, %v5756_v12  ;;  %v5791_v45 = vadd.f32 %v5769_v46, %v5755_v7  ;;  %5820 = vrot.lane.b32.xlu1 %v12046_v60, %s7893_s15  ;;  %5818 = vrot.lane.b32.xlu0 %v12048_v30, %s7893_s15 }
 0xd38   : > { %v5801_v36 = vmul.f32 0.055555556, %v5792_v57  ;;  %v5800_v40 = vmul.f32 0.055555556, %v5791_v45 }
 0xd39   : > { %v5775_v56 = vpop.permute.xlu0 %5774  ;;  %v5773_v32 = vpop.permute.xlu1 %5772 }
 0xd3a   : > { %v5794_v48 = vadd.f32 %v5775_v56, %v5758_v19  ;;  %v5793_v18 = vadd.f32 %v5773_v32, %v5757_v41  ;;  %5824 = vrot.lane.b32.xlu1 %v5801_v36, %s7893_s15  ;;  %5822 = vrot.lane.b32.xlu0 %v5800_v40, %s7893_s15 }
 0xd3c   : > { %v5803_v4 = vmul.f32 0.055555556, %v5794_v48  ;;  %v5802_v16 = vmul.f32 0.055555556, %v5793_v18 }
 0xd3d   : > { %v5777_v50 = vpop.permute.xlu1 %5776 }
 0xd3e   : > { %v5795_v39 = vadd.f32 %v5777_v50, %v5759_v14  ;;  %5828 = vrot.lane.b32.xlu1 %v5803_v4, %s7893_s15  ;;  %5826 = vrot.lane.b32.xlu0 %v5802_v16, %s7893_s15 }
 0xd40   : > { %v5804_v63 = vmul.f32 0.055555556, %v5795_v39 }
 0xd42   : > { %5851 = vrot.lane.b32.xlu1 %v12038_v10, %s13431_s28  ;;  %5830 = vrot.lane.b32.xlu0 %v5804_v63, %s7893_s15 }
 0xd46   : > { %5855 = vrot.lane.b32.xlu1 %v12048_v30, %s13431_s28  ;;  %5853 = vrot.lane.b32.xlu0 %v12036_v23, %s13431_s28 }
 0xd4a   : > { %5859 = vrot.lane.b32.xlu1 %v5800_v40, %s13431_s28  ;;  %5857 = vrot.lane.b32.xlu0 %v12046_v60, %s13431_s28 }
 0xd4e   : > { %5863 = vrot.lane.b32.xlu1 %v5802_v16, %s13431_s28  ;;  %5861 = vrot.lane.b32.xlu0 %v5801_v36, %s13431_s28 }
 0xd52   : > { %5867 = vrot.lane.b32.xlu1 %v5804_v63, %s13431_s28  ;;  %5865 = vrot.lane.b32.xlu0 %v5803_v4, %s13431_s28  ;;  %s12092_s28 = scalar_lea.vmem %s12708_s8, %s7622_s19 }
 0xd53   : > { %v6008_v47 = vld [vmem:[%s12092_s28] sm:$0xff]  ;;  %v6010_v53 = vld [vmem:[%s12092_s28 + $0x10] sm:$0xff]  ;;  %v6009_v43 = vld [vmem:[%s12092_s28 + $0x8] sm:$0xff] }
 0xd54   : > { %v6012_v29 = vld [vmem:[%s12092_s28 + $0x20] sm:$0xff]  ;;  %v6011_v62 = vld [vmem:[%s12092_s28 + $0x18] sm:$0xff]  ;;  %v6014_v58 = vld [vmem:[%s12092_s28 + $0x30] sm:$0xff] }
 0xd55   : > { %v6013_v1 = vld [vmem:[%s12092_s28 + $0x28] sm:$0xff]  ;;  %v6016_v5 = vld [vmem:[%s12092_s28 + $0x40] sm:$0xff]  ;;  %v6015_v6 = vld [vmem:[%s12092_s28 + $0x38] sm:$0xff] }
 0xd56   : > { %5890 = vrot.lane.b32.xlu1 %v12036_v23, %s7894_s29  ;;  %5888 = vrot.lane.b32.xlu0 %v12038_v10, %s7894_s29  ;;  %v6018_v8 = vld [vmem:[%s12092_s28 + $0x50] sm:$0xff]  ;;  %v6017_v44 = vld [vmem:[%s12092_s28 + $0x48] sm:$0xff] }
 0xd57   : > { %v6020_v28 = vld [vmem:[%s12092_s28 + $0x60] sm:$0xff]  ;;  %v6019_v24 = vld [vmem:[%s12092_s28 + $0x58] sm:$0xff]  ;;  %v6022_v20 = vld [vmem:[%s12092_s28 + $0x70] sm:$0xff] }
 0xd58   : > { %v6021_v52 = vld [vmem:[%s12092_s28 + $0x68] sm:$0xff]  ;;  %v6024_v33 = vld [vmem:[%s12092_s28 + $0x80] sm:$0xff]  ;;  %v6023_v31 = vld [vmem:[%s12092_s28 + $0x78] sm:$0xff] }
 0xd59   : > { %v6025_v51 = vld [vmem:[%s12092_s28 + $0x88] sm:$0xff] }
 0xd5a   : > { %5894 = vrot.lane.b32.xlu1 %v12046_v60, %s7894_s29  ;;  %5892 = vrot.lane.b32.xlu0 %v12048_v30, %s7894_s29 }
 0xd5e   : > { %5898 = vrot.lane.b32.xlu1 %v5801_v36, %s7894_s29  ;;  %5896 = vrot.lane.b32.xlu0 %v5800_v40, %s7894_s29 }
 0xd62   : > { %5902 = vrot.lane.b32.xlu1 %v5803_v4, %s7894_s29  ;;  %5900 = vrot.lane.b32.xlu0 %v5802_v16, %s7894_s29 }
 0xd66   : > { %5925 = vrot.lane.b32.xlu1 %v12038_v10, %s7895_s13  ;;  %5904 = vrot.lane.b32.xlu0 %v5804_v63, %s7894_s29 }
 0xd6a   : > { %5929 = vrot.lane.b32.xlu1 %v12048_v30, %s7895_s13  ;;  %5927 = vrot.lane.b32.xlu0 %v12036_v23, %s7895_s13 }
 0xd6e   : > { %5933 = vrot.lane.b32.xlu1 %v5800_v40, %s7895_s13  ;;  %5931 = vrot.lane.b32.xlu0 %v12046_v60, %s7895_s13 }
 0xd72   : > { %5937 = vrot.lane.b32.xlu1 %v5802_v16, %s7895_s13  ;;  %5935 = vrot.lane.b32.xlu0 %v5801_v36, %s7895_s13 }
 0xd76   : > { %5941 = vrot.lane.b32.xlu1 %v5804_v63, %s7895_s13  ;;  %5939 = vrot.lane.b32.xlu0 %v5803_v4, %s7895_s13  ;;  %s640_s13 = scalar_lea.vmem %s12711_s11, %s9941_s27 }
 0xd7a   : > { %5964 = vrot.lane.b32.xlu1 %v12036_v23, %s7896_s30  ;;  %5962 = vrot.lane.b32.xlu0 %v12038_v10, %s7896_s30 }
 0xd7e   : > { %5968 = vrot.lane.b32.xlu1 %v12046_v60, %s7896_s30  ;;  %5966 = vrot.lane.b32.xlu0 %v12048_v30, %s7896_s30 }
 0xd82   : > { %5972 = vrot.lane.b32.xlu1 %v5801_v36, %s7896_s30  ;;  %5970 = vrot.lane.b32.xlu0 %v5800_v40, %s7896_s30 }
 0xd86   : > { %5976 = vrot.lane.b32.xlu1 %v5803_v4, %s7896_s30  ;;  %5974 = vrot.lane.b32.xlu0 %v5802_v16, %s7896_s30 }
 0xd8a   : > { %6064 = vperm.xlu1 %7681, %v6008_v47   ;;  %5978 = vrot.lane.b32.xlu0 %v5804_v63, %s7896_s30  ;;  %s630_s30 = scalar_lea.vmem %s12709_s9, %s9941_s27 }
 0xd8e   : > { %6074 = vperm.xlu1 %7681, %v6010_v53   ;;  %6069 = vperm.xlu0 %7680, %v6009_v43  }
 0xd92   : > { %6084 = vperm.xlu1 %7681, %v6012_v29   ;;  %6079 = vperm.xlu0 %7680, %v6011_v62  }
 0xd96   : > { %6094 = vperm.xlu1 %7681, %v6014_v58   ;;  %6089 = vperm.xlu0 %7680, %v6013_v1  }
 0xd9a   : > { %6104 = vperm.xlu1 %7681, %v6016_v5   ;;  %6099 = vperm.xlu0 %7680, %v6015_v6  }
 0xd9e   : > { %6123 = vperm.xlu1 %7681, %v6018_v8   ;;  %6118 = vperm.xlu0 %7680, %v6017_v44  }
 0xda2   : > { %6133 = vperm.xlu1 %7681, %v6020_v28   ;;  %6128 = vperm.xlu0 %7680, %v6019_v24  }
 0xda4   : > { %v5815_v61 = vpop.permute.xlu0 %5814  ;;  %v5817_v54 = vpop.permute.xlu1 %5816 }
 0xda5   : > { %5842 = vst.msk [vmem:[#allocation3] sm:$0xff] %vm5841_vm2, %v5815_v61  ;;  %5843 = vst.msk [vmem:[#allocation3 + $0x8] sm:$0xff] %vm5841_vm2, %v5817_v54 }
 0xda6   : > { %6143 = vperm.xlu1 %7681, %v6022_v20   ;;  %6138 = vperm.xlu0 %7680, %v6021_v52  }
 0xda8   : > { %v5819_v21 = vpop.permute.xlu0 %5818  ;;  %v5821_v59 = vpop.permute.xlu1 %5820 }
 0xda9   : > { %5844 = vst.msk [vmem:[#allocation3 + $0x10] sm:$0xff] %vm5841_vm2, %v5819_v21  ;;  %5845 = vst.msk [vmem:[#allocation3 + $0x18] sm:$0xff] %vm5841_vm2, %v5821_v59 }
 0xdaa   : > { %6153 = vperm.xlu1 %7681, %v6024_v33   ;;  %6148 = vperm.xlu0 %7680, %v6023_v31  }
 0xdac   : > { %v5823_v0 = vpop.permute.xlu0 %5822  ;;  %v5825_v37 = vpop.permute.xlu1 %5824 }
 0xdad   : > { %5846 = vst.msk [vmem:[#allocation3 + $0x20] sm:$0xff] %vm5841_vm2, %v5823_v0  ;;  %5847 = vst.msk [vmem:[#allocation3 + $0x28] sm:$0xff] %vm5841_vm2, %v5825_v37 }
 0xdae   : > { %6158 = vperm.xlu0 %7680, %v6025_v51  }
 0xdb0   : > { %v5827_v49 = vpop.permute.xlu0 %5826  ;;  %v5829_v23 = vpop.permute.xlu1 %5828 }
 0xdb1   : > { %5848 = vst.msk [vmem:[#allocation3 + $0x30] sm:$0xff] %vm5841_vm2, %v5827_v49  ;;  %5849 = vst.msk [vmem:[#allocation3 + $0x38] sm:$0xff] %vm5841_vm2, %v5829_v23 }
 0xdb4   : > { %v5831_v10 = vpop.permute.xlu0 %5830  ;;  %v5852_v2 = vpop.permute.xlu1 %5851 }
 0xdb5   : > { %5850 = vst.msk [vmem:[#allocation3 + $0x40] sm:$0xff] %vm5841_vm2, %v5831_v10 }
 0xdb6   : > { %5879 = vst.msk [vmem:[#allocation3] sm:$0xff] %vm5878_vm13, %v5852_v2 }
 0xdb8   : > { %v5854_v17 = vpop.permute.xlu0 %5853  ;;  %v5856_v55 = vpop.permute.xlu1 %5855 }
 0xdb9   : > { %5880 = vst.msk [vmem:[#allocation3 + $0x8] sm:$0xff] %vm5878_vm13, %v5854_v17  ;;  %5881 = vst.msk [vmem:[#allocation3 + $0x10] sm:$0xff] %vm5878_vm13, %v5856_v55 }
 0xdbc   : > { %v5858_v38 = vpop.permute.xlu0 %5857  ;;  %v5860_v35 = vpop.permute.xlu1 %5859 }
 0xdbd   : > { %5882 = vst.msk [vmem:[#allocation3 + $0x18] sm:$0xff] %vm5878_vm13, %v5858_v38  ;;  %5883 = vst.msk [vmem:[#allocation3 + $0x20] sm:$0xff] %vm5878_vm13, %v5860_v35 }
 0xdc0   : > { %v5862_v42 = vpop.permute.xlu0 %5861  ;;  %v5864_v9 = vpop.permute.xlu1 %5863 }
 0xdc1   : > { %5884 = vst.msk [vmem:[#allocation3 + $0x28] sm:$0xff] %vm5878_vm13, %v5862_v42  ;;  %5885 = vst.msk [vmem:[#allocation3 + $0x30] sm:$0xff] %vm5878_vm13, %v5864_v9 }
 0xdc4   : > { %v5866_v27 = vpop.permute.xlu0 %5865  ;;  %v5868_v13 = vpop.permute.xlu1 %5867 }
 0xdc5   : > { %5886 = vst.msk [vmem:[#allocation3 + $0x38] sm:$0xff] %vm5878_vm13, %v5866_v27  ;;  %5887 = vst.msk [vmem:[#allocation3 + $0x40] sm:$0xff] %vm5878_vm13, %v5868_v13  ;;  %v6026_v27 = vld [vmem:[%s12092_s28 + $0x90] sm:$0xff] }
 0xdc8   : > { %v5889_v34 = vpop.permute.xlu0 %5888  ;;  %v5891_v7 = vpop.permute.xlu1 %5890 }
 0xdc9   : > { %5916 = vst.msk [vmem:[#allocation3] sm:$0xff] %vm5915_vm12, %v5889_v34  ;;  %5917 = vst.msk [vmem:[#allocation3 + $0x8] sm:$0xff] %vm5915_vm12, %v5891_v7  ;;  %v6027_v34 = vld [vmem:[%s12092_s28 + $0x98] sm:$0xff]  ;;  %v6028_v7 = vld [vmem:[%s12092_s28 + $0xa0] sm:$0xff] }
 0xdcc   : > { %v5893_v12 = vpop.permute.xlu0 %5892  ;;  %v5895_v60 = vpop.permute.xlu1 %5894 }
 0xdcd   : > { %5918 = vst.msk [vmem:[#allocation3 + $0x10] sm:$0xff] %vm5915_vm12, %v5893_v12  ;;  %5919 = vst.msk [vmem:[#allocation3 + $0x18] sm:$0xff] %vm5915_vm12, %v5895_v60  ;;  %v6029_v12 = vld [vmem:[%s12092_s28 + $0xa8] sm:$0xff]  ;;  %v6030_v60 = vld [vmem:[%s12092_s28 + $0xb0] sm:$0xff] }
 0xdd0   : > { %v5897_v30 = vpop.permute.xlu0 %5896  ;;  %v5899_v22 = vpop.permute.xlu1 %5898 }
 0xdd1   : > { %5920 = vst.msk [vmem:[#allocation3 + $0x20] sm:$0xff] %vm5915_vm12, %v5897_v30  ;;  %5921 = vst.msk [vmem:[#allocation3 + $0x28] sm:$0xff] %vm5915_vm12, %v5899_v22  ;;  %v6031_v30 = vld [vmem:[%s12092_s28 + $0xb8] sm:$0xff]  ;;  %v6032_v22 = vld [vmem:[%s12092_s28 + $0xc0] sm:$0xff] }
 0xdd4   : > { %v5901_v25 = vpop.permute.xlu0 %5900  ;;  %v5903_v3 = vpop.permute.xlu1 %5902 }
 0xdd5   : > { %5922 = vst.msk [vmem:[#allocation3 + $0x30] sm:$0xff] %vm5915_vm12, %v5901_v25  ;;  %5923 = vst.msk [vmem:[#allocation3 + $0x38] sm:$0xff] %vm5915_vm12, %v5903_v3  ;;  %v6033_v25 = vld [vmem:[%s12092_s28 + $0xc8] sm:$0xff]  ;;  %v6034_v3 = vld [vmem:[%s12092_s28 + $0xd0] sm:$0xff] }
 0xdd8   : > { %v5905_v46 = vpop.permute.xlu0 %5904  ;;  %v5926_v26 = vpop.permute.xlu1 %5925 }
 0xdd9   : > { %5924 = vst.msk [vmem:[#allocation3 + $0x40] sm:$0xff] %vm5915_vm12, %v5905_v46 }
 0xdda   : > { %5953 = vst.msk [vmem:[#allocation3] sm:$0xff] %vm5952_vm15, %v5926_v26 }
 0xddc   : > { %v5928_v57 = vpop.permute.xlu0 %5927  ;;  %v5930_v45 = vpop.permute.xlu1 %5929 }
 0xddd   : > { %5954 = vst.msk [vmem:[#allocation3 + $0x8] sm:$0xff] %vm5952_vm15, %v5928_v57  ;;  %5955 = vst.msk [vmem:[#allocation3 + $0x10] sm:$0xff] %vm5952_vm15, %v5930_v45 }
 0xde0   : > { %v5932_v11 = vpop.permute.xlu0 %5931  ;;  %v5934_v41 = vpop.permute.xlu1 %5933 }
 0xde1   : > { %5956 = vst.msk [vmem:[#allocation3 + $0x18] sm:$0xff] %vm5952_vm15, %v5932_v11  ;;  %5957 = vst.msk [vmem:[#allocation3 + $0x20] sm:$0xff] %vm5952_vm15, %v5934_v41 }
 0xde4   : > { %v5936_v19 = vpop.permute.xlu0 %5935  ;;  %v5938_v36 = vpop.permute.xlu1 %5937 }
 0xde5   : > { %5958 = vst.msk [vmem:[#allocation3 + $0x28] sm:$0xff] %vm5952_vm15, %v5936_v19  ;;  %5959 = vst.msk [vmem:[#allocation3 + $0x30] sm:$0xff] %vm5952_vm15, %v5938_v36 }
 0xde8   : > { %v5940_v40 = vpop.permute.xlu0 %5939  ;;  %v5942_v56 = vpop.permute.xlu1 %5941 }
 0xde9   : > { %5960 = vst.msk [vmem:[#allocation3 + $0x38] sm:$0xff] %vm5952_vm15, %v5940_v40  ;;  %5961 = vst.msk [vmem:[#allocation3 + $0x40] sm:$0xff] %vm5952_vm15, %v5942_v56 }
 0xdec   : > { %v5963_v32 = vpop.permute.xlu0 %5962  ;;  %v5965_v15 = vpop.permute.xlu1 %5964 }
 0xded   : > { %5990 = vst.msk [vmem:[#allocation3] sm:$0xff] %vm5989_vm9, %v5963_v32  ;;  %5991 = vst.msk [vmem:[#allocation3 + $0x8] sm:$0xff] %vm5989_vm9, %v5965_v15 }
 0xdf0   : > { %v5967_v48 = vpop.permute.xlu0 %5966  ;;  %v5969_v18 = vpop.permute.xlu1 %5968 }
 0xdf1   : > { %5992 = vst.msk [vmem:[#allocation3 + $0x10] sm:$0xff] %vm5989_vm9, %v5967_v48  ;;  %5993 = vst.msk [vmem:[#allocation3 + $0x18] sm:$0xff] %vm5989_vm9, %v5969_v18 }
 0xdf4   : > { %v5971_v14 = vpop.permute.xlu0 %5970  ;;  %v5973_v4 = vpop.permute.xlu1 %5972  ;;  %v12175_v6 = vld [vmem:[#allocation3] sm:$0xff]  ;;  %v12177_v8 = vld [vmem:[#allocation3 + $0x8] sm:$0xff] }
 0xdf5   : > { %5994 = vst.msk [vmem:[#allocation3 + $0x20] sm:$0xff] %vm5989_vm9, %v5971_v14  ;;  %5995 = vst.msk [vmem:[#allocation3 + $0x28] sm:$0xff] %vm5989_vm9, %v5973_v4 }
 0xdf8   : > { %v5975_v16 = vpop.permute.xlu0 %5974  ;;  %v5977_v50 = vpop.permute.xlu1 %5976  ;;  %v12183_v52 = vld [vmem:[#allocation3 + $0x10] sm:$0xff]  ;;  %v12185_v61 = vld [vmem:[#allocation3 + $0x18] sm:$0xff] }
 0xdf9   : > { %5996 = vst.msk [vmem:[#allocation3 + $0x30] sm:$0xff] %vm5989_vm9, %v5975_v16  ;;  %5997 = vst.msk [vmem:[#allocation3 + $0x38] sm:$0xff] %vm5989_vm9, %v5977_v50 }
 0xdfc   : > { %v5979_v39 = vpop.permute.xlu0 %5978  ;;  %v12191_v59 = vld [vmem:[#allocation3 + $0x20] sm:$0xff]  ;;  %v12193_v51 = vld [vmem:[#allocation3 + $0x28] sm:$0xff] }
 0xdfd   : > { %5998 = vst.msk [vmem:[#allocation3 + $0x40] sm:$0xff] %vm5989_vm9, %v5979_v39 }
 0xe00   : > { %v12199_v10 = vld [vmem:[#allocation3 + $0x30] sm:$0xff]  ;;  %v12201_v2 = vld [vmem:[#allocation3 + $0x38] sm:$0xff] }
 0xe04   : > { %v12207_v42 = vld [vmem:[#allocation3 + $0x40] sm:$0xff] }
 0xe09   : > { %v12157_v63 = vpop.permute.xlu1 %6064 }
 0xe0d   : > { %v12159_v47 = vpop.permute.xlu0 %6069  ;;  %v12161_v53 = vpop.permute.xlu1 %6074 }
 0xe11   : > { %v12163_v43 = vpop.permute.xlu0 %6079  ;;  %v12165_v29 = vpop.permute.xlu1 %6084 }
 0xe15   : > { %v12167_v62 = vpop.permute.xlu0 %6089  ;;  %v12169_v58 = vpop.permute.xlu1 %6094 }
 0xe19   : > { %v12171_v1 = vpop.permute.xlu0 %6099  ;;  %v12173_v5 = vpop.permute.xlu1 %6104 }
 0xe1d   : > { %v6119_v44 = vpop.permute.xlu0 %6118  ;;  %v6124_v28 = vpop.permute.xlu1 %6123 }
 0xe1e   : > { %v6161_v24 = vmul.f32 %v6119_v44, %v12175_v6  ;;  %v6162_v20 = vmul.f32 %v6124_v28, %v12177_v8 }
 0xe20   : > { %6179 = vrot.lane.b32.xlu1 %v6161_v24, %s7874_s14  ;;  %6181 = vrot.lane.b32.xlu0 %v6162_v20, %s7874_s14 }
 0xe21   : > { %v6129_v54 = vpop.permute.xlu0 %6128  ;;  %v6134_v33 = vpop.permute.xlu1 %6133 }
 0xe22   : > { %v6163_v31 = vmul.f32 %v6129_v54, %v12183_v52  ;;  %v6164_v21 = vmul.f32 %v6134_v33, %v12185_v61 }
 0xe24   : > { %6183 = vrot.lane.b32.xlu1 %v6163_v31, %s7874_s14  ;;  %6185 = vrot.lane.b32.xlu0 %v6164_v21, %s7874_s14 }
 0xe25   : > { %v6139_v0 = vpop.permute.xlu0 %6138  ;;  %v6144_v37 = vpop.permute.xlu1 %6143 }
 0xe26   : > { %v6165_v49 = vmul.f32 %v6139_v0, %v12191_v59  ;;  %v6166_v23 = vmul.f32 %v6144_v37, %v12193_v51  ;;  %v6036_v0 = vld [vmem:[%s12092_s28 + $0xe0] sm:$0xff]  ;;  %v6035_v37 = vld [vmem:[%s12092_s28 + $0xd8] sm:$0xff] }
 0xe28   : > { %6187 = vrot.lane.b32.xlu1 %v6165_v49, %s7874_s14  ;;  %6189 = vrot.lane.b32.xlu0 %v6166_v23, %s7874_s14  ;;  %v6038_v49 = vld [vmem:[%s12092_s28 + $0xf0] sm:$0xff]  ;;  %v6037_v23 = vld [vmem:[%s12092_s28 + $0xe8] sm:$0xff] }
 0xe29   : > { %v6149_v17 = vpop.permute.xlu0 %6148  ;;  %v6154_v55 = vpop.permute.xlu1 %6153 }
 0xe2a   : > { %v6167_v38 = vmul.f32 %v6149_v17, %v12199_v10  ;;  %v6168_v35 = vmul.f32 %v6154_v55, %v12201_v2  ;;  %v6040_v17 = vld [vmem:[%s12092_s28 + $0x100] sm:$0xff]  ;;  %v6039_v55 = vld [vmem:[%s12092_s28 + $0xf8] sm:$0xff] }
 0xe2c   : > { %6191 = vrot.lane.b32.xlu1 %v6167_v38, %s7874_s14  ;;  %6193 = vrot.lane.b32.xlu0 %v6168_v35, %s7874_s14  ;;  %v6042_v38 = vld [vmem:[%s12092_s28 + $0x110] sm:$0xff]  ;;  %v6041_v35 = vld [vmem:[%s12092_s28 + $0x108] sm:$0xff] }
 0xe2d   : > { %v6159_v9 = vpop.permute.xlu0 %6158 }
 0xe2e   : > { %v6169_v13 = vmul.f32 %v6159_v9, %v12207_v42  ;;  %v6043_v9 = vld [vmem:[%s12092_s28 + $0x118] sm:$0xff] }
 0xe30   : > { %6195 = vrot.lane.b32.xlu1 %v6169_v13, %s7874_s14  ;;  %6217 = vperm.xlu0 %7680, %v6026_v27  }
 0xe34   : > { %6222 = vperm.xlu1 %7681, %v6027_v34   ;;  %6227 = vperm.xlu0 %7680, %v6028_v7  }
 0xe38   : > { %6232 = vperm.xlu1 %7681, %v6029_v12   ;;  %6237 = vperm.xlu0 %7680, %v6030_v60  }
 0xe3c   : > { %6242 = vperm.xlu1 %7681, %v6031_v30   ;;  %6247 = vperm.xlu0 %7680, %v6032_v22  }
 0xe40   : > { %6252 = vperm.xlu1 %7681, %v6033_v25   ;;  %6257 = vperm.xlu0 %7680, %v6034_v3  }
 0xe92   : > { %v12220_v46 = vpop.permute.xlu1 %6179  ;;  %v12222_v26 = vpop.permute.xlu0 %6181 }
 0xe96   : > { %v12224_v57 = vpop.permute.xlu1 %6183  ;;  %v12226_v45 = vpop.permute.xlu0 %6185 }
 0xe9a   : > { %v12228_v11 = vpop.permute.xlu1 %6187  ;;  %v12230_v41 = vpop.permute.xlu0 %6189 }
 0xe9e   : > { %v12232_v19 = vpop.permute.xlu1 %6191  ;;  %v12234_v36 = vpop.permute.xlu0 %6193 }
 0xea2   : > { %v12236_v40 = vpop.permute.xlu1 %6195 }
 0xeaf   : > { %v6218_v56 = vpop.permute.xlu0 %6217 }
 0xeb0   : > { %v6260_v32 = vmul.f32 %v6218_v56, %v12175_v6 }
 0xeb2   : > { %6278 = vrot.lane.b32.xlu1 %v6260_v32, %s7875_s20 }
 0xeb3   : > { %v6228_v15 = vpop.permute.xlu0 %6227  ;;  %v6223_v48 = vpop.permute.xlu1 %6222 }
 0xeb4   : > { %v6262_v18 = vmul.f32 %v6228_v15, %v12183_v52  ;;  %v6261_v14 = vmul.f32 %v6223_v48, %v12177_v8 }
 0xeb6   : > { %6282 = vrot.lane.b32.xlu1 %v6262_v18, %s7875_s20  ;;  %6280 = vrot.lane.b32.xlu0 %v6261_v14, %s7875_s20 }
 0xeb7   : > { %v6238_v4 = vpop.permute.xlu0 %6237  ;;  %v6233_v16 = vpop.permute.xlu1 %6232 }
 0xeb8   : > { %v6264_v50 = vmul.f32 %v6238_v4, %v12191_v59  ;;  %v6263_v39 = vmul.f32 %v6233_v16, %v12185_v61 }
 0xeba   : > { %6286 = vrot.lane.b32.xlu1 %v6264_v50, %s7875_s20  ;;  %6284 = vrot.lane.b32.xlu0 %v6263_v39, %s7875_s20 }
 0xebb   : > { %v6248_v44 = vpop.permute.xlu0 %6247  ;;  %v6243_v28 = vpop.permute.xlu1 %6242 }
 0xebc   : > { %v6266_v24 = vmul.f32 %v6248_v44, %v12199_v10  ;;  %v6265_v20 = vmul.f32 %v6243_v28, %v12193_v51 }
 0xebe   : > { %6290 = vrot.lane.b32.xlu1 %v6266_v24, %s7875_s20  ;;  %6288 = vrot.lane.b32.xlu0 %v6265_v20, %s7875_s20 }
 0xebf   : > { %v6258_v54 = vpop.permute.xlu0 %6257  ;;  %v6253_v33 = vpop.permute.xlu1 %6252 }
 0xec0   : > { %v6268_v31 = vmul.f32 %v6258_v54, %v12207_v42  ;;  %v6267_v21 = vmul.f32 %v6253_v33, %v12201_v2 }
 0xec2   : > { %6294 = vrot.lane.b32.xlu1 %v6268_v31, %s7875_s20  ;;  %6292 = vrot.lane.b32.xlu0 %v6267_v21, %s7875_s20  ;;  %v6044_v31 = vld [vmem:[%s12092_s28 + $0x120] sm:$0xff] }
 0xec6   : > { %6321 = vperm.xlu1 %7681, %v6036_v0   ;;  %6316 = vperm.xlu0 %7680, %v6035_v37   ;;  %v6045_v0 = vld [vmem:[%s12092_s28 + $0x128] sm:$0xff]  ;;  %v6046_v37 = vld [vmem:[%s12092_s28 + $0x130] sm:$0xff] }
 0xeca   : > { %6331 = vperm.xlu1 %7681, %v6038_v49   ;;  %6326 = vperm.xlu0 %7680, %v6037_v23   ;;  %v6047_v49 = vld [vmem:[%s12092_s28 + $0x138] sm:$0xff]  ;;  %v6048_v23 = vld [vmem:[%s12092_s28 + $0x140] sm:$0xff] }
 0xece   : > { %6341 = vperm.xlu1 %7681, %v6040_v17   ;;  %6336 = vperm.xlu0 %7680, %v6039_v55   ;;  %v6049_v17 = vld [vmem:[%s12092_s28 + $0x148] sm:$0xff]  ;;  %v6050_v55 = vld [vmem:[%s12092_s28 + $0x150] sm:$0xff] }
 0xed2   : > { %6351 = vperm.xlu1 %7681, %v6042_v38   ;;  %6346 = vperm.xlu0 %7680, %v6041_v35   ;;  %v6051_v38 = vld [vmem:[%s12092_s28 + $0x158] sm:$0xff]  ;;  %v6052_v35 = vld [vmem:[%s12092_s28 + $0x160] sm:$0xff] }
 0xed6   : > { %6356 = vperm.xlu0 %7680, %v6043_v9  }
 0xf24   : > { %v12265_v27 = vpop.permute.xlu1 %6278 }
 0xf28   : > { %v12267_v13 = vpop.permute.xlu0 %6280  ;;  %v12269_v34 = vpop.permute.xlu1 %6282 }
 0xf2c   : > { %v12271_v7 = vpop.permute.xlu0 %6284  ;;  %v12273_v12 = vpop.permute.xlu1 %6286 }
 0xf30   : > { %v12275_v60 = vpop.permute.xlu0 %6288  ;;  %v12277_v30 = vpop.permute.xlu1 %6290 }
 0xf34   : > { %v12279_v22 = vpop.permute.xlu0 %6292  ;;  %v12281_v25 = vpop.permute.xlu1 %6294 }
 0xf45   : > { %v6317_v3 = vpop.permute.xlu0 %6316  ;;  %v6322_v56 = vpop.permute.xlu1 %6321 }
 0xf46   : > { %v6359_v32 = vmul.f32 %v6317_v3, %v12175_v6  ;;  %v6360_v15 = vmul.f32 %v6322_v56, %v12177_v8 }
 0xf48   : > { %6377 = vrot.lane.b32.xlu1 %v6359_v32, %s7890_s18  ;;  %6379 = vrot.lane.b32.xlu0 %v6360_v15, %s7890_s18 }
 0xf49   : > { %v6327_v48 = vpop.permute.xlu0 %6326  ;;  %v6332_v18 = vpop.permute.xlu1 %6331 }
 0xf4a   : > { %v6361_v14 = vmul.f32 %v6327_v48, %v12183_v52  ;;  %v6362_v4 = vmul.f32 %v6332_v18, %v12185_v61 }
 0xf4c   : > { %6381 = vrot.lane.b32.xlu1 %v6361_v14, %s7890_s18  ;;  %6383 = vrot.lane.b32.xlu0 %v6362_v4, %s7890_s18 }
 0xf4d   : > { %v6337_v16 = vpop.permute.xlu0 %6336  ;;  %v6342_v50 = vpop.permute.xlu1 %6341 }
 0xf4e   : > { %v6363_v39 = vmul.f32 %v6337_v16, %v12191_v59  ;;  %v6364_v44 = vmul.f32 %v6342_v50, %v12193_v51 }
 0xf50   : > { %6385 = vrot.lane.b32.xlu1 %v6363_v39, %s7890_s18  ;;  %6387 = vrot.lane.b32.xlu0 %v6364_v44, %s7890_s18 }
 0xf51   : > { %v6347_v28 = vpop.permute.xlu0 %6346  ;;  %v6352_v24 = vpop.permute.xlu1 %6351 }
 0xf52   : > { %v6365_v20 = vmul.f32 %v6347_v28, %v12199_v10  ;;  %v6366_v54 = vmul.f32 %v6352_v24, %v12201_v2 }
 0xf54   : > { %6389 = vrot.lane.b32.xlu1 %v6365_v20, %s7890_s18  ;;  %6391 = vrot.lane.b32.xlu0 %v6366_v54, %s7890_s18 }
 0xf55   : > { %v6357_v33 = vpop.permute.xlu0 %6356 }
 0xf56   : > { %v6367_v21 = vmul.f32 %v6357_v33, %v12207_v42 }
 0xf58   : > { %6393 = vrot.lane.b32.xlu1 %v6367_v21, %s7890_s18  ;;  %6415 = vperm.xlu0 %7680, %v6044_v31  }
 0xf5c   : > { %6420 = vperm.xlu1 %7681, %v6045_v0   ;;  %6425 = vperm.xlu0 %7680, %v6046_v37  }
 0xf60   : > { %6430 = vperm.xlu1 %7681, %v6047_v49   ;;  %6435 = vperm.xlu0 %7680, %v6048_v23  }
 0xf64   : > { %6440 = vperm.xlu1 %7681, %v6049_v17   ;;  %6445 = vperm.xlu0 %7680, %v6050_v55  }
 0xf68   : > { %6450 = vperm.xlu1 %7681, %v6051_v38   ;;  %6455 = vperm.xlu0 %7680, %v6052_v35   ;;  %v6054_v35 = vld [vmem:[%s12092_s28 + $0x170] sm:$0xff] }
 0xfba   : > { %v12310_v9 = vpop.permute.xlu1 %6377  ;;  %v12312_v3 = vpop.permute.xlu0 %6379 }
 0xfbe   : > { %v12314_v56 = vpop.permute.xlu1 %6381  ;;  %v12316_v32 = vpop.permute.xlu0 %6383 }
 0xfc2   : > { %v12318_v15 = vpop.permute.xlu1 %6385  ;;  %v12320_v48 = vpop.permute.xlu0 %6387 }
 0xfc6   : > { %v12322_v18 = vpop.permute.xlu1 %6389  ;;  %v12324_v14 = vpop.permute.xlu0 %6391 }
 0xfca   : > { %v12326_v4 = vpop.permute.xlu1 %6393 }
 0xfcb   : > { %13432 = vst [vmem:[#allocation68_spill] sm:$0xff] %v12326_v4 }
 0xfd7   : > { %v6416_v16 = vpop.permute.xlu0 %6415 }
 0xfd8   : > { %v6458_v50 = vmul.f32 %v6416_v16, %v12175_v6  ;;  %v6053_v16 = vld [vmem:[%s12092_s28 + $0x168] sm:$0xff] }
 0xfda   : > { %6476 = vrot.lane.b32.xlu1 %v6458_v50, %s7893_s15  ;;  %v6056_v50 = vld [vmem:[%s12092_s28 + $0x180] sm:$0xff] }
 0xfdb   : > { %v6426_v39 = vpop.permute.xlu0 %6425  ;;  %v6421_v44 = vpop.permute.xlu1 %6420 }
 0xfdc   : > { %v6460_v28 = vmul.f32 %v6426_v39, %v12183_v52  ;;  %v6459_v24 = vmul.f32 %v6421_v44, %v12177_v8  ;;  %v6055_v39 = vld [vmem:[%s12092_s28 + $0x178] sm:$0xff]  ;;  %v6058_v44 = vld [vmem:[%s12092_s28 + $0x190] sm:$0xff] }
 0xfde   : > { %6480 = vrot.lane.b32.xlu1 %v6460_v28, %s7893_s15  ;;  %6478 = vrot.lane.b32.xlu0 %v6459_v24, %s7893_s15  ;;  %v6057_v28 = vld [vmem:[%s12092_s28 + $0x188] sm:$0xff]  ;;  %v6060_v24 = vld [vmem:[%s12092_s28 + $0x1a0] sm:$0xff] }
 0xfdf   : > { %v6436_v20 = vpop.permute.xlu0 %6435  ;;  %v6431_v54 = vpop.permute.xlu1 %6430 }
 0xfe0   : > { %v6462_v33 = vmul.f32 %v6436_v20, %v12191_v59  ;;  %v6461_v31 = vmul.f32 %v6431_v54, %v12185_v61  ;;  %v6059_v20 = vld [vmem:[%s12092_s28 + $0x198] sm:$0xff]  ;;  %v6061_v54 = vld [vmem:[%s12092_s28 + $0x1a8] sm:$0xff] }
 0xfe2   : > { %6484 = vrot.lane.b32.xlu1 %v6462_v33, %s7893_s15  ;;  %6482 = vrot.lane.b32.xlu0 %v6461_v31, %s7893_s15 }
 0xfe3   : > { %v6446_v21 = vpop.permute.xlu0 %6445  ;;  %v6441_v0 = vpop.permute.xlu1 %6440 }
 0xfe4   : > { %v6464_v37 = vmul.f32 %v6446_v21, %v12199_v10  ;;  %v6463_v49 = vmul.f32 %v6441_v0, %v12193_v51 }
 0xfe6   : > { %6488 = vrot.lane.b32.xlu1 %v6464_v37, %s7893_s15  ;;  %6486 = vrot.lane.b32.xlu0 %v6463_v49, %s7893_s15 }
 0xfe7   : > { %v6456_v23 = vpop.permute.xlu0 %6455  ;;  %v6451_v17 = vpop.permute.xlu1 %6450 }
 0xfe8   : > { %v6466_v55 = vmul.f32 %v6456_v23, %v12207_v42  ;;  %v6465_v38 = vmul.f32 %v6451_v17, %v12201_v2 }
 0xfea   : > { %6492 = vrot.lane.b32.xlu1 %v6466_v55, %s7893_s15  ;;  %6490 = vrot.lane.b32.xlu0 %v6465_v38, %s7893_s15 }
 0xfee   : > { %6519 = vperm.xlu1 %7681, %v6054_v35   ;;  %6514 = vperm.xlu0 %7680, %v6053_v16  }
 0xff2   : > { %6529 = vperm.xlu1 %7681, %v6056_v50   ;;  %6524 = vperm.xlu0 %7680, %v6055_v39  }
 0xff6   : > { %6539 = vperm.xlu1 %7681, %v6058_v44   ;;  %6534 = vperm.xlu0 %7680, %v6057_v28  }
 0xffa   : > { %6549 = vperm.xlu1 %7681, %v6060_v24   ;;  %6544 = vperm.xlu0 %7680, %v6059_v20  }
 0xffe   : > { %6554 = vperm.xlu0 %7680, %v6061_v54  }
0x104c   : > { %v12355_v33 = vpop.permute.xlu1 %6476 }
0x1050   : > { %v12357_v31 = vpop.permute.xlu0 %6478  ;;  %v12359_v21 = vpop.permute.xlu1 %6480 }
0x1054   : > { %v12361_v0 = vpop.permute.xlu0 %6482  ;;  %v12363_v37 = vpop.permute.xlu1 %6484 }
0x1058   : > { %v12365_v49 = vpop.permute.xlu0 %6486  ;;  %v12367_v23 = vpop.permute.xlu1 %6488 }
0x1059   : > { %13433 = vst [vmem:[#allocation70_spill] sm:$0xff] %v12365_v49  ;;  %13434 = vst [vmem:[#allocation73_spill] sm:$0xff] %v12367_v23 }
0x105c   : > { %v12369_v17 = vpop.permute.xlu0 %6490  ;;  %v12371_v55 = vpop.permute.xlu1 %6492 }
0x105d   : > { %13435 = vst [vmem:[#allocation71_spill] sm:$0xff] %v12369_v17  ;;  %13436 = vst [vmem:[#allocation75_spill] sm:$0xff] %v12371_v55  ;;  %v6619_v55 = vld [vmem:[%s630_s30 + $0x40] sm:$0xff] }
0x105e   : > { %v6799_v17 = vld [vmem:[%s640_s13 + $0x40] sm:$0xff] }
0x106d   : > { %v6515_v38 = vpop.permute.xlu0 %6514  ;;  %v6520_v35 = vpop.permute.xlu1 %6519 }
0x106e   : > { %v6557_v16 = vmul.f32 %v6515_v38, %v12175_v6  ;;  %v6558_v50 = vmul.f32 %v6520_v35, %v12177_v8 }
0x1070   : > { %6575 = vrot.lane.b32.xlu1 %v6557_v16, %s7897_s21  ;;  %6577 = vrot.lane.b32.xlu0 %v6558_v50, %s7897_s21 }
0x1071   : > { %v6525_v39 = vpop.permute.xlu0 %6524  ;;  %v6530_v44 = vpop.permute.xlu1 %6529 }
0x1072   : > { %v6559_v28 = vmul.f32 %v6525_v39, %v12183_v52  ;;  %v6560_v24 = vmul.f32 %v6530_v44, %v12185_v61 }
0x1074   : > { %6579 = vrot.lane.b32.xlu1 %v6559_v28, %s7897_s21  ;;  %6581 = vrot.lane.b32.xlu0 %v6560_v24, %s7897_s21  ;;  %v6611_v24 = vld [vmem:[%s630_s30] sm:$0xff] }
0x1075   : > { %v6535_v20 = vpop.permute.xlu0 %6534  ;;  %v6540_v54 = vpop.permute.xlu1 %6539 }
0x1076   : > { %v6561_v38 = vmul.f32 %v6535_v20, %v12191_v59  ;;  %v6562_v35 = vmul.f32 %v6540_v54, %v12193_v51  ;;  %v6612_v54 = vld [vmem:[%s630_s30 + $0x8] sm:$0xff] }
0x1078   : > { %6583 = vrot.lane.b32.xlu1 %v6561_v38, %s7897_s21  ;;  %6585 = vrot.lane.b32.xlu0 %v6562_v35, %s7897_s21  ;;  %v6613_v38 = vld [vmem:[%s630_s30 + $0x10] sm:$0xff]  ;;  %v6614_v35 = vld [vmem:[%s630_s30 + $0x18] sm:$0xff] }
0x1079   : > { %v6545_v16 = vpop.permute.xlu0 %6544  ;;  %v6550_v50 = vpop.permute.xlu1 %6549 }
0x107a   : > { %v6563_v39 = vmul.f32 %v6545_v16, %v12199_v10  ;;  %v6564_v44 = vmul.f32 %v6550_v50, %v12201_v2  ;;  %v6615_v16 = vld [vmem:[%s630_s30 + $0x20] sm:$0xff]  ;;  %v6616_v50 = vld [vmem:[%s630_s30 + $0x28] sm:$0xff] }
0x107c   : > { %6587 = vrot.lane.b32.xlu1 %v6563_v39, %s7897_s21  ;;  %6589 = vrot.lane.b32.xlu0 %v6564_v44, %s7897_s21  ;;  %v6617_v39 = vld [vmem:[%s630_s30 + $0x30] sm:$0xff]  ;;  %v6618_v44 = vld [vmem:[%s630_s30 + $0x38] sm:$0xff] }
0x107d   : > { %v6555_v28 = vpop.permute.xlu0 %6554 }
0x107e   : > { %v6565_v20 = vmul.f32 %v6555_v28, %v12207_v42  ;;  %v6728_v28 = vld [vmem:[%s635_s17] sm:$0xff] }
0x1080   : > { %6591 = vrot.lane.b32.xlu1 %v6565_v20, %s7897_s21  ;;  %6622 = vperm.xlu0 %7680, %v6611_v24   ;;  %v6729_v24 = vld [vmem:[%s635_s17 + $0x8] sm:$0xff]  ;;  %v6730_v20 = vld [vmem:[%s635_s17 + $0x10] sm:$0xff] }
0x1084   : > { %6627 = vperm.xlu1 %7681, %v6612_v54   ;;  %6632 = vperm.xlu0 %7680, %v6613_v38   ;;  %v6731_v54 = vld [vmem:[%s635_s17 + $0x18] sm:$0xff]  ;;  %v6732_v38 = vld [vmem:[%s635_s17 + $0x20] sm:$0xff] }
0x1088   : > { %6637 = vperm.xlu1 %7681, %v6614_v35   ;;  %6642 = vperm.xlu0 %7680, %v6615_v16   ;;  %v6733_v35 = vld [vmem:[%s635_s17 + $0x28] sm:$0xff]  ;;  %v6734_v16 = vld [vmem:[%s635_s17 + $0x30] sm:$0xff] }
0x108c   : > { %6647 = vperm.xlu1 %7681, %v6616_v50   ;;  %6652 = vperm.xlu0 %7680, %v6617_v39   ;;  %v6735_v50 = vld [vmem:[%s635_s17 + $0x38] sm:$0xff]  ;;  %v6791_v39 = vld [vmem:[%s640_s13] sm:$0xff] }
0x1090   : > { %6657 = vperm.xlu1 %7681, %v6618_v44   ;;  %6662 = vperm.xlu0 %7680, %v6619_v55   ;;  %v6736_v55 = vld [vmem:[%s635_s17 + $0x40] sm:$0xff]  ;;  %v6792_v44 = vld [vmem:[%s640_s13 + $0x8] sm:$0xff] }
0x1094   : > { %6739 = vperm.xlu1 %7681, %v6728_v28   ;;  %6744 = vperm.xlu0 %7680, %v6729_v24   ;;  %v6793_v28 = vld [vmem:[%s640_s13 + $0x10] sm:$0xff]  ;;  %v6794_v24 = vld [vmem:[%s640_s13 + $0x18] sm:$0xff] }
0x1098   : > { %6749 = vperm.xlu1 %7681, %v6730_v20   ;;  %6754 = vperm.xlu0 %7680, %v6731_v54   ;;  %v6795_v20 = vld [vmem:[%s640_s13 + $0x20] sm:$0xff]  ;;  %v6796_v54 = vld [vmem:[%s640_s13 + $0x28] sm:$0xff] }
0x109c   : > { %6759 = vperm.xlu1 %7681, %v6732_v38   ;;  %6764 = vperm.xlu0 %7680, %v6733_v35   ;;  %v6797_v38 = vld [vmem:[%s640_s13 + $0x30] sm:$0xff]  ;;  %v6798_v35 = vld [vmem:[%s640_s13 + $0x38] sm:$0xff] }
0x10a0   : > { %6769 = vperm.xlu1 %7681, %v6734_v16   ;;  %6774 = vperm.xlu0 %7680, %v6735_v50  }
0x10a4   : > { %6779 = vperm.xlu1 %7681, %v6736_v55   ;;  %6802 = vperm.xlu0 %7680, %v6791_v39  }
0x10a8   : > { %6807 = vperm.xlu1 %7681, %v6792_v44   ;;  %6812 = vperm.xlu0 %7680, %v6793_v28   ;;  %v6107_v44 = vmul.f32 %v12157_v63, %v12175_v6  ;;  %v6111_v63 = vmul.f32 %v12165_v29, %v12191_v59  ;;  %v6112_v59 = vmul.f32 %v12167_v62, %v12193_v51 }
0x10aa   : > { %v6206_v28 = vadd.f32 %v12220_v46, %v6107_v44 }
0x10ac   : > { %6817 = vperm.xlu1 %7681, %v6794_v24   ;;  %6822 = vperm.xlu0 %7680, %v6795_v20   ;;  %v6109_v24 = vmul.f32 %v12161_v53, %v12183_v52  ;;  %v6110_v53 = vmul.f32 %v12163_v43, %v12185_v61  ;;  %v6210_v52 = vadd.f32 %v12228_v11, %v6111_v63  ;;  %v13441_v63 = vld [vmem:[#allocation71_spill] sm:$0xff] }
0x10ad   : > { %v6113_v43 = vmul.f32 %v12169_v58, %v12199_v10  ;;  %v6114_v11 = vmul.f32 %v12171_v1, %v12201_v2 }
0x10ae   : > { %v6309_v61 = vadd.f32 %v12273_v12, %v6210_v52 }
0x10af   : > { %v6212_v62 = vadd.f32 %v12232_v19, %v6113_v43  ;;  %v6213_v1 = vadd.f32 %v12234_v36, %v6114_v11 }
0x10b0   : > { %6827 = vperm.xlu1 %7681, %v6796_v54   ;;  %6832 = vperm.xlu0 %7680, %v6797_v38   ;;  %v6108_v54 = vmul.f32 %v12159_v47, %v12177_v8  ;;  %v6208_v38 = vadd.f32 %v12224_v57, %v6109_v24  ;;  %v6408_v58 = vadd.f32 %v12318_v15, %v6309_v61  ;;  %v13439_v24 = vld [vmem:[#allocation70_spill] sm:$0xff] }
0x10b1   : > { %v6312_v36 = vadd.f32 %v12279_v22, %v6213_v1 }
0x10b2   : > { %v6307_v6 = vadd.f32 %v12269_v34, %v6208_v38 }
0x10b4   : > { %6837 = vperm.xlu1 %7681, %v6798_v35   ;;  %6842 = vperm.xlu0 %7680, %v6799_v17   ;;  %v6305_v17 = vadd.f32 %v12265_v27, %v6206_v28  ;;  %v6406_v46 = vadd.f32 %v12314_v56, %v6307_v6  ;;  %v6209_v27 = vadd.f32 %v12226_v45, %v6110_v53 }
0x10b6   : > { %v6404_v23 = vadd.f32 %v12310_v9, %v6305_v17  ;;  %v6308_v34 = vadd.f32 %v12271_v7, %v6209_v27  ;;  %v13440_v17 = vld [vmem:[#allocation68_spill] sm:$0xff] }
0x10b8   : > { %v6503_v8 = vadd.f32 %v12355_v33, %v6404_v23  ;;  %v6211_v33 = vadd.f32 %v12230_v41, %v6112_v59  ;;  %v6407_v2 = vadd.f32 %v12316_v32, %v6308_v34 }
0x10ba   : > { %v6310_v19 = vadd.f32 %v12275_v60, %v6211_v33  ;;  %v6506_v15 = vadd.f32 %v12361_v0, %v6407_v2  ;;  %v6411_v60 = vadd.f32 %v12324_v14, %v6312_v36 }
0x10bc   : > { %v6510_v14 = vadd.f32 %v13441_v63, %v6411_v60 }
0x10e2   : > { %v6576_v16 = vpop.permute.xlu1 %6575  ;;  %v6578_v50 = vpop.permute.xlu0 %6577 }
0x10e3   : > { %v6602_v29 = vadd.f32 %v6576_v16, %v6503_v8 }
0x10e6   : > { %v6580_v55 = vpop.permute.xlu1 %6579  ;;  %v6582_v39 = vpop.permute.xlu0 %6581 }
0x10ea   : > { %v6584_v4 = vpop.permute.xlu1 %6583  ;;  %v12403_v49 = vpop.permute.xlu0 %6585 }
0x10eb   : > { %13437 = vst [vmem:[#allocation16_spill] sm:$0xff] %v12403_v49  ;;  %v6207_v49 = vadd.f32 %v12222_v26, %v6108_v54 }
0x10ed   : > { %v6306_v47 = vadd.f32 %v12267_v13, %v6207_v49  ;;  %v6505_v13 = vadd.f32 %v12359_v21, %v6406_v46  ;;  %v6311_v21 = vadd.f32 %v12277_v30, %v6212_v62 }
0x10ee   : > { %v6588_v20 = vpop.permute.xlu1 %6587  ;;  %v12414_v35 = vpop.permute.xlu0 %6589 }
0x10ef   : > { %v6405_v9 = vadd.f32 %v12312_v3, %v6306_v47  ;;  %v6115_v3 = vmul.f32 %v12173_v5, %v12207_v42  ;;  %v6604_v51 = vadd.f32 %v6580_v55, %v6505_v13  ;;  %v6507_v5 = vadd.f32 %v12363_v37, %v6408_v58  ;;  %v13438_v55 = vld [vmem:[#allocation73_spill] sm:$0xff]  ;;  %v13443_v47 = vld [vmem:[#allocation75_spill] sm:$0xff] }
0x10f0   : > { %v6410_v32 = vadd.f32 %v12322_v18, %v6311_v21  ;;  %v6409_v37 = vadd.f32 %v12320_v48, %v6310_v19  ;;  %v6609_v61 = vadd.f32 %v12414_v35, %v6510_v14 }
0x10f1   : > { %v6504_v45 = vadd.f32 %v12357_v31, %v6405_v9  ;;  %v6214_v31 = vadd.f32 %v12236_v40, %v6115_v3  ;;  %v6606_v23 = vadd.f32 %v6584_v4, %v6507_v5 }
0x10f2   : > { %v6592_v57 = vpop.permute.xlu1 %6591  ;;  %v6509_v0 = vadd.f32 %v13438_v55, %v6410_v32  ;;  %v6508_v22 = vadd.f32 %v13439_v24, %v6409_v37  ;;  %v13442_v6 = vld [vmem:[#allocation16_spill] sm:$0xff] }
0x10f3   : > { %v6603_v7 = vadd.f32 %v6578_v50, %v6504_v45  ;;  %v6313_v30 = vadd.f32 %v12281_v25, %v6214_v31  ;;  %v6605_v50 = vadd.f32 %v6582_v39, %v6506_v15 }
0x10f4   : > { %v6608_v38 = vadd.f32 %v6588_v20, %v6509_v0  ;;  %v6607_v53 = vadd.f32 %v13442_v6, %v6508_v22 }
0x10f5   : > { %v6412_v25 = vadd.f32 %v13440_v17, %v6313_v30 }
0x10f7   : > { %v6511_v8 = vadd.f32 %v13443_v47, %v6412_v25 }
0x10f9   : > { %v6610_v20 = vadd.f32 %v6592_v57, %v6511_v8 }
0x10ff   : > { %v6623_v26 = vpop.permute.xlu0 %6622 }
0x1100   : > { %v12439_v56 = vadd.f32 %v6623_v26, %v6602_v29 }
0x1102   : > { %v6683_v49 = vmin.f32 %v12439_v56, 0.0  ;;  %vm6674_vm11 = vcmp.gt.f32.partialorder %v12439_v56, 0.0 }
0x1103   : > { %v6633_v10 = vpop.permute.xlu0 %6632  ;;  %v6628_v12 = vpop.permute.xlu1 %6627 }
0x1104   : > { %v12451_v42 = vadd.f32 %v6633_v10, %v6604_v51  ;;  %v12456_v41 = vadd.f32 %v6628_v12, %v6603_v7  ;;  %v6692_v54 = vmul.f32 1.442695, %v6683_v49 }
0x1106   : > { %v6685_v44 = vmin.f32 %v12451_v42, 0.0  ;;  %v6684_v18 = vmin.f32 %v12456_v41, 0.0  ;;  %7818 = vpow2.f32 %v6692_v54  ;;  %vm6675_vm14 = vcmp.gt.f32.partialorder %v12456_v41, 0.0 }
0x1107   : > { %v6643_v40 = vpop.permute.xlu0 %6642  ;;  %v6638_v16 = vpop.permute.xlu1 %6637  ;;  %vm6676_vm4 = vcmp.gt.f32.partialorder %v12451_v42, 0.0 }
0x1108   : > { %v12465_v28 = vadd.f32 %v6643_v40, %v6606_v23  ;;  %v12469_v4 = vadd.f32 %v6638_v16, %v6605_v50  ;;  %v6696_v52 = vmul.f32 1.442695, %v6685_v44  ;;  %v6694_v27 = vmul.f32 1.442695, %v6684_v18 }
0x110a   : > { %v6687_v46 = vmin.f32 %v12465_v28, 0.0  ;;  %v6686_v9 = vmin.f32 %v12469_v4, 0.0  ;;  %7820 = vpow2.f32 %v6696_v52  ;;  %vm6677_vm5 = vcmp.gt.f32.partialorder %v12469_v4, 0.0 }
0x110b   : > { %v6653_v48 = vpop.permute.xlu0 %6652  ;;  %v6648_v39 = vpop.permute.xlu1 %6647  ;;  %7822 = vpow2.f32 %v6694_v27  ;;  %vm6678_vm10 = vcmp.gt.f32.partialorder %v12465_v28, 0.0 }
0x110c   : > { %v12476_v26 = vadd.f32 %v6653_v48, %v6608_v38  ;;  %v12479_v29 = vadd.f32 %v6648_v39, %v6607_v53  ;;  %v6700_v13 = vmul.f32 1.442695, %v6687_v46  ;;  %v6698_v45 = vmul.f32 1.442695, %v6686_v9 }
0x110e   : > { %v6689_v11 = vmin.f32 %v12476_v26, 0.0  ;;  %v6688_v3 = vmin.f32 %v12479_v29, 0.0  ;;  %7824 = vpow2.f32 %v6700_v13  ;;  %vm6679_vm6 = vcmp.gt.f32.partialorder %v12479_v29, 0.0 }
0x110f   : > { %v6663_v59 = vpop.permute.xlu0 %6662  ;;  %v6658_v43 = vpop.permute.xlu1 %6657  ;;  %7826 = vpow2.f32 %v6698_v45  ;;  %vm6680_vm8 = vcmp.gt.f32.partialorder %v12476_v26, 0.0 }
0x1110   : > { %v12483_v34 = vadd.f32 %v6663_v59, %v6610_v20  ;;  %v12486_v62 = vadd.f32 %v6658_v43, %v6609_v61  ;;  %v6704_v57 = vmul.f32 1.442695, %v6689_v11  ;;  %v6702_v35 = vmul.f32 1.442695, %v6688_v3  ;;  %v7819_v2 = vpop.eup %7818 }
0x1111   : > { %v7465_v5 = vadd.f32 -1.0, %v7819_v2 }
0x1112   : > { %v6691_v10 = vmin.f32 %v12483_v34, 0.0  ;;  %v6690_v12 = vmin.f32 %v12486_v62, 0.0  ;;  %7828 = vpow2.f32 %v6704_v57  ;;  %vm6681_vm3 = vcmp.gt.f32.partialorder %v12486_v62, 0.0 }
0x1113   : > { %v6745_v58 = vpop.permute.xlu0 %6744  ;;  %v6740_v51 = vpop.permute.xlu1 %6739  ;;  %7830 = vpow2.f32 %v6702_v35  ;;  %v6719_v23 = vsel %vm6674_vm11, %v12439_v56, %v7465_v5  ;;  %vm6682_vm1 = vcmp.gt.f32.partialorder %v12483_v34, 0.0 }
0x1114   : > { %v6708_v7 = vmul.f32 1.442695, %v6691_v10  ;;  %v6706_v31 = vmul.f32 1.442695, %v6690_v12  ;;  %v7821_v21 = vpop.eup %7820  ;;  %v6782_v50 = vmul.f32 %v6740_v51, %v6719_v23 }
0x1115   : > { %v7823_v49 = vpop.eup %7822  ;;  %v7467_v40 = vadd.f32 -1.0, %v7821_v21 }
0x1116   : > { %7832 = vpow2.f32 %v6708_v7  ;;  %v7466_v32 = vadd.f32 -1.0, %v7823_v49 }
0x1117   : > { %v6755_v33 = vpop.permute.xlu0 %6754  ;;  %v6750_v1 = vpop.permute.xlu1 %6749  ;;  %7834 = vpow2.f32 %v6706_v31  ;;  %v6721_v44 = vsel %vm6676_vm4, %v12451_v42, %v7467_v40 }
0x1118   : > { %v7825_v36 = vpop.eup %7824  ;;  %v6720_v55 = vsel %vm6675_vm14, %v12456_v41, %v7466_v32  ;;  %v6784_v25 = vmul.f32 %v6750_v1, %v6721_v44 }
0x1119   : > { %v7827_v37 = vpop.eup %7826  ;;  %v7469_v24 = vadd.f32 -1.0, %v7825_v36  ;;  %v6783_v17 = vmul.f32 %v6745_v58, %v6720_v55 }
0x111a   : > { %v7468_v0 = vadd.f32 -1.0, %v7827_v37 }
0x111b   : > { %v6765_v19 = vpop.permute.xlu0 %6764  ;;  %v6760_v15 = vpop.permute.xlu1 %6759  ;;  %v6723_v42 = vsel %vm6678_vm10, %v12465_v28, %v7469_v24 }
0x111c   : > { %v7829_v60 = vpop.eup %7828  ;;  %v6722_v41 = vsel %vm6677_vm5, %v12469_v4, %v7468_v0  ;;  %v6786_v52 = vmul.f32 %v6760_v15, %v6723_v42 }
0x111d   : > { %v7831_v18 = vpop.eup %7830  ;;  %v7471_v39 = vadd.f32 -1.0, %v7829_v60  ;;  %v6785_v8 = vmul.f32 %v6755_v33, %v6722_v41 }
0x111e   : > { %v7470_v48 = vadd.f32 -1.0, %v7831_v18 }
0x111f   : > { %v6775_v16 = vpop.permute.xlu0 %6774  ;;  %v6770_v30 = vpop.permute.xlu1 %6769  ;;  %v6725_v46 = vsel %vm6680_vm8, %v12476_v26, %v7471_v39 }
0x1120   : > { %v7833_v38 = vpop.eup %7832  ;;  %v6724_v28 = vsel %vm6679_vm6, %v12479_v29, %v7470_v48  ;;  %v6788_v13 = vmul.f32 %v6770_v30, %v6725_v46 }
0x1121   : > { %v7835_v6 = vpop.eup %7834  ;;  %v7473_v27 = vadd.f32 -1.0, %v7833_v38  ;;  %v6787_v61 = vmul.f32 %v6765_v19, %v6724_v28 }
0x1122   : > { %v7472_v4 = vadd.f32 -1.0, %v7835_v6 }
0x1123   : > { %v6803_v22 = vpop.permute.xlu0 %6802  ;;  %v6780_v54 = vpop.permute.xlu1 %6779  ;;  %v6727_v29 = vsel %vm6682_vm1, %v12483_v34, %v7473_v27 }
0x1124   : > { %v12496_v56 = vadd.f32 %v6803_v22, %v6782_v50  ;;  %v6726_v26 = vsel %vm6681_vm3, %v12486_v62, %v7472_v4  ;;  %v6790_v57 = vmul.f32 %v6780_v54, %v6727_v29 }
0x1125   : > { %v6789_v51 = vmul.f32 %v6775_v16, %v6726_v26 }
0x1126   : > { %6863 = vrot.lane.b32.xlu1 %v12496_v56, %s7874_s14 }
0x1127   : > { %v6813_v63 = vpop.permute.xlu0 %6812  ;;  %v6808_v14 = vpop.permute.xlu1 %6807 }
0x1128   : > { %v12504_v53 = vadd.f32 %v6813_v63, %v6784_v25  ;;  %v12506_v47 = vadd.f32 %v6808_v14, %v6783_v17 }
0x112a   : > { %6867 = vrot.lane.b32.xlu1 %v12504_v53, %s7874_s14  ;;  %6865 = vrot.lane.b32.xlu0 %v12506_v47, %s7874_s14 }
0x112b   : > { %v6823_v9 = vpop.permute.xlu0 %6822  ;;  %v6818_v20 = vpop.permute.xlu1 %6817 }
0x112c   : > { %v12516_v59 = vadd.f32 %v6823_v9, %v6786_v52  ;;  %v12518_v43 = vadd.f32 %v6818_v20, %v6785_v8 }
0x112e   : > { %6871 = vrot.lane.b32.xlu1 %v12516_v59, %s7874_s14  ;;  %6869 = vrot.lane.b32.xlu0 %v12518_v43, %s7874_s14 }
0x112f   : > { %v6833_v11 = vpop.permute.xlu0 %6832  ;;  %v6828_v45 = vpop.permute.xlu1 %6827 }
0x1130   : > { %v12528_v3 = vadd.f32 %v6833_v11, %v6788_v13  ;;  %v12530_v58 = vadd.f32 %v6828_v45, %v6787_v61 }
0x1132   : > { %6875 = vrot.lane.b32.xlu1 %v12528_v3, %s7874_s14  ;;  %6873 = vrot.lane.b32.xlu0 %v12530_v58, %s7874_s14 }
0x1133   : > { %v6843_v10 = vpop.permute.xlu0 %6842  ;;  %v6838_v35 = vpop.permute.xlu1 %6837 }
0x1134   : > { %v12536_v12 = vadd.f32 %v6843_v10, %v6790_v57  ;;  %v12538_v62 = vadd.f32 %v6838_v35, %v6789_v51 }
0x1136   : > { %6879 = vrot.lane.b32.xlu1 %v12536_v12, %s7874_s14  ;;  %6877 = vrot.lane.b32.xlu0 %v12538_v62, %s7874_s14  ;;  %s12669_s14 = scalar_lea.vmem %s12712_s12, %s9941_s27 }
0x113a   : > { %6901 = vrot.lane.b32.xlu1 %v12506_v47, %s7875_s20  ;;  %6899 = vrot.lane.b32.xlu0 %v12496_v56, %s7875_s20 }
0x113e   : > { %6905 = vrot.lane.b32.xlu1 %v12518_v43, %s7875_s20  ;;  %6903 = vrot.lane.b32.xlu0 %v12504_v53, %s7875_s20 }
0x1142   : > { %6909 = vrot.lane.b32.xlu1 %v12530_v58, %s7875_s20  ;;  %6907 = vrot.lane.b32.xlu0 %v12516_v59, %s7875_s20 }
0x1146   : > { %6913 = vrot.lane.b32.xlu1 %v12538_v62, %s7875_s20  ;;  %6911 = vrot.lane.b32.xlu0 %v12528_v3, %s7875_s20 }
0x114a   : > { %6935 = vrot.lane.b32.xlu1 %v12496_v56, %s7872_s26  ;;  %6915 = vrot.lane.b32.xlu0 %v12536_v12, %s7875_s20 }
0x114e   : > { %6939 = vrot.lane.b32.xlu1 %v12504_v53, %s7872_s26  ;;  %6937 = vrot.lane.b32.xlu0 %v12506_v47, %s7872_s26 }
0x1152   : > { %6943 = vrot.lane.b32.xlu1 %v12516_v59, %s7872_s26  ;;  %6941 = vrot.lane.b32.xlu0 %v12518_v43, %s7872_s26 }
0x1156   : > { %6947 = vrot.lane.b32.xlu1 %v12528_v3, %s7872_s26  ;;  %6945 = vrot.lane.b32.xlu0 %v12530_v58, %s7872_s26 }
0x115a   : > { %6951 = vrot.lane.b32.xlu1 %v12536_v12, %s7872_s26  ;;  %6949 = vrot.lane.b32.xlu0 %v12538_v62, %s7872_s26 }
0x115e   : > { %6973 = vrot.lane.b32.xlu1 %v12506_v47, %s7890_s18  ;;  %6971 = vrot.lane.b32.xlu0 %v12496_v56, %s7890_s18 }
0x1162   : > { %6977 = vrot.lane.b32.xlu1 %v12518_v43, %s7890_s18  ;;  %6975 = vrot.lane.b32.xlu0 %v12504_v53, %s7890_s18 }
0x1166   : > { %6981 = vrot.lane.b32.xlu1 %v12530_v58, %s7890_s18  ;;  %6979 = vrot.lane.b32.xlu0 %v12516_v59, %s7890_s18 }
0x116a   : > { %6985 = vrot.lane.b32.xlu1 %v12538_v62, %s7890_s18  ;;  %6983 = vrot.lane.b32.xlu0 %v12528_v3, %s7890_s18 }
0x116e   : > { %7007 = vrot.lane.b32.xlu1 %v12496_v56, %s7893_s15  ;;  %6987 = vrot.lane.b32.xlu0 %v12536_v12, %s7890_s18 }
0x1172   : > { %7011 = vrot.lane.b32.xlu1 %v12504_v53, %s7893_s15  ;;  %7009 = vrot.lane.b32.xlu0 %v12506_v47, %s7893_s15 }
0x1176   : > { %7015 = vrot.lane.b32.xlu1 %v12516_v59, %s7893_s15  ;;  %7013 = vrot.lane.b32.xlu0 %v12518_v43, %s7893_s15 }
0x117a   : > { %7019 = vrot.lane.b32.xlu1 %v12528_v3, %s7893_s15  ;;  %7017 = vrot.lane.b32.xlu0 %v12530_v58, %s7893_s15 }
0x117e   : > { %7023 = vrot.lane.b32.xlu1 %v12536_v12, %s7893_s15  ;;  %7021 = vrot.lane.b32.xlu0 %v12538_v62, %s7893_s15 }
0x1182   : > { %7045 = vrot.lane.b32.xlu1 %v12506_v47, %s7897_s21  ;;  %7043 = vrot.lane.b32.xlu0 %v12496_v56, %s7897_s21 }
0x1186   : > { %7049 = vrot.lane.b32.xlu1 %v12518_v43, %s7897_s21  ;;  %7047 = vrot.lane.b32.xlu0 %v12504_v53, %s7897_s21 }
0x118a   : > { %7053 = vrot.lane.b32.xlu1 %v12530_v58, %s7897_s21  ;;  %7051 = vrot.lane.b32.xlu0 %v12516_v59, %s7897_s21 }
0x118e   : > { %7057 = vrot.lane.b32.xlu1 %v12538_v62, %s7897_s21  ;;  %7055 = vrot.lane.b32.xlu0 %v12528_v3, %s7897_s21 }
0x1192   : > { %7079 = vrot.lane.b32.xlu1 %v12496_v56, %s7867_s16  ;;  %7059 = vrot.lane.b32.xlu0 %v12536_v12, %s7897_s21 }
0x1196   : > { %7083 = vrot.lane.b32.xlu1 %v12504_v53, %s7867_s16  ;;  %7081 = vrot.lane.b32.xlu0 %v12506_v47, %s7867_s16 }
0x1198   : > { %v6864_v34 = vpop.permute.xlu1 %6863 }
0x1199   : > { %v6890_v15 = vadd.f32 %v6864_v34, %v12496_v56 }
0x119a   : > { %7087 = vrot.lane.b32.xlu1 %v12516_v59, %s7867_s16  ;;  %7085 = vrot.lane.b32.xlu0 %v12518_v43, %s7867_s16 }
0x119c   : > { %v6866_v33 = vpop.permute.xlu0 %6865  ;;  %v6868_v1 = vpop.permute.xlu1 %6867 }
0x119d   : > { %v6891_v49 = vadd.f32 %v6866_v33, %v12506_v47  ;;  %v6892_v16 = vadd.f32 %v6868_v1, %v12504_v53 }
0x119e   : > { %7091 = vrot.lane.b32.xlu1 %v12528_v3, %s7867_s16  ;;  %7089 = vrot.lane.b32.xlu0 %v12530_v58, %s7867_s16 }
0x11a0   : > { %v6870_v2 = vpop.permute.xlu0 %6869  ;;  %v6872_v7 = vpop.permute.xlu1 %6871 }
0x11a1   : > { %v6893_v30 = vadd.f32 %v6870_v2, %v12518_v43  ;;  %v6894_v0 = vadd.f32 %v6872_v7, %v12516_v59 }
0x11a2   : > { %7095 = vrot.lane.b32.xlu1 %v12536_v12, %s7867_s16  ;;  %7093 = vrot.lane.b32.xlu0 %v12538_v62, %s7867_s16 }
0x11a4   : > { %v6874_v31 = vpop.permute.xlu0 %6873  ;;  %v6876_v21 = vpop.permute.xlu1 %6875 }
0x11a5   : > { %v6895_v44 = vadd.f32 %v6874_v31, %v12530_v58  ;;  %v6896_v56 = vadd.f32 %v6876_v21, %v12528_v3 }
0x11a8   : > { %v6878_v5 = vpop.permute.xlu0 %6877  ;;  %v6880_v19 = vpop.permute.xlu1 %6879 }
0x11a9   : > { %v6897_v17 = vadd.f32 %v6878_v5, %v12538_v62  ;;  %v6898_v42 = vadd.f32 %v6880_v19, %v12536_v12 }
0x11ac   : > { %v6900_v36 = vpop.permute.xlu0 %6899  ;;  %v6902_v32 = vpop.permute.xlu1 %6901 }
0x11ad   : > { %v6926_v23 = vadd.f32 %v6900_v36, %v6890_v15  ;;  %v6927_v40 = vadd.f32 %v6902_v32, %v6891_v49 }
0x11b0   : > { %v6904_v37 = vpop.permute.xlu0 %6903  ;;  %v6906_v50 = vpop.permute.xlu1 %6905 }
0x11b1   : > { %v6928_v60 = vadd.f32 %v6904_v37, %v6892_v16  ;;  %v6929_v55 = vadd.f32 %v6906_v50, %v6893_v30 }
0x11b4   : > { %v6908_v24 = vpop.permute.xlu0 %6907  ;;  %v6910_v22 = vpop.permute.xlu1 %6909 }
0x11b5   : > { %v6930_v54 = vadd.f32 %v6908_v24, %v6894_v0  ;;  %v6931_v18 = vadd.f32 %v6910_v22, %v6895_v44 }
0x11b8   : > { %v6912_v25 = vpop.permute.xlu0 %6911  ;;  %v6914_v38 = vpop.permute.xlu1 %6913 }
0x11b9   : > { %v6932_v41 = vadd.f32 %v6912_v25, %v6896_v56  ;;  %v6933_v48 = vadd.f32 %v6914_v38, %v6897_v17 }
0x11bc   : > { %v6916_v39 = vpop.permute.xlu0 %6915  ;;  %v6936_v63 = vpop.permute.xlu1 %6935 }
0x11bd   : > { %v6934_v14 = vadd.f32 %v6916_v39, %v6898_v42  ;;  %v6962_v6 = vadd.f32 %v6936_v63, %v6926_v23 }
0x11c0   : > { %v6938_v53 = vpop.permute.xlu0 %6937  ;;  %v6940_v47 = vpop.permute.xlu1 %6939 }
0x11c1   : > { %v6963_v8 = vadd.f32 %v6938_v53, %v6927_v40  ;;  %v6964_v52 = vadd.f32 %v6940_v47, %v6928_v60 }
0x11c4   : > { %v6942_v28 = vpop.permute.xlu0 %6941  ;;  %v6944_v4 = vpop.permute.xlu1 %6943 }
0x11c5   : > { %v6965_v46 = vadd.f32 %v6942_v28, %v6929_v55  ;;  %v6966_v27 = vadd.f32 %v6944_v4, %v6930_v54 }
0x11c8   : > { %v6946_v9 = vpop.permute.xlu0 %6945  ;;  %v6948_v20 = vpop.permute.xlu1 %6947 }
0x11c9   : > { %v6967_v59 = vadd.f32 %v6946_v9, %v6931_v18  ;;  %v6968_v43 = vadd.f32 %v6948_v20, %v6932_v41 }
0x11cc   : > { %v6950_v61 = vpop.permute.xlu0 %6949  ;;  %v6952_v13 = vpop.permute.xlu1 %6951 }
0x11cd   : > { %v12661_v26 = vadd.f32 %v6950_v61, %v6933_v48  ;;  %v12663_v29 = vadd.f32 %v6952_v13, %v6934_v14 }
0x11d0   : > { %v6972_v11 = vpop.permute.xlu0 %6971  ;;  %v6974_v45 = vpop.permute.xlu1 %6973 }
0x11d1   : > { %v6998_v40 = vadd.f32 %v6972_v11, %v6962_v6  ;;  %v6999_v50 = vadd.f32 %v6974_v45, %v6963_v8 }
0x11d4   : > { %v6976_v3 = vpop.permute.xlu0 %6975  ;;  %v6978_v58 = vpop.permute.xlu1 %6977 }
0x11d5   : > { %v7000_v60 = vadd.f32 %v6976_v3, %v6964_v52  ;;  %v7001_v18 = vadd.f32 %v6978_v58, %v6965_v46 }
0x11d8   : > { %v6980_v51 = vpop.permute.xlu0 %6979  ;;  %v6982_v57 = vpop.permute.xlu1 %6981 }
0x11d9   : > { %v7002_v56 = vadd.f32 %v6980_v51, %v6966_v27  ;;  %v7003_v6 = vadd.f32 %v6982_v57, %v6967_v59 }
0x11dc   : > { %v6984_v10 = vpop.permute.xlu0 %6983  ;;  %v6986_v35 = vpop.permute.xlu1 %6985 }
0x11dd   : > { %v7004_v53 = vadd.f32 %v6984_v10, %v6968_v43  ;;  %v7005_v13 = vadd.f32 %v6986_v35, %v12661_v26 }
0x11e0   : > { %v6988_v12 = vpop.permute.xlu0 %6987  ;;  %v7008_v62 = vpop.permute.xlu1 %7007 }
0x11e1   : > { %v7034_v37 = vadd.f32 %v7008_v62, %v6998_v40  ;;  %v7006_v59 = vadd.f32 %v6988_v12, %v12663_v29 }
0x11e4   : > { %v7010_v34 = vpop.permute.xlu0 %7009  ;;  %v7012_v33 = vpop.permute.xlu1 %7011 }
0x11e5   : > { %v7035_v24 = vadd.f32 %v7010_v34, %v6999_v50  ;;  %v7036_v22 = vadd.f32 %v7012_v33, %v7000_v60 }
0x11e8   : > { %v7014_v1 = vpop.permute.xlu0 %7013  ;;  %v7016_v2 = vpop.permute.xlu1 %7015 }
0x11e9   : > { %v7037_v42 = vadd.f32 %v7014_v1, %v7001_v18  ;;  %v7038_v39 = vadd.f32 %v7016_v2, %v7002_v56 }
0x11ec   : > { %v7018_v7 = vpop.permute.xlu0 %7017  ;;  %v7020_v31 = vpop.permute.xlu1 %7019 }
0x11ed   : > { %v7039_v27 = vadd.f32 %v7018_v7, %v7003_v6  ;;  %v7040_v9 = vadd.f32 %v7020_v31, %v7004_v53 }
0x11f0   : > { %v7022_v21 = vpop.permute.xlu0 %7021  ;;  %v7024_v5 = vpop.permute.xlu1 %7023 }
0x11f1   : > { %v7041_v57 = vadd.f32 %v7022_v21, %v7005_v13  ;;  %v7042_v10 = vadd.f32 %v7024_v5, %v7006_v59 }
0x11f4   : > { %v7044_v19 = vpop.permute.xlu0 %7043  ;;  %v7046_v15 = vpop.permute.xlu1 %7045 }
0x11f5   : > { %v7070_v55 = vadd.f32 %v7044_v19, %v7034_v37  ;;  %v7071_v17 = vadd.f32 %v7046_v15, %v7035_v24 }
0x11f8   : > { %v7048_v49 = vpop.permute.xlu0 %7047  ;;  %v7050_v36 = vpop.permute.xlu1 %7049 }
0x11f9   : > { %v7072_v25 = vadd.f32 %v7048_v49, %v7036_v22  ;;  %v7073_v47 = vadd.f32 %v7050_v36, %v7037_v42 }
0x11fc   : > { %v7052_v32 = vpop.permute.xlu0 %7051  ;;  %v7054_v23 = vpop.permute.xlu1 %7053 }
0x11fd   : > { %v7074_v8 = vadd.f32 %v7052_v32, %v7038_v39  ;;  %v7075_v43 = vadd.f32 %v7054_v23, %v7039_v27 }
0x1200   : > { %v7056_v16 = vpop.permute.xlu0 %7055  ;;  %v7058_v30 = vpop.permute.xlu1 %7057 }
0x1201   : > { %v7076_v11 = vadd.f32 %v7056_v16, %v7040_v9  ;;  %v7077_v35 = vadd.f32 %v7058_v30, %v7041_v57 }
0x1204   : > { %v7060_v0 = vpop.permute.xlu0 %7059  ;;  %v7080_v44 = vpop.permute.xlu1 %7079 }
0x1205   : > { %v7106_v54 = vadd.f32 %v7080_v44, %v7070_v55  ;;  %v7078_v29 = vadd.f32 %v7060_v0, %v7042_v10 }
0x1207   : > { %v7115_v38 = vmul.f32 0.125, %v7106_v54 }
0x1208   : > { %v7082_v41 = vpop.permute.xlu0 %7081  ;;  %v7084_v48 = vpop.permute.xlu1 %7083 }
0x1209   : > { %7125 = vst.msk [vmem:[%s12669_s14] sm:$0xff] %vm7124_vm0, %v7115_v38  ;;  %v7107_v63 = vadd.f32 %v7082_v41, %v7071_v17  ;;  %v7108_v14 = vadd.f32 %v7084_v48, %v7072_v25 }
0x120b   : > { %v7116_v52 = vmul.f32 0.125, %v7107_v63  ;;  %v7117_v28 = vmul.f32 0.125, %v7108_v14 }
0x120c   : > { %v7086_v4 = vpop.permute.xlu0 %7085  ;;  %v7088_v46 = vpop.permute.xlu1 %7087 }
0x120d   : > { %7126 = vst.msk [vmem:[%s12669_s14 + $0x8] sm:$0xff] %vm7124_vm0, %v7116_v52  ;;  %7127 = vst.msk [vmem:[%s12669_s14 + $0x10] sm:$0xff] %vm7124_vm0, %v7117_v28  ;;  %v7109_v20 = vadd.f32 %v7086_v4, %v7073_v47  ;;  %v7110_v61 = vadd.f32 %v7088_v46, %v7074_v8 }
0x120f   : > { %v7118_v45 = vmul.f32 0.125, %v7109_v20  ;;  %v7119_v3 = vmul.f32 0.125, %v7110_v61 }
0x1210   : > { %v7090_v58 = vpop.permute.xlu0 %7089  ;;  %v7092_v51 = vpop.permute.xlu1 %7091 }
0x1211   : > { %7128 = vst.msk [vmem:[%s12669_s14 + $0x18] sm:$0xff] %vm7124_vm0, %v7118_v45  ;;  %7129 = vst.msk [vmem:[%s12669_s14 + $0x20] sm:$0xff] %vm7124_vm0, %v7119_v3  ;;  %v7111_v62 = vadd.f32 %v7090_v58, %v7075_v43  ;;  %v7112_v26 = vadd.f32 %v7092_v51, %v7076_v11 }
0x1213   : > { %v7120_v12 = vmul.f32 0.125, %v7111_v62  ;;  %v7121_v34 = vmul.f32 0.125, %v7112_v26 }
0x1214   : > { %v7094_v33 = vpop.permute.xlu0 %7093  ;;  %v7096_v1 = vpop.permute.xlu1 %7095 }
0x1215   : > { %7130 = vst.msk [vmem:[%s12669_s14 + $0x28] sm:$0xff] %vm7124_vm0, %v7120_v12  ;;  %7131 = vst.msk [vmem:[%s12669_s14 + $0x30] sm:$0xff] %vm7124_vm0, %v7121_v34  ;;  %v7113_v2 = vadd.f32 %v7094_v33, %v7077_v35  ;;  %v7114_v7 = vadd.f32 %v7096_v1, %v7078_v29 }
0x1217   : > { %v7122_v31 = vmul.f32 0.125, %v7113_v2  ;;  %v7123_v21 = vmul.f32 0.125, %v7114_v7 }
0x1219   : > { %7132 = vst.msk [vmem:[%s12669_s14 + $0x38] sm:$0xff] %vm7124_vm0, %v7122_v31  ;;  %7133 = vst.msk [vmem:[%s12669_s14 + $0x40] sm:$0xff] %vm7124_vm0, %v7123_v21 }
0x121a PF: > { %s22_s23 = sadd.s32 1, %s7863_s23   ;;  %s13444_s21 = smov %s7859_s22 }
0x121b   : > { %p19_p5 = scmp.ge.s32.totalorder %s22_s23, 4   ;;  %s13445_s22 = smov %s13447_s24 }
0x121d   :  { %21 = sbr.rel (!%p19_p5) target bundleno = 2 (0x2), region = 128 }

</bundles_post_ra>
